<compile_context>
chip_gen: v7x
topology: tpu7x:2x2x1
jax: 0.10.0
libtpu: 0.0.40
codegen_flags: <defaults>
</compile_context>

<pallas_src>
import functools

import jax
import jax.numpy as jnp
from jax.experimental import pallas as pl
from jax.experimental.pallas import tpu as pltpu  # noqa: F401  (TPU backend)


# --------------------------- architecture constants ---------------------------
C1_OC, C1_K, C1_S = 32, 11, 4            # Conv2d(1, 32, 11, 4)
P1_K, P1_S = 3, 2                        # MaxPool2d(3, 2)
C2_OC, C2_K = 85, 5                      # Conv2d(32, 85, 5)
P2_K, P2_S = 3, 2                        # MaxPool2d(3, 2)
C3_OC = 85                               # Conv2d(85, 85, 1)
HIDDEN = 5
IMG = 100
H1 = (IMG - C1_K) // C1_S + 1            # 23  conv1 output
Q1 = (H1 - P1_K) // P1_S + 1             # 11  pool1 output
H2 = Q1 - C2_K + 1                       # 7   conv2 output
Q2 = (H2 - P2_K) // P2_S + 1             # 3   pool2 / conv3 output
FLAT = C3_OC * Q2 * Q2                   # 765


# ------------------------------- Pallas kernels -------------------------------

def _sigmoid(x):
    # exp on the EUP + approximate reciprocal on the EUP (free VLIW slot),
    # saturates correctly for large |x|.
    return pl.reciprocal(1.0 + jnp.exp(-x), approx=True)


def _conv1_pool1_kernel(p1_ref, w1_ref, b1_ref, o_ref):
    """Fused conv1 + bias + ReLU + maxpool1.

    p1_ref: (9, 121, G1) bf16  im2col patches grouped by pool-window offset
    w1_ref: (32, 121)    bf16  conv1 weights (channel-major GEMM LHS)
    b1_ref: (32, 1)      f32
    o_ref : (32, G1)     bf16  pool1 activations, channel-major, lane-dense
    """
    w1 = w1_ref[...]
    m = jnp.dot(w1, p1_ref[0], preferred_element_type=jnp.float32)
    for k in range(1, P1_K * P1_K):      # static unroll, running max on the VPU
        m = jnp.maximum(m, jnp.dot(w1, p1_ref[k],
                                   preferred_element_type=jnp.float32))
    # bias is constant over the pool window and ReLU is monotone, so
    # pool(relu(conv + b)) == relu(max_k(conv_k) + b).
    o_ref[...] = jnp.maximum(m + b1_ref[...], 0.0).astype(o_ref.dtype)


def _tail_kernel(p2_ref, w2_ref, b2_ref, w3_ref, b3_ref, w1g_ref, bf1_ref,
                 wf2_ref, bf2_ref, wo_ref, bo_ref, o_ref, *, n_batch):
    """Fused conv2 + ReLU + maxpool2 + conv3 + ReLU + FC1 + FC2 + FC3.

    p2_ref : (9, 800, 9*N) bf16  conv2 im2col patches grouped by pool offset
    w2_ref : (85, 800) bf16      conv2 weights ((kh,kw,c)-ordered columns)
    w3_ref : (85, 85)  bf16      conv3 1x1 weights
    w1g_ref: (9, H, 85) bf16     FC1 weights regrouped per spatial position
    wf2/wo : f32 FC weights;  b*: f32 column-vector biases
    o_ref  : (1, N) f32
    """
    # conv2 + maxpool2: running elementwise max over the 9 window offsets.
    w2 = w2_ref[...]
    m = jnp.dot(w2, p2_ref[0], preferred_element_type=jnp.float32)
    for k in range(1, P2_K * P2_K):
        m = jnp.maximum(m, jnp.dot(w2, p2_ref[k],
                                   preferred_element_type=jnp.float32))
    act2 = jnp.maximum(m + b2_ref[...], 0.0).astype(jnp.bfloat16)     # (85, 9N)

    # conv3 (1x1) + ReLU, still channel-major.
    act3 = jnp.dot(w3_ref[...], act2,
                   preferred_element_type=jnp.float32) + b3_ref[...]
    act3 = jnp.maximum(act3, 0.0).astype(jnp.bfloat16)                # (85, 9N)

    # FC1 over the flattened (c, i, j) features: one small GEMM per spatial
    # position s = i*3+j; columns s*N:(s+1)*N hold that position's batch.
    acc = jnp.dot(w1g_ref[0], act3[:, 0:n_batch],
                  preferred_element_type=jnp.float32)
    for s in range(1, Q2 * Q2):
        acc = acc + jnp.dot(w1g_ref[s],
                            act3[:, s * n_batch:(s + 1) * n_batch],
                            preferred_element_type=jnp.float32)
    h1 = _sigmoid(acc + bf1_ref[...])                                 # (H, N)
    h2 = _sigmoid(jnp.dot(wf2_ref[...], h1,
                          preferred_element_type=jnp.float32) + bf2_ref[...])
    out = _sigmoid(jnp.dot(wo_ref[...], h2,
                           preferred_element_type=jnp.float32) + bo_ref[...])
    o_ref[...] = out.astype(o_ref.dtype)                              # (1, N)


# ------------------------------ pallas_call wrappers ------------------------------

def _full_spec(shape):
    nd = len(shape)
    return pl.BlockSpec(shape, lambda i, _nd=nd: (0,) * _nd)


def conv1_pool1(p1, w1, b1):
    g1 = p1.shape[2]
    return pl.pallas_call(
        _conv1_pool1_kernel,
        out_shape=jax.ShapeDtypeStruct((C1_OC, g1), jnp.bfloat16),
        grid=(1,),
        in_specs=[_full_spec(p1.shape), _full_spec(w1.shape), _full_spec(b1.shape)],
        out_specs=_full_spec((C1_OC, g1)),
    )(p1, w1, b1)


def tail(p2, prep, n_batch):
    kernel = functools.partial(_tail_kernel, n_batch=n_batch)
    args = (p2, prep["w2"], prep["b2"], prep["w3"], prep["b3"],
            prep["w1g"], prep["bf1"], prep["wf2"], prep["bf2"],
            prep["wo"], prep["bo"])
    return pl.pallas_call(
        kernel,
        out_shape=jax.ShapeDtypeStruct((1, n_batch), jnp.float32),
        grid=(1,),
        in_specs=[_full_spec(a.shape) for a in args],
        out_specs=_full_spec((1, n_batch)),
    )(*args)


# ------------------------------ plain-JAX glue ------------------------------
# im2col patches grouped by pool-window offset; built with strided slices and
# stacks only (no 5-D transpose materialisation).

def _conv1_patch_groups(x):
    """x: (N, 1, 100, 100) -> (9, 121, Q1*Q1*N) bf16."""
    n = x.shape[0]
    xb = x[:, 0, :, :].astype(jnp.bfloat16).transpose(1, 2, 0)    # (100, 100, N)
    cols = []
    for kh in range(C1_K):
        for kw in range(C1_K):
            cols.append(jax.lax.slice(
                xb, (kh, kw, 0),
                (kh + (H1 - 1) * C1_S + 1, kw + (H1 - 1) * C1_S + 1, n),
                (C1_S, C1_S, 1)))                                 # (23, 23, N)
    p_full = jnp.stack(cols, axis=0)                              # (121, 23, 23, N)
    groups = []
    for dy in range(P1_K):
        for dx in range(P1_K):
            g = jax.lax.slice(
                p_full, (0, dy, dx, 0),
                (p_full.shape[0], dy + (Q1 - 1) * P1_S + 1,
                 dx + (Q1 - 1) * P1_S + 1, n),
                (1, P1_S, P1_S, 1))                               # (121, 11, 11, N)
            groups.append(g.reshape(p_full.shape[0], Q1 * Q1 * n))
    return jnp.stack(groups, axis=0)                              # (9, 121, 242)


def _conv2_patch_groups(pool1):
    """pool1: (32, 11, 11, N) bf16 -> (9, 800, Q2*Q2*N) bf16."""
    n = pool1.shape[-1]
    cols = []
    for kh in range(C2_K):
        for kw in range(C2_K):
            cols.append(jax.lax.slice(
                pool1, (0, kh, kw, 0),
                (pool1.shape[0], kh + H2, kw + H2, n)))           # (32, 7, 7, N)
    p_full = jnp.concatenate(cols, axis=0)                        # (800, 7, 7, N)
    groups = []
    for dy in range(P2_K):
        for dx in range(P2_K):
            g = jax.lax.slice(
                p_full, (0, dy, dx, 0),
                (p_full.shape[0], dy + (Q2 - 1) * P2_S + 1,
                 dx + (Q2 - 1) * P2_S + 1, n),
                (1, P2_S, P2_S, 1))                               # (800, 3, 3, N)
            groups.append(g.reshape(p_full.shape[0], Q2 * Q2 * n))
    return jnp.stack(groups, axis=0)                              # (9, 800, 18)


# ------------------------------- forward pass -------------------------------

def three_layer_blink_forward(x, prep):
    n = x.shape[0]
    p1 = _conv1_patch_groups(x)                                   # (9, 121, 242)
    pool1 = conv1_pool1(p1, prep["w1"], prep["b1"])               # (32, 242) bf16
    pool1 = pool1.reshape(C1_OC, Q1, Q1, n)                       # (32, 11, 11, N)
    p2 = _conv2_patch_groups(pool1)                               # (9, 800, 18)
    out = tail(p2, prep, n)                                       # (1, N)
    return out.reshape(n, 1)


# -------------------------------- parameters --------------------------------

def _init_conv(key, oc, c, kh, kw):
    fan_in = c * kh * kw
    bound = 1.0 / float(fan_in) ** 0.5
    k_w, k_b = jax.random.split(key)
    w = jax.random.uniform(k_w, (oc, c, kh, kw), jnp.float32, -bound, bound)
    b = jax.random.uniform(k_b, (oc,), jnp.float32, -bound, bound)
    return w, b


def _init_linear(key, in_f, out_f):
    bound = 1.0 / float(in_f) ** 0.5
    k_w, k_b = jax.random.split(key)
    w = jax.random.uniform(k_w, (out_f, in_f), jnp.float32, -bound, bound)
    b = jax.random.uniform(k_b, (out_f,), jnp.float32, -bound, bound)
    return w, b


def init_params(key, hidden_nodes=HIDDEN):
    ks = jax.random.split(key, 6)
    c1w, c1b = _init_conv(ks[0], C1_OC, 1, C1_K, C1_K)
    c2w, c2b = _init_conv(ks[1], C2_OC, C1_OC, C2_K, C2_K)
    c3w, c3b = _init_conv(ks[2], C3_OC, C2_OC, 1, 1)
    f1w, f1b = _init_linear(ks[3], FLAT, hidden_nodes)
    f2w, f2b = _init_linear(ks[4], 5, hidden_nodes)
    ow, ob = _init_linear(ks[5], hidden_nodes, 1)
    return dict(c1w=c1w, c1b=c1b, c2w=c2w, c2b=c2b, c3w=c3w, c3b=c3b,
                f1w=f1w, f1b=f1b, f2w=f2w, f2b=f2b, ow=ow, ob=ob)


def prepare_params(params):
    """One-time weight re-layouts + bf16 casts, hoisted out of the hot path."""
    h = params["f1w"].shape[0]
    return dict(
        # conv1: (32, 1, 11, 11) -> (32, 121), channel-major GEMM LHS.
        w1=params["c1w"].reshape(C1_OC, C1_K * C1_K).astype(jnp.bfloat16),
        b1=params["c1b"].reshape(C1_OC, 1).astype(jnp.float32),
        # conv2: (85, 32, 5, 5) -> (85, 800) with columns ordered (kh, kw, c)
        # to match the patch layout built in _conv2_patch_groups.
        w2=params["c2w"].transpose(0, 2, 3, 1)
            .reshape(C2_OC, C2_K * C2_K * C1_OC).astype(jnp.bfloat16),
        b2=params["c2b"].reshape(C2_OC, 1).astype(jnp.float32),
        # conv3 1x1: (85, 85, 1, 1) -> (85, 85).
        w3=params["c3w"].reshape(C3_OC, C2_OC).astype(jnp.bfloat16),
        b3=params["c3b"].reshape(C3_OC, 1).astype(jnp.float32),
        # FC1: (h, 765) with column index c*9 + s  ->  (9, h, 85) blocks.
        w1g=params["f1w"].reshape(h, C3_OC, Q2 * Q2).transpose(2, 0, 1)
            .astype(jnp.bfloat16),
        bf1=params["f1b"].reshape(h, 1).astype(jnp.float32),
        wf2=params["f2w"].astype(jnp.float32),
        bf2=params["f2b"].reshape(-1, 1).astype(jnp.float32),
        wo=params["ow"].astype(jnp.float32),
        bo=params["ob"].reshape(1, 1).astype(jnp.float32),
    )


if __name__ == "__main__":
    key = jax.random.PRNGKey(0)
    k_x, k_p = jax.random.split(key)
    # batch=2, single-channel 100x100 image -> 85*3*3 = 765 matches Linear(765, h).
    x = jax.random.normal(k_x, (2, 1, IMG, IMG), dtype=jnp.float32)
    params = init_params(k_p, hidden_nodes=HIDDEN)
    prep = prepare_params(params)        # one-time, outside the jitted forward

    fwd = jax.jit(three_layer_blink_forward)
    y = fwd(x, prep)
    jax.block_until_ready(y)
    assert y.shape == (2, 1)
    assert bool(jnp.all(jnp.isfinite(y)))
    print("KERNEL_OK")
</pallas_src>

<mosaic_0001>
module attributes {stable_mosaic.version = 11 : i64} {
  func.func @_conv1_pool1_kernel(%arg0: i32, %arg1: memref<9x121x242xbf16, #tpu.memory_space<vmem>>, %arg2: memref<32x121xbf16, #tpu.memory_space<vmem>>, %arg3: memref<32x1xf32, #tpu.memory_space<vmem>>, %arg4: memref<32x242xbf16, #tpu.memory_space<vmem>>) attributes {dimension_semantics = [#tpu.dimension_semantics<arbitrary>], iteration_bounds = array<i64: 1>, scalar_prefetch = 0 : i64, scratch_operands = 0 : i64, tpu.core_type = #tpu.core_type<tc>, window_params = [{pipeline_mode = #tpu.pipeline_mode<synchronous>, transform_indices = @transform_0, window_bounds = array<i64: 9, 121, 242>}, {pipeline_mode = #tpu.pipeline_mode<synchronous>, transform_indices = @transform_1, window_bounds = array<i64: 32, 121>}, {pipeline_mode = #tpu.pipeline_mode<synchronous>, transform_indices = @transform_2, window_bounds = array<i64: 32, 1>}, {pipeline_mode = #tpu.pipeline_mode<synchronous>, transform_indices = @transform_3, window_bounds = array<i64: 32, 242>}]} {
    %c0 = arith.constant 0 : index
    %c0_0 = arith.constant 0 : index
    %0 = vector.load %arg2[%c0, %c0_0] : memref<32x121xbf16, #tpu.memory_space<vmem>>, vector<32x121xbf16>
    %c0_1 = arith.constant 0 : index
    %c0_2 = arith.constant 0 : index
    %c0_3 = arith.constant 0 : index
    %1 = vector.load %arg1[%c0_1, %c0_2, %c0_3] : memref<9x121x242xbf16, #tpu.memory_space<vmem>>, vector<1x121x242xbf16>
    %2 = vector.shape_cast %1 : vector<1x121x242xbf16> to vector<121x242xbf16>
    %cst = arith.constant dense<0.000000e+00> : vector<32x242xf32>
    %3 = tpu.matmul %0, %2, %cst {dimension_numbers = #tpu.dot_dimension_numbers<[1], [0], [0], [1], [0, 0, 1, 1], [], []>} : vector<32x121xbf16>, vector<121x242xbf16>, vector<32x242xf32> -> vector<32x242xf32>
    %c1 = arith.constant 1 : index
    %c0_4 = arith.constant 0 : index
    %c0_5 = arith.constant 0 : index
    %4 = vector.load %arg1[%c1, %c0_4, %c0_5] : memref<9x121x242xbf16, #tpu.memory_space<vmem>>, vector<1x121x242xbf16>
    %5 = vector.shape_cast %4 : vector<1x121x242xbf16> to vector<121x242xbf16>
    %cst_6 = arith.constant dense<0.000000e+00> : vector<32x242xf32>
    %6 = tpu.matmul %0, %5, %cst_6 {dimension_numbers = #tpu.dot_dimension_numbers<[1], [0], [0], [1], [0, 0, 1, 1], [], []>} : vector<32x121xbf16>, vector<121x242xbf16>, vector<32x242xf32> -> vector<32x242xf32>
    %7 = arith.maximumf %3, %6 : vector<32x242xf32>
    %c2 = arith.constant 2 : index
    %c0_7 = arith.constant 0 : index
    %c0_8 = arith.constant 0 : index
    %8 = vector.load %arg1[%c2, %c0_7, %c0_8] : memref<9x121x242xbf16, #tpu.memory_space<vmem>>, vector<1x121x242xbf16>
    %9 = vector.shape_cast %8 : vector<1x121x242xbf16> to vector<121x242xbf16>
    %cst_9 = arith.constant dense<0.000000e+00> : vector<32x242xf32>
    %10 = tpu.matmul %0, %9, %cst_9 {dimension_numbers = #tpu.dot_dimension_numbers<[1], [0], [0], [1], [0, 0, 1, 1], [], []>} : vector<32x121xbf16>, vector<121x242xbf16>, vector<32x242xf32> -> vector<32x242xf32>
    %11 = arith.maximumf %7, %10 : vector<32x242xf32>
    %c3 = arith.constant 3 : index
    %c0_10 = arith.constant 0 : index
    %c0_11 = arith.constant 0 : index
    %12 = vector.load %arg1[%c3, %c0_10, %c0_11] : memref<9x121x242xbf16, #tpu.memory_space<vmem>>, vector<1x121x242xbf16>
    %13 = vector.shape_cast %12 : vector<1x121x242xbf16> to vector<121x242xbf16>
    %cst_12 = arith.constant dense<0.000000e+00> : vector<32x242xf32>
    %14 = tpu.matmul %0, %13, %cst_12 {dimension_numbers = #tpu.dot_dimension_numbers<[1], [0], [0], [1], [0, 0, 1, 1], [], []>} : vector<32x121xbf16>, vector<121x242xbf16>, vector<32x242xf32> -> vector<32x242xf32>
    %15 = arith.maximumf %11, %14 : vector<32x242xf32>
    %c4 = arith.constant 4 : index
    %c0_13 = arith.constant 0 : index
    %c0_14 = arith.constant 0 : index
    %16 = vector.load %arg1[%c4, %c0_13, %c0_14] : memref<9x121x242xbf16, #tpu.memory_space<vmem>>, vector<1x121x242xbf16>
    %17 = vector.shape_cast %16 : vector<1x121x242xbf16> to vector<121x242xbf16>
    %cst_15 = arith.constant dense<0.000000e+00> : vector<32x242xf32>
    %18 = tpu.matmul %0, %17, %cst_15 {dimension_numbers = #tpu.dot_dimension_numbers<[1], [0], [0], [1], [0, 0, 1, 1], [], []>} : vector<32x121xbf16>, vector<121x242xbf16>, vector<32x242xf32> -> vector<32x242xf32>
    %19 = arith.maximumf %15, %18 : vector<32x242xf32>
    %c5 = arith.constant 5 : index
    %c0_16 = arith.constant 0 : index
    %c0_17 = arith.constant 0 : index
    %20 = vector.load %arg1[%c5, %c0_16, %c0_17] : memref<9x121x242xbf16, #tpu.memory_space<vmem>>, vector<1x121x242xbf16>
    %21 = vector.shape_cast %20 : vector<1x121x242xbf16> to vector<121x242xbf16>
    %cst_18 = arith.constant dense<0.000000e+00> : vector<32x242xf32>
    %22 = tpu.matmul %0, %21, %cst_18 {dimension_numbers = #tpu.dot_dimension_numbers<[1], [0], [0], [1], [0, 0, 1, 1], [], []>} : vector<32x121xbf16>, vector<121x242xbf16>, vector<32x242xf32> -> vector<32x242xf32>
    %23 = arith.maximumf %19, %22 : vector<32x242xf32>
    %c6 = arith.constant 6 : index
    %c0_19 = arith.constant 0 : index
    %c0_20 = arith.constant 0 : index
    %24 = vector.load %arg1[%c6, %c0_19, %c0_20] : memref<9x121x242xbf16, #tpu.memory_space<vmem>>, vector<1x121x242xbf16>
    %25 = vector.shape_cast %24 : vector<1x121x242xbf16> to vector<121x242xbf16>
    %cst_21 = arith.constant dense<0.000000e+00> : vector<32x242xf32>
    %26 = tpu.matmul %0, %25, %cst_21 {dimension_numbers = #tpu.dot_dimension_numbers<[1], [0], [0], [1], [0, 0, 1, 1], [], []>} : vector<32x121xbf16>, vector<121x242xbf16>, vector<32x242xf32> -> vector<32x242xf32>
    %27 = arith.maximumf %23, %26 : vector<32x242xf32>
    %c7 = arith.constant 7 : index
    %c0_22 = arith.constant 0 : index
    %c0_23 = arith.constant 0 : index
    %28 = vector.load %arg1[%c7, %c0_22, %c0_23] : memref<9x121x242xbf16, #tpu.memory_space<vmem>>, vector<1x121x242xbf16>
    %29 = vector.shape_cast %28 : vector<1x121x242xbf16> to vector<121x242xbf16>
    %cst_24 = arith.constant dense<0.000000e+00> : vector<32x242xf32>
    %30 = tpu.matmul %0, %29, %cst_24 {dimension_numbers = #tpu.dot_dimension_numbers<[1], [0], [0], [1], [0, 0, 1, 1], [], []>} : vector<32x121xbf16>, vector<121x242xbf16>, vector<32x242xf32> -> vector<32x242xf32>
    %31 = arith.maximumf %27, %30 : vector<32x242xf32>
    %c8 = arith.constant 8 : index
    %c0_25 = arith.constant 0 : index
    %c0_26 = arith.constant 0 : index
    %32 = vector.load %arg1[%c8, %c0_25, %c0_26] : memref<9x121x242xbf16, #tpu.memory_space<vmem>>, vector<1x121x242xbf16>
    %33 = vector.shape_cast %32 : vector<1x121x242xbf16> to vector<121x242xbf16>
    %cst_27 = arith.constant dense<0.000000e+00> : vector<32x242xf32>
    %34 = tpu.matmul %0, %33, %cst_27 {dimension_numbers = #tpu.dot_dimension_numbers<[1], [0], [0], [1], [0, 0, 1, 1], [], []>} : vector<32x121xbf16>, vector<121x242xbf16>, vector<32x242xf32> -> vector<32x242xf32>
    %35 = arith.maximumf %31, %34 : vector<32x242xf32>
    %c0_28 = arith.constant 0 : index
    %c0_29 = arith.constant 0 : index
    %36 = vector.load %arg3[%c0_28, %c0_29] : memref<32x1xf32, #tpu.memory_space<vmem>>, vector<32x1xf32>
    %37 = vector.broadcast %36 : vector<32x1xf32> to vector<32x242xf32>
    %38 = arith.addf %35, %37 : vector<32x242xf32>
    %cst_30 = arith.constant 0.000000e+00 : f32
    %39 = vector.broadcast %cst_30 : f32 to vector<32x242xf32>
    %40 = arith.maximumf %38, %39 : vector<32x242xf32>
    %41 = arith.truncf %40 : vector<32x242xf32> to vector<32x242xbf16>
    %c0_31 = arith.constant 0 : index
    %c0_32 = arith.constant 0 : index
    %42 = vector.load %arg4[%c0_31, %c0_32] : memref<32x242xbf16, #tpu.memory_space<vmem>>, vector<32x242xbf16>
    tpu.vector_store %arg4[%c0_31, %c0_32], %41 {strides = array<i32>} : memref<32x242xbf16, #tpu.memory_space<vmem>>, vector<32x242xbf16>,
    return
  }
  func.func @transform_0(%arg0: i32) -> (i32, i32, i32) {
    %c0_i32 = arith.constant 0 : i32
    %c0_i32_0 = arith.constant 0 : i32
    %c0_i32_1 = arith.constant 0 : i32
    %c0_i32_2 = arith.constant 0 : i32
    return %c0_i32, %c0_i32_0, %c0_i32_1 : i32, i32, i32
  }
  func.func @transform_1(%arg0: i32) -> (i32, i32) {
    %c0_i32 = arith.constant 0 : i32
    %c0_i32_0 = arith.constant 0 : i32
    %c0_i32_1 = arith.constant 0 : i32
    return %c0_i32, %c0_i32_0 : i32, i32
  }
  func.func @transform_2(%arg0: i32) -> (i32, i32) {
    %c0_i32 = arith.constant 0 : i32
    %c0_i32_0 = arith.constant 0 : i32
    %c0_i32_1 = arith.constant 0 : i32
    return %c0_i32, %c0_i32_0 : i32, i32
  }
  func.func @transform_3(%arg0: i32) -> (i32, i32) {
    %c0_i32 = arith.constant 0 : i32
    %c0_i32_0 = arith.constant 0 : i32
    %c0_i32_1 = arith.constant 0 : i32
    return %c0_i32, %c0_i32_0 : i32, i32
  }
}

module attributes {stable_mosaic.version = 11 : i64} {
  func.func @_tail_kernel(%arg0: i32, %arg1: memref<9x800x18xbf16, #tpu.memory_space<vmem>>, %arg2: memref<85x800xbf16, #tpu.memory_space<vmem>>, %arg3: memref<85x1xf32, #tpu.memory_space<vmem>>, %arg4: memref<85x85xbf16, #tpu.memory_space<vmem>>, %arg5: memref<85x1xf32, #tpu.memory_space<vmem>>, %arg6: memref<9x5x85xbf16, #tpu.memory_space<vmem>>, %arg7: memref<5x1xf32, #tpu.memory_space<vmem>>, %arg8: memref<5x5xf32, #tpu.memory_space<vmem>>, %arg9: memref<5x1xf32, #tpu.memory_space<vmem>>, %arg10: memref<1x5xf32, #tpu.memory_space<vmem>>, %arg11: memref<1x1xf32, #tpu.memory_space<vmem>>, %arg12: memref<1x2xf32, #tpu.memory_space<vmem>>) attributes {dimension_semantics = [#tpu.dimension_semantics<arbitrary>], iteration_bounds = array<i64: 1>, scalar_prefetch = 0 : i64, scratch_operands = 0 : i64, tpu.core_type = #tpu.core_type<tc>, window_params = [{pipeline_mode = #tpu.pipeline_mode<synchronous>, transform_indices = @transform_0, window_bounds = array<i64: 9, 800, 18>}, {pipeline_mode = #tpu.pipeline_mode<synchronous>, transform_indices = @transform_1, window_bounds = array<i64: 85, 800>}, {pipeline_mode = #tpu.pipeline_mode<synchronous>, transform_indices = @transform_2, window_bounds = array<i64: 85, 1>}, {pipeline_mode = #tpu.pipeline_mode<synchronous>, transform_indices = @transform_3, window_bounds = array<i64: 85, 85>}, {pipeline_mode = #tpu.pipeline_mode<synchronous>, transform_indices = @transform_4, window_bounds = array<i64: 85, 1>}, {pipeline_mode = #tpu.pipeline_mode<synchronous>, transform_indices = @transform_5, window_bounds = array<i64: 9, 5, 85>}, {pipeline_mode = #tpu.pipeline_mode<synchronous>, transform_indices = @transform_6, window_bounds = array<i64: 5, 1>}, {pipeline_mode = #tpu.pipeline_mode<synchronous>, transform_indices = @transform_7, window_bounds = array<i64: 5, 5>}, {pipeline_mode = #tpu.pipeline_mode<synchronous>, transform_indices = @transform_8, window_bounds = array<i64: 5, 1>}, {pipeline_mode = #tpu.pipeline_mode<synchronous>, transform_indices = @transform_9, window_bounds = array<i64: 1, 5>}, {pipeline_mode = #tpu.pipeline_mode<synchronous>, transform_indices = @transform_10, window_bounds = array<i64: 1, 1>}, {pipeline_mode = #tpu.pipeline_mode<synchronous>, transform_indices = @transform_11, window_bounds = array<i64: 1, 2>}]} {
    %c0 = arith.constant 0 : index
    %c0_0 = arith.constant 0 : index
    %0 = vector.load %arg2[%c0, %c0_0] : memref<85x800xbf16, #tpu.memory_space<vmem>>, vector<85x800xbf16>
    %c0_1 = arith.constant 0 : index
    %c0_2 = arith.constant 0 : index
    %c0_3 = arith.constant 0 : index
    %1 = vector.load %arg1[%c0_1, %c0_2, %c0_3] : memref<9x800x18xbf16, #tpu.memory_space<vmem>>, vector<1x800x18xbf16>
    %2 = vector.shape_cast %1 : vector<1x800x18xbf16> to vector<800x18xbf16>
    %cst = arith.constant dense<0.000000e+00> : vector<85x18xf32>
    %3 = tpu.matmul %0, %2, %cst {dimension_numbers = #tpu.dot_dimension_numbers<[1], [0], [0], [1], [0, 0, 1, 1], [], []>} : vector<85x800xbf16>, vector<800x18xbf16>, vector<85x18xf32> -> vector<85x18xf32>
    %c1 = arith.constant 1 : index
    %c0_4 = arith.constant 0 : index
    %c0_5 = arith.constant 0 : index
    %4 = vector.load %arg1[%c1, %c0_4, %c0_5] : memref<9x800x18xbf16, #tpu.memory_space<vmem>>, vector<1x800x18xbf16>
    %5 = vector.shape_cast %4 : vector<1x800x18xbf16> to vector<800x18xbf16>
    %cst_6 = arith.constant dense<0.000000e+00> : vector<85x18xf32>
    %6 = tpu.matmul %0, %5, %cst_6 {dimension_numbers = #tpu.dot_dimension_numbers<[1], [0], [0], [1], [0, 0, 1, 1], [], []>} : vector<85x800xbf16>, vector<800x18xbf16>, vector<85x18xf32> -> vector<85x18xf32>
    %7 = arith.maximumf %3, %6 : vector<85x18xf32>
    %c2 = arith.constant 2 : index
    %c0_7 = arith.constant 0 : index
    %c0_8 = arith.constant 0 : index
    %8 = vector.load %arg1[%c2, %c0_7, %c0_8] : memref<9x800x18xbf16, #tpu.memory_space<vmem>>, vector<1x800x18xbf16>
    %9 = vector.shape_cast %8 : vector<1x800x18xbf16> to vector<800x18xbf16>
    %cst_9 = arith.constant dense<0.000000e+00> : vector<85x18xf32>
    %10 = tpu.matmul %0, %9, %cst_9 {dimension_numbers = #tpu.dot_dimension_numbers<[1], [0], [0], [1], [0, 0, 1, 1], [], []>} : vector<85x800xbf16>, vector<800x18xbf16>, vector<85x18xf32> -> vector<85x18xf32>
    %11 = arith.maximumf %7, %10 : vector<85x18xf32>
    %c3 = arith.constant 3 : index
    %c0_10 = arith.constant 0 : index
    %c0_11 = arith.constant 0 : index
    %12 = vector.load %arg1[%c3, %c0_10, %c0_11] : memref<9x800x18xbf16, #tpu.memory_space<vmem>>, vector<1x800x18xbf16>
    %13 = vector.shape_cast %12 : vector<1x800x18xbf16> to vector<800x18xbf16>
    %cst_12 = arith.constant dense<0.000000e+00> : vector<85x18xf32>
    %14 = tpu.matmul %0, %13, %cst_12 {dimension_numbers = #tpu.dot_dimension_numbers<[1], [0], [0], [1], [0, 0, 1, 1], [], []>} : vector<85x800xbf16>, vector<800x18xbf16>, vector<85x18xf32> -> vector<85x18xf32>
    %15 = arith.maximumf %11, %14 : vector<85x18xf32>
    %c4 = arith.constant 4 : index
    %c0_13 = arith.constant 0 : index
    %c0_14 = arith.constant 0 : index
    %16 = vector.load %arg1[%c4, %c0_13, %c0_14] : memref<9x800x18xbf16, #tpu.memory_space<vmem>>, vector<1x800x18xbf16>
    %17 = vector.shape_cast %16 : vector<1x800x18xbf16> to vector<800x18xbf16>
    %cst_15 = arith.constant dense<0.000000e+00> : vector<85x18xf32>
    %18 = tpu.matmul %0, %17, %cst_15 {dimension_numbers = #tpu.dot_dimension_numbers<[1], [0], [0], [1], [0, 0, 1, 1], [], []>} : vector<85x800xbf16>, vector<800x18xbf16>, vector<85x18xf32> -> vector<85x18xf32>
    %19 = arith.maximumf %15, %18 : vector<85x18xf32>
    %c5 = arith.constant 5 : index
    %c0_16 = arith.constant 0 : index
    %c0_17 = arith.constant 0 : index
    %20 = vector.load %arg1[%c5, %c0_16, %c0_17] : memref<9x800x18xbf16, #tpu.memory_space<vmem>>, vector<1x800x18xbf16>
    %21 = vector.shape_cast %20 : vector<1x800x18xbf16> to vector<800x18xbf16>
    %cst_18 = arith.constant dense<0.000000e+00> : vector<85x18xf32>
    %22 = tpu.matmul %0, %21, %cst_18 {dimension_numbers = #tpu.dot_dimension_numbers<[1], [0], [0], [1], [0, 0, 1, 1], [], []>} : vector<85x800xbf16>, vector<800x18xbf16>, vector<85x18xf32> -> vector<85x18xf32>
    %23 = arith.maximumf %19, %22 : vector<85x18xf32>
    %c6 = arith.constant 6 : index
    %c0_19 = arith.constant 0 : index
    %c0_20 = arith.constant 0 : index
    %24 = vector.load %arg1[%c6, %c0_19, %c0_20] : memref<9x800x18xbf16, #tpu.memory_space<vmem>>, vector<1x800x18xbf16>
    %25 = vector.shape_cast %24 : vector<1x800x18xbf16> to vector<800x18xbf16>
    %cst_21 = arith.constant dense<0.000000e+00> : vector<85x18xf32>
    %26 = tpu.matmul %0, %25, %cst_21 {dimension_numbers = #tpu.dot_dimension_numbers<[1], [0], [0], [1], [0, 0, 1, 1], [], []>} : vector<85x800xbf16>, vector<800x18xbf16>, vector<85x18xf32> -> vector<85x18xf32>
    %27 = arith.maximumf %23, %26 : vector<85x18xf32>
    %c7 = arith.constant 7 : index
    %c0_22 = arith.constant 0 : index
    %c0_23 = arith.constant 0 : index
    %28 = vector.load %arg1[%c7, %c0_22, %c0_23] : memref<9x800x18xbf16, #tpu.memory_space<vmem>>, vector<1x800x18xbf16>
    %29 = vector.shape_cast %28 : vector<1x800x18xbf16> to vector<800x18xbf16>
    %cst_24 = arith.constant dense<0.000000e+00> : vector<85x18xf32>
    %30 = tpu.matmul %0, %29, %cst_24 {dimension_numbers = #tpu.dot_dimension_numbers<[1], [0], [0], [1], [0, 0, 1, 1], [], []>} : vector<85x800xbf16>, vector<800x18xbf16>, vector<85x18xf32> -> vector<85x18xf32>
    %31 = arith.maximumf %27, %30 : vector<85x18xf32>
    %c8 = arith.constant 8 : index
    %c0_25 = arith.constant 0 : index
    %c0_26 = arith.constant 0 : index
    %32 = vector.load %arg1[%c8, %c0_25, %c0_26] : memref<9x800x18xbf16, #tpu.memory_space<vmem>>, vector<1x800x18xbf16>
    %33 = vector.shape_cast %32 : vector<1x800x18xbf16> to vector<800x18xbf16>
    %cst_27 = arith.constant dense<0.000000e+00> : vector<85x18xf32>
    %34 = tpu.matmul %0, %33, %cst_27 {dimension_numbers = #tpu.dot_dimension_numbers<[1], [0], [0], [1], [0, 0, 1, 1], [], []>} : vector<85x800xbf16>, vector<800x18xbf16>, vector<85x18xf32> -> vector<85x18xf32>
    %35 = arith.maximumf %31, %34 : vector<85x18xf32>
    %c0_28 = arith.constant 0 : index
    %c0_29 = arith.constant 0 : index
    %36 = vector.load %arg3[%c0_28, %c0_29] : memref<85x1xf32, #tpu.memory_space<vmem>>, vector<85x1xf32>
    %37 = vector.broadcast %36 : vector<85x1xf32> to vector<85x18xf32>
    %38 = arith.addf %35, %37 : vector<85x18xf32>
    %cst_30 = arith.constant 0.000000e+00 : f32
    %39 = vector.broadcast %cst_30 : f32 to vector<85x18xf32>
    %40 = arith.maximumf %38, %39 : vector<85x18xf32>
    %41 = arith.truncf %40 : vector<85x18xf32> to vector<85x18xbf16>
    %c0_31 = arith.constant 0 : index
    %c0_32 = arith.constant 0 : index
    %42 = vector.load %arg4[%c0_31, %c0_32] : memref<85x85xbf16, #tpu.memory_space<vmem>>, vector<85x85xbf16>
    %cst_33 = arith.constant dense<0.000000e+00> : vector<85x18xf32>
    %43 = tpu.matmul %42, %41, %cst_33 {dimension_numbers = #tpu.dot_dimension_numbers<[1], [0], [0], [1], [0, 0, 1, 1], [], []>} : vector<85x85xbf16>, vector<85x18xbf16>, vector<85x18xf32> -> vector<85x18xf32>
    %c0_34 = arith.constant 0 : index
    %c0_35 = arith.constant 0 : index
    %44 = vector.load %arg5[%c0_34, %c0_35] : memref<85x1xf32, #tpu.memory_space<vmem>>, vector<85x1xf32>
    %45 = vector.broadcast %44 : vector<85x1xf32> to vector<85x18xf32>
    %46 = arith.addf %43, %45 : vector<85x18xf32>
    %cst_36 = arith.constant 0.000000e+00 : f32
    %47 = vector.broadcast %cst_36 : f32 to vector<85x18xf32>
    %48 = arith.maximumf %46, %47 : vector<85x18xf32>
    %49 = arith.truncf %48 : vector<85x18xf32> to vector<85x18xbf16>
    %c0_37 = arith.constant 0 : index
    %c0_38 = arith.constant 0 : index
    %c0_39 = arith.constant 0 : index
    %50 = vector.load %arg6[%c0_37, %c0_38, %c0_39] : memref<9x5x85xbf16, #tpu.memory_space<vmem>>, vector<1x5x85xbf16>
    %51 = vector.shape_cast %50 : vector<1x5x85xbf16> to vector<5x85xbf16>
    %52 = vector.extract_strided_slice %49 {offsets = [0, 0], sizes = [85, 2], strides = [1, 1]} : vector<85x18xbf16> to vector<85x2xbf16>
    %cst_40 = arith.constant dense<0.000000e+00> : vector<5x2xf32>
    %53 = tpu.matmul %51, %52, %cst_40 {dimension_numbers = #tpu.dot_dimension_numbers<[1], [0], [0], [1], [0, 0, 1, 1], [], []>} : vector<5x85xbf16>, vector<85x2xbf16>, vector<5x2xf32> -> vector<5x2xf32>
    %c1_41 = arith.constant 1 : index
    %c0_42 = arith.constant 0 : index
    %c0_43 = arith.constant 0 : index
    %54 = vector.load %arg6[%c1_41, %c0_42, %c0_43] : memref<9x5x85xbf16, #tpu.memory_space<vmem>>, vector<1x5x85xbf16>
    %55 = vector.shape_cast %54 : vector<1x5x85xbf16> to vector<5x85xbf16>
    %56 = vector.extract_strided_slice %49 {offsets = [0, 2], sizes = [85, 2], strides = [1, 1]} : vector<85x18xbf16> to vector<85x2xbf16>
    %cst_44 = arith.constant dense<0.000000e+00> : vector<5x2xf32>
    %57 = tpu.matmul %55, %56, %cst_44 {dimension_numbers = #tpu.dot_dimension_numbers<[1], [0], [0], [1], [0, 0, 1, 1], [], []>} : vector<5x85xbf16>, vector<85x2xbf16>, vector<5x2xf32> -> vector<5x2xf32>
    %58 = arith.addf %53, %57 : vector<5x2xf32>
    %c2_45 = arith.constant 2 : index
    %c0_46 = arith.constant 0 : index
    %c0_47 = arith.constant 0 : index
    %59 = vector.load %arg6[%c2_45, %c0_46, %c0_47] : memref<9x5x85xbf16, #tpu.memory_space<vmem>>, vector<1x5x85xbf16>
    %60 = vector.shape_cast %59 : vector<1x5x85xbf16> to vector<5x85xbf16>
    %61 = vector.extract_strided_slice %49 {offsets = [0, 4], sizes = [85, 2], strides = [1, 1]} : vector<85x18xbf16> to vector<85x2xbf16>
    %cst_48 = arith.constant dense<0.000000e+00> : vector<5x2xf32>
    %62 = tpu.matmul %60, %61, %cst_48 {dimension_numbers = #tpu.dot_dimension_numbers<[1], [0], [0], [1], [0, 0, 1, 1], [], []>} : vector<5x85xbf16>, vector<85x2xbf16>, vector<5x2xf32> -> vector<5x2xf32>
    %63 = arith.addf %58, %62 : vector<5x2xf32>
    %c3_49 = arith.constant 3 : index
    %c0_50 = arith.constant 0 : index
    %c0_51 = arith.constant 0 : index
    %64 = vector.load %arg6[%c3_49, %c0_50, %c0_51] : memref<9x5x85xbf16, #tpu.memory_space<vmem>>, vector<1x5x85xbf16>
    %65 = vector.shape_cast %64 : vector<1x5x85xbf16> to vector<5x85xbf16>
    %66 = vector.extract_strided_slice %49 {offsets = [0, 6], sizes = [85, 2], strides = [1, 1]} : vector<85x18xbf16> to vector<85x2xbf16>
    %cst_52 = arith.constant dense<0.000000e+00> : vector<5x2xf32>
    %67 = tpu.matmul %65, %66, %cst_52 {dimension_numbers = #tpu.dot_dimension_numbers<[1], [0], [0], [1], [0, 0, 1, 1], [], []>} : vector<5x85xbf16>, vector<85x2xbf16>, vector<5x2xf32> -> vector<5x2xf32>
    %68 = arith.addf %63, %67 : vector<5x2xf32>
    %c4_53 = arith.constant 4 : index
    %c0_54 = arith.constant 0 : index
    %c0_55 = arith.constant 0 : index
    %69 = vector.load %arg6[%c4_53, %c0_54, %c0_55] : memref<9x5x85xbf16, #tpu.memory_space<vmem>>, vector<1x5x85xbf16>
    %70 = vector.shape_cast %69 : vector<1x5x85xbf16> to vector<5x85xbf16>
    %71 = vector.extract_strided_slice %49 {offsets = [0, 8], sizes = [85, 2], strides = [1, 1]} : vector<85x18xbf16> to vector<85x2xbf16>
    %cst_56 = arith.constant dense<0.000000e+00> : vector<5x2xf32>
    %72 = tpu.matmul %70, %71, %cst_56 {dimension_numbers = #tpu.dot_dimension_numbers<[1], [0], [0], [1], [0, 0, 1, 1], [], []>} : vector<5x85xbf16>, vector<85x2xbf16>, vector<5x2xf32> -> vector<5x2xf32>
    %73 = arith.addf %68, %72 : vector<5x2xf32>
    %c5_57 = arith.constant 5 : index
    %c0_58 = arith.constant 0 : index
    %c0_59 = arith.constant 0 : index
    %74 = vector.load %arg6[%c5_57, %c0_58, %c0_59] : memref<9x5x85xbf16, #tpu.memory_space<vmem>>, vector<1x5x85xbf16>
    %75 = vector.shape_cast %74 : vector<1x5x85xbf16> to vector<5x85xbf16>
    %76 = vector.extract_strided_slice %49 {offsets = [0, 10], sizes = [85, 2], strides = [1, 1]} : vector<85x18xbf16> to vector<85x2xbf16>
    %cst_60 = arith.constant dense<0.000000e+00> : vector<5x2xf32>
    %77 = tpu.matmul %75, %76, %cst_60 {dimension_numbers = #tpu.dot_dimension_numbers<[1], [0], [0], [1], [0, 0, 1, 1], [], []>} : vector<5x85xbf16>, vector<85x2xbf16>, vector<5x2xf32> -> vector<5x2xf32>
    %78 = arith.addf %73, %77 : vector<5x2xf32>
    %c6_61 = arith.constant 6 : index
    %c0_62 = arith.constant 0 : index
    %c0_63 = arith.constant 0 : index
    %79 = vector.load %arg6[%c6_61, %c0_62, %c0_63] : memref<9x5x85xbf16, #tpu.memory_space<vmem>>, vector<1x5x85xbf16>
    %80 = vector.shape_cast %79 : vector<1x5x85xbf16> to vector<5x85xbf16>
    %81 = vector.extract_strided_slice %49 {offsets = [0, 12], sizes = [85, 2], strides = [1, 1]} : vector<85x18xbf16> to vector<85x2xbf16>
    %cst_64 = arith.constant dense<0.000000e+00> : vector<5x2xf32>
    %82 = tpu.matmul %80, %81, %cst_64 {dimension_numbers = #tpu.dot_dimension_numbers<[1], [0], [0], [1], [0, 0, 1, 1], [], []>} : vector<5x85xbf16>, vector<85x2xbf16>, vector<5x2xf32> -> vector<5x2xf32>
    %83 = arith.addf %78, %82 : vector<5x2xf32>
    %c7_65 = arith.constant 7 : index
    %c0_66 = arith.constant 0 : index
    %c0_67 = arith.constant 0 : index
    %84 = vector.load %arg6[%c7_65, %c0_66, %c0_67] : memref<9x5x85xbf16, #tpu.memory_space<vmem>>, vector<1x5x85xbf16>
    %85 = vector.shape_cast %84 : vector<1x5x85xbf16> to vector<5x85xbf16>
    %86 = vector.extract_strided_slice %49 {offsets = [0, 14], sizes = [85, 2], strides = [1, 1]} : vector<85x18xbf16> to vector<85x2xbf16>
    %cst_68 = arith.constant dense<0.000000e+00> : vector<5x2xf32>
    %87 = tpu.matmul %85, %86, %cst_68 {dimension_numbers = #tpu.dot_dimension_numbers<[1], [0], [0], [1], [0, 0, 1, 1], [], []>} : vector<5x85xbf16>, vector<85x2xbf16>, vector<5x2xf32> -> vector<5x2xf32>
    %88 = arith.addf %83, %87 : vector<5x2xf32>
    %c8_69 = arith.constant 8 : index
    %c0_70 = arith.constant 0 : index
    %c0_71 = arith.constant 0 : index
    %89 = vector.load %arg6[%c8_69, %c0_70, %c0_71] : memref<9x5x85xbf16, #tpu.memory_space<vmem>>, vector<1x5x85xbf16>
    %90 = vector.shape_cast %89 : vector<1x5x85xbf16> to vector<5x85xbf16>
    %91 = vector.extract_strided_slice %49 {offsets = [0, 16], sizes = [85, 2], strides = [1, 1]} : vector<85x18xbf16> to vector<85x2xbf16>
    %cst_72 = arith.constant dense<0.000000e+00> : vector<5x2xf32>
    %92 = tpu.matmul %90, %91, %cst_72 {dimension_numbers = #tpu.dot_dimension_numbers<[1], [0], [0], [1], [0, 0, 1, 1], [], []>} : vector<5x85xbf16>, vector<85x2xbf16>, vector<5x2xf32> -> vector<5x2xf32>
    %93 = arith.addf %88, %92 : vector<5x2xf32>
    %c0_73 = arith.constant 0 : index
    %c0_74 = arith.constant 0 : index
    %94 = vector.load %arg7[%c0_73, %c0_74] : memref<5x1xf32, #tpu.memory_space<vmem>>, vector<5x1xf32>
    %95 = vector.broadcast %94 : vector<5x1xf32> to vector<5x2xf32>
    %96 = arith.addf %93, %95 : vector<5x2xf32>
    %cst_75 = arith.constant 0.000000e+00 : f32
    %97 = vector.broadcast %cst_75 : f32 to vector<5x2xf32>
    %98 = arith.subf %97, %96 : vector<5x2xf32>
    %99 = math.exp %98 : vector<5x2xf32>
    %cst_76 = arith.constant 1.000000e+00 : f32
    %100 = vector.broadcast %cst_76 : f32 to vector<5x2xf32>
    %101 = arith.addf %100, %99 : vector<5x2xf32>
    %102 = tpu.reciprocal %101 {approx = true} : vector<5x2xf32> -> vector<5x2xf32>
    %c0_77 = arith.constant 0 : index
    %c0_78 = arith.constant 0 : index
    %103 = vector.load %arg8[%c0_77, %c0_78] : memref<5x5xf32, #tpu.memory_space<vmem>>, vector<5x5xf32>
    %cst_79 = arith.constant dense<0.000000e+00> : vector<5x2xf32>
    %104 = tpu.matmul %103, %102, %cst_79 {dimension_numbers = #tpu.dot_dimension_numbers<[1], [0], [0], [1], [0, 0, 1, 1], [], []>} : vector<5x5xf32>, vector<5x2xf32>, vector<5x2xf32> -> vector<5x2xf32>
    %c0_80 = arith.constant 0 : index
    %c0_81 = arith.constant 0 : index
    %105 = vector.load %arg9[%c0_80, %c0_81] : memref<5x1xf32, #tpu.memory_space<vmem>>, vector<5x1xf32>
    %106 = vector.broadcast %105 : vector<5x1xf32> to vector<5x2xf32>
    %107 = arith.addf %104, %106 : vector<5x2xf32>
    %cst_82 = arith.constant 0.000000e+00 : f32
    %108 = vector.broadcast %cst_82 : f32 to vector<5x2xf32>
    %109 = arith.subf %108, %107 : vector<5x2xf32>
    %110 = math.exp %109 : vector<5x2xf32>
    %cst_83 = arith.constant 1.000000e+00 : f32
    %111 = vector.broadcast %cst_83 : f32 to vector<5x2xf32>
    %112 = arith.addf %111, %110 : vector<5x2xf32>
    %113 = tpu.reciprocal %112 {approx = true} : vector<5x2xf32> -> vector<5x2xf32>
    %c0_84 = arith.constant 0 : index
    %c0_85 = arith.constant 0 : index
    %114 = vector.load %arg10[%c0_84, %c0_85] : memref<1x5xf32, #tpu.memory_space<vmem>>, vector<1x5xf32>
    %cst_86 = arith.constant dense<0.000000e+00> : vector<1x2xf32>
    %115 = tpu.matmul %114, %113, %cst_86 {dimension_numbers = #tpu.dot_dimension_numbers<[1], [0], [0], [1], [0, 0, 1, 1], [], []>} : vector<1x5xf32>, vector<5x2xf32>, vector<1x2xf32> -> vector<1x2xf32>
    %c0_87 = arith.constant 0 : index
    %c0_88 = arith.constant 0 : index
    %116 = vector.load %arg11[%c0_87, %c0_88] : memref<1x1xf32, #tpu.memory_space<vmem>>, vector<1x1xf32>
    %117 = vector.broadcast %116 : vector<1x1xf32> to vector<1x2xf32>
    %118 = arith.addf %115, %117 : vector<1x2xf32>
    %cst_89 = arith.constant 0.000000e+00 : f32
    %119 = vector.broadcast %cst_89 : f32 to vector<1x2xf32>
    %120 = arith.subf %119, %118 : vector<1x2xf32>
    %121 = math.exp %120 : vector<1x2xf32>
    %cst_90 = arith.constant 1.000000e+00 : f32
    %122 = vector.broadcast %cst_90 : f32 to vector<1x2xf32>
    %123 = arith.addf %122, %121 : vector<1x2xf32>
    %124 = tpu.reciprocal %123 {approx = true} : vector<1x2xf32> -> vector<1x2xf32>
    %c0_91 = arith.constant 0 : index
    %c0_92 = arith.constant 0 : index
    %125 = vector.load %arg12[%c0_91, %c0_92] : memref<1x2xf32, #tpu.memory_space<vmem>>, vector<1x2xf32>
    tpu.vector_store %arg12[%c0_91, %c0_92], %124 {strides = array<i32>} : memref<1x2xf32, #tpu.memory_space<vmem>>, vector<1x2xf32>,
    return
  }
  func.func @transform_0(%arg0: i32) -> (i32, i32, i32) {
    %c0_i32 = arith.constant 0 : i32
    %c0_i32_0 = arith.constant 0 : i32
    %c0_i32_1 = arith.constant 0 : i32
    %c0_i32_2 = arith.constant 0 : i32
    return %c0_i32, %c0_i32_0, %c0_i32_1 : i32, i32, i32
  }
  func.func @transform_1(%arg0: i32) -> (i32, i32) {
    %c0_i32 = arith.constant 0 : i32
    %c0_i32_0 = arith.constant 0 : i32
    %c0_i32_1 = arith.constant 0 : i32
    return %c0_i32, %c0_i32_0 : i32, i32
  }
  func.func @transform_2(%arg0: i32) -> (i32, i32) {
    %c0_i32 = arith.constant 0 : i32
    %c0_i32_0 = arith.constant 0 : i32
    %c0_i32_1 = arith.constant 0 : i32
    return %c0_i32, %c0_i32_0 : i32, i32
  }
  func.func @transform_3(%arg0: i32) -> (i32, i32) {
    %c0_i32 = arith.constant 0 : i32
    %c0_i32_0 = arith.constant 0 : i32
    %c0_i32_1 = arith.constant 0 : i32
    return %c0_i32, %c0_i32_0 : i32, i32
  }
  func.func @transform_4(%arg0: i32) -> (i32, i32) {
    %c0_i32 = arith.constant 0 : i32
    %c0_i32_0 = arith.constant 0 : i32
    %c0_i32_1 = arith.constant 0 : i32
    return %c0_i32, %c0_i32_0 : i32, i32
  }
  func.func @transform_5(%arg0: i32) -> (i32, i32, i32) {
    %c0_i32 = arith.constant 0 : i32
    %c0_i32_0 = arith.constant 0 : i32
    %c0_i32_1 = arith.constant 0 : i32
    %c0_i32_2 = arith.constant 0 : i32
    return %c0_i32, %c0_i32_0, %c0_i32_1 : i32, i32, i32
  }
  func.func @transform_6(%arg0: i32) -> (i32, i32) {
    %c0_i32 = arith.constant 0 : i32
    %c0_i32_0 = arith.constant 0 : i32
    %c0_i32_1 = arith.constant 0 : i32
    return %c0_i32, %c0_i32_0 : i32, i32
  }
  func.func @transform_7(%arg0: i32) -> (i32, i32) {
    %c0_i32 = arith.constant 0 : i32
    %c0_i32_0 = arith.constant 0 : i32
    %c0_i32_1 = arith.constant 0 : i32
    return %c0_i32, %c0_i32_0 : i32, i32
  }
  func.func @transform_8(%arg0: i32) -> (i32, i32) {
    %c0_i32 = arith.constant 0 : i32
    %c0_i32_0 = arith.constant 0 : i32
    %c0_i32_1 = arith.constant 0 : i32
    return %c0_i32, %c0_i32_0 : i32, i32
  }
  func.func @transform_9(%arg0: i32) -> (i32, i32) {
    %c0_i32 = arith.constant 0 : i32
    %c0_i32_0 = arith.constant 0 : i32
    %c0_i32_1 = arith.constant 0 : i32
    return %c0_i32, %c0_i32_0 : i32, i32
  }
  func.func @transform_10(%arg0: i32) -> (i32, i32) {
    %c0_i32 = arith.constant 0 : i32
    %c0_i32_0 = arith.constant 0 : i32
    %c0_i32_1 = arith.constant 0 : i32
    return %c0_i32, %c0_i32_0 : i32, i32
  }
  func.func @transform_11(%arg0: i32) -> (i32, i32) {
    %c0_i32 = arith.constant 0 : i32
    %c0_i32_0 = arith.constant 0 : i32
    %c0_i32_1 = arith.constant 0 : i32
    return %c0_i32, %c0_i32_0 : i32, i32
  }
}

</mosaic_0001>

<bundles_post_ra>
// kernel: three_layer_blink_forward.2
= control target key start
LH: loop header
LB: loop body
LE: loop exit
PB: predicated region body
PF: predicated region fallthrough
CT: control target
= control target key end

     0   :  { %v2101_v1 = vmov 0   ;;  %vm130_vm0 = vcmask 1043456   ;;  %vm131_vm1 = vcmask 1044480   ;;  %v2102_v25 = vmov 65535   ;;  %s2668_s0 = inlined_call_operand.vmem [shape: bf16[9,121,242], index: 0, kind: input, shape index: {}]   ;;  %s2669_s1 = inlined_call_operand.vmem [shape: bf16[32,121], index: 1, kind: input, shape index: {}]   ;;  %s2670_s2 = inlined_call_operand.vmem [shape: f32[32,1], index: 2, kind: input, shape index: {}]   ;;  %s2671_s3 = inlined_call_operand.vmem [shape: bf16[32,242], index: 3, kind: output, shape index: {}]  }
   0x1   :  { %v1883_v0 = vld [vmem:[%s2668_s0 + $0x4] ss:$8 sps:$4 sm:$0xff]   ;;  %172 = vmatprep.mubr.bf16.mxu0 %v2101_v1  ;;  %326 = vmatprep.mubr.bf16.mxu1 %v2101_v1  ;;  %v1887_v3 = vld [vmem:[%s2668_s0] ss:$8 sps:$4 sm:$0xff]   ;;  %v1889_v5 = vld [vmem:[%s2668_s0 + $0x14] ss:$8 sps:$4 sm:$0xff]  }
   0x2   :  { %v1885_v2 = vld [vmem:[%s2668_s0 + $0x84] ss:$8 sps:$4 sm:$0xff]   ;;  %1882 = vset.pattern.permute.xlu1 %v2101_v1  ;;  %1881 = vset.pattern.permute.xlu0 %v2101_v1  ;;  %v1888_v4 = vld [vmem:[%s2668_s0 + $0x80] ss:$8 sps:$4 sm:$0xff]   ;;  %v1891_v6 = vld [vmem:[%s2668_s0 + $0x94] ss:$8 sps:$4 sm:$0xff]  }
   0x3   :  { %140 = vmatprep.subr.bf16.mxu0 %v1883_v0  ;;  %294 = vmatprep.subr.bf16.mxu1 %v1885_v2  ;;  %v1893_v7 = vld [vmem:[%s2668_s0 + $0x10] ss:$8 sps:$4 sm:$0xff]   ;;  %v1895_v9 = vld [vmem:[%s2668_s0 + $0x24] ss:$8 sps:$4 sm:$0xff]   ;;  %v1899_v11 = vld [vmem:[%s2668_s0 + $0x20] ss:$8 sps:$4 sm:$0xff]  }
   0x4   :  { %141 = vmatpush1.bf16.msra.mxu0 %v1887_v3  ;;  %295 = vmatpush1.bf16.msra.mxu1 %v1888_v4  ;;  %v1894_v8 = vld [vmem:[%s2668_s0 + $0x90] ss:$8 sps:$4 sm:$0xff]   ;;  %v1897_v10 = vld [vmem:[%s2668_s0 + $0xa4] ss:$8 sps:$4 sm:$0xff]   ;;  %v1900_v12 = vld [vmem:[%s2668_s0 + $0xa0] ss:$8 sps:$4 sm:$0xff]  }
   0x5   :  { %142 = vmatprep.subr.bf16.mxu0 %v1889_v5  ;;  %296 = vmatprep.subr.bf16.mxu1 %v1891_v6  ;;  %v1901_v13 = vld [vmem:[%s2668_s0 + $0x34] ss:$8 sps:$4 sm:$0xff]   ;;  %v1905_v15 = vld [vmem:[%s2668_s0 + $0x30] ss:$8 sps:$4 sm:$0xff]   ;;  %v1907_v17 = vld [vmem:[%s2668_s0 + $0x44] ss:$8 sps:$4 sm:$0xff]  }
   0x6   :  { %v1903_v14 = vld [vmem:[%s2668_s0 + $0xb4] ss:$8 sps:$4 sm:$0xff]   ;;  %v1906_v16 = vld [vmem:[%s2668_s0 + $0xb0] ss:$8 sps:$4 sm:$0xff]   ;;  %v1909_v18 = vld [vmem:[%s2668_s0 + $0xc4] ss:$8 sps:$4 sm:$0xff]  }
   0x7   :  { %v1911_v19 = vld [vmem:[%s2668_s0 + $0x40] ss:$8 sps:$4 sm:$0xff]   ;;  %v1913_v21 = vld [vmem:[%s2668_s0 + $0x54] ss:$8 sps:$4 sm:$0xff]   ;;  %v1917_v23 = vld [vmem:[%s2668_s0 + $0x50] ss:$8 sps:$4 sm:$0xff]  }
   0x8   :  { %143 = vmatpush1.bf16.msra.mxu0 %v1893_v7  ;;  %297 = vmatpush1.bf16.msra.mxu1 %v1894_v8  ;;  %v1912_v20 = vld [vmem:[%s2668_s0 + $0xc0] ss:$8 sps:$4 sm:$0xff]   ;;  %v1915_v22 = vld [vmem:[%s2668_s0 + $0xd4] ss:$8 sps:$4 sm:$0xff]   ;;  %v1918_v24 = vld [vmem:[%s2668_s0 + $0xd0] ss:$8 sps:$4 sm:$0xff]  }
   0x9   :  { %144 = vmatprep.subr.bf16.mxu0 %v1895_v9  ;;  %298 = vmatprep.subr.bf16.mxu1 %v1897_v10  ;;  %v132_v26 = vsel %vm130_vm0, 4294967295, %v2102_v25  ;;  %v1919_v27 = vld [vmem:[%s2668_s0 + $0x64] ss:$8 sps:$4 sm:$0xff]   ;;  %v1925_v29 = vld [vmem:[%s2668_s0 + $0x74] ss:$8 sps:$4 sm:$0x1f]  }
   0xa   :  { %v1921_v28 = vld [vmem:[%s2668_s0 + $0xe4] ss:$8 sps:$4 sm:$0xff]   ;;  %v1927_v30 = vld [vmem:[%s2668_s0 + $0xf4] ss:$8 sps:$4 sm:$0x1f]   ;;  %v2215_v32 = vsel %vm131_vm1, %v132_v26, 0 }
   0xb   :  { %v1923_v31 = vld [vmem:[%s2668_s0 + $0x60] ss:$8 sps:$4 sm:$0xff]   ;;  %v1929_v34 = vld [vmem:[%s2668_s0 + $0x70] ss:$8 sps:$4 sm:$0x1f]   ;;  %v138_v36 = vand.u32 %v1925_v29, %v2215_v32  ;;  %v292_v37 = vand.u32 %v1927_v30, %v2215_v32  ;;  %vm123_vm2 = vcmask 990208  }
   0xc   :  { %145 = vmatpush1.bf16.msra.mxu0 %v1899_v11  ;;  %299 = vmatpush1.bf16.msra.mxu1 %v1900_v12  ;;  %v1924_v33 = vld [vmem:[%s2668_s0 + $0xe0] ss:$8 sps:$4 sm:$0xff]   ;;  %v1930_v35 = vld [vmem:[%s2668_s0 + $0xf0] ss:$8 sps:$4 sm:$0x1f]   ;;  %v135_v38 = vand.u32 %v1929_v34, %v2215_v32  ;;  %vm1553_vm3 = vcmask 932868  }
   0xd   :  { %146 = vmatprep.subr.bf16.mxu0 %v1901_v13  ;;  %300 = vmatprep.subr.bf16.mxu1 %v1903_v14  ;;  %v289_v39 = vand.u32 %v1930_v35, %v2215_v32  ;;  %v1934_v40 = vld [vmem:[%s2668_s0 + $0x104] ss:$8 sps:$4 sm:$0xff]   ;;  %v1932_v43 = vld [vmem:[%s2668_s0 + $0x100] ss:$8 sps:$4 sm:$0xff]   ;;  %v1940_v45 = vld [vmem:[%s2668_s0 + $0x114] ss:$8 sps:$4 sm:$0xff]  }
   0xe   :  { %v1937_v41 = vld [vmem:[%s2668_s0 + $0x184] ss:$8 sps:$4 sm:$0xff]   ;;  %v1935_v44 = vld [vmem:[%s2668_s0 + $0x180] ss:$8 sps:$4 sm:$0xff]   ;;  %v1943_v46 = vld [vmem:[%s2668_s0 + $0x194] ss:$8 sps:$4 sm:$0xff]  }
   0xf   :  { %v2239_v42 = vld [vmem:[%s2669_s1] sm:$0xff]   ;;  %v1938_v47 = vld [vmem:[%s2668_s0 + $0x110] ss:$8 sps:$4 sm:$0xff]   ;;  %v2277_v52 = vld [vmem:[%s2669_s1 + $0x8] sm:$0xff]  }
  0x10   :  { %147 = vmatpush1.bf16.msra.mxu0 %v1905_v15  ;;  %301 = vmatpush1.bf16.msra.mxu1 %v1906_v16  ;;  %v1941_v48 = vld [vmem:[%s2668_s0 + $0x190] ss:$8 sps:$4 sm:$0xff]   ;;  %v1946_v49 = vld [vmem:[%s2668_s0 + $0x124] ss:$8 sps:$4 sm:$0xff]   ;;  %v1944_v51 = vld [vmem:[%s2668_s0 + $0x120] ss:$8 sps:$4 sm:$0xff]  }
  0x11   :  { %148 = vmatprep.subr.bf16.mxu0 %v1907_v17  ;;  %302 = vmatprep.subr.bf16.mxu1 %v1909_v18  ;;  %v1949_v50 = vld [vmem:[%s2668_s0 + $0x1a4] ss:$8 sps:$4 sm:$0xff]   ;;  %v1947_v53 = vld [vmem:[%s2668_s0 + $0x1a0] ss:$8 sps:$4 sm:$0xff]   ;;  %v1952_v54 = vld [vmem:[%s2668_s0 + $0x134] ss:$8 sps:$4 sm:$0xff]  }
  0x12   :  { %v1955_v55 = vld [vmem:[%s2668_s0 + $0x1b4] ss:$8 sps:$4 sm:$0xff]   ;;  %v1950_v56 = vld [vmem:[%s2668_s0 + $0x130] ss:$8 sps:$4 sm:$0xff]   ;;  %v1958_v58 = vld [vmem:[%s2668_s0 + $0x144] ss:$8 sps:$4 sm:$0xff]  }
  0x13   :  { %v1953_v57 = vld [vmem:[%s2668_s0 + $0x1b0] ss:$8 sps:$4 sm:$0xff]   ;;  %v1961_v59 = vld [vmem:[%s2668_s0 + $0x1c4] ss:$8 sps:$4 sm:$0xff]   ;;  %v1956_v60 = vld [vmem:[%s2668_s0 + $0x140] ss:$8 sps:$4 sm:$0xff]  }
  0x14   :  { %149 = vmatpush1.bf16.msra.mxu0 %v1911_v19  ;;  %303 = vmatpush1.bf16.msra.mxu1 %v1912_v20  ;;  %v1959_v61 = vld [vmem:[%s2668_s0 + $0x1c0] ss:$8 sps:$4 sm:$0xff]   ;;  %v1964_v62 = vld [vmem:[%s2668_s0 + $0x154] ss:$8 sps:$4 sm:$0xff]   ;;  %v1962_v0 = vld [vmem:[%s2668_s0 + $0x150] ss:$8 sps:$4 sm:$0xff]  }
  0x15   :  { %150 = vmatprep.subr.bf16.mxu0 %v1913_v21  ;;  %304 = vmatprep.subr.bf16.mxu1 %v1915_v22  ;;  %v1967_v63 = vld [vmem:[%s2668_s0 + $0x1d4] ss:$8 sps:$4 sm:$0xff]   ;;  %v1965_v2 = vld [vmem:[%s2668_s0 + $0x1d0] ss:$8 sps:$4 sm:$0xff]   ;;  %v1971_v3 = vld [vmem:[%s2668_s0 + $0x164] ss:$8 sps:$4 sm:$0xff]  }
  0x16   :  { %v1974_v4 = vld [vmem:[%s2668_s0 + $0x1e4] ss:$8 sps:$4 sm:$0xff]   ;;  %v1977_v5 = vld [vmem:[%s2668_s0 + $0x174] ss:$8 sps:$4 sm:$0x1f]   ;;  %vm1554_vm4 = vmor %vm1553_vm3, %vm130_vm0 }
  0x17   :  { %v1980_v6 = vld [vmem:[%s2668_s0 + $0x1f4] ss:$8 sps:$4 sm:$0x1f]   ;;  %v1969_v7 = vld [vmem:[%s2668_s0 + $0x160] ss:$8 sps:$4 sm:$0xff]   ;;  %v454_v11 = vand.u32 %v1977_v5, %v2215_v32 }
  0x18   :  { %151 = vmatpush1.bf16.msra.mxu0 %v1917_v23  ;;  %305 = vmatpush1.bf16.msra.mxu1 %v1918_v24  ;;  %v1972_v8 = vld [vmem:[%s2668_s0 + $0x1e0] ss:$8 sps:$4 sm:$0xff]   ;;  %v1975_v9 = vld [vmem:[%s2668_s0 + $0x170] ss:$8 sps:$4 sm:$0x1f]   ;;  %v616_v12 = vand.u32 %v1980_v6, %v2215_v32 }
  0x19   :  { %152 = vmatprep.subr.bf16.mxu0 %v1919_v27  ;;  %306 = vmatprep.subr.bf16.mxu1 %v1921_v28  ;;  %v1978_v10 = vld [vmem:[%s2668_s0 + $0x1f0] ss:$8 sps:$4 sm:$0x1f]   ;;  %v451_v13 = vand.u32 %v1975_v9, %v2215_v32  ;;  %v1983_v15 = vld [vmem:[%s2668_s0 + $0x204] ss:$8 sps:$4 sm:$0xff]  }
  0x1a   :  { %v613_v14 = vand.u32 %v1978_v10, %v2215_v32  ;;  %v1986_v16 = vld [vmem:[%s2668_s0 + $0x284] ss:$8 sps:$4 sm:$0xff]   ;;  %v1981_v17 = vld [vmem:[%s2668_s0 + $0x200] ss:$8 sps:$4 sm:$0xff]   ;;  %v1989_v19 = vld [vmem:[%s2668_s0 + $0x214] ss:$8 sps:$4 sm:$0xff]  }
  0x1b   :  { %v1984_v18 = vld [vmem:[%s2668_s0 + $0x280] ss:$8 sps:$4 sm:$0xff]   ;;  %v1992_v20 = vld [vmem:[%s2668_s0 + $0x294] ss:$8 sps:$4 sm:$0xff]   ;;  %v1987_v21 = vld [vmem:[%s2668_s0 + $0x210] ss:$8 sps:$4 sm:$0xff]  }
  0x1c   :  { %153 = vmatpush1.bf16.msra.mxu0 %v1923_v31  ;;  %307 = vmatpush1.bf16.msra.mxu1 %v1924_v33  ;;  %v1990_v22 = vld [vmem:[%s2668_s0 + $0x290] ss:$8 sps:$4 sm:$0xff]   ;;  %v1995_v23 = vld [vmem:[%s2668_s0 + $0x224] ss:$8 sps:$4 sm:$0xff]   ;;  %v1993_v25 = vld [vmem:[%s2668_s0 + $0x220] ss:$8 sps:$4 sm:$0xff]  }
  0x1d   :  { %154 = vmatprep.subr.bf16.mxu0 %v138_v36  ;;  %308 = vmatprep.subr.bf16.mxu1 %v292_v37  ;;  %v1998_v24 = vld [vmem:[%s2668_s0 + $0x2a4] ss:$8 sps:$4 sm:$0xff]   ;;  %v1996_v26 = vld [vmem:[%s2668_s0 + $0x2a0] ss:$8 sps:$4 sm:$0xff]   ;;  %v2001_v27 = vld [vmem:[%s2668_s0 + $0x234] ss:$8 sps:$4 sm:$0xff]  }
  0x1e   :  { %v2004_v28 = vld [vmem:[%s2668_s0 + $0x2b4] ss:$8 sps:$4 sm:$0xff]   ;;  %v1999_v29 = vld [vmem:[%s2668_s0 + $0x230] ss:$8 sps:$4 sm:$0xff]   ;;  %v2007_v31 = vld [vmem:[%s2668_s0 + $0x244] ss:$8 sps:$4 sm:$0xff]  }
  0x1f   :  { %v2002_v30 = vld [vmem:[%s2668_s0 + $0x2b0] ss:$8 sps:$4 sm:$0xff]   ;;  %v2010_v33 = vld [vmem:[%s2668_s0 + $0x2c4] ss:$8 sps:$4 sm:$0xff]   ;;  %v2005_v34 = vld [vmem:[%s2668_s0 + $0x240] ss:$8 sps:$4 sm:$0xff]  }
  0x20   :  { %155 = vmatpush1.bf16.msra.mxu0 %v135_v38  ;;  %309 = vmatpush1.bf16.msra.mxu1 %v289_v39  ;;  %v2008_v35 = vld [vmem:[%s2668_s0 + $0x2c0] ss:$8 sps:$4 sm:$0xff]   ;;  %v2013_v36 = vld [vmem:[%s2668_s0 + $0x254] ss:$8 sps:$4 sm:$0xff]   ;;  %v2011_v38 = vld [vmem:[%s2668_s0 + $0x250] ss:$8 sps:$4 sm:$0xff]  }
  0x21   :  { %456 = vmatprep.subr.bf16.mxu0 %v1934_v40  ;;  %618 = vmatprep.subr.bf16.mxu1 %v1937_v41  ;;  %v2016_v37 = vld [vmem:[%s2668_s0 + $0x2d4] ss:$8 sps:$4 sm:$0xff]   ;;  %v2014_v39 = vld [vmem:[%s2668_s0 + $0x2d0] ss:$8 sps:$4 sm:$0xff]   ;;  %v2019_v40 = vld [vmem:[%s2668_s0 + $0x264] ss:$8 sps:$4 sm:$0xff]  }
  0x22   :  { %v2025_v41 = vld [vmem:[%s2668_s0 + $0x274] ss:$8 sps:$4 sm:$0x1f]   ;;  %v2055_v9 = vld [vmem:[%s2668_s0 + $0x344] ss:$8 sps:$4 sm:$0xff]  }
  0x23   :  { %1581 = vmatmul.mubr.msk.bf16.vlgmr.msra.gmra.mrb[0].mxu0 %vm123_vm2, %v2239_v42  ;;  %1615 = vmatmul.mubr.msk.bf16.vlgmr.msra.gmra.mrb[0].mxu1 %vm123_vm2, %v2239_v42  ;;  %v2049_v5 = vld [vmem:[%s2668_s0 + $0x334] ss:$8 sps:$4 sm:$0xff]   ;;  %v2058_v10 = vld [vmem:[%s2668_s0 + $0x3c4] ss:$8 sps:$4 sm:$0xff]  }
  0x24   :  { %457 = vmatpush1.bf16.msra.mxu0 %v1932_v43  ;;  %619 = vmatpush1.bf16.msra.mxu1 %v1935_v44  ;;  %v2022_v43 = vld [vmem:[%s2668_s0 + $0x2e4] ss:$8 sps:$4 sm:$0xff]   ;;  %v2028_v44 = vld [vmem:[%s2668_s0 + $0x2f4] ss:$8 sps:$4 sm:$0x1f]  }
  0x25   :  { %458 = vmatprep.subr.bf16.mxu0 %v1940_v45  ;;  %620 = vmatprep.subr.bf16.mxu1 %v1943_v46  ;;  %v2017_v45 = vld [vmem:[%s2668_s0 + $0x260] ss:$8 sps:$4 sm:$0xff]   ;;  %v2052_v6 = vld [vmem:[%s2668_s0 + $0x3b4] ss:$8 sps:$4 sm:$0xff]  }
  0x26   :  { %182 = vmatprep.mubr.bf16.mxu0 %v2101_v1  ;;  %336 = vmatprep.mubr.bf16.mxu1 %v2101_v1  ;;  %v2020_v46 = vld [vmem:[%s2668_s0 + $0x2e0] ss:$8 sps:$4 sm:$0xff]  }
  0x28   :  { %459 = vmatpush1.bf16.msra.mxu0 %v1938_v47  ;;  %621 = vmatpush1.bf16.msra.mxu1 %v1941_v48  ;;  %v2023_v47 = vld [vmem:[%s2668_s0 + $0x270] ss:$8 sps:$4 sm:$0x1f]  }
  0x29   :  { %460 = vmatprep.subr.bf16.mxu0 %v1946_v49  ;;  %622 = vmatprep.subr.bf16.mxu1 %v1949_v50  ;;  %v2026_v48 = vld [vmem:[%s2668_s0 + $0x2f0] ss:$8 sps:$4 sm:$0x1f]   ;;  %v778_v49 = vand.u32 %v2025_v41, %v2215_v32  ;;  %v940_v50 = vand.u32 %v2028_v44, %v2215_v32  ;;  %v2089_v41 = vld [vmem:[%s2668_s0 + $0x440] ss:$8 sps:$4 sm:$0xff]  }
  0x2a   :  { %v2092_v44 = vld [vmem:[%s2668_s0 + $0x450] ss:$8 sps:$4 sm:$0xff]  }
  0x2b   :  { %1582 = vmatmul.mubr.msk.bf16.gmra.mrb[4].mxu0 %vm123_vm2, %v2277_v52  ;;  %1616 = vmatmul.mubr.msk.bf16.gmra.mrb[4].mxu1 %vm123_vm2, %v2277_v52 }
  0x2c   :  { %461 = vmatpush1.bf16.msra.mxu0 %v1944_v51  ;;  %623 = vmatpush1.bf16.msra.mxu1 %v1947_v53  ;;  %v775_v51 = vand.u32 %v2023_v47, %v2215_v32  ;;  %v937_v53 = vand.u32 %v2026_v48, %v2215_v32  ;;  %v2098_v47 = vld [vmem:[%s2668_s0 + $0x470] ss:$8 sps:$4 sm:$0x1f]  }
  0x2d   :  { %462 = vmatprep.subr.bf16.mxu0 %v1952_v54  ;;  %624 = vmatprep.subr.bf16.mxu1 %v1955_v55  ;;  %v2031_v54 = vld [vmem:[%s2668_s0 + $0x304] ss:$8 sps:$4 sm:$0xff]  }
  0x2e   :  { %488 = vmatprep.mubr.bf16.mxu0 %v2101_v1  ;;  %650 = vmatprep.mubr.bf16.mxu1 %v2101_v1  ;;  %v2034_v55 = vld [vmem:[%s2668_s0 + $0x384] ss:$8 sps:$4 sm:$0xff]  }
  0x30   :  { %463 = vmatpush1.bf16.msra.mxu0 %v1950_v56  ;;  %625 = vmatpush1.bf16.msra.mxu1 %v1953_v57  ;;  %v2029_v56 = vld [vmem:[%s2668_s0 + $0x300] ss:$8 sps:$4 sm:$0xff]  }
  0x31   :  { %464 = vmatprep.subr.bf16.mxu0 %v1958_v58  ;;  %626 = vmatprep.subr.bf16.mxu1 %v1961_v59  ;;  %v2032_v57 = vld [vmem:[%s2668_s0 + $0x380] ss:$8 sps:$4 sm:$0xff]   ;;  %v2037_v58 = vld [vmem:[%s2668_s0 + $0x314] ss:$8 sps:$4 sm:$0xff]  }
  0x32   :  { %v2040_v59 = vld [vmem:[%s2668_s0 + $0x394] ss:$8 sps:$4 sm:$0xff]  }
  0x34   :  { %465 = vmatpush1.bf16.msra.mxu0 %v1956_v60  ;;  %627 = vmatpush1.bf16.msra.mxu1 %v1959_v61  ;;  %v2035_v60 = vld [vmem:[%s2668_s0 + $0x310] ss:$8 sps:$4 sm:$0xff]  }
  0x35   :  { %466 = vmatprep.subr.bf16.mxu0 %v1964_v62  ;;  %628 = vmatprep.subr.bf16.mxu1 %v1967_v63  ;;  %v2038_v61 = vld [vmem:[%s2668_s0 + $0x390] ss:$8 sps:$4 sm:$0xff]   ;;  %v1489_v63 = vld [vmem:[%s2670_s2] sm:$0xff] }
  0x36   :  { %v1491_v62 = vld [vmem:[%s2670_s2 + $0x10] sm:$0xff]  ;;  %1495 = vperm.xlu0 %1881, %v1489_v63  }
  0x37   :  { %1505 = vperm.xlu1 %1882, %v1491_v62  }
  0x38   :  { %467 = vmatpush1.bf16.msra.mxu0 %v1962_v0  ;;  %629 = vmatpush1.bf16.msra.mxu1 %v1965_v2  ;;  %v2043_v0 = vld [vmem:[%s2668_s0 + $0x324] ss:$8 sps:$4 sm:$0xff]  }
  0x39   :  { %468 = vmatprep.subr.bf16.mxu0 %v1971_v3  ;;  %630 = vmatprep.subr.bf16.mxu1 %v1974_v4  ;;  %v2046_v2 = vld [vmem:[%s2668_s0 + $0x3a4] ss:$8 sps:$4 sm:$0xff]   ;;  %v2041_v3 = vld [vmem:[%s2668_s0 + $0x320] ss:$8 sps:$4 sm:$0xff]  }
  0x3a   :  { %v2044_v4 = vld [vmem:[%s2668_s0 + $0x3a0] ss:$8 sps:$4 sm:$0xff]  }
  0x3c   :  { %469 = vmatpush1.bf16.msra.mxu0 %v1969_v7  ;;  %631 = vmatpush1.bf16.msra.mxu1 %v1972_v8  ;;  %v2047_v7 = vld [vmem:[%s2668_s0 + $0x330] ss:$8 sps:$4 sm:$0xff]  }
  0x3d   :  { %470 = vmatprep.subr.bf16.mxu0 %v454_v11  ;;  %632 = vmatprep.subr.bf16.mxu1 %v616_v12  ;;  %v2050_v8 = vld [vmem:[%s2668_s0 + $0x3b0] ss:$8 sps:$4 sm:$0xff]   ;;  %v2053_v11 = vld [vmem:[%s2668_s0 + $0x340] ss:$8 sps:$4 sm:$0xff]  }
  0x3e   :  { %v2056_v12 = vld [vmem:[%s2668_s0 + $0x3c0] ss:$8 sps:$4 sm:$0xff]  }
  0x40   :  { %471 = vmatpush1.bf16.msra.mxu0 %v451_v13  ;;  %633 = vmatpush1.bf16.msra.mxu1 %v613_v14  ;;  %v2061_v13 = vld [vmem:[%s2668_s0 + $0x354] ss:$8 sps:$4 sm:$0xff]  }
  0x41   :  { %780 = vmatprep.subr.bf16.mxu0 %v1983_v15  ;;  %942 = vmatprep.subr.bf16.mxu1 %v1986_v16  ;;  %v2064_v14 = vld [vmem:[%s2668_s0 + $0x3d4] ss:$8 sps:$4 sm:$0xff]   ;;  %v2059_v15 = vld [vmem:[%s2668_s0 + $0x350] ss:$8 sps:$4 sm:$0xff]  }
  0x42   :  { %v2062_v16 = vld [vmem:[%s2668_s0 + $0x3d0] ss:$8 sps:$4 sm:$0xff]  }
  0x43   :  { %1649 = vmatmul.mubr.msk.bf16.vlgmr.msra.gmra.mrb[8].mxu0 %vm123_vm2, %v2239_v42  ;;  %1683 = vmatmul.mubr.msk.bf16.vlgmr.msra.gmra.mrb[8].mxu1 %vm123_vm2, %v2239_v42 }
  0x44   :  { %781 = vmatpush1.bf16.msra.mxu0 %v1981_v17  ;;  %943 = vmatpush1.bf16.msra.mxu1 %v1984_v18  ;;  %v2067_v17 = vld [vmem:[%s2668_s0 + $0x364] ss:$8 sps:$4 sm:$0xff]  }
  0x45   :  { %782 = vmatprep.subr.bf16.mxu0 %v1989_v19  ;;  %944 = vmatprep.subr.bf16.mxu1 %v1992_v20  ;;  %v2070_v18 = vld [vmem:[%s2668_s0 + $0x3e4] ss:$8 sps:$4 sm:$0xff]   ;;  %v2073_v19 = vld [vmem:[%s2668_s0 + $0x374] ss:$8 sps:$4 sm:$0x1f]  }
  0x46   :  { %498 = vmatprep.mubr.bf16.mxu0 %v2101_v1  ;;  %660 = vmatprep.mubr.bf16.mxu1 %v2101_v1  ;;  %v2076_v20 = vld [vmem:[%s2668_s0 + $0x3f4] ss:$8 sps:$4 sm:$0x1f]  }
  0x48   :  { %783 = vmatpush1.bf16.msra.mxu0 %v1987_v21  ;;  %945 = vmatpush1.bf16.msra.mxu1 %v1990_v22  ;;  %v2065_v21 = vld [vmem:[%s2668_s0 + $0x360] ss:$8 sps:$4 sm:$0xff]  }
  0x49   :  { %784 = vmatprep.subr.bf16.mxu0 %v1995_v23  ;;  %946 = vmatprep.subr.bf16.mxu1 %v1998_v24  ;;  %v2068_v22 = vld [vmem:[%s2668_s0 + $0x3e0] ss:$8 sps:$4 sm:$0xff]   ;;  %v1492_v23 = vld [vmem:[%s2670_s2 + $0x18] sm:$0xff] }
  0x4a   :  { %v1490_v24 = vld [vmem:[%s2670_s2 + $0x8] sm:$0xff]  ;;  %1510 = vperm.xlu1 %1882, %v1492_v23  }
  0x4b   :  { %1650 = vmatmul.mubr.msk.bf16.gmra.mrb[12].mxu0 %vm123_vm2, %v2277_v52  ;;  %1684 = vmatmul.mubr.msk.bf16.gmra.mrb[12].mxu1 %vm123_vm2, %v2277_v52 }
  0x4c   :  { %785 = vmatpush1.bf16.msra.mxu0 %v1993_v25  ;;  %947 = vmatpush1.bf16.msra.mxu1 %v1996_v26  ;;  %v2071_v25 = vld [vmem:[%s2668_s0 + $0x370] ss:$8 sps:$4 sm:$0x1f]  }
  0x4d   :  { %786 = vmatprep.subr.bf16.mxu0 %v2001_v27  ;;  %948 = vmatprep.subr.bf16.mxu1 %v2004_v28  ;;  %v2074_v26 = vld [vmem:[%s2668_s0 + $0x3f0] ss:$8 sps:$4 sm:$0x1f]   ;;  %v1102_v27 = vand.u32 %v2073_v19, %v2215_v32  ;;  %v1264_v28 = vand.u32 %v2076_v20, %v2215_v32 }
  0x4e   :  { %812 = vmatprep.mubr.bf16.mxu0 %v2101_v1  ;;  %974 = vmatprep.mubr.bf16.mxu1 %v2101_v1 }
  0x4f   :  { %1500 = vperm.xlu0 %1881, %v1490_v24  }
  0x50   :  { %787 = vmatpush1.bf16.msra.mxu0 %v1999_v29  ;;  %949 = vmatpush1.bf16.msra.mxu1 %v2002_v30  ;;  %v1099_v29 = vand.u32 %v2071_v25, %v2215_v32  ;;  %v1261_v30 = vand.u32 %v2074_v26, %v2215_v32 }
  0x51   :  { %788 = vmatprep.subr.bf16.mxu0 %v2007_v31  ;;  %950 = vmatprep.subr.bf16.mxu1 %v2010_v33  ;;  %v2079_v31 = vld [vmem:[%s2668_s0 + $0x404] ss:$8 sps:$4 sm:$0xff]   ;;  %v2077_v33 = vld [vmem:[%s2668_s0 + $0x400] ss:$8 sps:$4 sm:$0xff]  }
  0x54   :  { %789 = vmatpush1.bf16.msra.mxu0 %v2005_v34  ;;  %951 = vmatpush1.bf16.msra.mxu1 %v2008_v35  ;;  %v2082_v34 = vld [vmem:[%s2668_s0 + $0x414] ss:$8 sps:$4 sm:$0xff]   ;;  %v2080_v35 = vld [vmem:[%s2668_s0 + $0x410] ss:$8 sps:$4 sm:$0xff]  }
  0x55   :  { %790 = vmatprep.subr.bf16.mxu0 %v2013_v36  ;;  %952 = vmatprep.subr.bf16.mxu1 %v2016_v37  ;;  %v2085_v36 = vld [vmem:[%s2668_s0 + $0x424] ss:$8 sps:$4 sm:$0xff]   ;;  %v2083_v37 = vld [vmem:[%s2668_s0 + $0x420] ss:$8 sps:$4 sm:$0xff]  }
  0x58   :  { %791 = vmatpush1.bf16.msra.mxu0 %v2011_v38  ;;  %953 = vmatpush1.bf16.msra.mxu1 %v2014_v39  ;;  %v2088_v38 = vld [vmem:[%s2668_s0 + $0x434] ss:$8 sps:$4 sm:$0xff]   ;;  %v2086_v39 = vld [vmem:[%s2668_s0 + $0x430] ss:$8 sps:$4 sm:$0xff]  }
  0x59   :  { %792 = vmatprep.subr.bf16.mxu0 %v2019_v40  ;;  %954 = vmatprep.subr.bf16.mxu1 %v2022_v43  ;;  %v2091_v40 = vld [vmem:[%s2668_s0 + $0x444] ss:$8 sps:$4 sm:$0xff]   ;;  %v2094_v43 = vld [vmem:[%s2668_s0 + $0x454] ss:$8 sps:$4 sm:$0xff]  }
  0x5c   :  { %793 = vmatpush1.bf16.msra.mxu0 %v2017_v45  ;;  %955 = vmatpush1.bf16.msra.mxu1 %v2020_v46  ;;  %v2100_v45 = vld [vmem:[%s2668_s0 + $0x474] ss:$8 sps:$4 sm:$0x1f]   ;;  %v2095_v46 = vld [vmem:[%s2668_s0 + $0x460] ss:$8 sps:$4 sm:$0xff]  }
  0x5d   :  { %794 = vmatprep.subr.bf16.mxu0 %v778_v49  ;;  %956 = vmatprep.subr.bf16.mxu1 %v940_v50  ;;  %v1426_v48 = vand.u32 %v2100_v45, %v2215_v32  ;;  %v1423_v49 = vand.u32 %v2098_v47, %v2215_v32 }
  0x60   :  { %795 = vmatpush1.bf16.msra.mxu0 %v775_v51  ;;  %957 = vmatpush1.bf16.msra.mxu1 %v937_v53 }
  0x61   :  { %1104 = vmatprep.subr.bf16.mxu0 %v2031_v54  ;;  %1266 = vmatprep.subr.bf16.mxu1 %v2034_v55 }
  0x63   :  { %1717 = vmatmul.mubr.msk.bf16.vlgmr.msra.gmra.mrb[16].mxu0 %vm123_vm2, %v2239_v42  ;;  %1751 = vmatmul.mubr.msk.bf16.vlgmr.msra.gmra.mrb[16].mxu1 %vm123_vm2, %v2239_v42 }
  0x64   :  { %1105 = vmatpush1.bf16.msra.mxu0 %v2029_v56  ;;  %1267 = vmatpush1.bf16.msra.mxu1 %v2032_v57 }
  0x65   :  { %1106 = vmatprep.subr.bf16.mxu0 %v2037_v58  ;;  %1268 = vmatprep.subr.bf16.mxu1 %v2040_v59 }
  0x66   :  { %822 = vmatprep.mubr.bf16.mxu0 %v2101_v1  ;;  %984 = vmatprep.mubr.bf16.mxu1 %v2101_v1 }
  0x68   :  { %1107 = vmatpush1.bf16.msra.mxu0 %v2035_v60  ;;  %1269 = vmatpush1.bf16.msra.mxu1 %v2038_v61 }
  0x69   :  { %1108 = vmatprep.subr.bf16.mxu0 %v2043_v0  ;;  %1270 = vmatprep.subr.bf16.mxu1 %v2046_v2 }
  0x6b   :  { %1718 = vmatmul.mubr.msk.bf16.gmra.mrb[20].mxu0 %vm123_vm2, %v2277_v52  ;;  %1752 = vmatmul.mubr.msk.bf16.gmra.mrb[20].mxu1 %vm123_vm2, %v2277_v52 }
  0x6c   :  { %1109 = vmatpush1.bf16.msra.mxu0 %v2041_v3  ;;  %1271 = vmatpush1.bf16.msra.mxu1 %v2044_v4 }
  0x6d   :  { %1110 = vmatprep.subr.bf16.mxu0 %v2049_v5  ;;  %1272 = vmatprep.subr.bf16.mxu1 %v2052_v6 }
  0x6e   :  { %1136 = vmatprep.mubr.bf16.mxu0 %v2101_v1  ;;  %1298 = vmatprep.mubr.bf16.mxu1 %v2101_v1 }
  0x70   :  { %1111 = vmatpush1.bf16.msra.mxu0 %v2047_v7  ;;  %1273 = vmatpush1.bf16.msra.mxu1 %v2050_v8 }
  0x71   :  { %1112 = vmatprep.subr.bf16.mxu0 %v2055_v9  ;;  %1274 = vmatprep.subr.bf16.mxu1 %v2058_v10 }
  0x74   :  { %1113 = vmatpush1.bf16.msra.mxu0 %v2053_v11  ;;  %1275 = vmatpush1.bf16.msra.mxu1 %v2056_v12 }
  0x75   :  { %1114 = vmatprep.subr.bf16.mxu0 %v2061_v13  ;;  %1276 = vmatprep.subr.bf16.mxu1 %v2064_v14 }
  0x78   :  { %1115 = vmatpush1.bf16.msra.mxu0 %v2059_v15  ;;  %1277 = vmatpush1.bf16.msra.mxu1 %v2062_v16 }
  0x79   :  { %1116 = vmatprep.subr.bf16.mxu0 %v2067_v17  ;;  %1278 = vmatprep.subr.bf16.mxu1 %v2070_v18 }
  0x7c   :  { %1117 = vmatpush1.bf16.msra.mxu0 %v2065_v21  ;;  %1279 = vmatpush1.bf16.msra.mxu1 %v2068_v22 }
  0x7d   :  { %1118 = vmatprep.subr.bf16.mxu0 %v1102_v27  ;;  %1280 = vmatprep.subr.bf16.mxu1 %v1264_v28 }
  0x80   :  { %1119 = vmatpush1.bf16.msra.mxu0 %v1099_v29  ;;  %1281 = vmatpush1.bf16.msra.mxu1 %v1261_v30 }
  0x81   :  { %1428 = vmatprep.subr.bf16.mxu0 %v2079_v31  ;;  %1863 = vmatprep.subr.bf16.mxu1 %v2079_v31 }
  0x83   :  { %1785 = vmatmul.mubr.msk.bf16.vlgmr.msra.gmra.mrb[24].mxu0 %vm123_vm2, %v2239_v42  ;;  %1819 = vmatmul.mubr.msk.bf16.vlgmr.msra.gmra.mrb[24].mxu1 %vm123_vm2, %v2239_v42 }
  0x84   :  { %1429 = vmatpush1.bf16.msra.mxu0 %v2077_v33  ;;  %1871 = vmatpush1.bf16.msra.mxu1 %v2077_v33 }
  0x85   :  { %1430 = vmatprep.subr.bf16.mxu0 %v2082_v34  ;;  %1864 = vmatprep.subr.bf16.mxu1 %v2082_v34 }
  0x86   :  { %1146 = vmatprep.mubr.bf16.mxu0 %v2101_v1  ;;  %1308 = vmatprep.mubr.bf16.mxu1 %v2101_v1 }
  0x88   :  { %1431 = vmatpush1.bf16.msra.mxu0 %v2080_v35  ;;  %1872 = vmatpush1.bf16.msra.mxu1 %v2080_v35 }
  0x89   :  { %1432 = vmatprep.subr.bf16.mxu0 %v2085_v36  ;;  %1865 = vmatprep.subr.bf16.mxu1 %v2085_v36 }
  0x8b   :  { %1786 = vmatmul.mubr.msk.bf16.gmra.mrb[28].mxu0 %vm123_vm2, %v2277_v52  ;;  %1820 = vmatmul.mubr.msk.bf16.gmra.mrb[28].mxu1 %vm123_vm2, %v2277_v52 }
  0x8c   :  { %1433 = vmatpush1.bf16.msra.mxu0 %v2083_v37  ;;  %1873 = vmatpush1.bf16.msra.mxu1 %v2083_v37 }
  0x8d   :  { %1434 = vmatprep.subr.bf16.mxu0 %v2088_v38  ;;  %1866 = vmatprep.subr.bf16.mxu1 %v2088_v38 }
  0x8e   :  { %1460 = vmatprep.mubr.bf16.mxu0 %v2101_v1  ;;  %1470 = vmatprep.mubr.bf16.mxu1 %v2101_v1  ;;  %v2097_v1 = vld [vmem:[%s2668_s0 + $0x464] ss:$8 sps:$4 sm:$0xff]  }
  0x90   :  { %1435 = vmatpush1.bf16.msra.mxu0 %v2086_v39  ;;  %1874 = vmatpush1.bf16.msra.mxu1 %v2086_v39 }
  0x91   :  { %1436 = vmatprep.subr.bf16.mxu0 %v2091_v40  ;;  %1867 = vmatprep.subr.bf16.mxu1 %v2091_v40 }
  0x94   :  { %1437 = vmatpush1.bf16.msra.mxu0 %v2089_v41  ;;  %1875 = vmatpush1.bf16.msra.mxu1 %v2089_v41 }
  0x95   :  { %1438 = vmatprep.subr.bf16.mxu0 %v2094_v43  ;;  %1868 = vmatprep.subr.bf16.mxu1 %v2094_v43 }
  0x98   :  { %1439 = vmatpush1.bf16.msra.mxu0 %v2092_v44  ;;  %1876 = vmatpush1.bf16.msra.mxu1 %v2092_v44 }
  0x99   :  { %1440 = vmatprep.subr.bf16.mxu0 %v2097_v1  ;;  %1869 = vmatprep.subr.bf16.mxu1 %v2097_v1 }
  0x9c   :  { %1441 = vmatpush1.bf16.msra.mxu0 %v2095_v46  ;;  %1877 = vmatpush1.bf16.msra.mxu1 %v2095_v46 }
  0x9d   :  { %1442 = vmatprep.subr.bf16.mxu0 %v1426_v48  ;;  %1870 = vmatprep.subr.bf16.mxu1 %v1426_v48 }
  0xa0   :  { %1443 = vmatpush1.bf16.msra.mxu0 %v1423_v49  ;;  %1878 = vmatpush1.bf16.msra.mxu1 %v1423_v49 }
  0xa3   :  { %1853 = vmatmul.mubr.msk.bf16.vlgmr.msra.gmra.mrb[32].mxu0 %vm123_vm2, %v2239_v42  ;;  %1854 = vmatmul.mubr.msk.bf16.vlgmr.msra.gmra.mrb[32].mxu1 %vm123_vm2, %v2277_v52 }
  0xf6   :  { %v174_v50 = vpop.f32.mrb[0].mxu0  ;;  %v328_v51 = vpop.f32.mrb[0].mxu1 }
  0xf7   :  { %v347_v53 = vmax.f32 %v174_v50, %v328_v51  ;;  %v176_v54 = vpop.f32.mrb[1].mxu0  ;;  %v330_v55 = vpop.f32.mrb[1].mxu1 }
  0xf8   :  { %v348_v56 = vmax.f32 %v176_v54, %v330_v55  ;;  %v178_v57 = vpop.f32.mrb[2].mxu0  ;;  %v332_v58 = vpop.f32.mrb[2].mxu1 }
  0xf9   :  { %v349_v59 = vmax.f32 %v178_v57, %v332_v58  ;;  %v180_v32 = vpop.f32.mrb[3].mxu0  ;;  %v334_v60 = vpop.f32.mrb[3].mxu1 }
  0xfa   :  { %v350_v61 = vmax.f32 %v180_v32, %v334_v60 }
  0xfe   :  { %v184_v62 = vpop.f32.mrb[4].mxu0  ;;  %v338_v63 = vpop.f32.mrb[4].mxu1 }
  0xff   :  { %v351_v0 = vmax.f32 %v184_v62, %v338_v63  ;;  %v186_v2 = vpop.f32.mrb[5].mxu0  ;;  %v340_v42 = vpop.f32.mrb[5].mxu1 }
 0x100   :  { %v352_v3 = vmax.f32 %v186_v2, %v340_v42  ;;  %v188_v4 = vpop.f32.mrb[6].mxu0  ;;  %v342_v52 = vpop.f32.mrb[6].mxu1 }
 0x101   :  { %v353_v5 = vmax.f32 %v188_v4, %v342_v52  ;;  %v190_v6 = vpop.f32.mrb[7].mxu0  ;;  %v344_v7 = vpop.f32.mrb[7].mxu1 }
 0x102   :  { %v354_v8 = vmax.f32 %v190_v6, %v344_v7 }
 0x116   :  { %v490_v9 = vpop.f32.mrb[8].mxu0  ;;  %v652_v10 = vpop.f32.mrb[8].mxu1 }
 0x117   :  { %v509_v11 = vmax.f32 %v347_v53, %v490_v9  ;;  %v492_v12 = vpop.f32.mrb[9].mxu0  ;;  %v654_v13 = vpop.f32.mrb[9].mxu1 }
 0x118   :  { %v510_v14 = vmax.f32 %v348_v56, %v492_v12  ;;  %v494_v15 = vpop.f32.mrb[10].mxu0  ;;  %v656_v16 = vpop.f32.mrb[10].mxu1 }
 0x119   :  { %v671_v17 = vmax.f32 %v509_v11, %v652_v10  ;;  %v511_v18 = vmax.f32 %v349_v59, %v494_v15  ;;  %v496_v19 = vpop.f32.mrb[11].mxu0  ;;  %v658_v20 = vpop.f32.mrb[11].mxu1 }
 0x11a   :  { %v672_v21 = vmax.f32 %v510_v14, %v654_v13  ;;  %v512_v22 = vmax.f32 %v350_v61, %v496_v19 }
 0x11b   :  { %v673_v23 = vmax.f32 %v511_v18, %v656_v16 }
 0x11c   :  { %v674_v24 = vmax.f32 %v512_v22, %v658_v20 }
 0x11e   :  { %v500_v25 = vpop.f32.mrb[12].mxu0  ;;  %v662_v26 = vpop.f32.mrb[12].mxu1 }
 0x11f   :  { %v513_v27 = vmax.f32 %v351_v0, %v500_v25  ;;  %v502_v28 = vpop.f32.mrb[13].mxu0  ;;  %v664_v29 = vpop.f32.mrb[13].mxu1 }
 0x120   :  { %v514_v30 = vmax.f32 %v352_v3, %v502_v28  ;;  %v504_v31 = vpop.f32.mrb[14].mxu0  ;;  %v666_v33 = vpop.f32.mrb[14].mxu1 }
 0x121   :  { %v515_v34 = vmax.f32 %v353_v5, %v504_v31  ;;  %v675_v35 = vmax.f32 %v513_v27, %v662_v26  ;;  %v506_v36 = vpop.f32.mrb[15].mxu0  ;;  %v668_v37 = vpop.f32.mrb[15].mxu1 }
 0x122   :  { %v516_v38 = vmax.f32 %v354_v8, %v506_v36  ;;  %v676_v39 = vmax.f32 %v514_v30, %v664_v29 }
 0x123   :  { %v677_v40 = vmax.f32 %v515_v34, %v666_v33 }
 0x124   :  { %v678_v41 = vmax.f32 %v516_v38, %v668_v37 }
 0x136   :  { %v814_v43 = vpop.f32.mrb[16].mxu0  ;;  %v976_v44 = vpop.f32.mrb[16].mxu1 }
 0x137   :  { %v833_v1 = vmax.f32 %v671_v17, %v814_v43  ;;  %v816_v45 = vpop.f32.mrb[17].mxu0  ;;  %v978_v46 = vpop.f32.mrb[17].mxu1 }
 0x138   :  { %v834_v47 = vmax.f32 %v672_v21, %v816_v45  ;;  %v818_v48 = vpop.f32.mrb[18].mxu0  ;;  %v980_v49 = vpop.f32.mrb[18].mxu1 }
 0x139   :  { %v995_v50 = vmax.f32 %v833_v1, %v976_v44  ;;  %v835_v51 = vmax.f32 %v673_v23, %v818_v48  ;;  %v820_v53 = vpop.f32.mrb[19].mxu0  ;;  %v982_v54 = vpop.f32.mrb[19].mxu1 }
 0x13a   :  { %v996_v55 = vmax.f32 %v834_v47, %v978_v46  ;;  %v836_v56 = vmax.f32 %v674_v24, %v820_v53  ;;  %v1506_v43 = vpop.permute.xlu1 %1505  ;;  %v1496_v44 = vpop.permute.xlu0 %1495 }
 0x13b   :  { %v997_v57 = vmax.f32 %v835_v51, %v980_v49 }
 0x13c   :  { %v998_v58 = vmax.f32 %v836_v56, %v982_v54 }
 0x13e   :  { %v824_v59 = vpop.f32.mrb[20].mxu0  ;;  %v986_v32 = vpop.f32.mrb[20].mxu1 }
 0x13f   :  { %v837_v60 = vmax.f32 %v675_v35, %v824_v59  ;;  %v826_v61 = vpop.f32.mrb[21].mxu0  ;;  %v988_v62 = vpop.f32.mrb[21].mxu1 }
 0x140   :  { %v838_v63 = vmax.f32 %v676_v39, %v826_v61  ;;  %v828_v0 = vpop.f32.mrb[22].mxu0  ;;  %v990_v2 = vpop.f32.mrb[22].mxu1 }
 0x141   :  { %v839_v42 = vmax.f32 %v677_v40, %v828_v0  ;;  %v999_v3 = vmax.f32 %v837_v60, %v986_v32  ;;  %v830_v4 = vpop.f32.mrb[23].mxu0  ;;  %v992_v52 = vpop.f32.mrb[23].mxu1 }
 0x142   :  { %v840_v5 = vmax.f32 %v678_v41, %v830_v4  ;;  %v1000_v6 = vmax.f32 %v838_v63, %v988_v62  ;;  %v1511_v60 = vpop.permute.xlu1 %1510  ;;  %v1501_v61 = vpop.permute.xlu0 %1500 }
 0x143   :  { %v1001_v7 = vmax.f32 %v839_v42, %v990_v2 }
 0x144   :  { %v1002_v8 = vmax.f32 %v840_v5, %v992_v52 }
 0x156   :  { %v1138_v9 = vpop.f32.mrb[24].mxu0  ;;  %v1300_v10 = vpop.f32.mrb[24].mxu1 }
 0x157   :  { %v1157_v11 = vmax.f32 %v995_v50, %v1138_v9  ;;  %v1140_v12 = vpop.f32.mrb[25].mxu0  ;;  %v1302_v13 = vpop.f32.mrb[25].mxu1 }
 0x158   :  { %v1158_v14 = vmax.f32 %v996_v55, %v1140_v12  ;;  %v1142_v15 = vpop.f32.mrb[26].mxu0  ;;  %v1304_v16 = vpop.f32.mrb[26].mxu1 }
 0x159   :  { %v1319_v17 = vmax.f32 %v1157_v11, %v1300_v10  ;;  %v1159_v18 = vmax.f32 %v997_v57, %v1142_v15  ;;  %v1144_v19 = vpop.f32.mrb[27].mxu0  ;;  %v1306_v20 = vpop.f32.mrb[27].mxu1 }
 0x15a   :  { %v1320_v21 = vmax.f32 %v1158_v14, %v1302_v13  ;;  %v1160_v22 = vmax.f32 %v998_v58, %v1144_v19 }
 0x15b   :  { %v1321_v23 = vmax.f32 %v1159_v18, %v1304_v16 }
 0x15c   :  { %v1322_v24 = vmax.f32 %v1160_v22, %v1306_v20 }
 0x15e   :  { %v1148_v25 = vpop.f32.mrb[28].mxu0  ;;  %v1310_v26 = vpop.f32.mrb[28].mxu1 }
 0x15f   :  { %v1161_v27 = vmax.f32 %v999_v3, %v1148_v25  ;;  %v1150_v28 = vpop.f32.mrb[29].mxu0  ;;  %v1312_v29 = vpop.f32.mrb[29].mxu1 }
 0x160   :  { %v1162_v30 = vmax.f32 %v1000_v6, %v1150_v28  ;;  %v1152_v31 = vpop.f32.mrb[30].mxu0  ;;  %v1314_v33 = vpop.f32.mrb[30].mxu1 }
 0x161   :  { %v1163_v34 = vmax.f32 %v1001_v7, %v1152_v31  ;;  %v1323_v35 = vmax.f32 %v1161_v27, %v1310_v26  ;;  %v1154_v36 = vpop.f32.mrb[31].mxu0  ;;  %v1316_v37 = vpop.f32.mrb[31].mxu1 }
 0x162   :  { %v1164_v38 = vmax.f32 %v1002_v8, %v1154_v36  ;;  %v1324_v39 = vmax.f32 %v1162_v30, %v1312_v29 }
 0x163   :  { %v1325_v40 = vmax.f32 %v1163_v34, %v1314_v33 }
 0x164   :  { %v1326_v41 = vmax.f32 %v1164_v38, %v1316_v37 }
 0x176   :  { %v1462_v1 = vpop.f32.mrb[32].mxu0  ;;  %v1472_v45 = vpop.f32.mrb[32].mxu1 }
 0x177   :  { %v1481_v46 = vmax.f32 %v1319_v17, %v1462_v1  ;;  %v1485_v47 = vmax.f32 %v1323_v35, %v1472_v45  ;;  %v1464_v48 = vpop.f32.mrb[33].mxu0  ;;  %v1474_v49 = vpop.f32.mrb[33].mxu1 }
 0x178   :  { %v1482_v50 = vmax.f32 %v1320_v21, %v1464_v48  ;;  %v1486_v51 = vmax.f32 %v1324_v39, %v1474_v49  ;;  %v1466_v53 = vpop.f32.mrb[34].mxu0  ;;  %v1476_v54 = vpop.f32.mrb[34].mxu1 }
 0x179   :  { %v1513_v55 = vadd.f32 %v1496_v44, %v1481_v46  ;;  %v1517_v56 = vadd.f32 %v1506_v43, %v1485_v47  ;;  %v1483_v57 = vmax.f32 %v1321_v23, %v1466_v53  ;;  %v1487_v58 = vmax.f32 %v1325_v40, %v1476_v54  ;;  %v1468_v59 = vpop.f32.mrb[35].mxu0  ;;  %v1478_v32 = vpop.f32.mrb[35].mxu1 }
 0x17a   :  { %v1514_v62 = vadd.f32 %v1496_v44, %v1482_v50  ;;  %v1518_v63 = vadd.f32 %v1506_v43, %v1486_v51  ;;  %v1484_v0 = vmax.f32 %v1322_v24, %v1468_v59  ;;  %v1488_v2 = vmax.f32 %v1326_v41, %v1478_v32 }
 0x17b   :  { %v1521_v42 = vmax.f32 %v1513_v55, 0.0  ;;  %v1525_v3 = vmax.f32 %v1517_v56, 0.0  ;;  %v1515_v4 = vadd.f32 %v1501_v61, %v1483_v57  ;;  %v1519_v52 = vadd.f32 %v1511_v60, %v1487_v58 }
 0x17c   :  { %v1522_v5 = vmax.f32 %v1514_v62, 0.0  ;;  %v1526_v6 = vmax.f32 %v1518_v63, 0.0  ;;  %v1516_v7 = vadd.f32 %v1501_v61, %v1484_v0  ;;  %v1520_v8 = vadd.f32 %v1511_v60, %v1488_v2 }
 0x17d   :  { %v1523_v9 = vmax.f32 %v1515_v4, 0.0  ;;  %v1527_v10 = vmax.f32 %v1519_v52, 0.0 }
 0x17e   :  { %v1859_v11 = vpack.c.bf16 %v1522_v5, %v1521_v42  ;;  %v1861_v12 = vpack.c.bf16 %v1526_v6, %v1525_v3  ;;  %v1524_v13 = vmax.f32 %v1516_v7, 0.0  ;;  %v1528_v14 = vmax.f32 %v1520_v8, 0.0 }
 0x180   :  { %1555 = vst.msk [vmem:[%s2671_s3] sm:$0xff] %vm1554_vm4, %v1859_v11  ;;  %1557 = vst.msk [vmem:[%s2671_s3 + $0x10] sm:$0xff] %vm1554_vm4, %v1861_v12  ;;  %v1860_v15 = vpack.c.bf16 %v1524_v13, %v1523_v9  ;;  %v1862_v16 = vpack.c.bf16 %v1528_v14, %v1527_v10 }
 0x182   :  { %1556 = vst.msk [vmem:[%s2671_s3 + $0x8] sm:$0xff] %vm1554_vm4, %v1860_v15  ;;  %1558 = vst.msk [vmem:[%s2671_s3 + $0x18] sm:$0xff] %vm1554_vm4, %v1862_v16 }

// kernel: three_layer_blink_forward.3
= control target key start
LH: loop header
LB: loop body
LE: loop exit
PB: predicated region body
PF: predicated region fallthrough
CT: control target
= control target key end

     0   :  { %s15740_s0 = inlined_call_operand.vmem [shape: bf16[9,800,18], index: 0, kind: input, shape index: {}]   ;;  %s15741_s1 = inlined_call_operand.vmem [shape: bf16[85,800], index: 1, kind: input, shape index: {}]   ;;  %s15742_s2 = inlined_call_operand.vmem [shape: f32[85,1], index: 2, kind: input, shape index: {}]   ;;  %s15743_s3 = inlined_call_operand.vmem [shape: bf16[85,85], index: 3, kind: input, shape index: {}]   ;;  %s15744_s4 = inlined_call_operand.vmem [shape: f32[85,1], index: 4, kind: input, shape index: {}]   ;;  %s15745_s5 = inlined_call_operand.vmem [shape: bf16[9,5,85], index: 5, kind: input, shape index: {}]   ;;  %s15746_s6 = inlined_call_operand.vmem [shape: f32[5,1], index: 6, kind: input, shape index: {}]   ;;  %s15747_s7 = inlined_call_operand.vmem [shape: f32[5,5], index: 7, kind: input, shape index: {}]   ;;  %s15748_s8 = inlined_call_operand.vmem [shape: f32[5,1], index: 8, kind: input, shape index: {}]   ;;  %s15749_s9 = inlined_call_operand.vmem [shape: f32[1,5], index: 9, kind: input, shape index: {}]   ;;  %s15750_s10 = inlined_call_operand.<no memory space> [shape: f32[1,1], index: 10, kind: input, shape index: {}]   ;;  %s15751_s11 = inlined_call_operand.hbm [shape: f32[1,2], index: 11, kind: output, shape index: {}]  }
   0x1   :  { %v16_v0 = vstv %s15750_s10 }
   0x2   :  { %17 = vst [vmem:[#allocation2] sm:$0x1] %v16_v0 }
   0x3   :  { %v11279_v1 = vld [vmem:[%s15740_s0 + $0x40] sm:$0xff]   ;;  %v11283_v5 = vld [vmem:[%s15740_s0 + $0x48] sm:$0xff]   ;;  %v11287_v9 = vld [vmem:[%s15740_s0 + $0x50] sm:$0xff]   ;;  %vm685_vm0 = vcmask 261120  }
   0x4   :  { %v11280_v2 = vld [vmem:[%s15740_s0 + $0xc0] sm:$0xff]   ;;  %9371 = vmatprep.subr.bf16.mxu0 %v11279_v1  ;;  %v11284_v6 = vld [vmem:[%s15740_s0 + $0xc8] sm:$0xff]   ;;  %v11288_v10 = vld [vmem:[%s15740_s0 + $0xd0] sm:$0xff]  }
   0x5   :  { %v11281_v3 = vld [vmem:[%s15740_s0] sm:$0xff]   ;;  %9423 = vmatprep.subr.bf16.mxu1 %v11280_v2  ;;  %v11285_v7 = vld [vmem:[%s15740_s0 + $0x8] sm:$0xff]   ;;  %v11289_v11 = vld [vmem:[%s15740_s0 + $0x10] sm:$0xff]  }
   0x6   :  { %v11282_v4 = vld [vmem:[%s15740_s0 + $0x80] sm:$0xff]   ;;  %9372 = vmatpush3.bf16.msra.mxu0 %v11281_v3  ;;  %v11286_v8 = vld [vmem:[%s15740_s0 + $0x88] sm:$0xff]   ;;  %v11290_v12 = vld [vmem:[%s15740_s0 + $0x90] sm:$0xff]  }
   0x7   :  { %9424 = vmatpush3.bf16.msra.mxu1 %v11282_v4  ;;  %9373 = vmatprep.subr.bf16.mxu0 %v11283_v5  ;;  %v11291_v13 = vld [vmem:[%s15740_s0 + $0x58] sm:$0xff]   ;;  %v11295_v17 = vld [vmem:[%s15740_s0 + $0x60] sm:$0xff]   ;;  %v11299_v21 = vld [vmem:[%s15740_s0 + $0x68] sm:$0xff]  }
   0x8   :  { %9425 = vmatprep.subr.bf16.mxu1 %v11284_v6  ;;  %v11292_v14 = vld [vmem:[%s15740_s0 + $0xd8] sm:$0xff]   ;;  %v11296_v18 = vld [vmem:[%s15740_s0 + $0xe0] sm:$0xff]   ;;  %v11300_v22 = vld [vmem:[%s15740_s0 + $0xe8] sm:$0xff]  }
   0x9   :  { %v11293_v15 = vld [vmem:[%s15740_s0 + $0x18] sm:$0xff]   ;;  %v11297_v19 = vld [vmem:[%s15740_s0 + $0x20] sm:$0xff]   ;;  %v11301_v23 = vld [vmem:[%s15740_s0 + $0x28] sm:$0xff]  }
   0xa   :  { %9374 = vmatpush3.bf16.msra.mxu0 %v11285_v7  ;;  %v11294_v16 = vld [vmem:[%s15740_s0 + $0x98] sm:$0xff]   ;;  %v11298_v20 = vld [vmem:[%s15740_s0 + $0xa0] sm:$0xff]   ;;  %v11302_v24 = vld [vmem:[%s15740_s0 + $0xa8] sm:$0xff]  }
   0xb   :  { %9426 = vmatpush3.bf16.msra.mxu1 %v11286_v8  ;;  %9375 = vmatprep.subr.bf16.mxu0 %v11287_v9  ;;  %v11303_v25 = vld [vmem:[%s15740_s0 + $0x70] sm:$0xff]   ;;  %v11307_v29 = vld [vmem:[%s15740_s0 + $0x78] sm:$0xff]   ;;  %v12147_v33 = vld [vmem:[%s15741_s1 + $0x4] ss:$28 sps:$4 sm:$0xff]  }
   0xc   :  { %9427 = vmatprep.subr.bf16.mxu1 %v11288_v10  ;;  %v11304_v26 = vld [vmem:[%s15740_s0 + $0xf0] sm:$0xff]   ;;  %v11308_v30 = vld [vmem:[%s15740_s0 + $0xf8] sm:$0xff]   ;;  %v12152_v34 = vld [vmem:[%s15741_s1 + $0xc] ss:$28 sps:$4 sm:$0xff]   ;;  %736 = vmatprep.mubr.bf16.mxu0 %v12147_v33 }
   0xd   :  { %v11305_v27 = vld [vmem:[%s15740_s0 + $0x30] sm:$0xff]   ;;  %v11309_v31 = vld [vmem:[%s15740_s0 + $0x38] sm:$0xff]   ;;  %v12163_v36 = vld [vmem:[%s15741_s1 + $0x8] ss:$28 sps:$4 sm:$0xff]   ;;  %816 = vmatprep.mubr.bf16.mxu1 %v12152_v34 }
   0xe   :  { %9376 = vmatpush3.bf16.msra.mxu0 %v11289_v11  ;;  %v11306_v28 = vld [vmem:[%s15740_s0 + $0xb0] sm:$0xff]   ;;  %v11310_v32 = vld [vmem:[%s15740_s0 + $0xb8] sm:$0xff]   ;;  %v12176_v38 = vld [vmem:[%s15741_s1 + $0x44] ss:$28 sps:$4 sm:$0xff]  }
   0xf   :  { %9428 = vmatpush3.bf16.msra.mxu1 %v11290_v12  ;;  %9377 = vmatprep.subr.bf16.mxu0 %v11291_v13  ;;  %v12158_v35 = vld [vmem:[%s15741_s1] ss:$28 sps:$4 sm:$0xff]   ;;  %v12183_v39 = vld [vmem:[%s15741_s1 + $0x38] ss:$28 sps:$4 sm:$0xff]   ;;  %v11331_v45 = vld [vmem:[%s15740_s0 + $0x148] sm:$0xff]  }
  0x10   :  { %9429 = vmatprep.subr.bf16.mxu1 %v11292_v14  ;;  %v12169_v37 = vld [vmem:[%s15741_s1 + $0x3c] ss:$28 sps:$4 sm:$0xff]   ;;  %v12193_v41 = vld [vmem:[%s15741_s1 + $0x74] ss:$28 sps:$4 sm:$0xff]   ;;  %v11327_v43 = vld [vmem:[%s15740_s0 + $0x140] sm:$0xff]  }
  0x11   :  { %v12188_v40 = vld [vmem:[%s15741_s1 + $0x40] ss:$28 sps:$4 sm:$0xff]   ;;  %v11332_v46 = vld [vmem:[%s15740_s0 + $0x108] sm:$0xff]   ;;  %v11337_v48 = vld [vmem:[%s15740_s0 + $0x150] sm:$0xff]  }
  0x12   :  { %9378 = vmatpush3.bf16.msra.mxu0 %v11293_v15  ;;  %v12198_v42 = vld [vmem:[%s15741_s1 + $0x7c] ss:$28 sps:$4 sm:$0xff]   ;;  %v11330_v44 = vld [vmem:[%s15740_s0 + $0x100] sm:$0xff]   ;;  %v12219_v47 = vld [vmem:[%s15741_s1 + $0x70] ss:$28 sps:$4 sm:$0xff]  }
  0x13   :  { %9430 = vmatpush3.bf16.msra.mxu1 %v11294_v16  ;;  %9379 = vmatprep.subr.bf16.mxu0 %v11295_v17  ;;  %v12227_v49 = vld [vmem:[%s15741_s1 + $0x78] ss:$28 sps:$4 sm:$0xff]   ;;  %v12232_v50 = vld [vmem:[%s15741_s1 + $0xac] ss:$28 sps:$4 sm:$0xff]   ;;  %v11347_v55 = vld [vmem:[%s15740_s0 + $0x160] sm:$0xff]  }
  0x14   :  { %9431 = vmatprep.subr.bf16.mxu1 %v11296_v18  ;;  %v11340_v51 = vld [vmem:[%s15740_s0 + $0x110] sm:$0xff]   ;;  %v11341_v53 = vld [vmem:[%s15740_s0 + $0x158] sm:$0xff]   ;;  %v12258_v56 = vld [vmem:[%s15741_s1 + $0xa8] ss:$28 sps:$4 sm:$0xff]  }
  0x15   :  { %v12240_v52 = vld [vmem:[%s15741_s1 + $0xb4] ss:$28 sps:$4 sm:$0xff]   ;;  %v11342_v54 = vld [vmem:[%s15740_s0 + $0x118] sm:$0xff]   ;;  %v11350_v57 = vld [vmem:[%s15740_s0 + $0x120] sm:$0xff]  }
  0x16   :  { %9380 = vmatpush3.bf16.msra.mxu0 %v11297_v19  ;;  %v12266_v58 = vld [vmem:[%s15741_s1 + $0xb0] ss:$28 sps:$4 sm:$0xff]   ;;  %v12271_v59 = vld [vmem:[%s15741_s1 + $0xe4] ss:$28 sps:$4 sm:$0xff]   ;;  %v82_v0 = vld [vmem:[%s15741_s1 + $0x118] sm:$0x77] }
  0x17   :  { %9432 = vmatpush3.bf16.msra.mxu1 %v11298_v20  ;;  %9381 = vmatprep.subr.bf16.mxu0 %v11299_v21  ;;  %v12276_v60 = vld [vmem:[%s15741_s1 + $0xec] ss:$28 sps:$4 sm:$0xff]   ;;  %v11355_v63 = vld [vmem:[%s15740_s0 + $0x170] sm:$0xff]   ;;  %v83_v1 = vld [vmem:[%s15741_s1 + $0x120] sm:$0x77]  ;;  %v12310_v5 = vcombine.high %v82_v0, %v82_v0  ;;  %v12333_v12 = vcombine.low %v82_v0, %v82_v0 }
  0x18   :  { %9433 = vmatprep.subr.bf16.mxu1 %v11300_v22  ;;  %v11351_v61 = vld [vmem:[%s15740_s0 + $0x168] sm:$0xff]   ;;  %v11358_v2 = vld [vmem:[%s15740_s0 + $0x130] sm:$0xff]   ;;  %v12303_v3 = vld [vmem:[%s15741_s1 + $0xe0] ss:$28 sps:$4 sm:$0xff]   ;;  %v12312_v6 = vcombine.high %v83_v1, %v83_v1  ;;  %v12335_v13 = vcombine.low %v83_v1, %v83_v1 }
  0x19   :  { %v11352_v62 = vld [vmem:[%s15740_s0 + $0x128] sm:$0xff]   ;;  %15792 = vst [vmem:[#allocation6_spill] sm:$0xff] %v12310_v5  ;;  %v11359_v7 = vld [vmem:[%s15740_s0 + $0x178] sm:$0xff]   ;;  %v11364_v9 = vld [vmem:[%s15740_s0 + $0x180] sm:$0xff]  }
  0x1a   :  { %9382 = vmatpush3.bf16.msra.mxu0 %v11301_v23  ;;  %v12308_v4 = vld [vmem:[%s15741_s1 + $0xe8] ss:$28 sps:$4 sm:$0xff]   ;;  %15793 = vst [vmem:[#allocation7_spill] sm:$0xff] %v12312_v6  ;;  %v11360_v8 = vld [vmem:[%s15740_s0 + $0x138] sm:$0xff]   ;;  %v11375_v11 = vld [vmem:[%s15740_s0 + $0x250] sm:$0xff]  }
  0x1b   :  { %9434 = vmatpush3.bf16.msra.mxu1 %v11302_v24  ;;  %9383 = vmatprep.subr.bf16.mxu0 %v11303_v25  ;;  %v84_v10 = vld [vmem:[%s15741_s1 + $0x128] sm:$0x77]  ;;  %15794 = vst [vmem:[#allocation8_spill] sm:$0xff] %v12333_v12  ;;  %15795 = vst [vmem:[#allocation9_spill] sm:$0xff] %v12335_v13  ;;  %v12340_v14 = vld [vmem:[%s15741_s1 + $0x14] ss:$28 sps:$4 sm:$0xff]  }
  0x1c   :  { %9435 = vmatprep.subr.bf16.mxu1 %v11304_v26  ;;  %v12342_v15 = vcombine.high %v84_v10, %v84_v10  ;;  %v12351_v16 = vld [vmem:[%s15741_s1 + $0x10] ss:$28 sps:$4 sm:$0xff]   ;;  %v12353_v17 = vcombine.low %v84_v10, %v84_v10  ;;  %v12366_v20 = vld [vmem:[%s15741_s1 + $0x18] ss:$28 sps:$4 sm:$0xff]   ;;  %v12385_v24 = vld [vmem:[%s15741_s1 + $0x48] ss:$28 sps:$4 sm:$0xff]  }
  0x1d   :  { %v11367_v18 = vld [vmem:[%s15740_s0 + $0x188] sm:$0xff]   ;;  %v11376_v21 = vld [vmem:[%s15740_s0 + $0x210] sm:$0xff]   ;;  %v11379_v22 = vld [vmem:[%s15740_s0 + $0x258] sm:$0xff]  }
  0x1e   :  { %9384 = vmatpush3.bf16.msra.mxu0 %v11305_v27  ;;  %15796 = vst [vmem:[#allocation10_spill] sm:$0xff] %v12342_v15  ;;  %v12361_v19 = vld [vmem:[%s15741_s1 + $0x4c] ss:$28 sps:$4 sm:$0xff]   ;;  %v11371_v23 = vld [vmem:[%s15740_s0 + $0x1d0] sm:$0xff]   ;;  %v11380_v27 = vld [vmem:[%s15740_s0 + $0x218] sm:$0xff]  }
  0x1f   :  { %9436 = vmatpush3.bf16.msra.mxu1 %v11306_v28  ;;  %9385 = vmatprep.subr.bf16.mxu0 %v11307_v29  ;;  %v12390_v25 = vld [vmem:[%s15741_s1 + $0x50] ss:$28 sps:$4 sm:$0xff]   ;;  %v11377_v28 = vld [vmem:[%s15740_s0 + $0x1d8] sm:$0xff]   ;;  %v12404_v29 = vld [vmem:[%s15741_s1 + $0x84] ss:$28 sps:$4 sm:$0xff]  }
  0x20   :  { %9437 = vmatprep.subr.bf16.mxu1 %v11308_v30  ;;  %v11374_v26 = vld [vmem:[%s15740_s0 + $0x190] sm:$0xff]   ;;  %v12409_v30 = vld [vmem:[%s15741_s1 + $0x88] ss:$28 sps:$4 sm:$0xff]   ;;  %v11406_v10 = vld [vmem:[%s15740_s0 + $0x238] sm:$0xff]  }
  0x21   :  { %v11402_v0 = vld [vmem:[%s15740_s0 + $0x230] sm:$0xff]  }
  0x22   :  { %9386 = vmatpush3.bf16.msra.mxu0 %v11309_v31  ;;  %v11378_v31 = vld [vmem:[%s15740_s0 + $0x198] sm:$0xff]  }
  0x23   :  { %9438 = vmatpush3.bf16.msra.mxu1 %v11310_v32  ;;  %9475 = vmatprep.subr.bf16.mxu0 %v11327_v43  ;;  %v11388_v32 = vld [vmem:[%s15740_s0 + $0x260] sm:$0xff]   ;;  %v12480_v1 = vld [vmem:[%s15741_s1 + $0xb8] ss:$28 sps:$4 sm:$0xff]  }
  0x24   :  { %11248 = vmatprep.subr.bf16.mxu1 %v11327_v43  ;;  %v11384_v43 = vld [vmem:[%s15740_s0 + $0x1e0] sm:$0xff]  }
  0x25   :  { %737 = vmatmul.mubr.bf16.vlgmr.msra.gmra.mrb[0].mxu0 %v12158_v35 }
  0x26   :  { %817 = vmatmul.mubr.bf16.vlgmr.msra.gmra.mrb[0].mxu1 %v12163_v36  ;;  %744 = vmatprep.mubr.bf16.mxu0 %v12169_v37 }
  0x27   :  { %824 = vmatprep.mubr.bf16.mxu1 %v12176_v38  ;;  %11256 = vmatpush3.bf16.msra.mxu1 %v11330_v44 }
  0x28   :  { %9476 = vmatpush3.bf16.msra.mxu0 %v11330_v44  ;;  %11249 = vmatprep.subr.bf16.mxu1 %v11331_v45  ;;  %v11389_v44 = vld [vmem:[%s15740_s0 + $0x220] sm:$0xff]  }
  0x29   :  { %9477 = vmatprep.subr.bf16.mxu0 %v11331_v45  ;;  %v11392_v45 = vld [vmem:[%s15740_s0 + $0x268] sm:$0xff]  }
  0x2b   :  { %11257 = vmatpush3.bf16.msra.mxu1 %v11332_v46 }
  0x2c   :  { %9478 = vmatpush3.bf16.msra.mxu0 %v11332_v46  ;;  %11250 = vmatprep.subr.bf16.mxu1 %v11337_v48  ;;  %v12435_v46 = vld [vmem:[%s15741_s1 + $0x80] ss:$28 sps:$4 sm:$0xff]  }
  0x2d   :  { %745 = vmatmul.mubr.bf16.gmra.mrb[4].mxu0 %v12183_v39  ;;  %9479 = vmatprep.subr.bf16.mxu0 %v11337_v48  ;;  %v12440_v48 = vld [vmem:[%s15741_s1 + $0xc0] ss:$28 sps:$4 sm:$0xff]  }
  0x2e   :  { %825 = vmatmul.mubr.bf16.gmra.mrb[4].mxu1 %v12188_v40  ;;  %752 = vmatprep.mubr.bf16.mxu0 %v12193_v41 }
  0x2f   :  { %832 = vmatprep.mubr.bf16.mxu1 %v12198_v42  ;;  %11258 = vmatpush3.bf16.msra.mxu1 %v11340_v51 }
  0x30   :  { %9480 = vmatpush3.bf16.msra.mxu0 %v11340_v51  ;;  %11251 = vmatprep.subr.bf16.mxu1 %v11341_v53  ;;  %v11387_v51 = vld [vmem:[%s15740_s0 + $0x1a0] sm:$0xff]  }
  0x31   :  { %9481 = vmatprep.subr.bf16.mxu0 %v11341_v53  ;;  %v11390_v53 = vld [vmem:[%s15740_s0 + $0x1e8] sm:$0xff]  }
  0x33   :  { %11259 = vmatpush3.bf16.msra.mxu1 %v11342_v54 }
  0x34   :  { %9482 = vmatpush3.bf16.msra.mxu0 %v11342_v54  ;;  %11252 = vmatprep.subr.bf16.mxu1 %v11347_v55  ;;  %v11393_v54 = vld [vmem:[%s15740_s0 + $0x228] sm:$0xff]  }
  0x35   :  { %753 = vmatmul.mubr.bf16.gmra.mrb[8].mxu0 %v12219_v47  ;;  %9483 = vmatprep.subr.bf16.mxu0 %v11347_v55  ;;  %v12454_v55 = vld [vmem:[%s15741_s1 + $0xbc] ss:$28 sps:$4 sm:$0xff]  }
  0x36   :  { %833 = vmatmul.mubr.bf16.gmra.mrb[8].mxu1 %v12227_v49  ;;  %760 = vmatprep.mubr.bf16.mxu0 %v12232_v50 }
  0x37   :  { %840 = vmatprep.mubr.bf16.mxu1 %v12240_v52  ;;  %11260 = vmatpush3.bf16.msra.mxu1 %v11350_v57 }
  0x38   :  { %9484 = vmatpush3.bf16.msra.mxu0 %v11350_v57  ;;  %11253 = vmatprep.subr.bf16.mxu1 %v11351_v61  ;;  %v12459_v57 = vld [vmem:[%s15741_s1 + $0xf8] ss:$28 sps:$4 sm:$0xff]  }
  0x39   :  { %9485 = vmatprep.subr.bf16.mxu0 %v11351_v61  ;;  %v11401_v61 = vld [vmem:[%s15740_s0 + $0x270] sm:$0xff]  }
  0x3b   :  { %11261 = vmatpush3.bf16.msra.mxu1 %v11352_v62 }
  0x3c   :  { %9486 = vmatpush3.bf16.msra.mxu0 %v11352_v62  ;;  %11254 = vmatprep.subr.bf16.mxu1 %v11355_v63  ;;  %v11391_v62 = vld [vmem:[%s15740_s0 + $0x1a8] sm:$0xff]  }
  0x3d   :  { %761 = vmatmul.mubr.bf16.gmra.mrb[12].mxu0 %v12258_v56  ;;  %9487 = vmatprep.subr.bf16.mxu0 %v11355_v63  ;;  %v11397_v63 = vld [vmem:[%s15740_s0 + $0x1f0] sm:$0xff]  }
  0x3e   :  { %841 = vmatmul.mubr.bf16.gmra.mrb[12].mxu1 %v12266_v58  ;;  %768 = vmatprep.mubr.bf16.mxu0 %v12271_v59 }
  0x3f   :  { %848 = vmatprep.mubr.bf16.mxu1 %v12276_v60  ;;  %11262 = vmatpush3.bf16.msra.mxu1 %v11358_v2 }
  0x40   :  { %9488 = vmatpush3.bf16.msra.mxu0 %v11358_v2  ;;  %11255 = vmatprep.subr.bf16.mxu1 %v11359_v7  ;;  %v12485_v2 = vld [vmem:[%s15741_s1 + $0x130] ss:$0 sps:$4 sm:$0x77]  }
  0x41   :  { %9489 = vmatprep.subr.bf16.mxu0 %v11359_v7  ;;  %v11405_v7 = vld [vmem:[%s15740_s0 + $0x278] sm:$0xff]  }
  0x43   :  { %11263 = vmatpush3.bf16.msra.mxu1 %v11360_v8 }
  0x44   :  { %9490 = vmatpush3.bf16.msra.mxu0 %v11360_v8  ;;  %10926 = vmatprep.subr.bf16.mxu1 %v11364_v9  ;;  %v11400_v8 = vld [vmem:[%s15740_s0 + $0x1b0] sm:$0xff]  }
  0x45   :  { %769 = vmatmul.mubr.bf16.gmra.mrb[16].mxu0 %v12303_v3  ;;  %9587 = vmatprep.subr.bf16.mxu0 %v11375_v11  ;;  %v12504_v11 = vld [vmem:[%s15741_s1 + $0xf4] ss:$28 sps:$4 sm:$0xff]  }
  0x46   :  { %849 = vmatmul.mubr.bf16.gmra.mrb[16].mxu1 %v12308_v4  ;;  %776 = vmatprep.mubr.bf16.mxu0 %v12310_v5 }
  0x47   :  { %856 = vmatprep.mubr.bf16.mxu1 %v12312_v6 }
  0x4d   :  { %777 = vmatmul.mubr.bf16.gmra.mrb[20].mxu0 %v12333_v12 }
  0x4e   :  { %857 = vmatmul.mubr.bf16.gmra.mrb[20].mxu1 %v12335_v13  ;;  %896 = vmatprep.mubr.bf16.mxu0 %v12340_v14 }
  0x4f   :  { %936 = vmatprep.mubr.bf16.mxu1 %v12342_v15 }
  0x55   :  { %897 = vmatmul.mubr.bf16.vlgmr.msra.gmra.mrb[24].mxu0 %v12351_v16 }
  0x56   :  { %937 = vmatmul.mubr.bf16.vlgmr.msra.gmra.mrb[24].mxu1 %v12353_v17  ;;  %904 = vmatprep.mubr.bf16.mxu0 %v12361_v19 }
  0x57   :  { %10927 = vmatpush3.bf16.msra.mxu1 %v11364_v9  ;;  %10930 = vmatprep.mubr.msk.bf16.mxu1 %vm685_vm0, %v12366_v20  ;;  %v11403_v9 = vld [vmem:[%s15740_s0 + $0x1f8] sm:$0xff]  }
  0x58   :  { %10928 = vmatprep.subr.bf16.mxu1 %v11367_v18  ;;  %9588 = vmatpush3.bf16.msra.mxu0 %v11376_v21  ;;  %v11412_v21 = vld [vmem:[%s15740_s0 + $0x280] sm:$0xff]  }
  0x59   :  { %9589 = vmatprep.subr.bf16.mxu0 %v11379_v22  ;;  %v11409_v22 = vld [vmem:[%s15740_s0 + $0x200] sm:$0xff]  }
  0x5b   :  { %10929 = vmatpush3.bf16.msra.mxu1 %v11367_v18  ;;  %v11404_v18 = vld [vmem:[%s15740_s0 + $0x1b8] sm:$0xff]  }
  0x5c   :  { %9535 = vmatprep.subr.bf16.mxu1 %v11371_v23  ;;  %9590 = vmatpush3.bf16.msra.mxu0 %v11380_v27  ;;  %v11413_v23 = vld [vmem:[%s15740_s0 + $0x240] sm:$0xff]   ;;  %v12528_v27 = vld [vmem:[%s15741_s1 + $0xf0] ss:$28 sps:$4 sm:$0xff]  }
  0x5d   :  { %905 = vmatmul.mubr.bf16.gmra.mrb[28].mxu0 %v12385_v24  ;;  %9591 = vmatprep.subr.bf16.mxu0 %v11388_v32  ;;  %v11414_v32 = vld [vmem:[%s15740_s0 + $0x208] sm:$0xff]  }
  0x5e   :  { %10931 = vmatmul.mubr.msk.bf16.vlgmr.msra.gmra.mrb[28].mxu1 %vm685_vm0, %v12390_v25  ;;  %912 = vmatprep.mubr.bf16.mxu0 %v12404_v29 }
  0x5f   :  { %9536 = vmatpush3.bf16.msra.mxu1 %v11374_v26  ;;  %10934 = vmatprep.mubr.msk.bf16.mxu1 %vm685_vm0, %v12409_v30  ;;  %v11416_v26 = vld [vmem:[%s15740_s0 + $0x288] sm:$0xff]  }
  0x60   :  { %9537 = vmatprep.subr.bf16.mxu1 %v11377_v28  ;;  %9592 = vmatpush3.bf16.msra.mxu0 %v11389_v44  ;;  %v11411_v28 = vld [vmem:[%s15740_s0 + $0x1c0] sm:$0xff]   ;;  %v11418_v44 = vld [vmem:[%s15740_s0 + $0x2d0] sm:$0xff]  }
  0x61   :  { %9593 = vmatprep.subr.bf16.mxu0 %v11392_v45  ;;  %v11419_v45 = vld [vmem:[%s15740_s0 + $0x290] sm:$0xff]  }
  0x63   :  { %9538 = vmatpush3.bf16.msra.mxu1 %v11378_v31  ;;  %v11417_v31 = vld [vmem:[%s15740_s0 + $0x248] sm:$0xff]  }
  0x64   :  { %9539 = vmatprep.subr.bf16.mxu1 %v11384_v43  ;;  %9594 = vmatpush3.bf16.msra.mxu0 %v11393_v54  ;;  %v11415_v43 = vld [vmem:[%s15740_s0 + $0x1c8] sm:$0xff]   ;;  %v11422_v54 = vld [vmem:[%s15740_s0 + $0x2e0] sm:$0xff]  }
  0x65   :  { %913 = vmatmul.mubr.bf16.gmra.mrb[32].mxu0 %v12435_v46  ;;  %9595 = vmatprep.subr.bf16.mxu0 %v11401_v61  ;;  %v11427_v61 = vld [vmem:[%s15740_s0 + $0x2f0] sm:$0xff]  }
  0x66   :  { %10935 = vmatmul.mubr.msk.bf16.gmra.mrb[32].mxu1 %vm685_vm0, %v12440_v48  ;;  %920 = vmatprep.mubr.bf16.mxu0 %v12454_v55 }
  0x67   :  { %9540 = vmatpush3.bf16.msra.mxu1 %v11387_v51  ;;  %10938 = vmatprep.mubr.msk.bf16.mxu1 %vm685_vm0, %v12459_v57  ;;  %v11420_v51 = vld [vmem:[%s15740_s0 + $0x2d8] sm:$0xff]  }
  0x68   :  { %9541 = vmatprep.subr.bf16.mxu1 %v11390_v53  ;;  %9596 = vmatpush3.bf16.msra.mxu0 %v11402_v0  ;;  %v11434_v53 = vld [vmem:[%s15740_s0 + $0x318] sm:$0xff]   ;;  %v11450_v0 = vld [vmem:[%s15740_s0 + $0x348] sm:$0xff]  }
  0x69   :  { %9597 = vmatprep.subr.bf16.mxu0 %v11405_v7  ;;  %v11452_v7 = vld [vmem:[%s15740_s0 + $0x390] sm:$0xff]  }
  0x6b   :  { %9542 = vmatpush3.bf16.msra.mxu1 %v11391_v62  ;;  %v11457_v62 = vld [vmem:[%s15740_s0 + $0x3f8] sm:$0xff]  }
  0x6c   :  { %9543 = vmatprep.subr.bf16.mxu1 %v11397_v63  ;;  %9598 = vmatpush3.bf16.msra.mxu0 %v11406_v10  ;;  %v11444_v63 = vld [vmem:[%s15740_s0 + $0x380] sm:$0xff]   ;;  %v11463_v10 = vld [vmem:[%s15740_s0 + $0x3c8] sm:$0xff]  }
  0x6d   :  { %921 = vmatmul.mubr.bf16.gmra.mrb[36].mxu0 %v12480_v1  ;;  %9599 = vmatprep.subr.bf16.mxu0 %v11412_v21  ;;  %v11458_v21 = vld [vmem:[%s15740_s0 + $0x358] sm:$0xff]  }
  0x6e   :  { %10939 = vmatmul.mubr.msk.bf16.gmra.mrb[36].mxu1 %vm685_vm0, %v12485_v2  ;;  %928 = vmatprep.mubr.bf16.mxu0 %v12504_v11 }
  0x6f   :  { %9544 = vmatpush3.bf16.msra.mxu1 %v11400_v8  ;;  %1457 = vmatprep.mubr.bf16.mxu1 %v12147_v33  ;;  %v11423_v33 = vld [vmem:[%s15740_s0 + $0x310] sm:$0xff]  }
  0x70   :  { %9545 = vmatprep.subr.bf16.mxu1 %v11403_v9  ;;  %9600 = vmatpush3.bf16.msra.mxu0 %v11413_v23  ;;  %v11454_v8 = vld [vmem:[%s15740_s0 + $0x350] sm:$0xff]   ;;  %v11456_v9 = vld [vmem:[%s15740_s0 + $0x398] sm:$0xff]   ;;  %v11468_v23 = vld [vmem:[%s15740_s0 + $0x460] sm:$0xff]  }
  0x71   :  { %9601 = vmatprep.subr.bf16.mxu0 %v11416_v26  ;;  %v11467_v26 = vld [vmem:[%s15740_s0 + $0x3d8] sm:$0xff]  }
  0x73   :  { %9546 = vmatpush3.bf16.msra.mxu1 %v11404_v18  ;;  %v11464_v18 = vld [vmem:[%s15740_s0 + $0x410] sm:$0xff]  }
  0x74   :  { %9547 = vmatprep.subr.bf16.mxu1 %v11409_v22  ;;  %9602 = vmatpush3.bf16.msra.mxu0 %v11417_v31  ;;  %v11465_v22 = vld [vmem:[%s15740_s0 + $0x3d0] sm:$0xff]   ;;  %v11484_v31 = vld [vmem:[%s15740_s0 + $0x4a0] sm:$0xff]  }
  0x75   :  { %929 = vmatmul.mubr.bf16.gmra.mrb[40].mxu0 %v12528_v27  ;;  %10942 = vmatprep.subr.bf16.mxu0 %v11423_v33 }
  0x76   :  { %1537 = vmatprep.mubr.bf16.mxu0 %v12152_v34  ;;  %v11421_v34 = vld [vmem:[%s15740_s0 + $0x298] sm:$0xff]  }
  0x77   :  { %9548 = vmatpush3.bf16.msra.mxu1 %v11411_v28  ;;  %v11470_v28 = vld [vmem:[%s15740_s0 + $0x468] sm:$0xff]  }
  0x78   :  { %9549 = vmatprep.subr.bf16.mxu1 %v11414_v32  ;;  %v12760_v32 = vld [vmem:[%s15741_s1] ss:$28 sps:$4 sm:$0xff]  }
  0x7b   :  { %9550 = vmatpush3.bf16.msra.mxu1 %v11415_v43  ;;  %v11472_v43 = vld [vmem:[%s15740_s0 + $0x470] sm:$0xff]  }
  0x7c   :  { %9639 = vmatprep.subr.bf16.mxu1 %v11418_v44  ;;  %v11473_v44 = vld [vmem:[%s15740_s0 + $0x430] sm:$0xff]  }
  0x7d   :  { %1538 = vmatmul.mubr.bf16.vlgmr.msra.gmra.mrb[44].mxu0 %v12163_v36  ;;  %v11424_v36 = vld [vmem:[%s15740_s0 + $0x2a0] sm:$0xff]  }
  0x7e   :  { %1458 = vmatmul.mubr.bf16.vlgmr.msra.gmra.mrb[40].mxu1 %v12158_v35  ;;  %1545 = vmatprep.mubr.bf16.mxu0 %v12176_v38  ;;  %v11436_v35 = vld [vmem:[%s15740_s0 + $0x360] sm:$0xff]   ;;  %v11426_v38 = vld [vmem:[%s15740_s0 + $0x2a8] sm:$0xff]  }
  0x7f   :  { %1465 = vmatprep.mubr.bf16.mxu1 %v12169_v37  ;;  %9640 = vmatpush3.bf16.msra.mxu1 %v11419_v45  ;;  %v11425_v37 = vld [vmem:[%s15740_s0 + $0x2e8] sm:$0xff]   ;;  %v11474_v45 = vld [vmem:[%s15740_s0 + $0x478] sm:$0xff]  }
  0x80   :  { %10943 = vmatpush3.bf16.msra.mxu0 %v11423_v33  ;;  %9641 = vmatprep.subr.bf16.mxu1 %v11420_v51  ;;  %v12767_v33 = vld [vmem:[%s15741_s1 + $0x3c] ss:$28 sps:$4 sm:$0xff]  }
  0x81   :  { %10944 = vmatprep.subr.bf16.mxu0 %v11434_v53  ;;  %v12786_v51 = vld [vmem:[%s15741_s1 + $0x38] ss:$28 sps:$4 sm:$0xff]  }
  0x83   :  { %9642 = vmatpush3.bf16.msra.mxu1 %v11421_v34  ;;  %v12792_v34 = vld [vmem:[%s15741_s1 + $0x74] ss:$28 sps:$4 sm:$0xff]  }
  0x84   :  { %10945 = vmatpush3.bf16.msra.mxu0 %v11434_v53  ;;  %9643 = vmatprep.subr.bf16.mxu1 %v11422_v54  ;;  %v12798_v53 = vld [vmem:[%s15741_s1 + $0xc] ss:$28 sps:$4 sm:$0xff]   ;;  %v11475_v54 = vld [vmem:[%s15740_s0 + $0x438] sm:$0xff]  }
  0x85   :  { %9699 = vmatprep.subr.bf16.mxu0 %v11436_v35  ;;  %1546 = vmatmul.mubr.bf16.gmra.mrb[48].mxu0 %v12188_v40  ;;  %v11429_v40 = vld [vmem:[%s15740_s0 + $0x2f8] sm:$0xff]   ;;  %v11476_v35 = vld [vmem:[%s15740_s0 + $0x480] sm:$0xff]  }
  0x86   :  { %1466 = vmatmul.mubr.bf16.gmra.mrb[44].mxu1 %v12183_v39  ;;  %1553 = vmatprep.mubr.bf16.mxu0 %v12198_v42  ;;  %v11428_v39 = vld [vmem:[%s15740_s0 + $0x2b0] sm:$0xff]   ;;  %v11431_v42 = vld [vmem:[%s15740_s0 + $0x300] sm:$0xff]  }
  0x87   :  { %1473 = vmatprep.mubr.bf16.mxu1 %v12193_v41  ;;  %9644 = vmatpush3.bf16.msra.mxu1 %v11424_v36  ;;  %v11430_v41 = vld [vmem:[%s15740_s0 + $0x2b8] sm:$0xff]   ;;  %v11477_v36 = vld [vmem:[%s15740_s0 + $0x440] sm:$0xff]  }
  0x88   :  { %9645 = vmatprep.subr.bf16.mxu1 %v11425_v37  ;;  %v11478_v37 = vld [vmem:[%s15740_s0 + $0x488] sm:$0xff]  }
  0x8b   :  { %9646 = vmatpush3.bf16.msra.mxu1 %v11426_v38  ;;  %v11485_v38 = vld [vmem:[%s15740_s0 + $0x4a8] sm:$0xff]  }
  0x8c   :  { %9647 = vmatprep.subr.bf16.mxu1 %v11427_v61  ;;  %v12819_v61 = vld [vmem:[%s15741_s1 + $0x70] ss:$28 sps:$4 sm:$0xff]  }
  0x8d   :  { %1554 = vmatmul.mubr.bf16.gmra.mrb[52].mxu0 %v12227_v49  ;;  %v11433_v49 = vld [vmem:[%s15740_s0 + $0x308] sm:$0xff]  }
  0x8e   :  { %1474 = vmatmul.mubr.bf16.gmra.mrb[48].mxu1 %v12219_v47  ;;  %1561 = vmatprep.mubr.bf16.mxu0 %v12240_v52  ;;  %v11432_v47 = vld [vmem:[%s15740_s0 + $0x2c0] sm:$0xff]  }
  0x8f   :  { %1481 = vmatprep.mubr.bf16.mxu1 %v12232_v50  ;;  %9648 = vmatpush3.bf16.msra.mxu1 %v11428_v39  ;;  %v11435_v50 = vld [vmem:[%s15740_s0 + $0x2c8] sm:$0xff]   ;;  %v11445_v52 = vld [vmem:[%s15740_s0 + $0x3e0] sm:$0xff]  }
  0x90   :  { %9649 = vmatprep.subr.bf16.mxu1 %v11429_v40  ;;  %v12825_v39 = vld [vmem:[%s15741_s1 + $0x8] ss:$28 sps:$4 sm:$0xff]  }
  0x91   :  { %v12831_v40 = vld [vmem:[%s15741_s1 + $0xac] ss:$28 sps:$4 sm:$0xff]  }
  0x93   :  { %9650 = vmatpush3.bf16.msra.mxu1 %v11430_v41  ;;  %v12837_v41 = vld [vmem:[%s15741_s1 + $0x44] ss:$28 sps:$4 sm:$0xff]  }
  0x94   :  { %9651 = vmatprep.subr.bf16.mxu1 %v11431_v42  ;;  %v11479_v42 = vld [vmem:[%s15740_s0 + $0x448] sm:$0xff]  }
  0x95   :  { %1562 = vmatmul.mubr.bf16.gmra.mrb[56].mxu0 %v12266_v58  ;;  %v11438_v58 = vld [vmem:[%s15740_s0 + $0x368] sm:$0xff]  }
  0x96   :  { %1482 = vmatmul.mubr.bf16.gmra.mrb[52].mxu1 %v12258_v56  ;;  %1569 = vmatprep.mubr.bf16.mxu0 %v12276_v60  ;;  %v11437_v56 = vld [vmem:[%s15740_s0 + $0x320] sm:$0xff]   ;;  %v11449_v60 = vld [vmem:[%s15740_s0 + $0x3e8] sm:$0xff]  }
  0x97   :  { %1489 = vmatprep.mubr.bf16.mxu1 %v12271_v59  ;;  %9652 = vmatpush3.bf16.msra.mxu1 %v11432_v47  ;;  %v11447_v59 = vld [vmem:[%s15740_s0 + $0x3a0] sm:$0xff]   ;;  %v11480_v47 = vld [vmem:[%s15740_s0 + $0x490] sm:$0xff]  }
  0x98   :  { %9653 = vmatprep.subr.bf16.mxu1 %v11433_v49  ;;  %v11486_v49 = vld [vmem:[%s15740_s0 + $0x4f0] sm:$0xff]  }
  0x9b   :  { %9654 = vmatpush3.bf16.msra.mxu1 %v11435_v50  ;;  %v11481_v50 = vld [vmem:[%s15740_s0 + $0x450] sm:$0xff]  }
  0x9c   :  { %9751 = vmatprep.subr.bf16.mxu1 %v11445_v52  ;;  %v11482_v52 = vld [vmem:[%s15740_s0 + $0x498] sm:$0xff]  }
  0x9d   :  { %1570 = vmatmul.mubr.bf16.gmra.mrb[60].mxu0 %v12308_v4  ;;  %v11440_v4 = vld [vmem:[%s15740_s0 + $0x370] sm:$0xff]  }
  0x9e   :  { %1490 = vmatmul.mubr.bf16.gmra.mrb[56].mxu1 %v12303_v3  ;;  %1577 = vmatprep.mubr.bf16.mxu0 %v12312_v6  ;;  %v11439_v3 = vld [vmem:[%s15740_s0 + $0x328] sm:$0xff]  }
  0x9f   :  { %1497 = vmatprep.mubr.bf16.mxu1 %v12310_v5 }
  0xa5   :  { %1578 = vmatmul.mubr.bf16.gmra.mrb[64].mxu0 %v12335_v13 }
  0xa6   :  { %1498 = vmatmul.mubr.bf16.gmra.mrb[60].mxu1 %v12333_v12  ;;  %10946 = vmatprep.mubr.msk.bf16.mxu0 %vm685_vm0, %v12366_v20  ;;  %v11443_v20 = vld [vmem:[%s15740_s0 + $0x338] sm:$0xff]  }
  0xa7   :  { %1617 = vmatprep.mubr.bf16.mxu1 %v12340_v14  ;;  %v11451_v14 = vld [vmem:[%s15740_s0 + $0x3a8] sm:$0xff]  }
  0xad   :  { %10947 = vmatmul.mubr.msk.bf16.vlgmr.msra.gmra.mrb[68].mxu0 %vm685_vm0, %v12390_v25  ;;  %v11453_v25 = vld [vmem:[%s15740_s0 + $0x3f0] sm:$0xff]  }
  0xae   :  { %1618 = vmatmul.mubr.bf16.vlgmr.msra.gmra.mrb[64].mxu1 %v12351_v16  ;;  %9700 = vmatpush3.bf16.msra.mxu0 %v11437_v56  ;;  %v11441_v16 = vld [vmem:[%s15740_s0 + $0x330] sm:$0xff]   ;;  %v12858_v56 = vld [vmem:[%s15741_s1 + $0xa8] ss:$28 sps:$4 sm:$0xff]  }
  0xaf   :  { %1625 = vmatprep.mubr.bf16.mxu1 %v12361_v19  ;;  %9701 = vmatprep.subr.bf16.mxu0 %v11438_v58  ;;  %v11442_v19 = vld [vmem:[%s15740_s0 + $0x378] sm:$0xff]  }
  0xb0   :  { %10950 = vmatprep.mubr.msk.bf16.mxu0 %vm685_vm0, %v12409_v30  ;;  %9752 = vmatpush3.bf16.msra.mxu1 %v11447_v59  ;;  %v11455_v30 = vld [vmem:[%s15740_s0 + $0x3b0] sm:$0xff]   ;;  %v12864_v58 = vld [vmem:[%s15741_s1 + $0x40] ss:$28 sps:$4 sm:$0xff]  }
  0xb1   :  { %9753 = vmatprep.subr.bf16.mxu1 %v11449_v60  ;;  %v12870_v59 = vld [vmem:[%s15741_s1 + $0xe4] ss:$28 sps:$4 sm:$0xff]   ;;  %v12876_v60 = vld [vmem:[%s15741_s1 + $0x7c] ss:$28 sps:$4 sm:$0xff]  }
  0xb2   :  { %9702 = vmatpush3.bf16.msra.mxu0 %v11439_v3  ;;  %v11483_v3 = vld [vmem:[%s15740_s0 + $0x458] sm:$0xff]  }
  0xb3   :  { %9703 = vmatprep.subr.bf16.mxu0 %v11440_v4  ;;  %v11488_v4 = vld [vmem:[%s15740_s0 + $0x570] sm:$0xff]  }
  0xb4   :  { %9754 = vmatpush3.bf16.msra.mxu1 %v11451_v14  ;;  %v12888_v14 = vld [vmem:[%s15741_s1 + $0xe0] ss:$28 sps:$4 sm:$0xff]  }
  0xb5   :  { %10951 = vmatmul.mubr.msk.bf16.gmra.mrb[72].mxu0 %vm685_vm0, %v12440_v48  ;;  %9755 = vmatprep.subr.bf16.mxu1 %v11453_v25  ;;  %v11459_v48 = vld [vmem:[%s15740_s0 + $0x3b8] sm:$0xff]   ;;  %v12914_v25 = vld [vmem:[%s15741_s1 + $0xec] ss:$28 sps:$4 sm:$0xff]  }
  0xb6   :  { %1626 = vmatmul.mubr.bf16.gmra.mrb[68].mxu1 %v12385_v24  ;;  %9704 = vmatpush3.bf16.msra.mxu0 %v11441_v16  ;;  %v11446_v24 = vld [vmem:[%s15740_s0 + $0x340] sm:$0xff]   ;;  %v12894_v16 = vld [vmem:[%s15741_s1 + $0x78] ss:$28 sps:$4 sm:$0xff]  }
  0xb7   :  { %1633 = vmatprep.mubr.bf16.mxu1 %v12404_v29  ;;  %9705 = vmatprep.subr.bf16.mxu0 %v11442_v19  ;;  %v11448_v29 = vld [vmem:[%s15740_s0 + $0x388] sm:$0xff]   ;;  %v12901_v19 = vld [vmem:[%s15741_s1 + $0xb4] ss:$28 sps:$4 sm:$0xff]  }
  0xb8   :  { %10954 = vmatprep.mubr.msk.bf16.mxu0 %vm685_vm0, %v12459_v57  ;;  %9756 = vmatpush3.bf16.msra.mxu1 %v11455_v30  ;;  %v11460_v57 = vld [vmem:[%s15740_s0 + $0x400] sm:$0xff]   ;;  %v12920_v30 = vld [vmem:[%s15741_s1 + $0x14] ss:$28 sps:$4 sm:$0xff]  }
  0xb9   :  { %9757 = vmatprep.subr.bf16.mxu1 %v11457_v62 }
  0xba   :  { %9706 = vmatpush3.bf16.msra.mxu0 %v11443_v20  ;;  %v12908_v20 = vld [vmem:[%s15741_s1 + $0xb0] ss:$28 sps:$4 sm:$0xff]  }
  0xbb   :  { %9707 = vmatprep.subr.bf16.mxu0 %v11444_v63 }
  0xbc   :  { %9758 = vmatpush3.bf16.msra.mxu1 %v11459_v48 }
  0xbd   :  { %10955 = vmatmul.mubr.msk.bf16.gmra.mrb[76].mxu0 %vm685_vm0, %v12485_v2  ;;  %v12712_v2 = vld [vmem:[%s15741_s1 + $0x4] ss:$28 sps:$4 sm:$0xff]   ;;  %9759 = vmatprep.subr.bf16.mxu1 %v11460_v57 }
  0xbe   :  { %1634 = vmatmul.mubr.bf16.gmra.mrb[72].mxu1 %v12435_v46  ;;  %9708 = vmatpush3.bf16.msra.mxu0 %v11446_v24  ;;  %v11461_v46 = vld [vmem:[%s15740_s0 + $0x3c0] sm:$0xff]  }
  0xbf   :  { %1641 = vmatprep.mubr.bf16.mxu1 %v12454_v55  ;;  %9709 = vmatprep.subr.bf16.mxu0 %v11448_v29  ;;  %v11462_v55 = vld [vmem:[%s15740_s0 + $0x408] sm:$0xff]  }
  0xc0   :  { %2189 = vmatprep.mubr.bf16.mxu0 %v12712_v2  ;;  %9760 = vmatpush3.bf16.msra.mxu1 %v11461_v46 }
  0xc1   :  { %9761 = vmatprep.subr.bf16.mxu1 %v11462_v55 }
  0xc2   :  { %9710 = vmatpush3.bf16.msra.mxu0 %v11450_v0 }
  0xc3   :  { %9711 = vmatprep.subr.bf16.mxu0 %v11452_v7 }
  0xc4   :  { %9762 = vmatpush3.bf16.msra.mxu1 %v11463_v10 }
  0xc5   :  { %9763 = vmatprep.subr.bf16.mxu1 %v11464_v18 }
  0xc6   :  { %1642 = vmatmul.mubr.bf16.gmra.mrb[76].mxu1 %v12480_v1  ;;  %9712 = vmatpush3.bf16.msra.mxu0 %v11454_v8  ;;  %v11466_v1 = vld [vmem:[%s15740_s0 + $0x418] sm:$0xff]   ;;  %v11489_v8 = vld [vmem:[%s15740_s0 + $0x530] sm:$0xff]  }
  0xc7   :  { %1649 = vmatprep.mubr.bf16.mxu1 %v12504_v11  ;;  %9713 = vmatprep.subr.bf16.mxu0 %v11456_v9  ;;  %v11469_v11 = vld [vmem:[%s15740_s0 + $0x420] sm:$0xff]   ;;  %v11492_v9 = vld [vmem:[%s15740_s0 + $0x578] sm:$0xff]  }
  0xc8   :  { %9764 = vmatpush3.bf16.msra.mxu1 %v11465_v22  ;;  %v12934_v22 = vld [vmem:[%s15741_s1 + $0xe8] ss:$28 sps:$4 sm:$0xff]  }
  0xc9   :  { %9765 = vmatprep.subr.bf16.mxu1 %v11466_v1 }
  0xca   :  { %9714 = vmatpush3.bf16.msra.mxu0 %v11458_v21 }
  0xcb   :  { %9803 = vmatprep.subr.bf16.mxu0 %v11468_v23  ;;  %v12940_v23 = vld [vmem:[%s15741_s1 + $0x10] ss:$28 sps:$4 sm:$0xff]  }
  0xcc   :  { %9766 = vmatpush3.bf16.msra.mxu1 %v11467_v26  ;;  %v12949_v26 = vld [vmem:[%s15741_s1 + $0x4c] ss:$28 sps:$4 sm:$0xff]  }
  0xcd   :  { %2190 = vmatmul.mubr.bf16.vlgmr.msra.gmra.mrb[80].mxu0 %v12760_v32  ;;  %10958 = vmatprep.subr.bf16.mxu1 %v11484_v31 }
  0xce   :  { %1650 = vmatmul.mubr.bf16.gmra.mrb[80].mxu1 %v12528_v27  ;;  %2197 = vmatprep.mubr.bf16.mxu0 %v12767_v33  ;;  %v11471_v27 = vld [vmem:[%s15740_s0 + $0x428] sm:$0xff]  }
  0xcf   :  { %1657 = vmatprep.mubr.bf16.mxu1 %v12342_v15  ;;  %9804 = vmatpush3.bf16.msra.mxu0 %v11469_v11  ;;  %v11493_v11 = vld [vmem:[%s15740_s0 + $0x538] sm:$0xff]  }
  0xd0   :  { %9805 = vmatprep.subr.bf16.mxu0 %v11470_v28 }
  0xd3   :  { %9806 = vmatpush3.bf16.msra.mxu0 %v11471_v27  ;;  %v11496_v27 = vld [vmem:[%s15740_s0 + $0x580] sm:$0xff]  }
  0xd4   :  { %9807 = vmatprep.subr.bf16.mxu0 %v11472_v43 }
  0xd5   :  { %2198 = vmatmul.mubr.bf16.gmra.mrb[84].mxu0 %v12786_v51 }
  0xd6   :  { %1658 = vmatmul.mubr.bf16.gmra.mrb[84].mxu1 %v12353_v17  ;;  %2205 = vmatprep.mubr.bf16.mxu0 %v12792_v34 }
  0xd7   :  { %2269 = vmatprep.mubr.bf16.mxu1 %v12798_v53  ;;  %9808 = vmatpush3.bf16.msra.mxu0 %v11473_v44 }
  0xd8   :  { %9809 = vmatprep.subr.bf16.mxu0 %v11474_v45 }
  0xdb   :  { %9810 = vmatpush3.bf16.msra.mxu0 %v11475_v54 }
  0xdc   :  { %9811 = vmatprep.subr.bf16.mxu0 %v11476_v35 }
  0xdd   :  { %2206 = vmatmul.mubr.bf16.gmra.mrb[88].mxu0 %v12819_v61 }
  0xde   :  { %2270 = vmatmul.mubr.bf16.vlgmr.msra.gmra.mrb[88].mxu1 %v12825_v39  ;;  %2213 = vmatprep.mubr.bf16.mxu0 %v12831_v40 }
  0xdf   :  { %2277 = vmatprep.mubr.bf16.mxu1 %v12837_v41  ;;  %9812 = vmatpush3.bf16.msra.mxu0 %v11477_v36 }
  0xe0   :  { %10959 = vmatpush3.bf16.msra.mxu1 %v11484_v31  ;;  %9813 = vmatprep.subr.bf16.mxu0 %v11478_v37 }
  0xe1   :  { %10960 = vmatprep.subr.bf16.mxu1 %v11485_v38 }
  0xe3   :  { %9814 = vmatpush3.bf16.msra.mxu0 %v11479_v42  ;;  %v11497_v42 = vld [vmem:[%s15740_s0 + $0x540] sm:$0xff]  }
  0xe4   :  { %10961 = vmatpush3.bf16.msra.mxu1 %v11485_v38  ;;  %9815 = vmatprep.subr.bf16.mxu0 %v11480_v47 }
  0xe5   :  { %9863 = vmatprep.subr.bf16.mxu1 %v11486_v49  ;;  %2214 = vmatmul.mubr.bf16.gmra.mrb[92].mxu0 %v12858_v56 }
  0xe6   :  { %2278 = vmatmul.mubr.bf16.gmra.mrb[92].mxu1 %v12864_v58  ;;  %2221 = vmatprep.mubr.bf16.mxu0 %v12870_v59 }
  0xe7   :  { %2285 = vmatprep.mubr.bf16.mxu1 %v12876_v60  ;;  %9816 = vmatpush3.bf16.msra.mxu0 %v11481_v50 }
  0xe8   :  { %9817 = vmatprep.subr.bf16.mxu0 %v11482_v52  ;;  %v11500_v52 = vld [vmem:[%s15740_s0 + $0x588] sm:$0xff]  }
  0xeb   :  { %9818 = vmatpush3.bf16.msra.mxu0 %v11483_v3  ;;  %v11827_v3 = vld [vmem:[%s15741_s1 + $0x48] ss:$28 sps:$4 sm:$0xff]  }
  0xec   :  { %9915 = vmatprep.subr.bf16.mxu0 %v11488_v4 }
  0xed   :  { %2222 = vmatmul.mubr.bf16.gmra.mrb[96].mxu0 %v12888_v14 }
  0xee   :  { %2286 = vmatmul.mubr.bf16.gmra.mrb[96].mxu1 %v12894_v16  ;;  %2229 = vmatprep.mubr.bf16.mxu0 %v12310_v5 }
  0xef   :  { %2293 = vmatprep.mubr.bf16.mxu1 %v12901_v19 }
  0xf5   :  { %2230 = vmatmul.mubr.bf16.gmra.mrb[100].mxu0 %v12333_v12 }
  0xf6   :  { %2294 = vmatmul.mubr.bf16.gmra.mrb[100].mxu1 %v12908_v20  ;;  %2349 = vmatprep.mubr.bf16.mxu0 %v12920_v30 }
  0xf7   :  { %2301 = vmatprep.mubr.bf16.mxu1 %v12914_v25 }
  0xf8   :  { %v9387_v62 = vpop.f32.mrb[0].mxu0 }
  0xf9   :  { %v9439_v63 = vpop.f32.mrb[0].mxu1  ;;  %v9388_v24 = vpop.f32.mrb[1].mxu0 }
  0xfa   :  { %v9440_v29 = vpop.f32.mrb[1].mxu1  ;;  %v9389_v48 = vadd.f32 %v9388_v24, %v9387_v62  ;;  %v9390_v0 = vpop.f32.mrb[2].mxu0  ;;  %v11828_v62 = vld [vmem:[%s15741_s1 + $0x84] ss:$28 sps:$4 sm:$0xff]   ;;  %v11501_v24 = vld [vmem:[%s15740_s0 + $0x548] sm:$0xff]  }
  0xfb   :  { %v9441_v57 = vadd.f32 %v9440_v29, %v9439_v63  ;;  %v9442_v7 = vpop.f32.mrb[2].mxu1  ;;  %v9391_v46 = vpop.f32.mrb[3].mxu0  ;;  %v12978_v63 = vld [vmem:[%s15741_s1 + $0x18] ss:$28 sps:$4 sm:$0xff]  }
  0xfc   :  { %v9443_v55 = vpop.f32.mrb[3].mxu1  ;;  %v9392_v18 = vadd.f32 %v9391_v46, %v9390_v0  ;;  %v11504_v0 = vld [vmem:[%s15740_s0 + $0x590] sm:$0xff]  }
  0xfd   :  { %v12929_v10 = vadd.f32 %v9441_v57, %v9389_v48  ;;  %v9444_v21 = vadd.f32 %v9443_v55, %v9442_v7  ;;  %2350 = vmatmul.mubr.bf16.vlgmr.msra.gmra.mrb[104].mxu0 %v12940_v23  ;;  %v11487_v57 = vld [vmem:[%s15740_s0 + $0x4b0] sm:$0xff]  }
  0xfe   :  { %2302 = vmatmul.mubr.bf16.gmra.mrb[104].mxu1 %v12934_v22  ;;  %2357 = vmatprep.mubr.bf16.mxu0 %v12949_v26 }
  0xff   :  { %v12943_v1 = vadd.f32 %v9444_v21, %v9392_v18  ;;  %2309 = vmatprep.mubr.bf16.mxu1 %v12312_v6  ;;  %9916 = vmatpush3.bf16.msra.mxu0 %v11489_v8 }
 0x100   :  { %v9393_v28 = vpop.f32.mrb[4].mxu0  ;;  %9917 = vmatprep.subr.bf16.mxu0 %v11492_v9 }
 0x101   :  { %v9445_v31 = vpop.f32.mrb[4].mxu1  ;;  %v9394_v43 = vpop.f32.mrb[5].mxu0 }
 0x102   :  { %v9446_v44 = vpop.f32.mrb[5].mxu1  ;;  %v9395_v45 = vadd.f32 %v9394_v43, %v9393_v28  ;;  %v9396_v35 = vpop.f32.mrb[6].mxu0  ;;  %v11490_v28 = vld [vmem:[%s15740_s0 + $0x4f8] sm:$0xff]  }
 0x103   :  { %v9447_v54 = vadd.f32 %v9446_v44, %v9445_v31  ;;  %v9448_v36 = vpop.f32.mrb[6].mxu1  ;;  %v9397_v37 = vpop.f32.mrb[7].mxu0  ;;  %9918 = vmatpush3.bf16.msra.mxu0 %v11493_v11  ;;  %v11505_v31 = vld [vmem:[%s15740_s0 + $0x550] sm:$0xff]  }
 0x104   :  { %v9449_v38 = vpop.f32.mrb[7].mxu1  ;;  %v9398_v49 = vadd.f32 %v9397_v37, %v9396_v35  ;;  %9919 = vmatprep.subr.bf16.mxu0 %v11496_v27  ;;  %v11830_v35 = vld [vmem:[%s15741_s1 + $0x80] ss:$28 sps:$4 sm:$0xff]  }
 0x105   :  { %v12961_v47 = vadd.f32 %v9447_v54, %v9395_v45  ;;  %v9450_v50 = vadd.f32 %v9449_v38, %v9448_v36  ;;  %2358 = vmatmul.mubr.bf16.gmra.mrb[108].mxu0 %v11827_v3  ;;  %v11491_v45 = vld [vmem:[%s15740_s0 + $0x4b8] sm:$0xff]   ;;  %v13011_v36 = vld [vmem:[%s15741_s1 + $0x50] ss:$28 sps:$4 sm:$0xff]   ;;  %v11495_v3 = vld [vmem:[%s15740_s0 + $0x4c0] sm:$0xff]  }
 0x106   :  { %2310 = vmatmul.mubr.bf16.gmra.mrb[108].mxu1 %v12335_v13  ;;  %2365 = vmatprep.mubr.bf16.mxu0 %v11828_v62  ;;  %v11508_v54 = vld [vmem:[%s15740_s0 + $0x598] sm:$0xff]  }
 0x107   :  { %v12970_v4 = vadd.f32 %v9450_v50, %v9398_v49  ;;  %10962 = vmatprep.mubr.msk.bf16.mxu1 %vm685_vm0, %v12978_v63  ;;  %9920 = vmatpush3.bf16.msra.mxu0 %v11497_v42  ;;  %v11832_v38 = vld [vmem:[%s15741_s1 + $0xbc] ss:$28 sps:$4 sm:$0xff]   ;;  %v13023_v42 = vld [vmem:[%s15741_s1 + $0x88] ss:$28 sps:$4 sm:$0xff]  }
 0x108   :  { %v9399_v29 = vpop.f32.mrb[8].mxu0  ;;  %9921 = vmatprep.subr.bf16.mxu0 %v11500_v52  ;;  %v11494_v49 = vld [vmem:[%s15740_s0 + $0x500] sm:$0xff]   ;;  %v11509_v62 = vld [vmem:[%s15740_s0 + $0x558] sm:$0xff]  }
 0x109   :  { %v9451_v48 = vpop.f32.mrb[8].mxu1  ;;  %v9400_v7 = vpop.f32.mrb[9].mxu0 }
 0x10a   :  { %v9452_v46 = vpop.f32.mrb[9].mxu1  ;;  %v9401_v55 = vadd.f32 %v9400_v7, %v9399_v29  ;;  %v9402_v9 = vpop.f32.mrb[10].mxu0 }
 0x10b   :  { %v9453_v8 = vadd.f32 %v9452_v46, %v9451_v48  ;;  %v9454_v18 = vpop.f32.mrb[10].mxu1  ;;  %v9403_v21 = vpop.f32.mrb[11].mxu0  ;;  %9922 = vmatpush3.bf16.msra.mxu0 %v11501_v24  ;;  %v11498_v48 = vld [vmem:[%s15740_s0 + $0x508] sm:$0xff]  }
 0x10c   :  { %v9455_v11 = vpop.f32.mrb[11].mxu1  ;;  %v9404_v43 = vadd.f32 %v9403_v21, %v9402_v9  ;;  %9923 = vmatprep.subr.bf16.mxu0 %v11504_v0  ;;  %v11512_v9 = vld [vmem:[%s15740_s0 + $0x5a0] sm:$0xff]  }
 0x10d   :  { %v12997_v27 = vadd.f32 %v9453_v8, %v9401_v55  ;;  %v9456_v44 = vadd.f32 %v9455_v11, %v9454_v18  ;;  %2366 = vmatmul.mubr.bf16.gmra.mrb[112].mxu0 %v11830_v35  ;;  %v11513_v18 = vld [vmem:[%s15740_s0 + $0x560] sm:$0xff]   ;;  %v11836_v35 = vld [vmem:[%s15741_s1 + $0xf4] ss:$28 sps:$4 sm:$0xff]  }
 0x10e   :  { %10963 = vmatmul.mubr.msk.bf16.vlgmr.msra.gmra.mrb[112].mxu1 %vm685_vm0, %v13011_v36  ;;  %2373 = vmatprep.mubr.bf16.mxu0 %v11832_v38  ;;  %v11502_v38 = vld [vmem:[%s15740_s0 + $0x510] sm:$0xff]  }
 0x10f   :  { %v13015_v37 = vadd.f32 %v9456_v44, %v9404_v43  ;;  %9864 = vmatpush3.bf16.msra.mxu1 %v11487_v57  ;;  %10966 = vmatprep.mubr.msk.bf16.mxu1 %vm685_vm0, %v13023_v42  ;;  %v11516_v43 = vld [vmem:[%s15740_s0 + $0x5a8] sm:$0xff]   ;;  %v11834_v44 = vld [vmem:[%s15741_s1 + $0xb8] ss:$28 sps:$4 sm:$0xff]  }
 0x110   :  { %9865 = vmatprep.subr.bf16.mxu1 %v11490_v28  ;;  %v9405_v50 = vpop.f32.mrb[12].mxu0  ;;  %9924 = vmatpush3.bf16.msra.mxu0 %v11505_v31  ;;  %v11499_v31 = vld [vmem:[%s15740_s0 + $0x4c8] sm:$0xff]  }
 0x111   :  { %v9457_v52 = vpop.f32.mrb[12].mxu1  ;;  %v9406_v24 = vpop.f32.mrb[13].mxu0  ;;  %9925 = vmatprep.subr.bf16.mxu0 %v11508_v54 }
 0x112   :  { %v9458_v29 = vpop.f32.mrb[13].mxu1  ;;  %v9407_v57 = vadd.f32 %v9406_v24, %v9405_v50  ;;  %v9408_v7 = vpop.f32.mrb[14].mxu0 }
 0x113   :  { %9866 = vmatpush3.bf16.msra.mxu1 %v11491_v45  ;;  %v9459_v0 = vadd.f32 %v9458_v29, %v9457_v52  ;;  %v9460_v46 = vpop.f32.mrb[14].mxu1  ;;  %v9409_v55 = vpop.f32.mrb[15].mxu0  ;;  %v13059_v45 = vld [vmem:[%s15741_s1 + $0xc0] ss:$28 sps:$4 sm:$0xff]  }
 0x114   :  { %v9461_v8 = vpop.f32.mrb[15].mxu1  ;;  %9867 = vmatprep.subr.bf16.mxu1 %v11494_v49  ;;  %v9410_v11 = vadd.f32 %v9409_v55, %v9408_v7  ;;  %9926 = vmatpush3.bf16.msra.mxu0 %v11509_v62  ;;  %v13074_v49 = vld [vmem:[%s15741_s1 + $0xf8] ss:$28 sps:$4 sm:$0xff]  }
 0x115   :  { %v13045_v21 = vadd.f32 %v9459_v0, %v9407_v57  ;;  %v9462_v28 = vadd.f32 %v9461_v8, %v9460_v46  ;;  %2374 = vmatmul.mubr.bf16.gmra.mrb[116].mxu0 %v11834_v44  ;;  %9927 = vmatprep.subr.bf16.mxu0 %v11512_v9  ;;  %v11506_v55 = vld [vmem:[%s15740_s0 + $0x518] sm:$0xff]   ;;  %v11517_v8 = vld [vmem:[%s15740_s0 + $0x568] sm:$0xff]   ;;  %v13101_v44 = vld [vmem:[%s15741_s1 + $0x130] ss:$0 sps:$4 sm:$0x77]  }
 0x116   :  { %10967 = vmatmul.mubr.msk.bf16.gmra.mrb[116].mxu1 %vm685_vm0, %v13059_v45  ;;  %2381 = vmatprep.mubr.bf16.mxu0 %v11836_v35 }
 0x117   :  { %v13063_v54 = vadd.f32 %v9462_v28, %v9410_v11  ;;  %9868 = vmatpush3.bf16.msra.mxu1 %v11495_v3  ;;  %10970 = vmatprep.mubr.msk.bf16.mxu1 %vm685_vm0, %v13074_v49  ;;  %v11503_v3 = vld [vmem:[%s15740_s0 + $0x4d0] sm:$0xff]   ;;  %v11507_v28 = vld [vmem:[%s15740_s0 + $0x4d8] sm:$0xff]  }
 0x118   :  { %9869 = vmatprep.subr.bf16.mxu1 %v11498_v48  ;;  %v9411_v50 = vpop.f32.mrb[16].mxu0  ;;  %9928 = vmatpush3.bf16.msra.mxu0 %v11513_v18 }
 0x119   :  { %v9463_v52 = vpop.f32.mrb[16].mxu1  ;;  %v9412_v62 = vpop.f32.mrb[17].mxu0  ;;  %9929 = vmatprep.subr.bf16.mxu0 %v11516_v43  ;;  %v11838_v43 = vld [vmem:[%s15741_s1 + $0xf0] ss:$28 sps:$4 sm:$0xff]  }
 0x11a   :  { %v9464_v24 = vpop.f32.mrb[17].mxu1  ;;  %v9413_v29 = vadd.f32 %v9412_v62, %v9411_v50  ;;  %v9414_v57 = vpop.f32.mrb[18].mxu0  ;;  %v11511_v62 = vld [vmem:[%s15740_s0 + $0x4e0] sm:$0xff]  }
 0x11b   :  { %9870 = vmatpush3.bf16.msra.mxu1 %v11499_v31  ;;  %v9465_v48 = vadd.f32 %v9464_v24, %v9463_v52  ;;  %v9466_v0 = vpop.f32.mrb[18].mxu1  ;;  %v9415_v7 = vpop.f32.mrb[19].mxu0  ;;  %v11523_v31 = vld [vmem:[%s15740_s0 + $0x630] sm:$0xff]  }
 0x11c   :  { %v9467_v46 = vpop.f32.mrb[19].mxu1  ;;  %9871 = vmatprep.subr.bf16.mxu1 %v11502_v38  ;;  %v9416_v18 = vadd.f32 %v9415_v7, %v9414_v57  ;;  %v11510_v38 = vld [vmem:[%s15740_s0 + $0x520] sm:$0xff]   ;;  %9930 = vmatpush3.bf16.msra.mxu0 %v11517_v8 }
 0x11d   :  { %v13087_v9 = vadd.f32 %v9465_v48, %v9413_v29  ;;  %v9468_v11 = vadd.f32 %v9467_v46, %v9466_v0  ;;  %2382 = vmatmul.mubr.bf16.gmra.mrb[120].mxu0 %v11838_v43  ;;  %10974 = vmatprep.subr.bf16.mxu0 %v11523_v31 }
 0x11e   :  { %10971 = vmatmul.mubr.msk.bf16.gmra.mrb[120].mxu1 %vm685_vm0, %v13101_v44  ;;  %2389 = vmatprep.mubr.bf16.mxu0 %v12342_v15 }
 0x11f   :  { %v13105_v35 = vadd.f32 %v9468_v11, %v9416_v18  ;;  %9872 = vmatpush3.bf16.msra.mxu1 %v11503_v3  ;;  %2921 = vmatprep.mubr.bf16.mxu1 %v12712_v2  ;;  %v11515_v2 = vld [vmem:[%s15740_s0 + $0x4e8] sm:$0xff]   ;;  %v11518_v18 = vld [vmem:[%s15740_s0 + $0x5f0] sm:$0xff]  }
 0x120   :  { %9873 = vmatprep.subr.bf16.mxu1 %v11506_v55  ;;  %v9417_v50 = vpop.f32.mrb[20].mxu0  ;;  %v11514_v55 = vld [vmem:[%s15740_s0 + $0x528] sm:$0xff]  }
 0x121   :  { %v9469_v52 = vpop.f32.mrb[20].mxu1  ;;  %v9418_v24 = vpop.f32.mrb[21].mxu0 }
 0x122   :  { %v9470_v29 = vpop.f32.mrb[21].mxu1  ;;  %v9419_v3 = vadd.f32 %v9418_v24, %v9417_v50  ;;  %v9420_v57 = vpop.f32.mrb[22].mxu0  ;;  %v11519_v50 = vld [vmem:[%s15740_s0 + $0x5b0] sm:$0xff]  }
 0x123   :  { %9874 = vmatpush3.bf16.msra.mxu1 %v11507_v28  ;;  %v9471_v48 = vadd.f32 %v9470_v29, %v9469_v52  ;;  %v9472_v0 = vpop.f32.mrb[22].mxu1  ;;  %v9421_v7 = vpop.f32.mrb[23].mxu0 }
 0x124   :  { %9875 = vmatprep.subr.bf16.mxu1 %v11510_v38  ;;  %v9473_v46 = vpop.f32.mrb[23].mxu1 }
 0x125   :  { %v859_v8 = vadd.f32 %v9471_v48, %v9419_v3  ;;  %2390 = vmatmul.mubr.bf16.gmra.mrb[124].mxu0 %v12353_v17  ;;  %v11534_v3 = vld [vmem:[%s15740_s0 + $0x638] sm:$0xff]  }
 0x126   :  { %3001 = vmatprep.mubr.bf16.mxu0 %v12798_v53  ;;  %v11520_v53 = vld [vmem:[%s15740_s0 + $0x5f8] sm:$0xff]  }
 0x127   :  { %9876 = vmatpush3.bf16.msra.mxu1 %v11511_v62 }
 0x128   :  { %9877 = vmatprep.subr.bf16.mxu1 %v11514_v55  ;;  %v9491_v11 = vpop.f32.mrb[24].mxu0  ;;  %v11521_v55 = vld [vmem:[%s15740_s0 + $0x5b8] sm:$0xff]  }
 0x129   :  { %v9521_v28 = vpop.f32.mrb[24].mxu1  ;;  %v9492_v43 = vpop.f32.mrb[25].mxu0 }
 0x12a   :  { %v9522_v38 = vpop.f32.mrb[25].mxu1  ;;  %v9493_v52 = vadd.f32 %v9492_v43, %v9491_v11  ;;  %v9494_v29 = vpop.f32.mrb[26].mxu0  ;;  %v11525_v43 = vld [vmem:[%s15740_s0 + $0x608] sm:$0xff]  }
 0x12b   :  { %9878 = vmatpush3.bf16.msra.mxu1 %v11515_v2  ;;  %v9523_v24 = vadd.f32 %v9522_v38, %v9521_v28  ;;  %v9524_v62 = vpop.f32.mrb[26].mxu1  ;;  %v9495_v48 = vpop.f32.mrb[27].mxu0 }
 0x12c   :  { %v9525_v57 = vpop.f32.mrb[27].mxu1  ;;  %9967 = vmatprep.subr.bf16.mxu1 %v11518_v18  ;;  %v9496_v0 = vadd.f32 %v9495_v48, %v9494_v29  ;;  %v899_v7 = vadd.f32 %v9493_v52, %v12929_v10  ;;  %v11526_v62 = vld [vmem:[%s15740_s0 + $0x5c8] sm:$0xff]  }
 0x12d   :  { %v13136_v46 = vadd.f32 %v9523_v24, %v859_v8  ;;  %3002 = vmatmul.mubr.bf16.vlgmr.msra.gmra.mrb[128].mxu0 %v12825_v39  ;;  %v11536_v39 = vld [vmem:[%s15740_s0 + $0x680] sm:$0xff]  }
 0x12e   :  { %2922 = vmatmul.mubr.bf16.vlgmr.msra.gmra.mrb[124].mxu1 %v12760_v32  ;;  %v902_v2 = vadd.f32 %v9496_v0, %v12943_v1  ;;  %3009 = vmatprep.mubr.bf16.mxu0 %v12837_v41  ;;  %v11522_v32 = vld [vmem:[%s15740_s0 + $0x600] sm:$0xff]  }
 0x12f   :  { %2929 = vmatprep.mubr.bf16.mxu1 %v12767_v33  ;;  %9968 = vmatpush3.bf16.msra.mxu1 %v11519_v50  ;;  %v11524_v41 = vld [vmem:[%s15740_s0 + $0x5c0] sm:$0xff]  }
 0x130   :  { %10975 = vmatpush3.bf16.msra.mxu0 %v11523_v31  ;;  %v9497_v18 = vpop.f32.mrb[28].mxu0  ;;  %9969 = vmatprep.subr.bf16.mxu1 %v11520_v53 }
 0x131   :  { %v10932_v10 = vpop.f32.mrb[28].mxu1  ;;  %10976 = vmatprep.subr.bf16.mxu0 %v11534_v3  ;;  %v9498_v8 = vpop.f32.mrb[29].mxu0 }
 0x132   :  { %v978_v33 = vpop.f32.mrb[29].mxu1  ;;  %v9499_v1 = vadd.f32 %v9498_v8, %v9497_v18  ;;  %v9500_v11 = vpop.f32.mrb[30].mxu0 }
 0x133   :  { %v13155_v31 = vadd.f32 %v978_v33, %v899_v7  ;;  %v10933_v28 = vpop.f32.mrb[30].mxu1  ;;  %v9501_v38 = vpop.f32.mrb[31].mxu0  ;;  %9970 = vmatpush3.bf16.msra.mxu1 %v11521_v55 }
 0x134   :  { %v981_v50 = vpop.f32.mrb[31].mxu1  ;;  %10977 = vmatpush3.bf16.msra.mxu0 %v11534_v3  ;;  %v907_v52 = vadd.f32 %v9499_v1, %v12961_v47  ;;  %v9502_v24 = vadd.f32 %v9501_v38, %v9500_v11  ;;  %9971 = vmatprep.subr.bf16.mxu1 %v11522_v32  ;;  %v11527_v47 = vld [vmem:[%s15740_s0 + $0x610] sm:$0xff]   ;;  %v11529_v32 = vld [vmem:[%s15740_s0 + $0x618] sm:$0xff]  }
 0x135   :  { %v13161_v29 = vadd.f32 %v981_v50, %v902_v2  ;;  %10027 = vmatprep.subr.bf16.mxu0 %v11536_v39  ;;  %3010 = vmatmul.mubr.bf16.gmra.mrb[132].mxu0 %v12864_v58  ;;  %v11532_v50 = vld [vmem:[%s15740_s0 + $0x5e0] sm:$0xff]  }
 0x136   :  { %2930 = vmatmul.mubr.bf16.gmra.mrb[128].mxu1 %v12786_v51  ;;  %v13168_v53 = vadd.f32 %v10932_v10, %v907_v52  ;;  %v910_v48 = vadd.f32 %v9502_v24, %v12970_v4  ;;  %3017 = vmatprep.mubr.bf16.mxu0 %v12876_v60 }
 0x137   :  { %2937 = vmatprep.mubr.bf16.mxu1 %v12792_v34  ;;  %9972 = vmatpush3.bf16.msra.mxu1 %v11524_v41  ;;  %v11528_v34 = vld [vmem:[%s15740_s0 + $0x5d0] sm:$0xff]  }
 0x138   :  { %v13176_v51 = vadd.f32 %v10933_v28, %v910_v48  ;;  %v9503_v58 = vpop.f32.mrb[32].mxu0  ;;  %9973 = vmatprep.subr.bf16.mxu1 %v11525_v43 }
 0x139   :  { %v10936_v3 = vpop.f32.mrb[32].mxu1  ;;  %v9504_v57 = vpop.f32.mrb[33].mxu0 }
 0x13a   :  { %v994_v0 = vpop.f32.mrb[33].mxu1  ;;  %v9505_v7 = vadd.f32 %v9504_v57, %v9503_v58  ;;  %v9506_v55 = vpop.f32.mrb[34].mxu0 }
 0x13b   :  { %v10937_v2 = vpop.f32.mrb[34].mxu1  ;;  %v9507_v4 = vpop.f32.mrb[35].mxu0  ;;  %9974 = vmatpush3.bf16.msra.mxu1 %v11526_v62 }
 0x13c   :  { %v997_v18 = vpop.f32.mrb[35].mxu1  ;;  %v9508_v60 = vadd.f32 %v9507_v4, %v9506_v55  ;;  %v915_v10 = vadd.f32 %v9505_v7, %v12997_v27  ;;  %9975 = vmatprep.subr.bf16.mxu1 %v11527_v47  ;;  %v11530_v27 = vld [vmem:[%s15740_s0 + $0x5d8] sm:$0xff]  }
 0x13d   :  { %3018 = vmatmul.mubr.bf16.gmra.mrb[136].mxu0 %v12894_v16 }
 0x13e   :  { %2938 = vmatmul.mubr.bf16.gmra.mrb[132].mxu1 %v12819_v61  ;;  %v13187_v39 = vadd.f32 %v994_v0, %v915_v10  ;;  %v918_v8 = vadd.f32 %v9508_v60, %v13015_v37  ;;  %3025 = vmatprep.mubr.bf16.mxu0 %v12901_v19  ;;  %v11531_v61 = vld [vmem:[%s15740_s0 + $0x620] sm:$0xff]  }
 0x13f   :  { %2945 = vmatprep.mubr.bf16.mxu1 %v12831_v40  ;;  %9976 = vmatpush3.bf16.msra.mxu1 %v11528_v34 }
 0x140   :  { %v13195_v33 = vadd.f32 %v997_v18, %v918_v8  ;;  %v9509_v41 = vpop.f32.mrb[36].mxu0  ;;  %9977 = vmatprep.subr.bf16.mxu1 %v11529_v32 }
 0x141   :  { %v10940_v1 = vpop.f32.mrb[36].mxu1  ;;  %v9510_v40 = vpop.f32.mrb[37].mxu0 }
 0x142   :  { %v13201_v16 = vadd.f32 %v10940_v1, %v13136_v46  ;;  %v1010_v37 = vpop.f32.mrb[37].mxu1  ;;  %v9511_v19 = vadd.f32 %v9510_v40, %v9509_v41  ;;  %v9512_v11 = vpop.f32.mrb[38].mxu0  ;;  %v11533_v46 = vld [vmem:[%s15740_s0 + $0x628] sm:$0xff]  }
 0x143   :  { %v10941_v28 = vpop.f32.mrb[38].mxu1  ;;  %v9513_v43 = vpop.f32.mrb[39].mxu0  ;;  %9978 = vmatpush3.bf16.msra.mxu1 %v11530_v27 }
 0x144   :  { %15797 = vst [vmem:[#allocation11_spill] sm:$0xff] %v13201_v16  ;;  %v1013_v38 = vpop.f32.mrb[39].mxu1  ;;  %v923_v52 = vadd.f32 %v9511_v19, %v13045_v21  ;;  %v9514_v24 = vadd.f32 %v9513_v43, %v9512_v11  ;;  %9979 = vmatprep.subr.bf16.mxu1 %v11531_v61  ;;  %v11535_v21 = vld [vmem:[%s15740_s0 + $0x5e8] sm:$0xff]   ;;  %v11537_v19 = vld [vmem:[%s15740_s0 + $0x640] sm:$0xff]  }
 0x145   :  { %3026 = vmatmul.mubr.bf16.gmra.mrb[140].mxu0 %v12908_v20  ;;  %v11538_v11 = vld [vmem:[%s15740_s0 + $0x688] sm:$0xff]  }
 0x146   :  { %2946 = vmatmul.mubr.bf16.gmra.mrb[136].mxu1 %v12858_v56  ;;  %v13212_v62 = vadd.f32 %v10936_v3, %v923_v52  ;;  %v926_v48 = vadd.f32 %v9514_v24, %v13063_v54  ;;  %3033 = vmatprep.mubr.bf16.mxu0 %v12914_v25  ;;  %v11545_v56 = vld [vmem:[%s15740_s0 + $0x700] sm:$0xff]   ;;  %v11549_v24 = vld [vmem:[%s15740_s0 + $0x708] sm:$0xff]  }
 0x147   :  { %2953 = vmatprep.mubr.bf16.mxu1 %v12870_v59  ;;  %9980 = vmatpush3.bf16.msra.mxu1 %v11532_v50 }
 0x148   :  { %v13220_v47 = vadd.f32 %v10937_v2, %v926_v48  ;;  %v9515_v58 = vpop.f32.mrb[40].mxu0  ;;  %9981 = vmatprep.subr.bf16.mxu1 %v11533_v46 }
 0x149   :  { %v9516_v20 = vpop.f32.mrb[41].mxu0 }
 0x14a   :  { %v9517_v3 = vadd.f32 %v9516_v20, %v9515_v58  ;;  %v9518_v54 = vpop.f32.mrb[42].mxu0  ;;  %v11539_v58 = vld [vmem:[%s15740_s0 + $0x648] sm:$0xff]  }
 0x14b   :  { %v9519_v57 = vpop.f32.mrb[43].mxu0  ;;  %9982 = vmatpush3.bf16.msra.mxu1 %v11535_v21 }
 0x14c   :  { %v9520_v59 = vadd.f32 %v9519_v57, %v9518_v54  ;;  %v931_v25 = vadd.f32 %v9517_v3, %v13087_v9  ;;  %10079 = vmatprep.subr.bf16.mxu1 %v11545_v56  ;;  %v11540_v56 = vld [vmem:[%s15740_s0 + $0x690] sm:$0xff]   ;;  %v11551_v3 = vld [vmem:[%s15740_s0 + $0x6c8] sm:$0xff]  }
 0x14d   :  { %3034 = vmatmul.mubr.bf16.gmra.mrb[144].mxu0 %v12934_v22 }
 0x14e   :  { %2954 = vmatmul.mubr.bf16.gmra.mrb[140].mxu1 %v12888_v14  ;;  %v13228_v0 = vadd.f32 %v1010_v37, %v931_v25  ;;  %v934_v7 = vadd.f32 %v9520_v59, %v13105_v35  ;;  %3041 = vmatprep.mubr.bf16.mxu0 %v12312_v6 }
 0x14f   :  { %2961 = vmatprep.mubr.bf16.mxu1 %v12310_v5 }
 0x150   :  { %v13233_v55 = vadd.f32 %v1013_v38, %v934_v7  ;;  %v9603_v4 = vpop.f32.mrb[44].mxu0 }
 0x151   :  { %v9551_v2 = vpop.f32.mrb[40].mxu1  ;;  %v9604_v34 = vpop.f32.mrb[45].mxu0 }
 0x152   :  { %v9552_v18 = vpop.f32.mrb[41].mxu1  ;;  %v9605_v60 = vadd.f32 %v9604_v34, %v9603_v4  ;;  %v9606_v14 = vpop.f32.mrb[46].mxu0 }
 0x153   :  { %v9553_v9 = vadd.f32 %v9552_v18, %v9551_v2  ;;  %v9554_v10 = vpop.f32.mrb[42].mxu1  ;;  %v9607_v22 = vpop.f32.mrb[47].mxu0 }
 0x154   :  { %v9555_v32 = vpop.f32.mrb[43].mxu1  ;;  %v9608_v35 = vadd.f32 %v9607_v22, %v9606_v14  ;;  %v11557_v22 = vld [vmem:[%s15740_s0 + $0x718] sm:$0xff]  }
 0x155   :  { %v13235_v8 = vadd.f32 %v9605_v60, %v9553_v9  ;;  %v9556_v27 = vadd.f32 %v9555_v32, %v9554_v10  ;;  %3042 = vmatmul.mubr.bf16.gmra.mrb[148].mxu0 %v12335_v13  ;;  %v11555_v9 = vld [vmem:[%s15740_s0 + $0x6d0] sm:$0xff]   ;;  %v11543_v32 = vld [vmem:[%s15740_s0 + $0x658] sm:$0xff]  }
 0x156   :  { %2962 = vmatmul.mubr.bf16.gmra.mrb[144].mxu1 %v12333_v12  ;;  %10978 = vmatprep.mubr.msk.bf16.mxu0 %vm685_vm0, %v12978_v63 }
 0x157   :  { %v13239_v41 = vadd.f32 %v9608_v35, %v9556_v27  ;;  %3081 = vmatprep.mubr.bf16.mxu1 %v12920_v30  ;;  %v11547_v30 = vld [vmem:[%s15740_s0 + $0x6c0] sm:$0xff]  }
 0x158   :  { %v9609_v61 = vpop.f32.mrb[48].mxu0  ;;  %v13298_v27 = vld [vmem:[%s15741_s1 + $0x48] ss:$28 sps:$4 sm:$0xff]  }
 0x159   :  { %v9557_v1 = vpop.f32.mrb[44].mxu1  ;;  %v9610_v37 = vpop.f32.mrb[49].mxu0  ;;  %v11544_v35 = vld [vmem:[%s15740_s0 + $0x6a0] sm:$0xff]  }
 0x15a   :  { %v9558_v40 = vpop.f32.mrb[45].mxu1  ;;  %v9611_v43 = vadd.f32 %v9610_v37, %v9609_v61  ;;  %v9612_v50 = vpop.f32.mrb[50].mxu0  ;;  %v13311_v61 = vld [vmem:[%s15741_s1 + $0x84] ss:$28 sps:$4 sm:$0xff]  }
 0x15b   :  { %v9559_v28 = vadd.f32 %v9558_v40, %v9557_v1  ;;  %v9560_v38 = vpop.f32.mrb[46].mxu1  ;;  %v9613_v52 = vpop.f32.mrb[51].mxu0  ;;  %v11546_v37 = vld [vmem:[%s15740_s0 + $0x660] sm:$0xff]  }
 0x15c   :  { %v9561_v63 = vpop.f32.mrb[47].mxu1  ;;  %v9614_v21 = vadd.f32 %v9613_v52, %v9612_v50  ;;  %v11559_v52 = vld [vmem:[%s15740_s0 + $0x6d8] sm:$0xff]  }
 0x15d   :  { %v13256_v46 = vadd.f32 %v9611_v43, %v9559_v28  ;;  %v9562_v48 = vadd.f32 %v9561_v63, %v9560_v38  ;;  %10979 = vmatmul.mubr.msk.bf16.vlgmr.msra.gmra.mrb[152].mxu0 %vm685_vm0, %v13011_v36  ;;  %v11541_v36 = vld [vmem:[%s15740_s0 + $0x650] sm:$0xff]  }
 0x15e   :  { %3082 = vmatmul.mubr.bf16.vlgmr.msra.gmra.mrb[148].mxu1 %v12940_v23  ;;  %10028 = vmatpush3.bf16.msra.mxu0 %v11537_v19 }
 0x15f   :  { %v13267_v20 = vadd.f32 %v9614_v21, %v9562_v48  ;;  %3089 = vmatprep.mubr.bf16.mxu1 %v12949_v26  ;;  %10029 = vmatprep.subr.bf16.mxu0 %v11538_v11  ;;  %v11542_v26 = vld [vmem:[%s15740_s0 + $0x698] sm:$0xff]  }
 0x160   :  { %10982 = vmatprep.mubr.msk.bf16.mxu0 %vm685_vm0, %v13023_v42  ;;  %v9615_v54 = vpop.f32.mrb[52].mxu0  ;;  %10080 = vmatpush3.bf16.msra.mxu1 %v11547_v30  ;;  %v11553_v42 = vld [vmem:[%s15740_s0 + $0x710] sm:$0xff]  }
 0x161   :  { %v9563_v23 = vpop.f32.mrb[48].mxu1  ;;  %v9616_v59 = vpop.f32.mrb[53].mxu0  ;;  %10081 = vmatprep.subr.bf16.mxu1 %v11549_v24 }
 0x162   :  { %v9564_v57 = vpop.f32.mrb[49].mxu1  ;;  %10030 = vmatpush3.bf16.msra.mxu0 %v11539_v58  ;;  %v9617_v7 = vadd.f32 %v9616_v59, %v9615_v54  ;;  %v9618_v4 = vpop.f32.mrb[54].mxu0  ;;  %v11550_v58 = vld [vmem:[%s15740_s0 + $0x668] sm:$0xff]  }
 0x163   :  { %v9565_v25 = vadd.f32 %v9564_v57, %v9563_v23  ;;  %v9566_v2 = vpop.f32.mrb[50].mxu1  ;;  %v9619_v34 = vpop.f32.mrb[55].mxu0  ;;  %10031 = vmatprep.subr.bf16.mxu0 %v11540_v56  ;;  %v11560_v56 = vld [vmem:[%s15740_s0 + $0x720] sm:$0xff]   ;;  %v11552_v23 = vld [vmem:[%s15740_s0 + $0x6b0] sm:$0xff]  }
 0x164   :  { %v9567_v18 = vpop.f32.mrb[51].mxu1  ;;  %v9620_v14 = vadd.f32 %v9619_v34, %v9618_v4  ;;  %10082 = vmatpush3.bf16.msra.mxu1 %v11551_v3  ;;  %v13336_v3 = vld [vmem:[%s15741_s1 + $0x80] ss:$28 sps:$4 sm:$0xff]  }
 0x165   :  { %v13287_v60 = vadd.f32 %v9617_v7, %v9565_v25  ;;  %v9568_v10 = vadd.f32 %v9567_v18, %v9566_v2  ;;  %10983 = vmatmul.mubr.msk.bf16.gmra.mrb[156].mxu0 %vm685_vm0, %v13059_v45  ;;  %10083 = vmatprep.subr.bf16.mxu1 %v11553_v42  ;;  %v11844_v25 = vld [vmem:[%s15741_s1 + $0x4] ss:$28 sps:$4 sm:$0xff]   ;;  %v11562_v7 = vld [vmem:[%s15740_s0 + $0x728] sm:$0xff]  }
 0x166   :  { %3090 = vmatmul.mubr.bf16.gmra.mrb[152].mxu1 %v13298_v27  ;;  %10032 = vmatpush3.bf16.msra.mxu0 %v11541_v36  ;;  %v13349_v36 = vld [vmem:[%s15741_s1 + $0xbc] ss:$28 sps:$4 sm:$0xff]  }
 0x167   :  { %v13306_v1 = vadd.f32 %v9620_v14, %v9568_v10  ;;  %3097 = vmatprep.mubr.bf16.mxu1 %v13311_v61  ;;  %10033 = vmatprep.subr.bf16.mxu0 %v11542_v26  ;;  %v11554_v26 = vld [vmem:[%s15740_s0 + $0x670] sm:$0xff]  }
 0x168   :  { %10986 = vmatprep.mubr.msk.bf16.mxu0 %vm685_vm0, %v13074_v49  ;;  %v9621_v45 = vpop.f32.mrb[56].mxu0  ;;  %10084 = vmatpush3.bf16.msra.mxu1 %v11555_v9  ;;  %v11548_v49 = vld [vmem:[%s15740_s0 + $0x6a8] sm:$0xff]  }
 0x169   :  { %v9569_v40 = vpop.f32.mrb[52].mxu1  ;;  %v9622_v11 = vpop.f32.mrb[57].mxu0  ;;  %10085 = vmatprep.subr.bf16.mxu1 %v11557_v22  ;;  %v11563_v22 = vld [vmem:[%s15740_s0 + $0x6e8] sm:$0xff]  }
 0x16a   :  { %v9570_v19 = vpop.f32.mrb[53].mxu1  ;;  %10034 = vmatpush3.bf16.msra.mxu0 %v11543_v32  ;;  %v9623_v43 = vadd.f32 %v9622_v11, %v9621_v45  ;;  %v9624_v50 = vpop.f32.mrb[58].mxu0  ;;  %v11556_v32 = vld [vmem:[%s15740_s0 + $0x6b8] sm:$0xff]  }
 0x16b   :  { %v9571_v28 = vadd.f32 %v9570_v19, %v9569_v40  ;;  %v9572_v38 = vpop.f32.mrb[54].mxu1  ;;  %v9625_v63 = vpop.f32.mrb[59].mxu0  ;;  %10035 = vmatprep.subr.bf16.mxu0 %v11544_v35  ;;  %v11564_v19 = vld [vmem:[%s15740_s0 + $0x730] sm:$0xff]  }
 0x16c   :  { %v9573_v30 = vpop.f32.mrb[55].mxu1  ;;  %v9626_v21 = vadd.f32 %v9625_v63, %v9624_v50  ;;  %10086 = vmatpush3.bf16.msra.mxu1 %v11559_v52  ;;  %v13381_v11 = vld [vmem:[%s15741_s1 + $0xb8] ss:$28 sps:$4 sm:$0xff]   ;;  %v11568_v50 = vld [vmem:[%s15740_s0 + $0x780] sm:$0xff]  }
 0x16d   :  { %v13325_v24 = vadd.f32 %v9623_v43, %v9571_v28  ;;  %v9574_v48 = vadd.f32 %v9573_v30, %v9572_v38  ;;  %10987 = vmatmul.mubr.msk.bf16.gmra.mrb[160].mxu0 %vm685_vm0, %v13101_v44  ;;  %v11561_v44 = vld [vmem:[%s15740_s0 + $0x6e0] sm:$0xff]   ;;  %10087 = vmatprep.subr.bf16.mxu1 %v11560_v56  ;;  %v11565_v28 = vld [vmem:[%s15740_s0 + $0x6f0] sm:$0xff]  }
 0x16e   :  { %3098 = vmatmul.mubr.bf16.gmra.mrb[156].mxu1 %v13336_v3  ;;  %10036 = vmatpush3.bf16.msra.mxu0 %v11546_v37  ;;  %v11558_v37 = vld [vmem:[%s15740_s0 + $0x678] sm:$0xff]   ;;  %v13392_v38 = vld [vmem:[%s15741_s1 + $0xf4] ss:$28 sps:$4 sm:$0xff]  }
 0x16f   :  { %v13344_v54 = vadd.f32 %v9626_v21, %v9574_v48  ;;  %3105 = vmatprep.mubr.bf16.mxu1 %v13349_v36  ;;  %10037 = vmatprep.subr.bf16.mxu0 %v11548_v49  ;;  %v11566_v49 = vld [vmem:[%s15740_s0 + $0x738] sm:$0xff]  }
 0x170   :  { %v9627_v59 = vpop.f32.mrb[60].mxu0  ;;  %3653 = vmatprep.mubr.bf16.mxu0 %v11844_v25  ;;  %10088 = vmatpush3.bf16.msra.mxu1 %v11561_v44  ;;  %v11567_v21 = vld [vmem:[%s15740_s0 + $0x6f8] sm:$0xff]   ;;  %v11570_v25 = vld [vmem:[%s15740_s0 + $0x788] sm:$0xff]  }
 0x171   :  { %v9575_v57 = vpop.f32.mrb[56].mxu1  ;;  %v9628_v4 = vpop.f32.mrb[61].mxu0  ;;  %10089 = vmatprep.subr.bf16.mxu1 %v11562_v7 }
 0x172   :  { %v9576_v2 = vpop.f32.mrb[57].mxu1  ;;  %10038 = vmatpush3.bf16.msra.mxu0 %v11550_v58  ;;  %v9629_v18 = vadd.f32 %v9628_v4, %v9627_v59  ;;  %v9630_v9 = vpop.f32.mrb[62].mxu0  ;;  %v13420_v4 = vld [vmem:[%s15741_s1 + $0xf0] ss:$28 sps:$4 sm:$0xff]  }
 0x173   :  { %v9577_v42 = vadd.f32 %v9576_v2, %v9575_v57  ;;  %v9578_v34 = vpop.f32.mrb[58].mxu1  ;;  %v9631_v14 = vpop.f32.mrb[63].mxu0  ;;  %10039 = vmatprep.subr.bf16.mxu0 %v11552_v23  ;;  %v13415_v2 = vld [vmem:[%s15740_s0 + $0x7c0] sm:$0xff]  }
 0x174   :  { %v9579_v10 = vpop.f32.mrb[59].mxu1  ;;  %v9632_v45 = vadd.f32 %v9631_v14, %v9630_v9  ;;  %10090 = vmatpush3.bf16.msra.mxu1 %v11563_v22  ;;  %v11572_v14 = vld [vmem:[%s15740_s0 + $0x790] sm:$0xff]  }
 0x175   :  { %v13370_v35 = vadd.f32 %v9629_v18, %v9577_v42  ;;  %v9580_v40 = vadd.f32 %v9579_v10, %v9578_v34  ;;  %10091 = vmatprep.subr.bf16.mxu1 %v11564_v19  ;;  %v11848_v42 = vld [vmem:[%s15741_s1] ss:$28 sps:$4 sm:$0xff]   ;;  %v11571_v34 = vld [vmem:[%s15740_s0 + $0x748] sm:$0xff]  }
 0x176   :  { %3106 = vmatmul.mubr.bf16.gmra.mrb[160].mxu1 %v13381_v11  ;;  %10040 = vmatpush3.bf16.msra.mxu0 %v11554_v26  ;;  %v11569_v26 = vld [vmem:[%s15740_s0 + $0x740] sm:$0xff]   ;;  %v11849_v18 = vld [vmem:[%s15741_s1 + $0x3c] ss:$28 sps:$4 sm:$0xff]  }
 0x177   :  { %v13387_v43 = vadd.f32 %v9632_v45, %v9580_v40  ;;  %3113 = vmatprep.mubr.bf16.mxu1 %v13392_v38  ;;  %10041 = vmatprep.subr.bf16.mxu0 %v11556_v32 }
 0x178   :  { %v9633_v63 = vpop.f32.mrb[64].mxu0  ;;  %10092 = vmatpush3.bf16.msra.mxu1 %v11565_v28 }
 0x179   :  { %v9581_v30 = vpop.f32.mrb[60].mxu1  ;;  %v9634_v48 = vpop.f32.mrb[65].mxu0  ;;  %10093 = vmatprep.subr.bf16.mxu1 %v11566_v49  ;;  %v11574_v49 = vld [vmem:[%s15740_s0 + $0x798] sm:$0xff]  }
 0x17a   :  { %v9582_v52 = vpop.f32.mrb[61].mxu1  ;;  %10042 = vmatpush3.bf16.msra.mxu0 %v11558_v37  ;;  %v9635_v56 = vadd.f32 %v9634_v48, %v9633_v63  ;;  %v9636_v23 = vpop.f32.mrb[66].mxu0  ;;  %v11575_v48 = vld [vmem:[%s15740_s0 + $0x758] sm:$0xff]  }
 0x17b   :  { %v9583_v58 = vadd.f32 %v9582_v52, %v9581_v30  ;;  %v9584_v44 = vpop.f32.mrb[62].mxu1  ;;  %v9637_v57 = vpop.f32.mrb[67].mxu0  ;;  %10131 = vmatprep.subr.bf16.mxu0 %v11568_v50  ;;  %v11573_v50 = vld [vmem:[%s15740_s0 + $0x750] sm:$0xff]  }
 0x17c   :  { %v9585_v59 = vpop.f32.mrb[63].mxu1  ;;  %10094 = vmatpush3.bf16.msra.mxu1 %v11567_v21  ;;  %v11850_v52 = vld [vmem:[%s15741_s1 + $0x38] ss:$28 sps:$4 sm:$0xff]  }
 0x17d   :  { %v13410_v7 = vadd.f32 %v9635_v56, %v9583_v58  ;;  %3654 = vmatmul.mubr.bf16.vlgmr.msra.gmra.mrb[164].mxu0 %v11848_v42  ;;  %10990 = vmatprep.subr.bf16.mxu1 %v13415_v2  ;;  %v11851_v58 = vld [vmem:[%s15741_s1 + $0x74] ss:$28 sps:$4 sm:$0xff]   ;;  %v13460_v56 = vld [vmem:[%s15741_s1 + $0xc] ss:$28 sps:$4 sm:$0xff]   ;;  %v11576_v59 = vld [vmem:[%s15740_s0 + $0x7a0] sm:$0xff]  }
 0x17e   :  { %3114 = vmatmul.mubr.bf16.gmra.mrb[164].mxu1 %v13420_v4  ;;  %3661 = vmatprep.mubr.bf16.mxu0 %v11849_v18 }
 0x17f   :  { %3121 = vmatprep.mubr.bf16.mxu1 %v12342_v15  ;;  %10132 = vmatpush3.bf16.msra.mxu0 %v11569_v26 }
 0x180   :  { %v10948_v10 = vpop.f32.mrb[68].mxu0  ;;  %10133 = vmatprep.subr.bf16.mxu0 %v11570_v25 }
 0x181   :  { %v9655_v9 = vpop.f32.mrb[64].mxu1  ;;  %v1699_v22 = vpop.f32.mrb[69].mxu0 }
 0x182   :  { %v9656_v32 = vpop.f32.mrb[65].mxu1  ;;  %v10949_v37 = vpop.f32.mrb[70].mxu0 }
 0x183   :  { %v9657_v40 = vadd.f32 %v9656_v32, %v9655_v9  ;;  %v9658_v45 = vpop.f32.mrb[66].mxu1  ;;  %v1702_v28 = vpop.f32.mrb[71].mxu0  ;;  %10134 = vmatpush3.bf16.msra.mxu0 %v11571_v34 }
 0x184   :  { %v9659_v19 = vpop.f32.mrb[67].mxu1  ;;  %10135 = vmatprep.subr.bf16.mxu0 %v11572_v14 }
 0x185   :  { %v1620_v30 = vadd.f32 %v9657_v40, %v13235_v8  ;;  %v9660_v63 = vadd.f32 %v9659_v19, %v9658_v45  ;;  %3662 = vmatmul.mubr.bf16.gmra.mrb[168].mxu0 %v11850_v52  ;;  %v11578_v40 = vld [vmem:[%s15740_s0 + $0x7a8] sm:$0xff]   ;;  %v13510_v52 = vld [vmem:[%s15741_s1 + $0x44] ss:$28 sps:$4 sm:$0xff]  }
 0x186   :  { %3122 = vmatmul.mubr.bf16.gmra.mrb[168].mxu1 %v12353_v17  ;;  %3669 = vmatprep.mubr.bf16.mxu0 %v11851_v58  ;;  %v11580_v58 = vld [vmem:[%s15740_s0 + $0x7b0] sm:$0xff]  }
 0x187   :  { %v13451_v21 = vadd.f32 %v1699_v22, %v1620_v30  ;;  %v1623_v8 = vadd.f32 %v9660_v63, %v13239_v41  ;;  %3733 = vmatprep.mubr.bf16.mxu1 %v13460_v56  ;;  %10136 = vmatpush3.bf16.msra.mxu0 %v11573_v50  ;;  %v11577_v22 = vld [vmem:[%s15740_s0 + $0x760] sm:$0xff]   ;;  %v13489_v50 = vld [vmem:[%s15741_s1 + $0x70] ss:$28 sps:$4 sm:$0xff]  }
 0x188   :  { %v13467_v41 = vpop.f32.mrb[72].mxu0  ;;  %10137 = vmatprep.subr.bf16.mxu0 %v11574_v49  ;;  %v13495_v30 = vld [vmem:[%s15741_s1 + $0x8] ss:$28 sps:$4 sm:$0xff]  }
 0x189   :  { %v13465_v44 = vadd.f32 %v1702_v28, %v1623_v8  ;;  %v9661_v57 = vpop.f32.mrb[68].mxu1  ;;  %v1715_v25 = vpop.f32.mrb[73].mxu0  ;;  %v11585_v28 = vld [vmem:[%s15740_s0 + $0x7c8] sm:$0xff]  }
 0x18a   :  { %v9662_v26 = vpop.f32.mrb[69].mxu1  ;;  %v13474_v9 = vpop.f32.mrb[74].mxu0  ;;  %v13504_v49 = vld [vmem:[%s15741_s1 + $0xac] ss:$28 sps:$4 sm:$0xff]  }
 0x18b   :  { %v9663_v18 = vadd.f32 %v9662_v26, %v9661_v57  ;;  %v9664_v34 = vpop.f32.mrb[70].mxu1  ;;  %v1718_v32 = vpop.f32.mrb[75].mxu0  ;;  %10138 = vmatpush3.bf16.msra.mxu0 %v11575_v48  ;;  %v11586_v57 = vld [vmem:[%s15740_s0 + $0x810] sm:$0xff]  }
 0x18c   :  { %v9665_v14 = vpop.f32.mrb[71].mxu1  ;;  %10139 = vmatprep.subr.bf16.mxu0 %v11576_v59 }
 0x18d   :  { %v1628_v45 = vadd.f32 %v9663_v18, %v13256_v46  ;;  %v9666_v19 = vadd.f32 %v9665_v14, %v9664_v34  ;;  %3670 = vmatmul.mubr.bf16.gmra.mrb[172].mxu0 %v13489_v50 }
 0x18e   :  { %3734 = vmatmul.mubr.bf16.vlgmr.msra.gmra.mrb[172].mxu1 %v13495_v30  ;;  %3677 = vmatprep.mubr.bf16.mxu0 %v13504_v49 }
 0x18f   :  { %v13498_v46 = vadd.f32 %v10948_v10, %v1628_v45  ;;  %v1631_v63 = vadd.f32 %v9666_v19, %v13267_v20  ;;  %3741 = vmatprep.mubr.bf16.mxu1 %v13510_v52  ;;  %v11579_v10 = vld [vmem:[%s15740_s0 + $0x768] sm:$0xff]   ;;  %10140 = vmatpush3.bf16.msra.mxu0 %v11577_v22  ;;  %v11581_v45 = vld [vmem:[%s15740_s0 + $0x770] sm:$0xff]  }
 0x190   :  { %10991 = vmatpush3.bf16.msra.mxu1 %v13415_v2  ;;  %v13519_v8 = vpop.f32.mrb[76].mxu0  ;;  %10141 = vmatprep.subr.bf16.mxu0 %v11578_v40 }
 0x191   :  { %v13517_v20 = vadd.f32 %v10949_v37, %v1631_v63  ;;  %v9667_v48 = vpop.f32.mrb[72].mxu1  ;;  %10992 = vmatprep.subr.bf16.mxu1 %v11585_v28  ;;  %v13529_v2 = vpop.f32.mrb[77].mxu0 }
 0x192   :  { %v9668_v26 = vpop.f32.mrb[73].mxu1  ;;  %v10957_v34 = vpop.f32.mrb[78].mxu0 }
 0x193   :  { %v9669_v37 = vadd.f32 %v9668_v26, %v9667_v48  ;;  %v9670_v18 = vpop.f32.mrb[74].mxu1  ;;  %v13533_v40 = vpop.f32.mrb[79].mxu0  ;;  %10142 = vmatpush3.bf16.msra.mxu0 %v11579_v10  ;;  %v11582_v48 = vld [vmem:[%s15740_s0 + $0x7b8] sm:$0xff]   ;;  %v13545_v26 = vld [vmem:[%s15741_s1 + $0xa8] ss:$28 sps:$4 sm:$0xff]  }
 0x194   :  { %v9671_v22 = vpop.f32.mrb[75].mxu1  ;;  %10993 = vmatpush3.bf16.msra.mxu1 %v11585_v28  ;;  %10143 = vmatprep.subr.bf16.mxu0 %v11580_v58  ;;  %v13551_v28 = vld [vmem:[%s15741_s1 + $0x40] ss:$28 sps:$4 sm:$0xff]  }
 0x195   :  { %v1636_v19 = vadd.f32 %v9669_v37, %v13287_v60  ;;  %v9672_v63 = vadd.f32 %v9671_v22, %v9670_v18  ;;  %10191 = vmatprep.subr.bf16.mxu1 %v11586_v57  ;;  %3678 = vmatmul.mubr.bf16.gmra.mrb[176].mxu0 %v13545_v26  ;;  %v13560_v58 = vld [vmem:[%s15741_s1 + $0xe4] ss:$28 sps:$4 sm:$0xff]   ;;  %v13566_v57 = vld [vmem:[%s15741_s1 + $0x7c] ss:$28 sps:$4 sm:$0xff]   ;;  %v11588_v18 = vld [vmem:[%s15740_s0 + $0x890] sm:$0xff]  }
 0x196   :  { %3742 = vmatmul.mubr.bf16.gmra.mrb[176].mxu1 %v13551_v28  ;;  %3685 = vmatprep.mubr.bf16.mxu0 %v13560_v58 }
 0x197   :  { %v13554_v60 = vadd.f32 %v1715_v25, %v1636_v19  ;;  %v1639_v10 = vadd.f32 %v9672_v63, %v13306_v1  ;;  %3749 = vmatprep.mubr.bf16.mxu1 %v13566_v57  ;;  %v11583_v25 = vld [vmem:[%s15740_s0 + $0x778] sm:$0xff]   ;;  %10144 = vmatpush3.bf16.msra.mxu0 %v11581_v45 }
 0x198   :  { %10145 = vmatprep.subr.bf16.mxu0 %v11582_v48  ;;  %v13585_v48 = vld [vmem:[%s15741_s1 + $0xe0] ss:$28 sps:$4 sm:$0xff]  }
 0x199   :  { %v13572_v1 = vadd.f32 %v1718_v32, %v1639_v10  ;;  %v9673_v37 = vpop.f32.mrb[76].mxu1  ;;  %15798 = vst [vmem:[#allocation12_spill] sm:$0xff] %v13585_v48  ;;  %v13591_v10 = vld [vmem:[%s15741_s1 + $0x78] ss:$28 sps:$4 sm:$0xff]  }
 0x19a   :  { %v9674_v22 = vpop.f32.mrb[77].mxu1 }
 0x19b   :  { %v9675_v19 = vadd.f32 %v9674_v22, %v9673_v37  ;;  %v9676_v63 = vpop.f32.mrb[78].mxu1  ;;  %10146 = vmatpush3.bf16.msra.mxu0 %v11583_v25 }
 0x19c   :  { %v9677_v23 = vpop.f32.mrb[79].mxu1  ;;  %10243 = vmatprep.subr.bf16.mxu0 %v11588_v18 }
 0x19d   :  { %v1644_v32 = vadd.f32 %v9675_v19, %v13325_v24  ;;  %v9678_v45 = vadd.f32 %v9677_v23, %v9676_v63  ;;  %3686 = vmatmul.mubr.bf16.gmra.mrb[180].mxu0 %v13585_v48  ;;  %v13602_v23 = vld [vmem:[%s15741_s1 + $0xb4] ss:$28 sps:$4 sm:$0xff]  }
 0x19e   :  { %3750 = vmatmul.mubr.bf16.gmra.mrb[180].mxu1 %v13591_v10  ;;  %3693 = vmatprep.mubr.bf16.mxu0 %v12310_v5 }
 0x19f   :  { %v13595_v25 = vadd.f32 %v13467_v41, %v1644_v32  ;;  %v1647_v24 = vadd.f32 %v9678_v45, %v13344_v54  ;;  %3757 = vmatprep.mubr.bf16.mxu1 %v13602_v23 }
 0x1a0   :  { %v9715_v41 = vpop.f32.mrb[80].mxu0 }
 0x1a1   :  { %v13608_v18 = vadd.f32 %v13474_v9, %v1647_v24  ;;  %v9679_v22 = vpop.f32.mrb[80].mxu1  ;;  %v9716_v63 = vpop.f32.mrb[81].mxu0  ;;  %v13617_v9 = vld [vmem:[%s15741_s1 + $0xb0] ss:$28 sps:$4 sm:$0xff]  }
 0x1a2   :  { %v9680_v19 = vpop.f32.mrb[81].mxu1  ;;  %v9717_v45 = vadd.f32 %v9716_v63, %v9715_v41  ;;  %v9718_v34 = vpop.f32.mrb[82].mxu0 }
 0x1a3   :  { %v9681_v32 = vadd.f32 %v9680_v19, %v9679_v22  ;;  %v9682_v42 = vpop.f32.mrb[82].mxu1  ;;  %v9719_v59 = vpop.f32.mrb[83].mxu0 }
 0x1a4   :  { %v9683_v14 = vpop.f32.mrb[83].mxu1  ;;  %v9720_v37 = vadd.f32 %v9719_v59, %v9718_v34 }
 0x1a5   :  { %v1652_v5 = vadd.f32 %v9681_v32, %v13370_v35  ;;  %v9684_v48 = vadd.f32 %v9683_v14, %v9682_v42  ;;  %3694 = vmatmul.mubr.bf16.gmra.mrb[184].mxu0 %v12333_v12  ;;  %v13627_v35 = vld [vmem:[%s15741_s1 + $0xec] ss:$28 sps:$4 sm:$0xff]   ;;  %v13633_v42 = vld [vmem:[%s15741_s1 + $0x14] ss:$28 sps:$4 sm:$0xff]  }
 0x1a6   :  { %3758 = vmatmul.mubr.bf16.gmra.mrb[184].mxu1 %v13617_v9  ;;  %15799 = vst [vmem:[#allocation13_spill] sm:$0xff] %v13633_v42  ;;  %3813 = vmatprep.mubr.bf16.mxu0 %v13633_v42 }
 0x1a7   :  { %v13621_v24 = vadd.f32 %v13529_v2, %v1652_v5  ;;  %v1655_v22 = vadd.f32 %v9684_v48, %v13387_v43  ;;  %3765 = vmatprep.mubr.bf16.mxu1 %v13627_v35 }
 0x1a8   :  { %v9721_v2 = vpop.f32.mrb[84].mxu0 }
 0x1a9   :  { %v13637_v59 = vadd.f32 %v13533_v40, %v1655_v22  ;;  %v9685_v5 = vpop.f32.mrb[84].mxu1  ;;  %v9722_v34 = vpop.f32.mrb[85].mxu0  ;;  %v11589_v40 = vld [vmem:[%s15740_s0 + $0x850] sm:$0xff]  }
 0x1aa   :  { %v9686_v14 = vpop.f32.mrb[85].mxu1  ;;  %v13641_v41 = vadd.f32 %v9722_v34, %v9721_v2  ;;  %v9724_v19 = vpop.f32.mrb[86].mxu0  ;;  %v13657_v2 = vld [vmem:[%s15741_s1 + $0xe8] ss:$28 sps:$4 sm:$0xff]  }
 0x1ab   :  { %15800 = vst [vmem:[#allocation14_spill] sm:$0xff] %v13637_v59  ;;  %v9687_v48 = vadd.f32 %v9686_v14, %v9685_v5  ;;  %v9688_v63 = vpop.f32.mrb[86].mxu1  ;;  %v9725_v54 = vpop.f32.mrb[87].mxu0  ;;  %v11592_v5 = vld [vmem:[%s15740_s0 + $0x898] sm:$0xff]   ;;  %15801 = vst [vmem:[#allocation15_spill] sm:$0xff] %v13657_v2  ;;  %v11597_v34 = vld [vmem:[%s15740_s0 + $0x860] sm:$0xff]  }
 0x1ac   :  { %v9689_v42 = vpop.f32.mrb[87].mxu1  ;;  %v13649_v12 = vadd.f32 %v9725_v54, %v9724_v19  ;;  %v13673_v54 = vld [vmem:[%s15741_s1 + $0x4c] ss:$28 sps:$4 sm:$0xff]   ;;  %v11593_v14 = vld [vmem:[%s15740_s0 + $0x858] sm:$0xff]   ;;  %v11596_v19 = vld [vmem:[%s15740_s0 + $0x8a0] sm:$0xff]  }
 0x1ad   :  { %v1660_v22 = vadd.f32 %v9687_v48, %v13410_v7  ;;  %v13663_v42 = vld [vmem:[%s15741_s1 + $0x10] ss:$28 sps:$4 sm:$0xff]   ;;  %15804 = vst [vmem:[#allocation18_spill] sm:$0xff] %v13673_v54 }
 0x1ae   :  { %3766 = vmatmul.mubr.bf16.gmra.mrb[188].mxu1 %v13657_v2  ;;  %15802 = vst [vmem:[#allocation16_spill] sm:$0xff] %v13663_v42  ;;  %3814 = vmatmul.mubr.bf16.vlgmr.msra.gmra.mrb[188].mxu0 %v13663_v42  ;;  %v11613_v2 = vld [vmem:[%s15740_s0 + $0x880] sm:$0xff]  }
 0x1af   :  { %v13667_v7 = vadd.f32 %v13519_v8, %v1660_v22  ;;  %3773 = vmatprep.mubr.bf16.mxu1 %v12312_v6  ;;  %3821 = vmatprep.mubr.bf16.mxu0 %v13673_v54 }
 0x1b0   :  { %10244 = vmatpush3.bf16.msra.mxu0 %v11589_v40  ;;  %v9727_v48 = vpop.f32.mrb[88].mxu0 }
 0x1b1   :  { %15803 = vst [vmem:[#allocation17_spill] sm:$0xff] %v13667_v7  ;;  %v9767_v8 = vpop.f32.mrb[88].mxu1  ;;  %10245 = vmatprep.subr.bf16.mxu0 %v11592_v5  ;;  %v9728_v63 = vpop.f32.mrb[89].mxu0 }
 0x1b2   :  { %v9768_v22 = vpop.f32.mrb[89].mxu1  ;;  %v13684_v32 = vadd.f32 %v9728_v63, %v9727_v48  ;;  %v9730_v40 = vpop.f32.mrb[90].mxu0  ;;  %v11600_v48 = vld [vmem:[%s15740_s0 + $0x8a8] sm:$0xff]  }
 0x1b3   :  { %v9769_v43 = vadd.f32 %v9768_v22, %v9767_v8  ;;  %v9770_v54 = vpop.f32.mrb[90].mxu1  ;;  %v9731_v42 = vpop.f32.mrb[91].mxu0 }
 0x1b4   :  { %v9771_v6 = vpop.f32.mrb[91].mxu1  ;;  %10246 = vmatpush3.bf16.msra.mxu0 %v11593_v14  ;;  %v13691_v5 = vadd.f32 %v9731_v42, %v9730_v40  ;;  %v11590_v40 = vld [vmem:[%s15740_s0 + $0x818] sm:$0xff]  }
 0x1b5   :  { %v13689_v7 = vadd.f32 %v9769_v43, %v9717_v45  ;;  %v9772_v16 = vadd.f32 %v9771_v6, %v9770_v54  ;;  %10247 = vmatprep.subr.bf16.mxu0 %v11596_v19  ;;  %v13704_v45 = vld [vmem:[%s15741_s1 + $0x18] ss:$28 sps:$4 sm:$0xff]   ;;  %v11601_v6 = vld [vmem:[%s15740_s0 + $0x868] sm:$0xff]  }
 0x1b6   :  { %3774 = vmatmul.mubr.bf16.gmra.mrb[192].mxu1 %v12335_v13  ;;  %3822 = vmatmul.mubr.bf16.gmra.mrb[192].mxu0 %v13298_v27  ;;  %15805 = vst [vmem:[#allocation19_spill] sm:$0xff] %v13704_v45  ;;  %v11604_v27 = vld [vmem:[%s15740_s0 + $0x8b0] sm:$0xff]  }
 0x1b7   :  { %v13698_v8 = vadd.f32 %v9772_v16, %v9720_v37  ;;  %3829 = vmatprep.mubr.bf16.mxu0 %v13311_v61  ;;  %10994 = vmatprep.mubr.msk.bf16.mxu1 %vm685_vm0, %v13704_v45  ;;  %v11587_v16 = vld [vmem:[%s15740_s0 + $0x7d0] sm:$0xff]  }
 0x1b8   :  { %10248 = vmatpush3.bf16.msra.mxu0 %v11597_v34  ;;  %v9733_v43 = vpop.f32.mrb[92].mxu0 }
 0x1b9   :  { %v9773_v42 = vpop.f32.mrb[92].mxu1  ;;  %10249 = vmatprep.subr.bf16.mxu0 %v11600_v48  ;;  %v9734_v61 = vpop.f32.mrb[93].mxu0  ;;  %v11605_v48 = vld [vmem:[%s15740_s0 + $0x870] sm:$0xff]  }
 0x1ba   :  { %v9774_v37 = vpop.f32.mrb[93].mxu1  ;;  %v13717_v54 = vadd.f32 %v9734_v61, %v9733_v43  ;;  %v9736_v34 = vpop.f32.mrb[94].mxu0  ;;  %v11608_v61 = vld [vmem:[%s15740_s0 + $0x8b8] sm:$0xff]  }
 0x1bb   :  { %v9775_v14 = vadd.f32 %v9774_v37, %v9773_v42  ;;  %v9776_v19 = vpop.f32.mrb[94].mxu1  ;;  %v9737_v63 = vpop.f32.mrb[95].mxu0  ;;  %v11591_v42 = vld [vmem:[%s15740_s0 + $0x7d8] sm:$0xff]  }
 0x1bc   :  { %v9777_v22 = vpop.f32.mrb[95].mxu1  ;;  %10250 = vmatpush3.bf16.msra.mxu0 %v11601_v6  ;;  %v13728_v13 = vadd.f32 %v9737_v63, %v9736_v34  ;;  %v13740_v6 = vld [vmem:[%s15741_s1 + $0x50] ss:$28 sps:$4 sm:$0xff]  }
 0x1bd   :  { %v13726_v45 = vadd.f32 %v9775_v14, %v13641_v41  ;;  %v9778_v43 = vadd.f32 %v9777_v22, %v9776_v19  ;;  %10251 = vmatprep.subr.bf16.mxu0 %v11604_v27  ;;  %15806 = vst [vmem:[#allocation20_spill] sm:$0xff] %v13740_v6  ;;  %v13751_v27 = vld [vmem:[%s15741_s1 + $0x88] ss:$28 sps:$4 sm:$0xff]  }
 0x1be   :  { %3830 = vmatmul.mubr.bf16.gmra.mrb[196].mxu0 %v13336_v3  ;;  %10995 = vmatmul.mubr.msk.bf16.vlgmr.msra.gmra.mrb[196].mxu1 %vm685_vm0, %v13740_v6  ;;  %15807 = vst [vmem:[#allocation21_spill] sm:$0xff] %v13751_v27  ;;  %v11594_v3 = vld [vmem:[%s15740_s0 + $0x820] sm:$0xff]   ;;  %v11598_v19 = vld [vmem:[%s15740_s0 + $0x828] sm:$0xff]  }
 0x1bf   :  { %v13745_v41 = vadd.f32 %v9778_v43, %v13649_v12  ;;  %10192 = vmatpush3.bf16.msra.mxu1 %v11587_v16  ;;  %3837 = vmatprep.mubr.bf16.mxu0 %v13349_v36  ;;  %v11595_v12 = vld [vmem:[%s15740_s0 + $0x7e0] sm:$0xff]   ;;  %v11609_v36 = vld [vmem:[%s15740_s0 + $0x878] sm:$0xff]  }
 0x1c0   :  { %10193 = vmatprep.subr.bf16.mxu1 %v11590_v40  ;;  %10998 = vmatprep.mubr.msk.bf16.mxu1 %vm685_vm0, %v13751_v27  ;;  %v9739_v37 = vpop.f32.mrb[96].mxu0 }
 0x1c1   :  { %v9779_v14 = vpop.f32.mrb[96].mxu1  ;;  %10252 = vmatpush3.bf16.msra.mxu0 %v11605_v48  ;;  %v9740_v16 = vpop.f32.mrb[97].mxu0  ;;  %v11612_v48 = vld [vmem:[%s15740_s0 + $0x8c0] sm:$0xff]  }
 0x1c2   :  { %v9780_v34 = vpop.f32.mrb[97].mxu1  ;;  %10253 = vmatprep.subr.bf16.mxu0 %v11608_v61  ;;  %v13767_v63 = vadd.f32 %v9740_v16, %v9739_v37  ;;  %v9742_v40 = vpop.f32.mrb[98].mxu0  ;;  %v11599_v37 = vld [vmem:[%s15740_s0 + $0x7e8] sm:$0xff]  }
 0x1c3   :  { %10194 = vmatpush3.bf16.msra.mxu1 %v11591_v42  ;;  %v9781_v22 = vadd.f32 %v9780_v34, %v9779_v14  ;;  %v9782_v43 = vpop.f32.mrb[98].mxu1  ;;  %v9743_v27 = vpop.f32.mrb[99].mxu0  ;;  %v13790_v14 = vld [vmem:[%s15741_s1 + $0xc0] ss:$28 sps:$4 sm:$0xff]  }
 0x1c4   :  { %v9783_v6 = vpop.f32.mrb[99].mxu1  ;;  %10195 = vmatprep.subr.bf16.mxu1 %v11594_v3  ;;  %v13778_v42 = vadd.f32 %v9743_v27, %v9742_v40  ;;  %v11616_v3 = vld [vmem:[%s15740_s0 + $0x8c8] sm:$0xff]  }
 0x1c5   :  { %v13776_v59 = vadd.f32 %v9781_v22, %v13684_v32  ;;  %v9784_v61 = vadd.f32 %v9783_v6, %v9782_v43  ;;  %10254 = vmatpush3.bf16.msra.mxu0 %v11609_v36  ;;  %v11602_v6 = vld [vmem:[%s15740_s0 + $0x830] sm:$0xff]  }
 0x1c6   :  { %3838 = vmatmul.mubr.bf16.gmra.mrb[200].mxu0 %v13381_v11  ;;  %10999 = vmatmul.mubr.msk.bf16.gmra.mrb[200].mxu1 %vm685_vm0, %v13790_v14  ;;  %v13804_v11 = vld [vmem:[%s15741_s1 + $0xf8] ss:$28 sps:$4 sm:$0xff]  }
 0x1c7   :  { %v13795_v32 = vadd.f32 %v9784_v61, %v13691_v5  ;;  %10196 = vmatpush3.bf16.msra.mxu1 %v11595_v12  ;;  %3845 = vmatprep.mubr.bf16.mxu0 %v13392_v38  ;;  %v11603_v5 = vld [vmem:[%s15740_s0 + $0x7f0] sm:$0xff]   ;;  %v11606_v61 = vld [vmem:[%s15740_s0 + $0x838] sm:$0xff]  }
 0x1c8   :  { %10197 = vmatprep.subr.bf16.mxu1 %v11598_v19  ;;  %11002 = vmatprep.mubr.msk.bf16.mxu1 %vm685_vm0, %v13804_v11  ;;  %v9745_v27 = vpop.f32.mrb[100].mxu0 }
 0x1c9   :  { %v9785_v36 = vpop.f32.mrb[100].mxu1  ;;  %10255 = vmatprep.subr.bf16.mxu0 %v11612_v48  ;;  %v9746_v38 = vpop.f32.mrb[101].mxu0  ;;  %v11617_v48 = vld [vmem:[%s15740_s0 + $0x888] sm:$0xff]  }
 0x1ca   :  { %v9786_v12 = vpop.f32.mrb[101].mxu1  ;;  %10256 = vmatpush3.bf16.msra.mxu0 %v11613_v2  ;;  %v13811_v16 = vadd.f32 %v9746_v38, %v9745_v27  ;;  %v9748_v19 = vpop.f32.mrb[102].mxu0  ;;  %v11607_v27 = vld [vmem:[%s15740_s0 + $0x7f8] sm:$0xff]  }
 0x1cb   :  { %10198 = vmatpush3.bf16.msra.mxu1 %v11599_v37  ;;  %v9787_v34 = vadd.f32 %v9786_v12, %v9785_v36  ;;  %v9788_v22 = vpop.f32.mrb[102].mxu1  ;;  %10257 = vmatprep.subr.bf16.mxu0 %v11616_v3  ;;  %v9749_v40 = vpop.f32.mrb[103].mxu0  ;;  %v13828_v3 = vld [vmem:[%s15740_s0 + $0x950] sm:$0xff]   ;;  %v11610_v36 = vld [vmem:[%s15740_s0 + $0x840] sm:$0xff]  }
 0x1cc   :  { %v9789_v43 = vpop.f32.mrb[103].mxu1  ;;  %10199 = vmatprep.subr.bf16.mxu1 %v11602_v6  ;;  %v13834_v6 = vld [vmem:[%s15741_s1 + $0x130] ss:$0 sps:$4 sm:$0x77]   ;;  %v11611_v12 = vld [vmem:[%s15740_s0 + $0x800] sm:$0xff]  }
 0x1cd   :  { %v13820_v2 = vadd.f32 %v9787_v34, %v13717_v54  ;;  %v9790_v37 = vadd.f32 %v9789_v43, %v9788_v22  ;;  %15808 = vst [vmem:[#allocation22_spill] sm:$0xff] %v13834_v6 }
 0x1ce   :  { %3846 = vmatmul.mubr.bf16.gmra.mrb[204].mxu0 %v13420_v4  ;;  %11003 = vmatmul.mubr.msk.bf16.gmra.mrb[204].mxu1 %vm685_vm0, %v13834_v6 }
 0x1cf   :  { %v13839_v54 = vadd.f32 %v9790_v37, %v13728_v13  ;;  %10200 = vmatpush3.bf16.msra.mxu1 %v11603_v5  ;;  %3853 = vmatprep.mubr.bf16.mxu0 %v12342_v15  ;;  %v13851_v13 = vld [vmem:[%s15741_s1 + $0x4] ss:$28 sps:$4 sm:$0xff]   ;;  %v11614_v37 = vld [vmem:[%s15740_s0 + $0x848] sm:$0xff]  }
 0x1d0   :  { %10201 = vmatprep.subr.bf16.mxu1 %v11606_v61  ;;  %10258 = vmatpush3.bf16.msra.mxu0 %v11617_v48  ;;  %v9819_v38 = vpop.f32.mrb[104].mxu0  ;;  %15809 = vst [vmem:[#allocation23_spill] sm:$0xff] %v13851_v13 }
 0x1d1   :  { %v9791_v4 = vpop.f32.mrb[104].mxu1  ;;  %4385 = vmatprep.mubr.bf16.mxu1 %v13851_v13  ;;  %11006 = vmatprep.subr.bf16.mxu0 %v13828_v3  ;;  %v9820_v34 = vpop.f32.mrb[105].mxu0 }
 0x1d2   :  { %v9792_v5 = vpop.f32.mrb[105].mxu1  ;;  %v9821_v22 = vadd.f32 %v9820_v34, %v9819_v38  ;;  %v9822_v43 = vpop.f32.mrb[106].mxu0 }
 0x1d3   :  { %10202 = vmatpush3.bf16.msra.mxu1 %v11607_v27  ;;  %v9793_v19 = vadd.f32 %v9792_v5, %v9791_v4  ;;  %v9794_v40 = vpop.f32.mrb[106].mxu1  ;;  %v9823_v48 = vpop.f32.mrb[107].mxu0  ;;  %v11615_v27 = vld [vmem:[%s15740_s0 + $0x808] sm:$0xff]  }
 0x1d4   :  { %v9795_v61 = vpop.f32.mrb[107].mxu1  ;;  %10203 = vmatprep.subr.bf16.mxu1 %v11610_v36  ;;  %v9824_v6 = vadd.f32 %v9823_v48, %v9822_v43  ;;  %v2352_v4 = vadd.f32 %v9821_v22, %v13689_v7  ;;  %v11619_v7 = vld [vmem:[%s15740_s0 + $0x8d0] sm:$0xff]  }
 0x1d5   :  { %v13859_v15 = vadd.f32 %v9793_v19, %v13767_v63  ;;  %v9796_v13 = vadd.f32 %v9795_v61, %v9794_v40  ;;  %v11618_v63 = vld [vmem:[%s15740_s0 + $0x910] sm:$0xff]  }
 0x1d6   :  { %3854 = vmatmul.mubr.bf16.gmra.mrb[208].mxu0 %v12353_v17  ;;  %v2355_v36 = vadd.f32 %v9824_v6, %v13698_v8  ;;  %v11620_v8 = vld [vmem:[%s15740_s0 + $0x918] sm:$0xff]  }
 0x1d7   :  { %v13867_v38 = vadd.f32 %v9796_v13, %v13778_v42  ;;  %10204 = vmatpush3.bf16.msra.mxu1 %v11611_v12  ;;  %4465 = vmatprep.mubr.bf16.mxu0 %v13460_v56  ;;  %v11634_v6 = vld [vmem:[%s15740_s0 + $0x958] sm:$0xff]  }
 0x1d8   :  { %10205 = vmatprep.subr.bf16.mxu1 %v11614_v37  ;;  %v9825_v34 = vpop.f32.mrb[108].mxu0 }
 0x1d9   :  { %v9797_v5 = vpop.f32.mrb[108].mxu1  ;;  %v9826_v40 = vpop.f32.mrb[109].mxu0 }
 0x1da   :  { %v9798_v19 = vpop.f32.mrb[109].mxu1  ;;  %v9827_v12 = vadd.f32 %v9826_v40, %v9825_v34  ;;  %v9828_v13 = vpop.f32.mrb[110].mxu0  ;;  %v11622_v34 = vld [vmem:[%s15740_s0 + $0x920] sm:$0xff]  }
 0x1db   :  { %10206 = vmatpush3.bf16.msra.mxu1 %v11615_v27  ;;  %v9799_v42 = vadd.f32 %v9798_v19, %v9797_v5  ;;  %v9800_v56 = vpop.f32.mrb[110].mxu1  ;;  %v9829_v22 = vpop.f32.mrb[111].mxu0  ;;  %v13890_v27 = vld [vmem:[%s15741_s1] ss:$28 sps:$4 sm:$0xff]  }
 0x1dc   :  { %v9801_v43 = vpop.f32.mrb[111].mxu1  ;;  %10295 = vmatprep.subr.bf16.mxu1 %v11618_v63  ;;  %v9830_v48 = vadd.f32 %v9829_v22, %v9828_v13  ;;  %v2360_v37 = vadd.f32 %v9827_v12, %v13726_v45  ;;  %v11621_v5 = vld [vmem:[%s15740_s0 + $0x8d8] sm:$0xff]  }
 0x1dd   :  { %v13884_v61 = vadd.f32 %v9799_v42, %v13811_v16  ;;  %v13901_v16 = vld [vmem:[%s15741_s1 + $0x3c] ss:$28 sps:$4 sm:$0xff]  }
 0x1de   :  { %4386 = vmatmul.mubr.bf16.vlgmr.msra.gmra.mrb[208].mxu1 %v13890_v27  ;;  %4466 = vmatmul.mubr.bf16.vlgmr.msra.gmra.mrb[212].mxu0 %v13495_v30  ;;  %v2363_v63 = vadd.f32 %v9830_v48, %v13745_v41  ;;  %v11636_v41 = vld [vmem:[%s15740_s0 + $0x9a0] sm:$0xff]  }
 0x1df   :  { %4393 = vmatprep.mubr.bf16.mxu1 %v13901_v16  ;;  %4473 = vmatprep.mubr.bf16.mxu0 %v13510_v52  ;;  %v11624_v48 = vld [vmem:[%s15740_s0 + $0x8e0] sm:$0xff]  }
 0x1e0   :  { %10296 = vmatpush3.bf16.msra.mxu1 %v11619_v7  ;;  %11007 = vmatpush3.bf16.msra.mxu0 %v13828_v3  ;;  %v9831_v45 = vpop.f32.mrb[112].mxu0  ;;  %v15810_v3 = vmax.f32 %v13168_v53, %v13498_v46 }
 0x1e1   :  { %v10964_v30 = vpop.f32.mrb[112].mxu1  ;;  %10297 = vmatprep.subr.bf16.mxu1 %v11620_v8  ;;  %11008 = vmatprep.subr.bf16.mxu0 %v11634_v6  ;;  %v9832_v40 = vpop.f32.mrb[113].mxu0 }
 0x1e2   :  { %v2440_v19 = vadd.f32 %v10964_v30, %v2360_v37  ;;  %v2431_v42 = vpop.f32.mrb[113].mxu1  ;;  %v9833_v12 = vadd.f32 %v9832_v40, %v9831_v45  ;;  %v9834_v7 = vpop.f32.mrb[114].mxu0 }
 0x1e3   :  { %v2432_v52 = vadd.f32 %v2431_v42, %v2352_v4  ;;  %v10965_v13 = vpop.f32.mrb[114].mxu1  ;;  %v9835_v22 = vpop.f32.mrb[115].mxu0 }
 0x1e4   :  { %v13915_v56 = vmax.f32 %v15810_v3, %v2440_v19  ;;  %v2443_v8 = vadd.f32 %v10965_v13, %v2363_v63  ;;  %v2434_v43 = vpop.f32.mrb[115].mxu1  ;;  %10298 = vmatpush3.bf16.msra.mxu1 %v11621_v5  ;;  %11009 = vmatpush3.bf16.msra.mxu0 %v11634_v6 }
 0x1e5   :  { %18 = vsyncpa [#allocation4], 0  ;;  %v9836_v37 = vadd.f32 %v9835_v22, %v9834_v7  ;;  %v2435_v45 = vadd.f32 %v2434_v43, %v2355_v36  ;;  %v2368_v4 = vadd.f32 %v9833_v12, %v13776_v59  ;;  %10299 = vmatprep.subr.bf16.mxu1 %v11622_v34  ;;  %v11625_v53 = vld [vmem:[%s15740_s0 + $0x928] sm:$0xff]   ;;  %10355 = vmatprep.subr.bf16.mxu0 %v11636_v41  ;;  %v13932_v6 = vld [vmem:[%s15741_s1 + $0x38] ss:$28 sps:$4 sm:$0xff]   ;;  %vm7079_vm1 = vcmask 695296  }
 0x1e6   :  { %v15811_v46 = vmax.f32 %v13176_v51, %v13517_v20  ;;  %4394 = vmatmul.mubr.bf16.gmra.mrb[212].mxu1 %v13932_v6  ;;  %4474 = vmatmul.mubr.bf16.gmra.mrb[216].mxu0 %v13551_v28  ;;  %v15812_v59 = vmax.f32 %v13155_v31, %v13451_v21  ;;  %v13944_v51 = vld [vmem:[%s15741_s1 + $0x74] ss:$28 sps:$4 sm:$0xff]   ;;  %v15813_v63 = vmax.f32 %v13161_v29, %v13465_v44  ;;  %v11626_v31 = vld [vmem:[%s15740_s0 + $0x8e8] sm:$0xff]   ;;  %v11629_v22 = vld [vmem:[%s15740_s0 + $0x938] sm:$0xff]   ;;  %vm7098_vm2 = vcmask 1041408   ;;  %s11977_s30 = smov 124  }
 0x1e7   :  { %4401 = vmatprep.mubr.bf16.mxu1 %v13944_v51  ;;  %v2371_v20 = vadd.f32 %v9836_v37, %v13795_v32  ;;  %4481 = vmatprep.mubr.bf16.mxu0 %v13566_v57  ;;  %v11627_v34 = vld [vmem:[%s15740_s0 + $0x930] sm:$0xff]   ;;  %v15814_v7 = vmax.f32 %v13187_v39, %v13554_v60  ;;  %v11630_v60 = vld [vmem:[%s15740_s0 + $0x8f8] sm:$0xff]   ;;  %vm7099_vm3 = vcmask 1042432   ;;  %vm11976_vm4 = vmmov 0   ;;  %s11978_s14 = smov 120   ;;  %s11979_s15 = smov 122  }
 0x1e8   :  { %v13927_v5 = vmax.f32 %v15811_v46, %v2443_v8  ;;  %v13939_v36 = vmax.f32 %v15812_v59, %v2432_v52  ;;  %v13952_v28 = vmax.f32 %v15813_v63, %v2435_v45  ;;  %10300 = vmatpush3.bf16.msra.mxu1 %v11624_v48  ;;  %v9837_v21 = vpop.f32.mrb[116].mxu0  ;;  %v11628_v12 = vld [vmem:[%s15740_s0 + $0x8f0] sm:$0xff]   ;;  %v15817_v46 = vmax.f32 %v13220_v47, %v13608_v18  ;;  %s11980_s16 = smov 116   ;;  %s11981_s17 = smov 118  }
 0x1e9   :  { %v10968_v30 = vpop.f32.mrb[116].mxu1  ;;  %10301 = vmatprep.subr.bf16.mxu1 %v11625_v53  ;;  %v9838_v32 = vpop.f32.mrb[117].mxu0  ;;  %s11982_s18 = smov 112   ;;  %s11983_s19 = smov 114   ;;  %vm7805_vm5 = vcmask 1044480   ;;  %vm7801_vm6 = vcmask 39936  }
 0x1ea   :  { %v2447_v41 = vpop.f32.mrb[117].mxu1  ;;  %v9839_v57 = vadd.f32 %v9838_v32, %v9837_v21  ;;  %v9840_v40 = vpop.f32.mrb[118].mxu0  ;;  %v11633_v21 = vld [vmem:[%s15740_s0 + $0x948] sm:$0xff]   ;;  %vm7976_vm7 = vcmask 8192  }
 0x1eb   :  { %v2448_v19 = vadd.f32 %v2447_v41, %v2368_v4  ;;  %v10969_v29 = vpop.f32.mrb[118].mxu1  ;;  %v9841_v44 = vpop.f32.mrb[119].mxu0 }
 0x1ec   :  { %v2450_v42 = vpop.f32.mrb[119].mxu1  ;;  %10302 = vmatpush3.bf16.msra.mxu1 %v11626_v31  ;;  %v2376_v52 = vadd.f32 %v9839_v57, %v13820_v2  ;;  %v9842_v3 = vadd.f32 %v9841_v44, %v9840_v40  ;;  %v15815_v2 = vmax.f32 %v13195_v33, %v13572_v1  ;;  %v15816_v33 = vmax.f32 %v13212_v62, %v13595_v25  ;;  %v11632_v31 = vld [vmem:[%s15740_s0 + $0x900] sm:$0xff]  }
 0x1ed   :  { %v13967_v13 = vmax.f32 %v15814_v7, %v2448_v19  ;;  %v2451_v8 = vadd.f32 %v2450_v42, %v2371_v20  ;;  %10303 = vmatprep.subr.bf16.mxu1 %v11627_v34  ;;  %v15823_v42 = vld [vmem:[#allocation6_spill] sm:$0xff]  ;;  %v15825_v7 = vld [vmem:[#allocation11_spill] sm:$0xff] }
 0x1ee   :  { %4402 = vmatmul.mubr.bf16.gmra.mrb[216].mxu1 %v13489_v50  ;;  %4482 = vmatmul.mubr.bf16.gmra.mrb[220].mxu0 %v13591_v10  ;;  %v2456_v43 = vadd.f32 %v10968_v30, %v2376_v52  ;;  %v2379_v48 = vadd.f32 %v9842_v3, %v13839_v54  ;;  %v11631_v54 = vld [vmem:[%s15740_s0 + $0x940] sm:$0xff]   ;;  %v15818_v30 = vmax.f32 %v13228_v0, %v13621_v24  ;;  %v15821_v24 = vld [vmem:[#allocation12_spill] sm:$0xff] }
 0x1ef   :  { %v13978_v39 = vmax.f32 %v15815_v2, %v2451_v8  ;;  %4409 = vmatprep.mubr.bf16.mxu1 %v13504_v49  ;;  %4489 = vmatprep.mubr.bf16.mxu0 %v13602_v23  ;;  %v15826_v3 = vld [vmem:[#allocation17_spill] sm:$0xff] }
 0x1f0   :  { %10304 = vmatpush3.bf16.msra.mxu1 %v11628_v12  ;;  %v2459_v50 = vadd.f32 %v10969_v29, %v2379_v48  ;;  %v9843_v37 = vpop.f32.mrb[120].mxu0  ;;  %v13991_v1 = vmax.f32 %v15816_v33, %v2456_v43  ;;  %v15822_v29 = vld [vmem:[#allocation15_spill] sm:$0xff]  ;;  %v15827_v8 = vmax.f32 %v15825_v7, %v15826_v3 }
 0x1f1   :  { %v10972_v10 = vpop.f32.mrb[120].mxu1  ;;  %10305 = vmatprep.subr.bf16.mxu1 %v11629_v22  ;;  %v9844_v49 = vpop.f32.mrb[121].mxu0  ;;  %v15824_v12 = vld [vmem:[#allocation7_spill] sm:$0xff] }
 0x1f2   :  { %v2463_v23 = vpop.f32.mrb[121].mxu1  ;;  %v9845_v45 = vadd.f32 %v9844_v49, %v9843_v37  ;;  %v9846_v4 = vpop.f32.mrb[122].mxu0  ;;  %v13996_v59 = vmax.f32 %v15817_v46, %v2459_v50  ;;  %v11651_v3 = vld [vmem:[%s15740_s0 + $0x9e8] sm:$0xff]  }
 0x1f3   :  { %v10973_v53 = vpop.f32.mrb[122].mxu1  ;;  %v9847_v20 = vpop.f32.mrb[123].mxu0 }
 0x1f4   :  { %v2466_v63 = vpop.f32.mrb[123].mxu1  ;;  %10306 = vmatpush3.bf16.msra.mxu1 %v11630_v60  ;;  %v9848_v62 = vadd.f32 %v9847_v20, %v9846_v4  ;;  %v2384_v25 = vadd.f32 %v9845_v45, %v13859_v15  ;;  %v11635_v15 = vld [vmem:[%s15740_s0 + $0x908] sm:$0xff]   ;;  %v15830_v45 = vld [vmem:[#allocation9_spill] sm:$0xff] }
 0x1f5   :  { %10307 = vmatprep.subr.bf16.mxu1 %v11631_v54  ;;  %v15831_v4 = vld [vmem:[#allocation13_spill] sm:$0xff]  ;;  %v15832_v53 = vld [vmem:[#allocation19_spill] sm:$0xff] }
 0x1f6   :  { %4410 = vmatmul.mubr.bf16.gmra.mrb[220].mxu1 %v13545_v26  ;;  %4490 = vmatmul.mubr.bf16.gmra.mrb[224].mxu0 %v13617_v9  ;;  %v2464_v47 = vadd.f32 %v2463_v23, %v2384_v25  ;;  %v2387_v18 = vadd.f32 %v9848_v62, %v13867_v38  ;;  %v11645_v9 = vld [vmem:[%s15740_s0 + $0xa20] sm:$0xff]   ;;  %v15829_v23 = vld [vmem:[#allocation8_spill] sm:$0xff] }
 0x1f7   :  { %4417 = vmatprep.mubr.bf16.mxu1 %v13560_v58  ;;  %4497 = vmatprep.mubr.bf16.mxu0 %v13627_v35  ;;  %v15819_v35 = vld [vmem:[#allocation14_spill] sm:$0xff] }
 0x1f8   :  { %10308 = vmatpush3.bf16.msra.mxu1 %v11632_v31  ;;  %v14016_v34 = vmax.f32 %v15818_v30, %v2464_v47  ;;  %v2467_v26 = vadd.f32 %v2466_v63, %v2387_v18  ;;  %v9849_v32 = vpop.f32.mrb[124].mxu0  ;;  %v15820_v38 = vmax.f32 %v13233_v55, %v15819_v35  ;;  %v11647_v35 = vld [vmem:[%s15740_s0 + $0x9e0] sm:$0xff]  }
 0x1f9   :  { %10309 = vmatprep.subr.bf16.mxu1 %v11633_v21  ;;  %v9850_v58 = vpop.f32.mrb[125].mxu0 }
 0x1fa   :  { %v14024_v41 = vmax.f32 %v15820_v38, %v2467_v26  ;;  %v9851_v57 = vadd.f32 %v9850_v58, %v9849_v32  ;;  %v9852_v19 = vpop.f32.mrb[126].mxu0  ;;  %v11638_v32 = vld [vmem:[%s15740_s0 + $0x9a8] sm:$0xff]  }
 0x1fb   :  { %v9853_v40 = vpop.f32.mrb[127].mxu0  ;;  %v15834_v19 = vld [vmem:[#allocation20_spill] sm:$0xff] }
 0x1fc   :  { %10310 = vmatpush3.bf16.msra.mxu1 %v11635_v15  ;;  %v2392_v0 = vadd.f32 %v9851_v57, %v13884_v61  ;;  %v11637_v15 = vld [vmem:[%s15740_s0 + $0x960] sm:$0xff]   ;;  %v15833_v57 = vld [vmem:[#allocation16_spill] sm:$0xff]  ;;  %v11649_v40 = vld [vmem:[%s15740_s0 + $0xa28] sm:$0xff]  }
 0x1fd   :  { %10407 = vmatprep.subr.bf16.mxu1 %v11645_v9 }
 0x1fe   :  { %4418 = vmatmul.mubr.bf16.gmra.mrb[224].mxu1 %v15821_v24  ;;  %4498 = vmatmul.mubr.bf16.gmra.mrb[228].mxu0 %v15822_v29  ;;  %v2472_v44 = vadd.f32 %v10972_v10, %v2392_v0  ;;  %v11639_v0 = vld [vmem:[%s15740_s0 + $0x968] sm:$0xff]  }
 0x1ff   :  { %4425 = vmatprep.mubr.bf16.mxu1 %v15823_v42  ;;  %4505 = vmatprep.mubr.bf16.mxu0 %v15824_v12  ;;  %v15835_v24 = vld [vmem:[#allocation18_spill] sm:$0xff] }
 0x200   :  { %v9931_v55 = vpop.f32.mrb[128].mxu0  ;;  %v14034_v22 = vmax.f32 %v15827_v8, %v2472_v44  ;;  %v11640_v44 = vld [vmem:[%s15740_s0 + $0x9b0] sm:$0xff]  }
 0x201   :  { %v9879_v52 = vpop.f32.mrb[124].mxu1  ;;  %v9932_v48 = vpop.f32.mrb[129].mxu0 }
 0x202   :  { %15828 = vst [vmem:[#allocation14_spill] sm:$0xff] %v14034_v22  ;;  %v9880_v43 = vpop.f32.mrb[125].mxu1  ;;  %v9933_v2 = vadd.f32 %v9932_v48, %v9931_v55  ;;  %v9934_v50 = vpop.f32.mrb[130].mxu0 }
 0x203   :  { %v9881_v61 = vadd.f32 %v9880_v43, %v9879_v52  ;;  %v9882_v60 = vpop.f32.mrb[126].mxu1  ;;  %v9935_v54 = vpop.f32.mrb[131].mxu0  ;;  %v15836_v52 = vld [vmem:[#allocation21_spill] sm:$0xff] }
 0x204   :  { %v9883_v37 = vpop.f32.mrb[127].mxu1  ;;  %v9936_v33 = vadd.f32 %v9935_v54, %v9934_v50  ;;  %v11641_v50 = vld [vmem:[%s15740_s0 + $0x970] sm:$0xff]  }
 0x205   :  { %v9884_v10 = vadd.f32 %v9883_v37, %v9882_v60  ;;  %v14036_v49 = vadd.f32 %v9933_v2, %v9881_v61 }
 0x206   :  { %4426 = vmatmul.mubr.bf16.gmra.mrb[228].mxu1 %v15829_v23  ;;  %4506 = vmatmul.mubr.bf16.gmra.mrb[232].mxu0 %v15830_v45 }
 0x207   :  { %4545 = vmatprep.mubr.bf16.mxu1 %v15831_v4  ;;  %11010 = vmatprep.mubr.msk.bf16.mxu0 %vm685_vm0, %v15832_v53  ;;  %v14043_v46 = vadd.f32 %v9936_v33, %v9884_v10  ;;  %v11642_v10 = vld [vmem:[%s15740_s0 + $0x9b8] sm:$0xff]   ;;  %v11653_v53 = vld [vmem:[%s15740_s0 + $0xa30] sm:$0xff]  }
 0x208   :  { %v9937_v63 = vpop.f32.mrb[132].mxu0 }
 0x209   :  { %v9885_v20 = vpop.f32.mrb[128].mxu1  ;;  %v9938_v62 = vpop.f32.mrb[133].mxu0 }
 0x20a   :  { %v9886_v31 = vpop.f32.mrb[129].mxu1  ;;  %v9939_v21 = vadd.f32 %v9938_v62, %v9937_v63  ;;  %v9940_v18 = vpop.f32.mrb[134].mxu0  ;;  %v14090_v63 = vld [vmem:[%s15741_s1 + $0x48] ss:$28 sps:$4 sm:$0xff]   ;;  %v11643_v62 = vld [vmem:[%s15740_s0 + $0x978] sm:$0xff]  }
 0x20b   :  { %v9887_v25 = vadd.f32 %v9886_v31, %v9885_v20  ;;  %v9888_v47 = vpop.f32.mrb[130].mxu1  ;;  %v9941_v26 = vpop.f32.mrb[135].mxu0  ;;  %v11655_v31 = vld [vmem:[%s15740_s0 + $0x9f0] sm:$0xff]  }
 0x20c   :  { %v9889_v30 = vpop.f32.mrb[131].mxu1  ;;  %v9942_v58 = vadd.f32 %v9941_v26, %v9940_v18 }
 0x20d   :  { %v9890_v9 = vadd.f32 %v9889_v30, %v9888_v47  ;;  %v14054_v38 = vadd.f32 %v9939_v21, %v9887_v25  ;;  %v14104_v25 = vld [vmem:[%s15741_s1 + $0x84] ss:$28 sps:$4 sm:$0xff]  }
 0x20e   :  { %4546 = vmatmul.mubr.bf16.vlgmr.msra.gmra.mrb[232].mxu1 %v15833_v57  ;;  %11011 = vmatmul.mubr.msk.bf16.vlgmr.msra.gmra.mrb[236].mxu0 %vm685_vm0, %v15834_v19  ;;  %v11644_v47 = vld [vmem:[%s15740_s0 + $0x9c0] sm:$0xff]  }
 0x20f   :  { %10356 = vmatpush3.bf16.msra.mxu0 %v11637_v15  ;;  %4553 = vmatprep.mubr.bf16.mxu1 %v15835_v24  ;;  %v14066_v29 = vadd.f32 %v9942_v58, %v9890_v9  ;;  %v11646_v57 = vld [vmem:[%s15740_s0 + $0x980] sm:$0xff]  }
 0x210   :  { %10357 = vmatprep.subr.bf16.mxu0 %v11638_v32  ;;  %11014 = vmatprep.mubr.msk.bf16.mxu0 %vm685_vm0, %v15836_v52  ;;  %v9943_v7 = vpop.f32.mrb[136].mxu0  ;;  %v11660_v52 = vld [vmem:[%s15740_s0 + $0xa40] sm:$0xff]  }
 0x211   :  { %v9891_v55 = vpop.f32.mrb[132].mxu1  ;;  %10408 = vmatpush3.bf16.msra.mxu1 %v11647_v35  ;;  %v9944_v43 = vpop.f32.mrb[137].mxu0 }
 0x212   :  { %v9892_v8 = vpop.f32.mrb[133].mxu1  ;;  %10409 = vmatprep.subr.bf16.mxu1 %v11649_v40  ;;  %v9945_v61 = vadd.f32 %v9944_v43, %v9943_v7  ;;  %v9946_v60 = vpop.f32.mrb[138].mxu0  ;;  %v14134_v7 = vld [vmem:[%s15741_s1 + $0x80] ss:$28 sps:$4 sm:$0xff]  }
 0x213   :  { %10358 = vmatpush3.bf16.msra.mxu0 %v11639_v0  ;;  %v9893_v48 = vadd.f32 %v9892_v8, %v9891_v55  ;;  %v9894_v2 = vpop.f32.mrb[134].mxu1  ;;  %v9947_v54 = vpop.f32.mrb[139].mxu0  ;;  %v11659_v0 = vld [vmem:[%s15740_s0 + $0x9f8] sm:$0xff]   ;;  %v11650_v8 = vld [vmem:[%s15740_s0 + $0x988] sm:$0xff]  }
 0x214   :  { %v9895_v37 = vpop.f32.mrb[135].mxu1  ;;  %10359 = vmatprep.subr.bf16.mxu0 %v11640_v44  ;;  %v9948_v4 = vadd.f32 %v9947_v54, %v9946_v60  ;;  %v14145_v43 = vld [vmem:[%s15741_s1 + $0xbc] ss:$28 sps:$4 sm:$0xff]   ;;  %v11662_v54 = vld [vmem:[%s15740_s0 + $0xa48] sm:$0xff]  }
 0x215   :  { %v9896_v33 = vadd.f32 %v9895_v37, %v9894_v2  ;;  %10410 = vmatpush3.bf16.msra.mxu1 %v11651_v3  ;;  %v14085_v20 = vadd.f32 %v9945_v61, %v9893_v48  ;;  %v15837_v3 = vld [vmem:[#allocation22_spill] sm:$0xff]  ;;  %v11652_v61 = vld [vmem:[%s15740_s0 + $0x9d0] sm:$0xff]  }
 0x216   :  { %4554 = vmatmul.mubr.bf16.gmra.mrb[236].mxu1 %v14090_v63  ;;  %11015 = vmatmul.mubr.msk.bf16.gmra.mrb[240].mxu0 %vm685_vm0, %v13790_v14  ;;  %v11657_v14 = vld [vmem:[%s15740_s0 + $0xa38] sm:$0xff]   ;;  %v11661_v2 = vld [vmem:[%s15740_s0 + $0xa00] sm:$0xff]   ;;  %v15838_v37 = vld [vmem:[#allocation23_spill] sm:$0xff] }
 0x217   :  { %10360 = vmatpush3.bf16.msra.mxu0 %v11641_v50  ;;  %4561 = vmatprep.mubr.bf16.mxu1 %v14104_v25  ;;  %v14110_v21 = vadd.f32 %v9948_v4, %v9896_v33 }
 0x218   :  { %10361 = vmatprep.subr.bf16.mxu0 %v11642_v10  ;;  %11018 = vmatprep.mubr.msk.bf16.mxu0 %vm685_vm0, %v13804_v11  ;;  %v9949_v15 = vpop.f32.mrb[140].mxu0  ;;  %v11648_v11 = vld [vmem:[%s15740_s0 + $0x9c8] sm:$0xff]  }
 0x219   :  { %v9897_v18 = vpop.f32.mrb[136].mxu1  ;;  %10411 = vmatprep.subr.bf16.mxu1 %v11653_v53  ;;  %v9950_v26 = vpop.f32.mrb[141].mxu0 }
 0x21a   :  { %v9898_v30 = vpop.f32.mrb[137].mxu1  ;;  %10412 = vmatpush3.bf16.msra.mxu1 %v11655_v31  ;;  %v9951_v9 = vadd.f32 %v9950_v26, %v9949_v15  ;;  %v9952_v35 = vpop.f32.mrb[142].mxu0  ;;  %v11656_v15 = vld [vmem:[%s15740_s0 + $0x9d8] sm:$0xff]  }
 0x21b   :  { %10362 = vmatpush3.bf16.msra.mxu0 %v11643_v62  ;;  %v9899_v32 = vadd.f32 %v9898_v30, %v9897_v18  ;;  %v9900_v58 = vpop.f32.mrb[138].mxu1  ;;  %10413 = vmatprep.subr.bf16.mxu1 %v11657_v14  ;;  %v9953_v40 = vpop.f32.mrb[143].mxu0  ;;  %v11654_v14 = vld [vmem:[%s15740_s0 + $0x990] sm:$0xff]   ;;  %v11663_v30 = vld [vmem:[%s15740_s0 + $0xa08] sm:$0xff]  }
 0x21c   :  { %v9901_v19 = vpop.f32.mrb[139].mxu1  ;;  %10363 = vmatprep.subr.bf16.mxu0 %v11644_v47  ;;  %v9954_v44 = vadd.f32 %v9953_v40, %v9952_v35  ;;  %v14177_v35 = vld [vmem:[%s15741_s1 + $0xb8] ss:$28 sps:$4 sm:$0xff]  }
 0x21d   :  { %v9902_v24 = vadd.f32 %v9901_v19, %v9900_v58  ;;  %v14129_v55 = vadd.f32 %v9951_v9, %v9899_v32  ;;  %v11664_v58 = vld [vmem:[%s15740_s0 + $0xa50] sm:$0xff]   ;;  %v11658_v19 = vld [vmem:[%s15740_s0 + $0x998] sm:$0xff]  }
 0x21e   :  { %4562 = vmatmul.mubr.bf16.gmra.mrb[240].mxu1 %v14134_v7  ;;  %11019 = vmatmul.mubr.msk.bf16.gmra.mrb[244].mxu0 %vm685_vm0, %v15837_v3  ;;  %v14188_v40 = vld [vmem:[%s15741_s1 + $0xf4] ss:$28 sps:$4 sm:$0xff]  }
 0x21f   :  { %10364 = vmatpush3.bf16.msra.mxu0 %v11646_v57  ;;  %4569 = vmatprep.mubr.bf16.mxu1 %v14145_v43  ;;  %v14148_v48 = vadd.f32 %v9954_v44, %v9902_v24 }
 0x220   :  { %10365 = vmatprep.subr.bf16.mxu0 %v11648_v11  ;;  %10414 = vmatpush3.bf16.msra.mxu1 %v11659_v0  ;;  %v9955_v50 = vpop.f32.mrb[144].mxu0  ;;  %v11665_v11 = vld [vmem:[%s15740_s0 + $0xa10] sm:$0xff]   ;;  %v11668_v0 = vld [vmem:[%s15740_s0 + $0xaa0] sm:$0xff]  }
 0x221   :  { %v9903_v60 = vpop.f32.mrb[140].mxu1  ;;  %5117 = vmatprep.mubr.bf16.mxu0 %v15838_v37  ;;  %10415 = vmatprep.subr.bf16.mxu1 %v11660_v52  ;;  %v9956_v33 = vpop.f32.mrb[145].mxu0  ;;  %v11666_v52 = vld [vmem:[%s15740_s0 + $0xa58] sm:$0xff]  }
 0x222   :  { %v9904_v10 = vpop.f32.mrb[141].mxu1  ;;  %v9957_v53 = vadd.f32 %v9956_v33, %v9955_v50  ;;  %v9958_v62 = vpop.f32.mrb[146].mxu0  ;;  %v11669_v33 = vld [vmem:[%s15740_s0 + $0xa60] sm:$0xff]  }
 0x223   :  { %10366 = vmatpush3.bf16.msra.mxu0 %v11650_v8  ;;  %v9905_v4 = vadd.f32 %v9904_v10, %v9903_v60  ;;  %v9906_v31 = vpop.f32.mrb[142].mxu1  ;;  %v9959_v18 = vpop.f32.mrb[147].mxu0  ;;  %v11667_v10 = vld [vmem:[%s15740_s0 + $0xa18] sm:$0xff]  }
 0x224   :  { %v9907_v47 = vpop.f32.mrb[143].mxu1  ;;  %10367 = vmatprep.subr.bf16.mxu0 %v11652_v61  ;;  %10416 = vmatpush3.bf16.msra.mxu1 %v11661_v2  ;;  %v9960_v9 = vadd.f32 %v9959_v18, %v9958_v62  ;;  %v14219_v62 = vld [vmem:[%s15741_s1 + $0xf0] ss:$28 sps:$4 sm:$0xff]  }
 0x225   :  { %v14169_v26 = vadd.f32 %v9957_v53, %v9905_v4  ;;  %v9908_v32 = vadd.f32 %v9907_v47, %v9906_v31  ;;  %10417 = vmatprep.subr.bf16.mxu1 %v11662_v54  ;;  %v11670_v53 = vld [vmem:[%s15740_s0 + $0xaa8] sm:$0xff]   ;;  %v14214_v31 = vld [vmem:[%s15740_s0 + $0xae0] sm:$0xff]  }
 0x226   :  { %4570 = vmatmul.mubr.bf16.gmra.mrb[244].mxu1 %v14177_v35  ;;  %v11671_v47 = vld [vmem:[%s15740_s0 + $0xa68] sm:$0xff]  }
 0x227   :  { %v14180_v57 = vadd.f32 %v9960_v9, %v9908_v32  ;;  %10368 = vmatpush3.bf16.msra.mxu0 %v11654_v14  ;;  %4577 = vmatprep.mubr.bf16.mxu1 %v14188_v40  ;;  %v15839_v14 = vld [vmem:[#allocation10_spill] sm:$0xff] }
 0x228   :  { %10369 = vmatprep.subr.bf16.mxu0 %v11656_v15  ;;  %10418 = vmatpush3.bf16.msra.mxu1 %v11663_v30  ;;  %v9961_v44 = vpop.f32.mrb[148].mxu0  ;;  %v11672_v30 = vld [vmem:[%s15740_s0 + $0xab0] sm:$0xff]  }
 0x229   :  { %v9909_v24 = vpop.f32.mrb[144].mxu1  ;;  %10419 = vmatprep.subr.bf16.mxu1 %v11664_v58  ;;  %v9962_v8 = vpop.f32.mrb[149].mxu0 }
 0x22a   :  { %v9910_v3 = vpop.f32.mrb[145].mxu1  ;;  %v9963_v2 = vadd.f32 %v9962_v8, %v9961_v44  ;;  %v9964_v60 = vpop.f32.mrb[150].mxu0 }
 0x22b   :  { %10370 = vmatpush3.bf16.msra.mxu0 %v11658_v19  ;;  %v9911_v61 = vadd.f32 %v9910_v3, %v9909_v24  ;;  %v9912_v50 = vpop.f32.mrb[146].mxu1  ;;  %v9965_v37 = vpop.f32.mrb[151].mxu0 }
 0x22c   :  { %v9913_v54 = vpop.f32.mrb[147].mxu1  ;;  %10420 = vmatpush3.bf16.msra.mxu1 %v11665_v11  ;;  %10459 = vmatprep.subr.bf16.mxu0 %v11668_v0  ;;  %v11673_v0 = vld [vmem:[%s15740_s0 + $0xa70] sm:$0xff]  }
 0x22d   :  { %v14206_v4 = vadd.f32 %v9963_v2, %v9911_v61  ;;  %10421 = vmatprep.subr.bf16.mxu1 %v11666_v52  ;;  %v11674_v52 = vld [vmem:[%s15740_s0 + $0xab8] sm:$0xff]  }
 0x22e   :  { %4578 = vmatmul.mubr.bf16.gmra.mrb[248].mxu1 %v14219_v62  ;;  %5118 = vmatmul.mubr.bf16.vlgmr.msra.gmra.mrb[248].mxu0 %v13890_v27  ;;  %v11675_v61 = vld [vmem:[%s15740_s0 + $0xa78] sm:$0xff]  }
 0x22f   :  { %4585 = vmatprep.mubr.bf16.mxu1 %v15839_v14  ;;  %5125 = vmatprep.mubr.bf16.mxu0 %v13901_v16 }
 0x230   :  { %10422 = vmatpush3.bf16.msra.mxu1 %v11667_v10  ;;  %10460 = vmatpush3.bf16.msra.mxu0 %v11669_v33  ;;  %v10980_v15 = vpop.f32.mrb[152].mxu0 }
 0x231   :  { %v9983_v18 = vpop.f32.mrb[148].mxu1  ;;  %10461 = vmatprep.subr.bf16.mxu0 %v11670_v53  ;;  %11022 = vmatprep.subr.bf16.mxu1 %v14214_v31  ;;  %v3163_v32 = vpop.f32.mrb[153].mxu0 }
 0x232   :  { %v9984_v27 = vpop.f32.mrb[149].mxu1  ;;  %v10981_v16 = vpop.f32.mrb[154].mxu0 }
 0x233   :  { %v9985_v9 = vadd.f32 %v9984_v27, %v9983_v18  ;;  %v9986_v58 = vpop.f32.mrb[150].mxu1  ;;  %v3166_v11 = vpop.f32.mrb[155].mxu0 }
 0x234   :  { %v9987_v19 = vpop.f32.mrb[151].mxu1  ;;  %10462 = vmatpush3.bf16.msra.mxu0 %v11671_v47 }
 0x235   :  { %v3084_v24 = vadd.f32 %v9985_v9, %v14036_v49  ;;  %v9988_v44 = vadd.f32 %v9987_v19, %v9986_v58  ;;  %10463 = vmatprep.subr.bf16.mxu0 %v11672_v30  ;;  %v14248_v49 = vld [vmem:[%s15741_s1 + $0xc] ss:$28 sps:$4 sm:$0xff]   ;;  %v11677_v30 = vld [vmem:[%s15740_s0 + $0xa80] sm:$0xff]  }
 0x236   :  { %4586 = vmatmul.mubr.bf16.gmra.mrb[252].mxu1 %v12353_v17  ;;  %5126 = vmatmul.mubr.bf16.gmra.mrb[252].mxu0 %v13932_v6  ;;  %v11678_v9 = vld [vmem:[%s15740_s0 + $0xac8] sm:$0xff]  }
 0x237   :  { %v14241_v3 = vadd.f32 %v3163_v32, %v3084_v24  ;;  %v3087_v8 = vadd.f32 %v9988_v44, %v14043_v46  ;;  %5133 = vmatprep.mubr.bf16.mxu0 %v13944_v51  ;;  %5197 = vmatprep.mubr.bf16.mxu1 %v14248_v49  ;;  %v11676_v51 = vld [vmem:[%s15740_s0 + $0xac0] sm:$0xff]   ;;  %v11685_v58 = vld [vmem:[%s15740_s0 + $0xae8] sm:$0xff]  }
 0x238   :  { %10464 = vmatpush3.bf16.msra.mxu0 %v11673_v0  ;;  %v14258_v60 = vpop.f32.mrb[156].mxu0  ;;  %v14280_v19 = vld [vmem:[%s15741_s1 + $0x70] ss:$28 sps:$4 sm:$0xff]   ;;  %v14301_v44 = vld [vmem:[%s15741_s1 + $0x44] ss:$28 sps:$4 sm:$0xff]  }
 0x239   :  { %v14256_v2 = vadd.f32 %v3166_v11, %v3087_v8  ;;  %v9989_v46 = vpop.f32.mrb[152].mxu1  ;;  %10465 = vmatprep.subr.bf16.mxu0 %v11674_v52  ;;  %v3179_v37 = vpop.f32.mrb[157].mxu0  ;;  %v14295_v24 = vld [vmem:[%s15741_s1 + $0xac] ss:$28 sps:$4 sm:$0xff]  }
 0x23a   :  { %v9990_v50 = vpop.f32.mrb[153].mxu1  ;;  %v14265_v53 = vpop.f32.mrb[158].mxu0 }
 0x23b   :  { %v9991_v10 = vadd.f32 %v9990_v50, %v9989_v46  ;;  %v9992_v33 = vpop.f32.mrb[154].mxu1  ;;  %v3182_v18 = vpop.f32.mrb[159].mxu0  ;;  %v11686_v46 = vld [vmem:[%s15740_s0 + $0xb30] sm:$0xff]  }
 0x23c   :  { %v9993_v47 = vpop.f32.mrb[155].mxu1  ;;  %10466 = vmatpush3.bf16.msra.mxu0 %v11675_v61  ;;  %v11680_v61 = vld [vmem:[%s15740_s0 + $0xad0] sm:$0xff]  }
 0x23d   :  { %v3092_v27 = vadd.f32 %v9991_v10, %v14054_v38  ;;  %v9994_v32 = vadd.f32 %v9993_v47, %v9992_v33  ;;  %10467 = vmatprep.subr.bf16.mxu0 %v11676_v51  ;;  %v14286_v38 = vld [vmem:[%s15741_s1 + $0x8] ss:$28 sps:$4 sm:$0xff]  }
 0x23e   :  { %5134 = vmatmul.mubr.bf16.gmra.mrb[0].mxu0 %v14280_v19  ;;  %5198 = vmatmul.mubr.bf16.vlgmr.msra.gmra.mrb[0].mxu1 %v14286_v38 }
 0x23f   :  { %v14289_v11 = vadd.f32 %v10980_v15, %v3092_v27  ;;  %v3095_v0 = vadd.f32 %v9994_v32, %v14066_v29  ;;  %5141 = vmatprep.mubr.bf16.mxu0 %v14295_v24  ;;  %5205 = vmatprep.mubr.bf16.mxu1 %v14301_v44  ;;  %v11679_v15 = vld [vmem:[%s15740_s0 + $0xa88] sm:$0xff]   ;;  %v11681_v32 = vld [vmem:[%s15740_s0 + $0xa90] sm:$0xff]  }
 0x240   :  { %10468 = vmatpush3.bf16.msra.mxu0 %v11677_v30  ;;  %11023 = vmatpush3.bf16.msra.mxu1 %v14214_v31  ;;  %v14310_v8 = vpop.f32.mrb[160].mxu0 }
 0x241   :  { %v14308_v29 = vadd.f32 %v10981_v16, %v3095_v0  ;;  %v9995_v52 = vpop.f32.mrb[156].mxu1  ;;  %10469 = vmatprep.subr.bf16.mxu0 %v11678_v9  ;;  %11024 = vmatprep.subr.bf16.mxu1 %v11685_v58  ;;  %v14320_v31 = vpop.f32.mrb[161].mxu0 }
 0x242   :  { %v9996_v50 = vpop.f32.mrb[157].mxu1  ;;  %v10989_v33 = vpop.f32.mrb[162].mxu0 }
 0x243   :  { %v9997_v16 = vadd.f32 %v9996_v50, %v9995_v52  ;;  %v9998_v10 = vpop.f32.mrb[158].mxu1  ;;  %v14324_v27 = vpop.f32.mrb[163].mxu0  ;;  %v11682_v52 = vld [vmem:[%s15740_s0 + $0xad8] sm:$0xff]   ;;  %v14336_v50 = vld [vmem:[%s15741_s1 + $0xa8] ss:$28 sps:$4 sm:$0xff]  }
 0x244   :  { %v9999_v30 = vpop.f32.mrb[159].mxu1  ;;  %10470 = vmatpush3.bf16.msra.mxu0 %v11679_v15  ;;  %11025 = vmatpush3.bf16.msra.mxu1 %v11685_v58  ;;  %v14342_v58 = vld [vmem:[%s15741_s1 + $0x40] ss:$28 sps:$4 sm:$0xff]  }
 0x245   :  { %v3100_v9 = vadd.f32 %v9997_v16, %v14085_v20  ;;  %v10000_v0 = vadd.f32 %v9999_v30, %v9998_v10  ;;  %10471 = vmatprep.subr.bf16.mxu0 %v11680_v61  ;;  %10519 = vmatprep.subr.bf16.mxu1 %v11686_v46  ;;  %v14351_v61 = vld [vmem:[%s15741_s1 + $0xe4] ss:$28 sps:$4 sm:$0xff]   ;;  %v14357_v46 = vld [vmem:[%s15741_s1 + $0x7c] ss:$28 sps:$4 sm:$0xff]   ;;  %v11688_v10 = vld [vmem:[%s15740_s0 + $0xbb0] sm:$0xff]  }
 0x246   :  { %5142 = vmatmul.mubr.bf16.gmra.mrb[4].mxu0 %v14336_v50  ;;  %5206 = vmatmul.mubr.bf16.gmra.mrb[4].mxu1 %v14342_v58 }
 0x247   :  { %v14345_v20 = vadd.f32 %v3179_v37, %v3100_v9  ;;  %v3103_v15 = vadd.f32 %v10000_v0, %v14110_v21  ;;  %5149 = vmatprep.mubr.bf16.mxu0 %v14351_v61  ;;  %5213 = vmatprep.mubr.bf16.mxu1 %v14357_v46  ;;  %v11683_v37 = vld [vmem:[%s15740_s0 + $0xa98] sm:$0xff]  }
 0x248   :  { %10472 = vmatpush3.bf16.msra.mxu0 %v11681_v32 }
 0x249   :  { %v14363_v21 = vadd.f32 %v3182_v18, %v3103_v15  ;;  %v10001_v16 = vpop.f32.mrb[160].mxu1  ;;  %10473 = vmatprep.subr.bf16.mxu0 %v11682_v52  ;;  %v14376_v52 = vld [vmem:[%s15741_s1 + $0xe0] ss:$28 sps:$4 sm:$0xff]  }
 0x24a   :  { %v10002_v30 = vpop.f32.mrb[161].mxu1  ;;  %15840 = vst [vmem:[#allocation12_spill] sm:$0xff] %v14376_v52 }
 0x24b   :  { %v10003_v9 = vadd.f32 %v10002_v30, %v10001_v16  ;;  %v10004_v0 = vpop.f32.mrb[162].mxu1  ;;  %v14382_v16 = vld [vmem:[%s15741_s1 + $0x78] ss:$28 sps:$4 sm:$0xff]  }
 0x24c   :  { %v10005_v54 = vpop.f32.mrb[163].mxu1  ;;  %10474 = vmatpush3.bf16.msra.mxu0 %v11683_v37 }
 0x24d   :  { %v3108_v18 = vadd.f32 %v10003_v9, %v14129_v55  ;;  %v10006_v15 = vadd.f32 %v10005_v54, %v10004_v0  ;;  %10571 = vmatprep.subr.bf16.mxu0 %v11688_v10  ;;  %v14393_v54 = vld [vmem:[%s15741_s1 + $0xb4] ss:$28 sps:$4 sm:$0xff]  }
 0x24e   :  { %5150 = vmatmul.mubr.bf16.gmra.mrb[8].mxu0 %v14376_v52  ;;  %5214 = vmatmul.mubr.bf16.gmra.mrb[8].mxu1 %v14382_v16 }
 0x24f   :  { %v14386_v37 = vadd.f32 %v14258_v60, %v3108_v18  ;;  %v3111_v55 = vadd.f32 %v10006_v15, %v14148_v48  ;;  %5157 = vmatprep.mubr.bf16.mxu0 %v15823_v42  ;;  %5221 = vmatprep.mubr.bf16.mxu1 %v14393_v54 }
 0x250   :  { %v10043_v60 = vpop.f32.mrb[164].mxu0 }
 0x251   :  { %v14399_v30 = vadd.f32 %v14265_v53, %v3111_v55  ;;  %v10007_v9 = vpop.f32.mrb[164].mxu1  ;;  %v10044_v18 = vpop.f32.mrb[165].mxu0  ;;  %v14408_v53 = vld [vmem:[%s15741_s1 + $0xb0] ss:$28 sps:$4 sm:$0xff]  }
 0x252   :  { %v10008_v0 = vpop.f32.mrb[165].mxu1  ;;  %v10045_v32 = vadd.f32 %v10044_v18, %v10043_v60  ;;  %v10046_v47 = vpop.f32.mrb[166].mxu0 }
 0x253   :  { %v10009_v15 = vadd.f32 %v10008_v0, %v10007_v9  ;;  %v10010_v33 = vpop.f32.mrb[166].mxu1  ;;  %v10047_v51 = vpop.f32.mrb[167].mxu0 }
 0x254   :  { %v10011_v6 = vpop.f32.mrb[167].mxu1  ;;  %v10048_v10 = vadd.f32 %v10047_v51, %v10046_v47 }
 0x255   :  { %v3116_v42 = vadd.f32 %v10009_v15, %v14169_v26  ;;  %v10012_v52 = vadd.f32 %v10011_v6, %v10010_v33  ;;  %v14418_v26 = vld [vmem:[%s15741_s1 + $0xec] ss:$28 sps:$4 sm:$0xff]   ;;  %v14424_v6 = vld [vmem:[%s15741_s1 + $0x14] ss:$28 sps:$4 sm:$0xff]  }
 0x256   :  { %5158 = vmatmul.mubr.bf16.gmra.mrb[12].mxu0 %v15829_v23  ;;  %5222 = vmatmul.mubr.bf16.gmra.mrb[12].mxu1 %v14408_v53  ;;  %15841 = vst [vmem:[#allocation15_spill] sm:$0xff] %v14424_v6 }
 0x257   :  { %v14412_v55 = vadd.f32 %v14320_v31, %v3116_v42  ;;  %v3119_v9 = vadd.f32 %v10012_v52, %v14180_v57  ;;  %5229 = vmatprep.mubr.bf16.mxu1 %v14418_v26  ;;  %5277 = vmatprep.mubr.bf16.mxu0 %v14424_v6 }
 0x258   :  { %v10049_v31 = vpop.f32.mrb[168].mxu0 }
 0x259   :  { %v14428_v51 = vadd.f32 %v14324_v27, %v3119_v9  ;;  %v10013_v42 = vpop.f32.mrb[168].mxu1  ;;  %v10050_v33 = vpop.f32.mrb[169].mxu0  ;;  %v11689_v27 = vld [vmem:[%s15740_s0 + $0xb70] sm:$0xff]  }
 0x25a   :  { %v10014_v47 = vpop.f32.mrb[169].mxu1  ;;  %v14432_v60 = vadd.f32 %v10050_v33, %v10049_v31  ;;  %v10052_v0 = vpop.f32.mrb[170].mxu0  ;;  %v14448_v31 = vld [vmem:[%s15741_s1 + $0xe8] ss:$28 sps:$4 sm:$0xff]  }
 0x25b   :  { %v10015_v52 = vadd.f32 %v10014_v47, %v10013_v42  ;;  %v10016_v18 = vpop.f32.mrb[170].mxu1  ;;  %v10053_v48 = vpop.f32.mrb[171].mxu0  ;;  %v11692_v42 = vld [vmem:[%s15740_s0 + $0xbb8] sm:$0xff]   ;;  %v11697_v33 = vld [vmem:[%s15740_s0 + $0xb80] sm:$0xff]  }
 0x25c   :  { %v10017_v6 = vpop.f32.mrb[171].mxu1  ;;  %v14440_v23 = vadd.f32 %v10053_v48, %v10052_v0  ;;  %v14464_v48 = vld [vmem:[%s15741_s1 + $0x4c] ss:$28 sps:$4 sm:$0xff]   ;;  %v11693_v47 = vld [vmem:[%s15740_s0 + $0xb78] sm:$0xff]   ;;  %v11696_v0 = vld [vmem:[%s15740_s0 + $0xbc0] sm:$0xff]  }
 0x25d   :  { %v3124_v9 = vadd.f32 %v10015_v52, %v14206_v4  ;;  %v14454_v6 = vld [vmem:[%s15741_s1 + $0x10] ss:$28 sps:$4 sm:$0xff]   ;;  %15844 = vst [vmem:[#allocation13_spill] sm:$0xff] %v14464_v48 }
 0x25e   :  { %5230 = vmatmul.mubr.bf16.gmra.mrb[16].mxu1 %v14448_v31  ;;  %15842 = vst [vmem:[#allocation11_spill] sm:$0xff] %v14454_v6  ;;  %5278 = vmatmul.mubr.bf16.vlgmr.msra.gmra.mrb[16].mxu0 %v14454_v6 }
 0x25f   :  { %v14458_v4 = vadd.f32 %v14310_v8, %v3124_v9  ;;  %5237 = vmatprep.mubr.bf16.mxu1 %v15824_v12  ;;  %5285 = vmatprep.mubr.bf16.mxu0 %v14464_v48 }
 0x260   :  { %10572 = vmatpush3.bf16.msra.mxu0 %v11689_v27  ;;  %v10055_v52 = vpop.f32.mrb[172].mxu0 }
 0x261   :  { %15843 = vst [vmem:[#allocation17_spill] sm:$0xff] %v14458_v4  ;;  %v10095_v8 = vpop.f32.mrb[172].mxu1  ;;  %10573 = vmatprep.subr.bf16.mxu0 %v11692_v42  ;;  %v10056_v18 = vpop.f32.mrb[173].mxu0 }
 0x262   :  { %v10096_v9 = vpop.f32.mrb[173].mxu1  ;;  %v14475_v15 = vadd.f32 %v10056_v18, %v10055_v52  ;;  %v10058_v27 = vpop.f32.mrb[174].mxu0  ;;  %v11700_v52 = vld [vmem:[%s15740_s0 + $0xbc8] sm:$0xff]  }
 0x263   :  { %v10097_v57 = vadd.f32 %v10096_v9, %v10095_v8  ;;  %v10098_v48 = vpop.f32.mrb[174].mxu1  ;;  %v10059_v6 = vpop.f32.mrb[175].mxu0 }
 0x264   :  { %v10099_v12 = vpop.f32.mrb[175].mxu1  ;;  %10574 = vmatpush3.bf16.msra.mxu0 %v11693_v47  ;;  %v14482_v42 = vadd.f32 %v10059_v6, %v10058_v27  ;;  %v11690_v27 = vld [vmem:[%s15740_s0 + $0xb38] sm:$0xff]  }
 0x265   :  { %v14480_v4 = vadd.f32 %v10097_v57, %v10045_v32  ;;  %v10100_v22 = vadd.f32 %v10099_v12, %v10098_v48  ;;  %10575 = vmatprep.subr.bf16.mxu0 %v11696_v0  ;;  %v14495_v32 = vld [vmem:[%s15741_s1 + $0x18] ss:$28 sps:$4 sm:$0xff]   ;;  %v11701_v12 = vld [vmem:[%s15740_s0 + $0xb88] sm:$0xff]  }
 0x266   :  { %5238 = vmatmul.mubr.bf16.gmra.mrb[20].mxu1 %v15830_v45  ;;  %5286 = vmatmul.mubr.bf16.gmra.mrb[20].mxu0 %v14090_v63  ;;  %15845 = vst [vmem:[#allocation19_spill] sm:$0xff] %v14495_v32 }
 0x267   :  { %v14489_v8 = vadd.f32 %v10100_v22, %v10048_v10  ;;  %5293 = vmatprep.mubr.bf16.mxu0 %v14104_v25  ;;  %11026 = vmatprep.mubr.msk.bf16.mxu1 %vm685_vm0, %v14495_v32  ;;  %v11704_v22 = vld [vmem:[%s15740_s0 + $0xbd0] sm:$0xff]  }
 0x268   :  { %10576 = vmatpush3.bf16.msra.mxu0 %v11697_v33  ;;  %v10061_v57 = vpop.f32.mrb[176].mxu0  ;;  %v11687_v33 = vld [vmem:[%s15740_s0 + $0xaf0] sm:$0xff]  }
 0x269   :  { %v10101_v6 = vpop.f32.mrb[176].mxu1  ;;  %10577 = vmatprep.subr.bf16.mxu0 %v11700_v52  ;;  %v10062_v63 = vpop.f32.mrb[177].mxu0 }
 0x26a   :  { %v10102_v25 = vpop.f32.mrb[177].mxu1  ;;  %v14505_v10 = vadd.f32 %v10062_v63, %v10061_v57  ;;  %v10064_v47 = vpop.f32.mrb[178].mxu0  ;;  %v14525_v63 = vld [vmem:[%s15741_s1 + $0x50] ss:$28 sps:$4 sm:$0xff]  }
 0x26b   :  { %v10103_v48 = vadd.f32 %v10102_v25, %v10101_v6  ;;  %v10104_v0 = vpop.f32.mrb[178].mxu1  ;;  %v10065_v18 = vpop.f32.mrb[179].mxu0  ;;  %v11705_v6 = vld [vmem:[%s15740_s0 + $0xb90] sm:$0xff]   ;;  %15846 = vst [vmem:[#allocation16_spill] sm:$0xff] %v14525_v63 }
 0x26c   :  { %v10105_v9 = vpop.f32.mrb[179].mxu1  ;;  %10578 = vmatpush3.bf16.msra.mxu0 %v11701_v12  ;;  %v14516_v32 = vadd.f32 %v10065_v18, %v10064_v47 }
 0x26d   :  { %v14514_v52 = vadd.f32 %v10103_v48, %v14432_v60  ;;  %v10106_v57 = vadd.f32 %v10105_v9, %v10104_v0  ;;  %10579 = vmatprep.subr.bf16.mxu0 %v11704_v22  ;;  %v11708_v60 = vld [vmem:[%s15740_s0 + $0xbd8] sm:$0xff]   ;;  %v14542_v22 = vld [vmem:[%s15741_s1 + $0x88] ss:$28 sps:$4 sm:$0xff]  }
 0x26e   :  { %5294 = vmatmul.mubr.bf16.gmra.mrb[24].mxu0 %v14134_v7  ;;  %11027 = vmatmul.mubr.msk.bf16.vlgmr.msra.gmra.mrb[24].mxu1 %vm685_vm0, %v14525_v63  ;;  %v11691_v7 = vld [vmem:[%s15740_s0 + $0xaf8] sm:$0xff]   ;;  %15847 = vst [vmem:[#allocation20_spill] sm:$0xff] %v14542_v22 }
 0x26f   :  { %v14533_v12 = vadd.f32 %v10106_v57, %v14440_v23  ;;  %10520 = vmatpush3.bf16.msra.mxu1 %v11687_v33  ;;  %5301 = vmatprep.mubr.bf16.mxu0 %v14145_v43  ;;  %v11694_v23 = vld [vmem:[%s15740_s0 + $0xb40] sm:$0xff]   ;;  %v11709_v43 = vld [vmem:[%s15740_s0 + $0xb98] sm:$0xff]  }
 0x270   :  { %10521 = vmatprep.subr.bf16.mxu1 %v11690_v27  ;;  %11030 = vmatprep.mubr.msk.bf16.mxu1 %vm685_vm0, %v14542_v22  ;;  %v10067_v25 = vpop.f32.mrb[180].mxu0  ;;  %v11695_v57 = vld [vmem:[%s15740_s0 + $0xb00] sm:$0xff]  }
 0x271   :  { %v10107_v48 = vpop.f32.mrb[180].mxu1  ;;  %10580 = vmatpush3.bf16.msra.mxu0 %v11705_v6  ;;  %v10068_v47 = vpop.f32.mrb[181].mxu0  ;;  %v11698_v6 = vld [vmem:[%s15740_s0 + $0xb48] sm:$0xff]  }
 0x272   :  { %v10108_v0 = vpop.f32.mrb[181].mxu1  ;;  %10581 = vmatprep.subr.bf16.mxu0 %v11708_v60  ;;  %v14552_v33 = vadd.f32 %v10068_v47, %v10067_v25  ;;  %v10070_v9 = vpop.f32.mrb[182].mxu0  ;;  %v11712_v25 = vld [vmem:[%s15740_s0 + $0xbe0] sm:$0xff]  }
 0x273   :  { %10522 = vmatpush3.bf16.msra.mxu1 %v11691_v7  ;;  %v10109_v18 = vadd.f32 %v10108_v0, %v10107_v48  ;;  %v10110_v27 = vpop.f32.mrb[182].mxu1  ;;  %v10071_v22 = vpop.f32.mrb[183].mxu0  ;;  %v11702_v48 = vld [vmem:[%s15740_s0 + $0xb50] sm:$0xff]  }
 0x274   :  { %v10111_v63 = vpop.f32.mrb[183].mxu1  ;;  %10523 = vmatprep.subr.bf16.mxu1 %v11694_v23  ;;  %v14563_v60 = vadd.f32 %v10071_v22, %v10070_v9  ;;  %v14572_v23 = vld [vmem:[%s15741_s1 + $0xc0] ss:$28 sps:$4 sm:$0xff]   ;;  %v11716_v22 = vld [vmem:[%s15740_s0 + $0xbe8] sm:$0xff]  }
 0x275   :  { %v14561_v45 = vadd.f32 %v10109_v18, %v14475_v15  ;;  %v10112_v7 = vadd.f32 %v10111_v63, %v10110_v27  ;;  %10582 = vmatpush3.bf16.msra.mxu0 %v11709_v43  ;;  %15848 = vst [vmem:[#allocation18_spill] sm:$0xff] %v14572_v23  ;;  %v11713_v15 = vld [vmem:[%s15740_s0 + $0xba0] sm:$0xff]  }
 0x276   :  { %5302 = vmatmul.mubr.bf16.gmra.mrb[28].mxu0 %v14177_v35  ;;  %11031 = vmatmul.mubr.msk.bf16.gmra.mrb[28].mxu1 %vm685_vm0, %v14572_v23  ;;  %v11699_v35 = vld [vmem:[%s15740_s0 + $0xb08] sm:$0xff]  }
 0x277   :  { %v14580_v63 = vadd.f32 %v10112_v7, %v14482_v42  ;;  %10524 = vmatpush3.bf16.msra.mxu1 %v11695_v57  ;;  %5309 = vmatprep.mubr.bf16.mxu0 %v14188_v40  ;;  %v14595_v42 = vld [vmem:[%s15741_s1 + $0xf8] ss:$28 sps:$4 sm:$0xff]  }
 0x278   :  { %10525 = vmatprep.subr.bf16.mxu1 %v11698_v6  ;;  %11034 = vmatprep.mubr.msk.bf16.mxu1 %vm685_vm0, %v14595_v42  ;;  %v10073_v43 = vpop.f32.mrb[184].mxu0  ;;  %v11703_v6 = vld [vmem:[%s15740_s0 + $0xb10] sm:$0xff]  }
 0x279   :  { %v10113_v47 = vpop.f32.mrb[184].mxu1  ;;  %10583 = vmatprep.subr.bf16.mxu0 %v11712_v25  ;;  %v10074_v40 = vpop.f32.mrb[185].mxu0  ;;  %v11706_v25 = vld [vmem:[%s15740_s0 + $0xb58] sm:$0xff]  }
 0x27a   :  { %v10114_v0 = vpop.f32.mrb[185].mxu1  ;;  %10584 = vmatpush3.bf16.msra.mxu0 %v11713_v15  ;;  %v14599_v18 = vadd.f32 %v10074_v40, %v10073_v43  ;;  %v10076_v27 = vpop.f32.mrb[186].mxu0  ;;  %v11717_v15 = vld [vmem:[%s15740_s0 + $0xba8] sm:$0xff]  }
 0x27b   :  { %10526 = vmatpush3.bf16.msra.mxu1 %v11699_v35  ;;  %v10115_v9 = vadd.f32 %v10114_v0, %v10113_v47  ;;  %v10116_v57 = vpop.f32.mrb[186].mxu1  ;;  %10585 = vmatprep.subr.bf16.mxu0 %v11716_v22  ;;  %v10077_v7 = vpop.f32.mrb[187].mxu0  ;;  %v14616_v47 = vld [vmem:[%s15740_s0 + $0xc70] sm:$0xff]  }
 0x27c   :  { %v10117_v23 = vpop.f32.mrb[187].mxu1  ;;  %10527 = vmatprep.subr.bf16.mxu1 %v11702_v48  ;;  %v14622_v22 = vld [vmem:[%s15741_s1 + $0x130] ss:$0 sps:$4 sm:$0x77]  }
 0x27d   :  { %v14611_v35 = vadd.f32 %v10115_v9, %v14505_v10  ;;  %v10118_v43 = vadd.f32 %v10117_v23, %v10116_v57  ;;  %15849 = vst [vmem:[#allocation21_spill] sm:$0xff] %v14622_v22  ;;  %v11707_v10 = vld [vmem:[%s15740_s0 + $0xb18] sm:$0xff]  }
 0x27e   :  { %5310 = vmatmul.mubr.bf16.gmra.mrb[32].mxu0 %v14219_v62  ;;  %11035 = vmatmul.mubr.msk.bf16.gmra.mrb[32].mxu1 %vm685_vm0, %v14622_v22  ;;  %v11710_v62 = vld [vmem:[%s15740_s0 + $0xb60] sm:$0xff]  }
 0x27f   :  { %v14627_v48 = vadd.f32 %v10118_v43, %v14516_v32  ;;  %10528 = vmatpush3.bf16.msra.mxu1 %v11703_v6  ;;  %5317 = vmatprep.mubr.bf16.mxu0 %v15839_v14  ;;  %v14639_v32 = vld [vmem:[%s15741_s1 + $0x4] ss:$28 sps:$4 sm:$0xff]   ;;  %v11714_v14 = vld [vmem:[%s15740_s0 + $0xb68] sm:$0xff]  }
 0x280   :  { %10529 = vmatprep.subr.bf16.mxu1 %v11706_v25  ;;  %10586 = vmatpush3.bf16.msra.mxu0 %v11717_v15  ;;  %15850 = vst [vmem:[#allocation22_spill] sm:$0xff] %v14639_v32  ;;  %v11711_v25 = vld [vmem:[%s15740_s0 + $0xb20] sm:$0xff]  }
 0x281   :  { %v10119_v23 = vpop.f32.mrb[188].mxu1  ;;  %v10147_v40 = vpop.f32.mrb[188].mxu0  ;;  %5849 = vmatprep.mubr.bf16.mxu1 %v14639_v32  ;;  %11038 = vmatprep.subr.bf16.mxu0 %v14616_v47 }
 0x282   :  { %v10120_v0 = vpop.f32.mrb[189].mxu1  ;;  %v10148_v9 = vpop.f32.mrb[189].mxu0 }
 0x283   :  { %10530 = vmatpush3.bf16.msra.mxu1 %v11707_v10  ;;  %v10121_v27 = vadd.f32 %v10120_v0, %v10119_v23  ;;  %v10149_v57 = vadd.f32 %v10148_v9, %v10147_v40  ;;  %v10122_v6 = vpop.f32.mrb[190].mxu1  ;;  %v10150_v7 = vpop.f32.mrb[190].mxu0 }
 0x284   :  { %v10123_v15 = vpop.f32.mrb[191].mxu1  ;;  %v10151_v43 = vpop.f32.mrb[191].mxu0  ;;  %10531 = vmatprep.subr.bf16.mxu1 %v11710_v62  ;;  %v11715_v62 = vld [vmem:[%s15740_s0 + $0xb28] sm:$0xff]  }
 0x285   :  { %v14650_v32 = vadd.f32 %v10121_v27, %v14552_v33  ;;  %v10124_v22 = vadd.f32 %v10123_v15, %v10122_v6  ;;  %v10152_v10 = vadd.f32 %v10151_v43, %v10150_v7  ;;  %v3816_v23 = vadd.f32 %v10149_v57, %v14480_v4  ;;  %v11718_v33 = vld [vmem:[%s15740_s0 + $0xc30] sm:$0xff]  }
 0x286   :  { %5318 = vmatmul.mubr.bf16.gmra.mrb[36].mxu0 %v12353_v17 }
 0x287   :  { %v14655_v40 = vadd.f32 %v10124_v22, %v14563_v60  ;;  %10532 = vmatpush3.bf16.msra.mxu1 %v11711_v25  ;;  %5929 = vmatprep.mubr.bf16.mxu0 %v14248_v49  ;;  %v3819_v0 = vadd.f32 %v10152_v10, %v14489_v8  ;;  %v11720_v10 = vld [vmem:[%s15740_s0 + $0xc38] sm:$0xff]  }
 0x288   :  { %10533 = vmatprep.subr.bf16.mxu1 %v11714_v14  ;;  %v11719_v14 = vld [vmem:[%s15740_s0 + $0xbf0] sm:$0xff]  }
 0x289   :  { %v10125_v4 = vpop.f32.mrb[192].mxu1  ;;  %v10153_v9 = vpop.f32.mrb[192].mxu0 }
 0x28a   :  { %v10126_v27 = vpop.f32.mrb[193].mxu1  ;;  %v10154_v57 = vpop.f32.mrb[193].mxu0 }
 0x28b   :  { %10534 = vmatpush3.bf16.msra.mxu1 %v11715_v62  ;;  %v10127_v60 = vadd.f32 %v10126_v27, %v10125_v4  ;;  %v10155_v22 = vadd.f32 %v10154_v57, %v10153_v9  ;;  %v10156_v6 = vpop.f32.mrb[194].mxu0  ;;  %v10128_v7 = vpop.f32.mrb[194].mxu1  ;;  %v11734_v62 = vld [vmem:[%s15740_s0 + $0xc78] sm:$0xff]  }
 0x28c   :  { %v10157_v25 = vpop.f32.mrb[195].mxu0  ;;  %v10129_v15 = vpop.f32.mrb[195].mxu1  ;;  %10623 = vmatprep.subr.bf16.mxu1 %v11718_v33  ;;  %v14681_v33 = vld [vmem:[%s15741_s1] ss:$28 sps:$4 sm:$0xff]  }
 0x28d   :  { %v14669_v49 = vadd.f32 %v10127_v60, %v14599_v18  ;;  %v10158_v8 = vadd.f32 %v10157_v25, %v10156_v6  ;;  %v3824_v43 = vadd.f32 %v10155_v22, %v14514_v52  ;;  %v14689_v52 = vld [vmem:[%s15741_s1 + $0x3c] ss:$28 sps:$4 sm:$0xff]   ;;  %v15851_v25 = vmax.f32 %v13915_v56, %v14289_v11 }
 0x28e   :  { %5850 = vmatmul.mubr.bf16.vlgmr.msra.gmra.mrb[36].mxu1 %v14681_v33  ;;  %5930 = vmatmul.mubr.bf16.vlgmr.msra.gmra.mrb[40].mxu0 %v14286_v38  ;;  %v11721_v4 = vld [vmem:[%s15740_s0 + $0xbf8] sm:$0xff]  }
 0x28f   :  { %v3827_v18 = vadd.f32 %v10158_v8, %v14533_v12  ;;  %5857 = vmatprep.mubr.bf16.mxu1 %v14689_v52  ;;  %5937 = vmatprep.mubr.bf16.mxu0 %v14301_v44  ;;  %v11722_v12 = vld [vmem:[%s15740_s0 + $0xc40] sm:$0xff]  }
 0x290   :  { %10624 = vmatpush3.bf16.msra.mxu1 %v11719_v14  ;;  %11039 = vmatpush3.bf16.msra.mxu0 %v14616_v47 }
 0x291   :  { %v10159_v9 = vpop.f32.mrb[196].mxu0  ;;  %v10996_v38 = vpop.f32.mrb[196].mxu1  ;;  %10625 = vmatprep.subr.bf16.mxu1 %v11720_v10  ;;  %11040 = vmatprep.subr.bf16.mxu0 %v11734_v62  ;;  %v11724_v10 = vld [vmem:[%s15740_s0 + $0xc00] sm:$0xff]  }
 0x292   :  { %v3904_v27 = vadd.f32 %v10996_v38, %v3824_v43  ;;  %v10160_v57 = vpop.f32.mrb[197].mxu0  ;;  %v3895_v60 = vpop.f32.mrb[197].mxu1  ;;  %v15852_v43 = vmax.f32 %v13939_v36, %v14241_v3  ;;  %v14728_v36 = vld [vmem:[%s15741_s1 + $0x38] ss:$28 sps:$4 sm:$0xff]  }
 0x293   :  { %v10161_v22 = vadd.f32 %v10160_v57, %v10159_v9  ;;  %v3896_v44 = vadd.f32 %v3895_v60, %v3816_v23  ;;  %v10162_v6 = vpop.f32.mrb[198].mxu0  ;;  %v10997_v7 = vpop.f32.mrb[198].mxu1  ;;  %v11736_v23 = vld [vmem:[%s15740_s0 + $0xcc0] sm:$0xff]  }
 0x294   :  { %v14703_v15 = vmax.f32 %v15851_v25, %v3904_v27  ;;  %v3907_v47 = vadd.f32 %v10997_v7, %v3827_v18  ;;  %v10163_v14 = vpop.f32.mrb[199].mxu0  ;;  %v3898_v8 = vpop.f32.mrb[199].mxu1  ;;  %10626 = vmatpush3.bf16.msra.mxu1 %v11721_v4  ;;  %11041 = vmatpush3.bf16.msra.mxu0 %v11734_v62  ;;  %v11725_v4 = vld [vmem:[%s15740_s0 + $0xc48] sm:$0xff]   ;;  %v15853_v62 = vmax.f32 %v13927_v5, %v14308_v29  ;;  %v14740_v5 = vld [vmem:[%s15741_s1 + $0x74] ss:$28 sps:$4 sm:$0xff]  }
 0x295   :  { %v14714_v9 = vmax.f32 %v15852_v43, %v3896_v44  ;;  %v10164_v56 = vadd.f32 %v10163_v14, %v10162_v6  ;;  %v3899_v11 = vadd.f32 %v3898_v8, %v3819_v0  ;;  %v3832_v18 = vadd.f32 %v10161_v22, %v14561_v45  ;;  %10627 = vmatprep.subr.bf16.mxu1 %v11722_v12  ;;  %v11727_v0 = vld [vmem:[%s15740_s0 + $0xc50] sm:$0xff]  }
 0x296   :  { %v14723_v38 = vmax.f32 %v15853_v62, %v3907_v47  ;;  %5858 = vmatmul.mubr.bf16.gmra.mrb[40].mxu1 %v14728_v36  ;;  %5938 = vmatmul.mubr.bf16.gmra.mrb[44].mxu0 %v14342_v58  ;;  %v15854_v45 = vmax.f32 %v13952_v28, %v14256_v2  ;;  %v11726_v58 = vld [vmem:[%s15740_s0 + $0xc08] sm:$0xff]   ;;  %v11728_v6 = vld [vmem:[%s15740_s0 + $0xc10] sm:$0xff]   ;;  %v15855_v25 = vmax.f32 %v13967_v13, %v14345_v20  ;;  %v11730_v20 = vld [vmem:[%s15740_s0 + $0xc18] sm:$0xff]  }
 0x297   :  { %5865 = vmatprep.mubr.bf16.mxu1 %v14740_v5  ;;  %v3835_v29 = vadd.f32 %v10164_v56, %v14580_v63  ;;  %5945 = vmatprep.mubr.bf16.mxu0 %v14357_v46 }
 0x298   :  { %v14735_v3 = vmax.f32 %v15854_v45, %v3899_v11  ;;  %10628 = vmatpush3.bf16.msra.mxu1 %v11724_v10  ;;  %10683 = vmatprep.subr.bf16.mxu0 %v11736_v23  ;;  %v11729_v10 = vld [vmem:[%s15740_s0 + $0xc58] sm:$0xff]  }
 0x299   :  { %v10165_v28 = vpop.f32.mrb[200].mxu0  ;;  %v11000_v2 = vpop.f32.mrb[200].mxu1  ;;  %10629 = vmatprep.subr.bf16.mxu1 %v11725_v4 }
 0x29a   :  { %v10166_v12 = vpop.f32.mrb[201].mxu0  ;;  %v3911_v27 = vpop.f32.mrb[201].mxu1 }
 0x29b   :  { %v10167_v57 = vadd.f32 %v10166_v12, %v10165_v28  ;;  %v3912_v60 = vadd.f32 %v3911_v27, %v3832_v18  ;;  %v10168_v63 = vpop.f32.mrb[202].mxu0  ;;  %v11001_v22 = vpop.f32.mrb[202].mxu1 }
 0x29c   :  { %v10169_v46 = vpop.f32.mrb[203].mxu0  ;;  %v3914_v44 = vpop.f32.mrb[203].mxu1  ;;  %10630 = vmatpush3.bf16.msra.mxu1 %v11726_v58 }
 0x29d   :  { %v3840_v7 = vadd.f32 %v10167_v57, %v14611_v35  ;;  %v14758_v47 = vmax.f32 %v15855_v25, %v3912_v60  ;;  %v10170_v14 = vadd.f32 %v10169_v46, %v10168_v63  ;;  %v3915_v8 = vadd.f32 %v3914_v44, %v3835_v29  ;;  %10631 = vmatprep.subr.bf16.mxu1 %v11727_v0  ;;  %v11732_v29 = vld [vmem:[%s15740_s0 + $0xc20] sm:$0xff]   ;;  %v15863_v44 = vld [vmem:[#allocation7_spill] sm:$0xff] }
 0x29e   :  { %5866 = vmatmul.mubr.bf16.gmra.mrb[44].mxu1 %v14280_v19  ;;  %5946 = vmatmul.mubr.bf16.gmra.mrb[48].mxu0 %v14382_v16  ;;  %v15856_v35 = vmax.f32 %v13978_v39, %v14363_v21  ;;  %v15857_v19 = vmax.f32 %v13991_v1, %v14386_v37  ;;  %v11731_v39 = vld [vmem:[%s15740_s0 + $0xc60] sm:$0xff]   ;;  %v15859_v0 = vmax.f32 %v14016_v34, %v14412_v55  ;;  %v15861_v55 = vld [vmem:[#allocation12_spill] sm:$0xff] }
 0x29f   :  { %v3920_v23 = vadd.f32 %v11000_v2, %v3840_v7  ;;  %v3843_v43 = vadd.f32 %v10170_v14, %v14627_v48  ;;  %5873 = vmatprep.mubr.bf16.mxu1 %v14295_v24  ;;  %5953 = vmatprep.mubr.bf16.mxu0 %v14393_v54  ;;  %v15858_v54 = vmax.f32 %v13996_v59, %v14399_v30  ;;  %v11733_v59 = vld [vmem:[%s15740_s0 + $0xc68] sm:$0xff]  }
 0x2a0   :  { %v14769_v13 = vmax.f32 %v15856_v35, %v3915_v8  ;;  %10632 = vmatpush3.bf16.msra.mxu1 %v11728_v6  ;;  %v15862_v46 = vld [vmem:[#allocation6_spill] sm:$0xff] }
 0x2a1   :  { %v14779_v16 = vmax.f32 %v15857_v19, %v3920_v23  ;;  %v3923_v48 = vadd.f32 %v11001_v22, %v3843_v43  ;;  %v10171_v56 = vpop.f32.mrb[204].mxu0  ;;  %v11004_v11 = vpop.f32.mrb[204].mxu1  ;;  %10633 = vmatprep.subr.bf16.mxu1 %v11729_v10  ;;  %v15864_v6 = vld [vmem:[#allocation14_spill] sm:$0xff] }
 0x2a2   :  { %v10172_v24 = vpop.f32.mrb[205].mxu0  ;;  %v3927_v21 = vpop.f32.mrb[205].mxu1 }
 0x2a3   :  { %v14787_v18 = vmax.f32 %v15858_v54, %v3923_v48  ;;  %v10173_v4 = vadd.f32 %v10172_v24, %v10171_v56  ;;  %v10174_v62 = vpop.f32.mrb[206].mxu0  ;;  %v11005_v1 = vpop.f32.mrb[206].mxu1  ;;  %v15870_v54 = vld [vmem:[#allocation19_spill] sm:$0xff] }
 0x2a4   :  { %v10175_v37 = vpop.f32.mrb[207].mxu0  ;;  %v3930_v45 = vpop.f32.mrb[207].mxu1  ;;  %10634 = vmatpush3.bf16.msra.mxu1 %v11730_v20 }
 0x2a5   :  { %v10176_v58 = vadd.f32 %v10175_v37, %v10174_v62  ;;  %v3848_v28 = vadd.f32 %v10173_v4, %v14650_v32  ;;  %10635 = vmatprep.subr.bf16.mxu1 %v11731_v39  ;;  %v11735_v32 = vld [vmem:[%s15740_s0 + $0xc28] sm:$0xff]   ;;  %v15868_v39 = vld [vmem:[#allocation9_spill] sm:$0xff] }
 0x2a6   :  { %5874 = vmatmul.mubr.bf16.gmra.mrb[48].mxu1 %v14336_v50  ;;  %5954 = vmatmul.mubr.bf16.gmra.mrb[52].mxu0 %v14408_v53  ;;  %v11745_v53 = vld [vmem:[%s15740_s0 + $0xd40] sm:$0xff]  }
 0x2a7   :  { %v3928_v30 = vadd.f32 %v3927_v21, %v3848_v28  ;;  %v3851_v2 = vadd.f32 %v10176_v58, %v14655_v40  ;;  %5881 = vmatprep.mubr.bf16.mxu1 %v14351_v61  ;;  %5961 = vmatprep.mubr.bf16.mxu0 %v14418_v26  ;;  %v15860_v26 = vmax.f32 %v14024_v41, %v14428_v51  ;;  %v15865_v41 = vld [vmem:[#allocation17_spill] sm:$0xff]  ;;  %v15869_v21 = vld [vmem:[#allocation15_spill] sm:$0xff] }
 0x2a8   :  { %10636 = vmatpush3.bf16.msra.mxu1 %v11732_v29  ;;  %v15866_v51 = vmax.f32 %v15864_v6, %v15865_v41 }
 0x2a9   :  { %v14807_v12 = vmax.f32 %v15859_v0, %v3928_v30  ;;  %v3931_v50 = vadd.f32 %v3930_v45, %v3851_v2  ;;  %v10177_v27 = vpop.f32.mrb[208].mxu0  ;;  %10637 = vmatprep.subr.bf16.mxu1 %v11733_v59  ;;  %v11737_v59 = vld [vmem:[%s15740_s0 + $0xc80] sm:$0xff]  }
 0x2aa   :  { %v10178_v61 = vpop.f32.mrb[209].mxu0 }
 0x2ab   :  { %v14815_v40 = vmax.f32 %v15860_v26, %v3931_v50  ;;  %v10179_v57 = vadd.f32 %v10178_v61, %v10177_v27  ;;  %v10180_v60 = vpop.f32.mrb[210].mxu0  ;;  %v15871_v61 = vld [vmem:[#allocation11_spill] sm:$0xff]  ;;  %v15872_v26 = vld [vmem:[#allocation16_spill] sm:$0xff] }
 0x2ac   :  { %v10181_v63 = vpop.f32.mrb[211].mxu0  ;;  %10638 = vmatpush3.bf16.msra.mxu1 %v11735_v32  ;;  %v11738_v32 = vld [vmem:[%s15740_s0 + $0xcc8] sm:$0xff]  }
 0x2ad   :  { %v3856_v34 = vadd.f32 %v10179_v57, %v14669_v49  ;;  %10735 = vmatprep.subr.bf16.mxu1 %v11745_v53  ;;  %v11747_v53 = vld [vmem:[%s15740_s0 + $0xd00] sm:$0xff]   ;;  %v11749_v57 = vld [vmem:[%s15740_s0 + $0xd48] sm:$0xff]  }
 0x2ae   :  { %5882 = vmatmul.mubr.bf16.gmra.mrb[52].mxu1 %v15861_v55  ;;  %5962 = vmatmul.mubr.bf16.gmra.mrb[56].mxu0 %v14448_v31  ;;  %v11739_v63 = vld [vmem:[%s15740_s0 + $0xc88] sm:$0xff]   ;;  %v11740_v55 = vld [vmem:[%s15740_s0 + $0xcd0] sm:$0xff]  }
 0x2af   :  { %v3936_v22 = vadd.f32 %v11004_v11, %v3856_v34  ;;  %5889 = vmatprep.mubr.bf16.mxu1 %v15862_v46  ;;  %5969 = vmatprep.mubr.bf16.mxu0 %v15863_v44  ;;  %v15867_v11 = vld [vmem:[#allocation8_spill] sm:$0xff]  ;;  %v15873_v34 = vld [vmem:[#allocation13_spill] sm:$0xff] }
 0x2b1   :  { %v14825_v7 = vmax.f32 %v15866_v51, %v3936_v22  ;;  %v10207_v25 = vpop.f32.mrb[208].mxu1  ;;  %v10259_v14 = vpop.f32.mrb[212].mxu0  ;;  %v15874_v22 = vld [vmem:[#allocation20_spill] sm:$0xff]  ;;  %v11751_v51 = vld [vmem:[%s15740_s0 + $0xd08] sm:$0xff]  }
 0x2b2   :  { %v10208_v8 = vpop.f32.mrb[209].mxu1  ;;  %v10260_v10 = vpop.f32.mrb[213].mxu0 }
 0x2b3   :  { %v10209_v49 = vadd.f32 %v10208_v8, %v10207_v25  ;;  %v10261_v23 = vadd.f32 %v10260_v10, %v10259_v14  ;;  %v10210_v43 = vpop.f32.mrb[210].mxu1  ;;  %v10262_v35 = vpop.f32.mrb[214].mxu0 }
 0x2b4   :  { %v10211_v20 = vpop.f32.mrb[211].mxu1  ;;  %v10263_v31 = vpop.f32.mrb[215].mxu0 }
 0x2b5   :  { %v14827_v19 = vadd.f32 %v10261_v23, %v10209_v49  ;;  %v10212_v48 = vadd.f32 %v10211_v20, %v10210_v43  ;;  %v10264_v56 = vadd.f32 %v10263_v31, %v10262_v35  ;;  %v11741_v43 = vld [vmem:[%s15740_s0 + $0xc90] sm:$0xff]   ;;  %v11742_v31 = vld [vmem:[%s15740_s0 + $0xcd8] sm:$0xff]  }
 0x2b6   :  { %5890 = vmatmul.mubr.bf16.gmra.mrb[56].mxu1 %v15867_v11  ;;  %5970 = vmatmul.mubr.bf16.gmra.mrb[60].mxu0 %v15868_v39 }
 0x2b7   :  { %v14831_v24 = vadd.f32 %v10264_v56, %v10212_v48  ;;  %6009 = vmatprep.mubr.bf16.mxu1 %v15869_v21  ;;  %11042 = vmatprep.mubr.msk.bf16.mxu0 %vm685_vm0, %v15870_v54  ;;  %v11753_v54 = vld [vmem:[%s15740_s0 + $0xd50] sm:$0xff]  }
 0x2b9   :  { %v10213_v4 = vpop.f32.mrb[212].mxu1  ;;  %v10265_v62 = vpop.f32.mrb[216].mxu0 }
 0x2ba   :  { %v10214_v1 = vpop.f32.mrb[213].mxu1  ;;  %v10266_v37 = vpop.f32.mrb[217].mxu0 }
 0x2bb   :  { %v10215_v45 = vadd.f32 %v10214_v1, %v10213_v4  ;;  %v10267_v29 = vadd.f32 %v10266_v37, %v10265_v62  ;;  %v10216_v58 = vpop.f32.mrb[214].mxu1  ;;  %v10268_v28 = vpop.f32.mrb[218].mxu0  ;;  %v14881_v4 = vld [vmem:[%s15741_s1 + $0x48] ss:$28 sps:$4 sm:$0xff]   ;;  %v11755_v1 = vld [vmem:[%s15740_s0 + $0xd10] sm:$0xff]  }
 0x2bc   :  { %v10217_v30 = vpop.f32.mrb[215].mxu1  ;;  %v10269_v2 = vpop.f32.mrb[219].mxu0  ;;  %v15875_v62 = vld [vmem:[#allocation18_spill] sm:$0xff] }
 0x2bd   :  { %v14842_v0 = vadd.f32 %v10267_v29, %v10215_v45  ;;  %v10218_v50 = vadd.f32 %v10217_v30, %v10216_v58  ;;  %v10270_v27 = vadd.f32 %v10269_v2, %v10268_v28  ;;  %v11743_v45 = vld [vmem:[%s15740_s0 + $0xc98] sm:$0xff]   ;;  %v14897_v29 = vld [vmem:[%s15741_s1 + $0x84] ss:$28 sps:$4 sm:$0xff]  }
 0x2be   :  { %6010 = vmatmul.mubr.bf16.vlgmr.msra.gmra.mrb[60].mxu1 %v15871_v61  ;;  %11043 = vmatmul.mubr.msk.bf16.vlgmr.msra.gmra.mrb[64].mxu0 %vm685_vm0, %v15872_v26  ;;  %v11757_v58 = vld [vmem:[%s15740_s0 + $0xd58] sm:$0xff]   ;;  %v11744_v28 = vld [vmem:[%s15740_s0 + $0xce0] sm:$0xff]  }
 0x2bf   :  { %v14853_v60 = vadd.f32 %v10270_v27, %v10218_v50  ;;  %10684 = vmatpush3.bf16.msra.mxu0 %v11737_v59  ;;  %6017 = vmatprep.mubr.bf16.mxu1 %v15873_v34  ;;  %v11746_v26 = vld [vmem:[%s15740_s0 + $0xca0] sm:$0xff]   ;;  %v11759_v34 = vld [vmem:[%s15740_s0 + $0xd18] sm:$0xff]  }
 0x2c0   :  { %10685 = vmatprep.subr.bf16.mxu0 %v11738_v32  ;;  %11046 = vmatprep.mubr.msk.bf16.mxu0 %vm685_vm0, %v15874_v22 }
 0x2c1   :  { %v10219_v6 = vpop.f32.mrb[216].mxu1  ;;  %v10271_v41 = vpop.f32.mrb[220].mxu0  ;;  %10736 = vmatpush3.bf16.msra.mxu1 %v11747_v53 }
 0x2c2   :  { %v10220_v25 = vpop.f32.mrb[217].mxu1  ;;  %v10272_v14 = vpop.f32.mrb[221].mxu0  ;;  %10737 = vmatprep.subr.bf16.mxu1 %v11749_v57 }
 0x2c3   :  { %10686 = vmatpush3.bf16.msra.mxu0 %v11739_v63  ;;  %v10221_v8 = vadd.f32 %v10220_v25, %v10219_v6  ;;  %v10273_v10 = vadd.f32 %v10272_v14, %v10271_v41  ;;  %v10222_v49 = vpop.f32.mrb[218].mxu1  ;;  %v10274_v23 = vpop.f32.mrb[222].mxu0  ;;  %v11760_v41 = vld [vmem:[%s15740_s0 + $0xd60] sm:$0xff]  }
 0x2c4   :  { %v10223_v35 = vpop.f32.mrb[219].mxu1  ;;  %v10275_v20 = vpop.f32.mrb[223].mxu0  ;;  %10687 = vmatprep.subr.bf16.mxu0 %v11740_v55  ;;  %v15876_v25 = vld [vmem:[#allocation21_spill] sm:$0xff] }
 0x2c5   :  { %v14873_v48 = vadd.f32 %v10273_v10, %v10221_v8  ;;  %v10224_v56 = vadd.f32 %v10223_v35, %v10222_v49  ;;  %v10276_v21 = vadd.f32 %v10275_v20, %v10274_v23  ;;  %10738 = vmatpush3.bf16.msra.mxu1 %v11751_v51  ;;  %v14925_v51 = vld [vmem:[%s15741_s1 + $0x80] ss:$28 sps:$4 sm:$0xff]   ;;  %v11750_v8 = vld [vmem:[%s15740_s0 + $0xca8] sm:$0xff]   ;;  %v11752_v49 = vld [vmem:[%s15740_s0 + $0xcf0] sm:$0xff]  }
 0x2c6   :  { %6018 = vmatmul.mubr.bf16.gmra.mrb[64].mxu1 %v14881_v4  ;;  %11047 = vmatmul.mubr.msk.bf16.gmra.mrb[68].mxu0 %vm685_vm0, %v15875_v62  ;;  %v14938_v10 = vld [vmem:[%s15741_s1 + $0xbc] ss:$28 sps:$4 sm:$0xff]   ;;  %v11761_v23 = vld [vmem:[%s15740_s0 + $0xd20] sm:$0xff]  }
 0x2c7   :  { %v14889_v37 = vadd.f32 %v10276_v21, %v10224_v56  ;;  %10688 = vmatpush3.bf16.msra.mxu0 %v11741_v43  ;;  %6025 = vmatprep.mubr.bf16.mxu1 %v14897_v29  ;;  %v15877_v20 = vld [vmem:[#allocation22_spill] sm:$0xff] }
 0x2c8   :  { %10689 = vmatprep.subr.bf16.mxu0 %v11742_v31  ;;  %11050 = vmatprep.mubr.msk.bf16.mxu0 %vm685_vm0, %v14595_v42  ;;  %v11748_v42 = vld [vmem:[%s15740_s0 + $0xce8] sm:$0xff]  }
 0x2c9   :  { %v10225_v59 = vpop.f32.mrb[220].mxu1  ;;  %v10277_v30 = vpop.f32.mrb[224].mxu0  ;;  %10739 = vmatprep.subr.bf16.mxu1 %v11753_v54  ;;  %v11762_v31 = vld [vmem:[%s15740_s0 + $0xd68] sm:$0xff]  }
 0x2ca   :  { %v10226_v2 = vpop.f32.mrb[221].mxu1  ;;  %v10278_v32 = vpop.f32.mrb[225].mxu0  ;;  %10740 = vmatpush3.bf16.msra.mxu1 %v11755_v1 }
 0x2cb   :  { %10690 = vmatpush3.bf16.msra.mxu0 %v11743_v45  ;;  %v10227_v50 = vadd.f32 %v10226_v2, %v10225_v59  ;;  %v10279_v27 = vadd.f32 %v10278_v32, %v10277_v30  ;;  %v10228_v53 = vpop.f32.mrb[222].mxu1  ;;  %v10280_v61 = vpop.f32.mrb[226].mxu0  ;;  %10741 = vmatprep.subr.bf16.mxu1 %v11757_v58  ;;  %v11754_v58 = vld [vmem:[%s15740_s0 + $0xcb0] sm:$0xff]   ;;  %v11756_v2 = vld [vmem:[%s15740_s0 + $0xcf8] sm:$0xff]   ;;  %v11763_v32 = vld [vmem:[%s15740_s0 + $0xd28] sm:$0xff]  }
 0x2cc   :  { %v10229_v57 = vpop.f32.mrb[223].mxu1  ;;  %v10281_v63 = vpop.f32.mrb[227].mxu0  ;;  %10691 = vmatprep.subr.bf16.mxu0 %v11744_v28  ;;  %v6880_v28 = vld [vmem:[%s15742_s2] sm:$0xff] }
 0x2cd   :  { %v14917_v55 = vadd.f32 %v10279_v27, %v10227_v50  ;;  %v10230_v22 = vadd.f32 %v10229_v57, %v10228_v53  ;;  %v10282_v6 = vadd.f32 %v10281_v63, %v10280_v61  ;;  %v11764_v61 = vld [vmem:[%s15740_s0 + $0xd70] sm:$0xff]  }
 0x2ce   :  { %6026 = vmatmul.mubr.bf16.gmra.mrb[68].mxu1 %v14925_v51  ;;  %11051 = vmatmul.mubr.msk.bf16.gmra.mrb[72].mxu0 %vm685_vm0, %v15876_v25  ;;  %v14971_v57 = vld [vmem:[%s15741_s1 + $0xb8] ss:$28 sps:$4 sm:$0xff]   ;;  %v6881_v25 = vld [vmem:[%s15742_s2 + $0x8] sm:$0xff] }
 0x2cf   :  { %v14930_v14 = vadd.f32 %v10282_v6, %v10230_v22  ;;  %10692 = vmatpush3.bf16.msra.mxu0 %v11746_v26  ;;  %6033 = vmatprep.mubr.bf16.mxu1 %v14938_v10  ;;  %v11972_v26 = vmov 0   ;;  %v11765_v22 = vld [vmem:[%s15740_s0 + $0xd30] sm:$0xff]   ;;  %v11768_v6 = vld [vmem:[%s15740_s0 + $0xdc0] sm:$0xff]  }
 0x2d0   :  { %10693 = vmatprep.subr.bf16.mxu0 %v11748_v42  ;;  %10742 = vmatpush3.bf16.msra.mxu1 %v11759_v34  ;;  %v11758_v42 = vld [vmem:[%s15740_s0 + $0xcb8] sm:$0xff]   ;;  %v14982_v34 = vld [vmem:[%s15741_s1 + $0xf4] ss:$28 sps:$4 sm:$0xff]  }
 0x2d1   :  { %v10231_v43 = vpop.f32.mrb[224].mxu1  ;;  %v10283_v35 = vpop.f32.mrb[228].mxu0  ;;  %6581 = vmatprep.mubr.bf16.mxu0 %v15877_v20  ;;  %10743 = vmatprep.subr.bf16.mxu1 %v11760_v41  ;;  %v6882_v41 = vld [vmem:[%s15742_s2 + $0x10] sm:$0xff] }
 0x2d2   :  { %v10232_v56 = vpop.f32.mrb[225].mxu1  ;;  %v10284_v21 = vpop.f32.mrb[229].mxu0  ;;  %11277 = vset.pattern.permute.xlu0 %v11972_v26  ;;  %11278 = vset.pattern.permute.xlu1 %v11972_v26 }
 0x2d3   :  { %10694 = vmatpush3.bf16.msra.mxu0 %v11750_v8  ;;  %v10233_v54 = vadd.f32 %v10232_v56, %v10231_v43  ;;  %v10285_v62 = vadd.f32 %v10284_v21, %v10283_v35  ;;  %v10234_v1 = vpop.f32.mrb[226].mxu1  ;;  %v10286_v45 = vpop.f32.mrb[230].mxu0  ;;  %6893 = vperm.xlu0 %11277, %v6880_v28   ;;  %v11770_v28 = vld [vmem:[%s15740_s0 + $0xdc8] sm:$0xff]  }
 0x2d4   :  { %v10235_v59 = vpop.f32.mrb[227].mxu1  ;;  %v10287_v30 = vpop.f32.mrb[231].mxu0  ;;  %10695 = vmatprep.subr.bf16.mxu0 %v11752_v49  ;;  %10744 = vmatpush3.bf16.msra.mxu1 %v11761_v23  ;;  %v11766_v23 = vld [vmem:[%s15740_s0 + $0xd78] sm:$0xff]  }
 0x2d5   :  { %v14963_v50 = vadd.f32 %v10285_v62, %v10233_v54  ;;  %v10236_v27 = vadd.f32 %v10235_v59, %v10234_v1  ;;  %v10288_v53 = vadd.f32 %v10287_v30, %v10286_v45  ;;  %10745 = vmatprep.subr.bf16.mxu1 %v11762_v31  ;;  %6903 = vperm.xlu1 %11278, %v6882_v41   ;;  %v11767_v1 = vld [vmem:[%s15740_s0 + $0xd38] sm:$0xff]   ;;  %v11769_v45 = vld [vmem:[%s15740_s0 + $0xd80] sm:$0xff]   ;;  %v15019_v30 = vld [vmem:[%s15741_s1 + $0xf0] ss:$28 sps:$4 sm:$0xff]  }
 0x2d6   :  { %6034 = vmatmul.mubr.bf16.gmra.mrb[72].mxu1 %v14971_v57  ;;  %v15014_v59 = vld [vmem:[%s15740_s0 + $0xe00] sm:$0xff]  }
 0x2d7   :  { %v14974_v63 = vadd.f32 %v10288_v53, %v10236_v27  ;;  %10696 = vmatpush3.bf16.msra.mxu0 %v11754_v58  ;;  %6041 = vmatprep.mubr.bf16.mxu1 %v14982_v34  ;;  %v6884_v27 = vld [vmem:[%s15742_s2 + $0x20] sm:$0xff]  ;;  %v11771_v53 = vld [vmem:[%s15740_s0 + $0xd88] sm:$0xff]  }
 0x2d8   :  { %10697 = vmatprep.subr.bf16.mxu0 %v11756_v2  ;;  %10746 = vmatpush3.bf16.msra.mxu1 %v11763_v32  ;;  %v15878_v2 = vld [vmem:[#allocation10_spill] sm:$0xff]  ;;  %v6883_v32 = vld [vmem:[%s15742_s2 + $0x18] sm:$0xff] }
 0x2d9   :  { %v10237_v8 = vpop.f32.mrb[228].mxu1  ;;  %v10289_v49 = vpop.f32.mrb[232].mxu0  ;;  %10747 = vmatprep.subr.bf16.mxu1 %v11764_v61  ;;  %6898 = vperm.xlu0 %11277, %v6881_v25  }
 0x2da   :  { %v10238_v43 = vpop.f32.mrb[229].mxu1  ;;  %v10290_v35 = vpop.f32.mrb[233].mxu0  ;;  %6908 = vperm.xlu1 %11278, %v6883_v32  }
 0x2db   :  { %10698 = vmatpush3.bf16.msra.mxu0 %v11758_v42  ;;  %v10239_v20 = vadd.f32 %v10238_v43, %v10237_v8  ;;  %v10291_v31 = vadd.f32 %v10290_v35, %v10289_v49  ;;  %v10292_v56 = vpop.f32.mrb[234].mxu0  ;;  %v10240_v21 = vpop.f32.mrb[230].mxu1  ;;  %v11773_v49 = vld [vmem:[%s15740_s0 + $0xd90] sm:$0xff]   ;;  %v11774_v35 = vld [vmem:[%s15740_s0 + $0xdd8] sm:$0xff]  }
 0x2dc   :  { %v10293_v54 = vpop.f32.mrb[235].mxu0  ;;  %v10241_v62 = vpop.f32.mrb[231].mxu1  ;;  %10748 = vmatpush3.bf16.msra.mxu1 %v11765_v22  ;;  %10787 = vmatprep.subr.bf16.mxu0 %v11768_v6  ;;  %v11924_v21 = vld [vmem:[%s15741_s1 + $0xc] ss:$28 sps:$4 sm:$0xff]  }
 0x2dd   :  { %v15006_v58 = vadd.f32 %v10291_v31, %v10239_v20  ;;  %10749 = vmatprep.subr.bf16.mxu1 %v11766_v23  ;;  %6913 = vperm.xlu0 %11277, %v6884_v27   ;;  %v6885_v20 = vld [vmem:[%s15742_s2 + $0x28] sm:$0xff]  ;;  %v6886_v31 = vld [vmem:[%s15742_s2 + $0x30] sm:$0xff]  ;;  %v6888_v27 = vld [vmem:[%s15742_s2 + $0x40] sm:$0xff] }
 0x2de   :  { %6042 = vmatmul.mubr.bf16.gmra.mrb[76].mxu1 %v15019_v30  ;;  %6582 = vmatmul.mubr.bf16.vlgmr.msra.gmra.mrb[76].mxu0 %v14681_v33 }
 0x2df   :  { %6049 = vmatprep.mubr.bf16.mxu1 %v15878_v2  ;;  %6589 = vmatprep.mubr.bf16.mxu0 %v14689_v52  ;;  %v11772_v52 = vld [vmem:[%s15740_s0 + $0xdd0] sm:$0xff]  }
 0x2e0   :  { %10750 = vmatpush3.bf16.msra.mxu1 %v11767_v1  ;;  %10788 = vmatpush3.bf16.msra.mxu0 %v11769_v45  ;;  %v6887_v45 = vld [vmem:[%s15742_s2 + $0x38] sm:$0xff] }
 0x2e1   :  { %v10311_v61 = vpop.f32.mrb[232].mxu1  ;;  %v11012_v33 = vpop.f32.mrb[236].mxu0  ;;  %10789 = vmatprep.subr.bf16.mxu0 %v11770_v28  ;;  %11054 = vmatprep.subr.bf16.mxu1 %v15014_v59 }
 0x2e2   :  { %v10312_v26 = vpop.f32.mrb[233].mxu1  ;;  %v4627_v42 = vpop.f32.mrb[237].mxu0  ;;  %6918 = vperm.xlu1 %11278, %v6885_v20   ;;  %6923 = vperm.xlu0 %11277, %v6886_v31   ;;  %v11927_v31 = vld [vmem:[%s15741_s1 + $0xac] ss:$28 sps:$4 sm:$0xff]  }
 0x2e3   :  { %v10313_v22 = vadd.f32 %v10312_v26, %v10311_v61  ;;  %v10314_v6 = vpop.f32.mrb[234].mxu1  ;;  %v11013_v41 = vpop.f32.mrb[238].mxu0 }
 0x2e4   :  { %v10315_v25 = vpop.f32.mrb[235].mxu1  ;;  %v4630_v8 = vpop.f32.mrb[239].mxu0  ;;  %10790 = vmatpush3.bf16.msra.mxu0 %v11771_v53 }
 0x2e5   :  { %v4548_v23 = vadd.f32 %v10313_v22, %v14827_v19  ;;  %v10316_v43 = vadd.f32 %v10315_v25, %v10314_v6  ;;  %10791 = vmatprep.subr.bf16.mxu0 %v11772_v52  ;;  %v11777_v6 = vld [vmem:[%s15740_s0 + $0xda0] sm:$0xff]  }
 0x2e6   :  { %6050 = vmatmul.mubr.bf16.gmra.mrb[80].mxu1 %v12353_v17  ;;  %6590 = vmatmul.mubr.bf16.gmra.mrb[80].mxu0 %v14728_v36  ;;  %v11775_v36 = vld [vmem:[%s15740_s0 + $0xd98] sm:$0xff]  }
 0x2e7   :  { %v15053_v56 = vadd.f32 %v4627_v42, %v4548_v23  ;;  %v4551_v19 = vadd.f32 %v10316_v43, %v14831_v24  ;;  %6597 = vmatprep.mubr.bf16.mxu0 %v14740_v5  ;;  %6661 = vmatprep.mubr.bf16.mxu1 %v11924_v21  ;;  %v11776_v5 = vld [vmem:[%s15740_s0 + $0xde0] sm:$0xff]   ;;  %v11785_v23 = vld [vmem:[%s15740_s0 + $0xe08] sm:$0xff]  }
 0x2e8   :  { %10792 = vmatpush3.bf16.msra.mxu0 %v11773_v49  ;;  %6928 = vperm.xlu1 %11278, %v6887_v45   ;;  %v11778_v49 = vld [vmem:[%s15740_s0 + $0xde8] sm:$0xff]   ;;  %v11780_v45 = vld [vmem:[%s15740_s0 + $0xdf0] sm:$0xff]  }
 0x2e9   :  { %v4673_v54 = vmax.f32 %v14714_v9, %v15053_v56  ;;  %v15065_v62 = vadd.f32 %v4630_v8, %v4551_v19  ;;  %v10317_v1 = vpop.f32.mrb[236].mxu1  ;;  %v15067_v24 = vpop.f32.mrb[240].mxu0  ;;  %10793 = vmatprep.subr.bf16.mxu0 %v11774_v35  ;;  %6933 = vperm.xlu0 %11277, %v6888_v27   ;;  %v11925_v43 = vld [vmem:[%s15741_s1 + $0x70] ss:$28 sps:$4 sm:$0xff]   ;;  %v11928_v19 = vld [vmem:[%s15741_s1 + $0x44] ss:$28 sps:$4 sm:$0xff]  }
 0x2ea   :  { %v10318_v28 = vpop.f32.mrb[237].mxu1  ;;  %v4643_v32 = vpop.f32.mrb[241].mxu0  ;;  %v6889_v21 = vld [vmem:[%s15742_s2 + $0x48] sm:$0xff] }
 0x2eb   :  { %v4674_v53 = vmax.f32 %v14735_v3, %v15065_v62  ;;  %v10319_v61 = vadd.f32 %v10318_v28, %v10317_v1  ;;  %v10320_v52 = vpop.f32.mrb[238].mxu1  ;;  %v15080_v26 = vpop.f32.mrb[242].mxu0 }
 0x2ec   :  { %v10321_v42 = vpop.f32.mrb[239].mxu1  ;;  %v15082_v22 = vpop.f32.mrb[243].mxu0  ;;  %10794 = vmatpush3.bf16.msra.mxu0 %v11775_v36  ;;  %6938 = vperm.xlu1 %11278, %v6889_v21  }
 0x2ed   :  { %v4556_v25 = vadd.f32 %v10319_v61, %v14842_v0  ;;  %v10322_v8 = vadd.f32 %v10321_v42, %v10320_v52  ;;  %10795 = vmatprep.subr.bf16.mxu0 %v11776_v5  ;;  %v11926_v0 = vld [vmem:[%s15741_s1 + $0x8] ss:$28 sps:$4 sm:$0xff]  }
 0x2ee   :  { %6598 = vmatmul.mubr.bf16.gmra.mrb[84].mxu0 %v11925_v43  ;;  %6662 = vmatmul.mubr.bf16.vlgmr.msra.gmra.mrb[84].mxu1 %v11926_v0  ;;  %v11782_v0 = vld [vmem:[%s15740_s0 + $0xdf8] sm:$0xff]  }
 0x2ef   :  { %v15100_v35 = vadd.f32 %v11012_v33, %v4556_v25  ;;  %v4559_v20 = vadd.f32 %v10322_v8, %v14853_v60  ;;  %6605 = vmatprep.mubr.bf16.mxu0 %v11927_v31  ;;  %6669 = vmatprep.mubr.bf16.mxu1 %v11928_v19  ;;  %v6890_v33 = vld [vmem:[%s15742_s2 + $0x50] sm:$0x1f]  ;;  %v11779_v60 = vld [vmem:[%s15740_s0 + $0xda8] sm:$0xff]  }
 0x2f0   :  { %10796 = vmatpush3.bf16.msra.mxu0 %v11777_v6  ;;  %11055 = vmatpush3.bf16.msra.mxu1 %v15014_v59  ;;  %v11781_v8 = vld [vmem:[%s15740_s0 + $0xdb0] sm:$0xff]   ;;  %v11929_v31 = vld [vmem:[%s15741_s1 + $0xa8] ss:$28 sps:$4 sm:$0xff]  }
 0x2f1   :  { %v15119_v36 = vadd.f32 %v11013_v41, %v4559_v20  ;;  %v10323_v1 = vpop.f32.mrb[240].mxu1  ;;  %v15121_v5 = vpop.f32.mrb[244].mxu0  ;;  %10797 = vmatprep.subr.bf16.mxu0 %v11778_v49  ;;  %11056 = vmatprep.subr.bf16.mxu1 %v11785_v23  ;;  %v4675_v28 = vmax.f32 %v14703_v15, %v15100_v35  ;;  %v6985_v20 = vld [vmem:[%s15744_s4] sm:$0xff] }
 0x2f2   :  { %v10324_v27 = vpop.f32.mrb[241].mxu1  ;;  %v15128_v61 = vpop.f32.mrb[245].mxu0  ;;  %6943 = vperm.xlu0 %11277, %v6890_v33   ;;  %v11931_v33 = vld [vmem:[%s15741_s1 + $0xe4] ss:$28 sps:$4 sm:$0xff]   ;;  %6998 = vperm.xlu1 %11278, %v6985_v20  }
 0x2f3   :  { %v10325_v59 = vadd.f32 %v10324_v27, %v10323_v1  ;;  %v10326_v41 = vpop.f32.mrb[242].mxu1  ;;  %v11021_v52 = vpop.f32.mrb[246].mxu0  ;;  %v4676_v42 = vmax.f32 %v14723_v38, %v15119_v36  ;;  %v11783_v1 = vld [vmem:[%s15740_s0 + $0xdb8] sm:$0xff]   ;;  %v6987_v27 = vld [vmem:[%s15744_s4 + $0x10] sm:$0xff] }
 0x2f4   :  { %v10327_v6 = vpop.f32.mrb[243].mxu1  ;;  %v15132_v25 = vpop.f32.mrb[247].mxu0  ;;  %10798 = vmatpush3.bf16.msra.mxu0 %v11779_v60  ;;  %11057 = vmatpush3.bf16.msra.mxu1 %v11785_v23  ;;  %v11930_v23 = vld [vmem:[%s15741_s1 + $0x40] ss:$28 sps:$4 sm:$0xff]  }
 0x2f5   :  { %v4564_v49 = vadd.f32 %v10325_v59, %v14873_v48  ;;  %v10328_v43 = vadd.f32 %v10327_v6, %v10326_v41  ;;  %10799 = vmatprep.subr.bf16.mxu0 %v11780_v45  ;;  %v6986_v48 = vld [vmem:[%s15744_s4 + $0x8] sm:$0xff]  ;;  %v11932_v60 = vld [vmem:[%s15741_s1 + $0x7c] ss:$28 sps:$4 sm:$0xff]  }
 0x2f6   :  { %6606 = vmatmul.mubr.bf16.gmra.mrb[88].mxu0 %v11929_v31  ;;  %6670 = vmatmul.mubr.bf16.gmra.mrb[88].mxu1 %v11930_v23  ;;  %v6988_v41 = vld [vmem:[%s15744_s4 + $0x18] sm:$0xff] }
 0x2f7   :  { %v15153_v19 = vadd.f32 %v4643_v32, %v4564_v49  ;;  %v4567_v21 = vadd.f32 %v10328_v43, %v14889_v37  ;;  %6613 = vmatprep.mubr.bf16.mxu0 %v11931_v33  ;;  %6677 = vmatprep.mubr.bf16.mxu1 %v11932_v60  ;;  %v11933_v20 = vld [vmem:[%s15741_s1 + $0xe0] ss:$28 sps:$4 sm:$0xff]   ;;  %v11934_v31 = vld [vmem:[%s15741_s1 + $0x78] ss:$28 sps:$4 sm:$0xff]  }
 0x2f8   :  { %10800 = vmatpush3.bf16.msra.mxu0 %v11781_v8  ;;  %7003 = vperm.xlu0 %11277, %v6986_v48  }
 0x2f9   :  { %v15166_v32 = vadd.f32 %v15082_v22, %v4567_v21  ;;  %v10329_v37 = vpop.f32.mrb[244].mxu1  ;;  %10801 = vmatprep.subr.bf16.mxu0 %v11782_v0  ;;  %v4677_v45 = vmax.f32 %v14758_v47, %v15153_v19  ;;  %7008 = vperm.xlu1 %11278, %v6987_v27   ;;  %v6989_v0 = vld [vmem:[%s15744_s4 + $0x20] sm:$0xff]  ;;  %v11935_v21 = vld [vmem:[%s15741_s1 + $0xb4] ss:$28 sps:$4 sm:$0xff]   ;;  %v6992_v27 = vld [vmem:[%s15744_s4 + $0x38] sm:$0xff] }
 0x2fa   :  { %v10330_v59 = vpop.f32.mrb[245].mxu1 }
 0x2fb   :  { %v10331_v52 = vadd.f32 %v10330_v59, %v10329_v37  ;;  %v10332_v6 = vpop.f32.mrb[246].mxu1  ;;  %v4678_v22 = vmax.f32 %v14769_v13, %v15166_v32 }
 0x2fc   :  { %v10333_v8 = vpop.f32.mrb[247].mxu1  ;;  %10802 = vmatpush3.bf16.msra.mxu0 %v11783_v1  ;;  %7013 = vperm.xlu0 %11277, %v6988_v41  }
 0x2fd   :  { %v4572_v49 = vadd.f32 %v10331_v52, %v14917_v55  ;;  %v10334_v43 = vadd.f32 %v10333_v8, %v10332_v6  ;;  %v6990_v55 = vld [vmem:[%s15744_s4 + $0x28] sm:$0xff]  ;;  %7018 = vperm.xlu1 %11278, %v6989_v0  }
 0x2fe   :  { %6614 = vmatmul.mubr.bf16.gmra.mrb[92].mxu0 %v11933_v20  ;;  %6678 = vmatmul.mubr.bf16.gmra.mrb[92].mxu1 %v11934_v31  ;;  %v6993_v31 = vld [vmem:[%s15744_s4 + $0x40] sm:$0xff] }
 0x2ff   :  { %v15192_v23 = vadd.f32 %v15067_v24, %v4572_v49  ;;  %v4575_v48 = vadd.f32 %v10334_v43, %v14930_v14  ;;  %6621 = vmatprep.mubr.bf16.mxu0 %v15862_v46  ;;  %6685 = vmatprep.mubr.bf16.mxu1 %v11935_v21  ;;  %v6991_v14 = vld [vmem:[%s15744_s4 + $0x30] sm:$0xff] }
 0x300   :  { %7023 = vperm.xlu0 %11277, %v6990_v55   ;;  %v11936_v55 = vld [vmem:[%s15741_s1 + $0xb0] ss:$28 sps:$4 sm:$0xff]  }
 0x301   :  { %v4679_v33 = vmax.f32 %v14779_v16, %v15192_v23  ;;  %v15202_v60 = vadd.f32 %v15080_v26, %v4575_v48  ;;  %v10335_v1 = vpop.f32.mrb[248].mxu1  ;;  %v10371_v37 = vpop.f32.mrb[248].mxu0  ;;  %7028 = vperm.xlu1 %11278, %v6991_v14   ;;  %v6994_v48 = vld [vmem:[%s15744_s4 + $0x48] sm:$0xff] }
 0x302   :  { %v10336_v46 = vpop.f32.mrb[249].mxu1  ;;  %v10372_v24 = vpop.f32.mrb[249].mxu0 }
 0x303   :  { %v4680_v59 = vmax.f32 %v14787_v18, %v15202_v60  ;;  %v10337_v41 = vadd.f32 %v10336_v46, %v10335_v1  ;;  %v10373_v52 = vadd.f32 %v10372_v24, %v10371_v37  ;;  %v10338_v26 = vpop.f32.mrb[250].mxu1  ;;  %v10374_v6 = vpop.f32.mrb[250].mxu0  ;;  %v11937_v1 = vld [vmem:[%s15741_s1 + $0xec] ss:$28 sps:$4 sm:$0xff]  }
 0x304   :  { %v10339_v8 = vpop.f32.mrb[251].mxu1  ;;  %v10375_v49 = vpop.f32.mrb[251].mxu0  ;;  %7033 = vperm.xlu0 %11277, %v6992_v27  }
 0x305   :  { %v4580_v43 = vadd.f32 %v10337_v41, %v14963_v50  ;;  %v10340_v0 = vadd.f32 %v10339_v8, %v10338_v26  ;;  %v10376_v20 = vadd.f32 %v10375_v49, %v10374_v6  ;;  %7038 = vperm.xlu1 %11278, %v6993_v31  }
 0x306   :  { %6622 = vmatmul.mubr.bf16.gmra.mrb[96].mxu0 %v15867_v11  ;;  %6686 = vmatmul.mubr.bf16.gmra.mrb[96].mxu1 %v11936_v55  ;;  %v11938_v11 = vld [vmem:[%s15741_s1 + $0x14] ss:$28 sps:$4 sm:$0xff]   ;;  %v11939_v55 = vld [vmem:[%s15741_s1 + $0xe8] ss:$28 sps:$4 sm:$0xff]  }
 0x307   :  { %v15224_v50 = vadd.f32 %v15128_v61, %v4580_v43  ;;  %v4583_v21 = vadd.f32 %v10340_v0, %v14974_v63  ;;  %6693 = vmatprep.mubr.bf16.mxu1 %v11937_v1  ;;  %6741 = vmatprep.mubr.bf16.mxu0 %v11938_v11  ;;  %v6995_v63 = vld [vmem:[%s15744_s4 + $0x50] sm:$0x1f] }
 0x308   :  { %7043 = vperm.xlu0 %11277, %v6994_v48   ;;  %v11940_v48 = vld [vmem:[%s15741_s1 + $0x10] ss:$28 sps:$4 sm:$0xff]  }
 0x309   :  { %v15234_v37 = vadd.f32 %v15132_v25, %v4583_v21  ;;  %v10341_v14 = vpop.f32.mrb[252].mxu1  ;;  %v10377_v46 = vpop.f32.mrb[252].mxu0  ;;  %v4681_v61 = vmax.f32 %v14807_v12, %v15224_v50  ;;  %7048 = vperm.xlu1 %11278, %v6995_v63  }
 0x30a   :  { %v10342_v24 = vpop.f32.mrb[253].mxu1  ;;  %v10378_v27 = vpop.f32.mrb[253].mxu0 }
 0x30b   :  { %v10343_v41 = vadd.f32 %v10342_v24, %v10341_v14  ;;  %v10379_v26 = vadd.f32 %v10378_v27, %v10377_v46  ;;  %v10380_v6 = vpop.f32.mrb[254].mxu0  ;;  %v10344_v8 = vpop.f32.mrb[254].mxu1  ;;  %v4682_v25 = vmax.f32 %v14815_v40, %v15234_v37 }
 0x30c   :  { %v10381_v49 = vpop.f32.mrb[255].mxu0  ;;  %v10345_v43 = vpop.f32.mrb[255].mxu1 }
 0x30d   :  { %v4588_v0 = vadd.f32 %v10343_v41, %v15006_v58  ;;  %v10382_v31 = vadd.f32 %v10381_v49, %v10380_v6  ;;  %v11941_v58 = vld [vmem:[%s15741_s1 + $0x4c] ss:$28 sps:$4 sm:$0xff]  }
 0x30e   :  { %6694 = vmatmul.mubr.bf16.gmra.mrb[100].mxu1 %v11939_v55  ;;  %6742 = vmatmul.mubr.bf16.vlgmr.msra.gmra.mrb[100].mxu0 %v11940_v48  ;;  %v11942_v55 = vld [vmem:[%s15741_s1 + $0x18] ss:$28 sps:$4 sm:$0xff]  }
 0x30f   :  { %v15251_v21 = vadd.f32 %v15121_v5, %v4588_v0  ;;  %6701 = vmatprep.mubr.bf16.mxu1 %v15863_v44  ;;  %6749 = vmatprep.mubr.bf16.mxu0 %v11941_v58 }
 0x311   :  { %v10383_v11 = vpop.f32.mrb[0].mxu0  ;;  %v10423_v14 = vpop.f32.mrb[0].mxu1 }
 0x312   :  { %v10384_v46 = vpop.f32.mrb[1].mxu0  ;;  %v10424_v63 = vpop.f32.mrb[1].mxu1 }
 0x313   :  { %v10385_v24 = vadd.f32 %v10384_v46, %v10383_v11  ;;  %v10425_v27 = vadd.f32 %v10424_v63, %v10423_v14  ;;  %v10386_v41 = vpop.f32.mrb[2].mxu0  ;;  %v10426_v6 = vpop.f32.mrb[2].mxu1 }
 0x314   :  { %v10387_v5 = vpop.f32.mrb[3].mxu0  ;;  %v10427_v8 = vpop.f32.mrb[3].mxu1 }
 0x315   :  { %v15259_v49 = vadd.f32 %v10425_v27, %v10373_v52  ;;  %v10388_v44 = vadd.f32 %v10387_v5, %v10386_v41  ;;  %v10428_v43 = vadd.f32 %v10427_v8, %v10426_v6  ;;  %v11943_v6 = vld [vmem:[%s15741_s1 + $0x50] ss:$28 sps:$4 sm:$0xff]   ;;  %v11944_v8 = vld [vmem:[%s15741_s1 + $0x88] ss:$28 sps:$4 sm:$0xff]  }
 0x316   :  { %6702 = vmatmul.mubr.bf16.gmra.mrb[104].mxu1 %v15868_v39  ;;  %6750 = vmatmul.mubr.bf16.gmra.mrb[104].mxu0 %v14881_v4 }
 0x317   :  { %v15263_v0 = vadd.f32 %v10428_v43, %v10376_v20  ;;  %6757 = vmatprep.mubr.bf16.mxu0 %v14897_v29  ;;  %11058 = vmatprep.mubr.msk.bf16.mxu1 %vm685_vm0, %v11942_v55 }
 0x319   :  { %v10389_v48 = vpop.f32.mrb[4].mxu0  ;;  %v10429_v58 = vpop.f32.mrb[4].mxu1 }
 0x31a   :  { %v10390_v52 = vpop.f32.mrb[5].mxu0  ;;  %v10430_v11 = vpop.f32.mrb[5].mxu1 }
 0x31b   :  { %v10391_v14 = vadd.f32 %v10390_v52, %v10389_v48  ;;  %v10431_v46 = vadd.f32 %v10430_v11, %v10429_v58  ;;  %v10392_v63 = vpop.f32.mrb[6].mxu0  ;;  %v10432_v39 = vpop.f32.mrb[6].mxu1 }
 0x31c   :  { %v10393_v27 = vpop.f32.mrb[7].mxu0  ;;  %v10433_v4 = vpop.f32.mrb[7].mxu1 }
 0x31d   :  { %v15270_v20 = vadd.f32 %v10431_v46, %v10379_v26  ;;  %v10394_v41 = vadd.f32 %v10393_v27, %v10392_v63  ;;  %v10434_v29 = vadd.f32 %v10433_v4, %v10432_v39  ;;  %v11945_v27 = vld [vmem:[%s15741_s1 + $0xc0] ss:$28 sps:$4 sm:$0xff]  }
 0x31e   :  { %6758 = vmatmul.mubr.bf16.gmra.mrb[108].mxu0 %v14925_v51  ;;  %11059 = vmatmul.mubr.msk.bf16.vlgmr.msra.gmra.mrb[108].mxu1 %vm685_vm0, %v11943_v6 }
 0x31f   :  { %v15277_v5 = vadd.f32 %v10434_v29, %v10382_v31  ;;  %6765 = vmatprep.mubr.bf16.mxu0 %v14938_v10  ;;  %11062 = vmatprep.mubr.msk.bf16.mxu1 %vm685_vm0, %v11944_v8  ;;  %v11946_v29 = vld [vmem:[%s15741_s1 + $0xf8] ss:$28 sps:$4 sm:$0xff]  }
 0x321   :  { %v10395_v26 = vpop.f32.mrb[8].mxu0  ;;  %v10435_v43 = vpop.f32.mrb[8].mxu1 }
 0x322   :  { %v10396_v55 = vpop.f32.mrb[9].mxu0  ;;  %v10436_v51 = vpop.f32.mrb[9].mxu1 }
 0x323   :  { %v10397_v48 = vadd.f32 %v10396_v55, %v10395_v26  ;;  %v10437_v58 = vadd.f32 %v10436_v51, %v10435_v43  ;;  %v10398_v52 = vpop.f32.mrb[10].mxu0  ;;  %v10438_v11 = vpop.f32.mrb[10].mxu1 }
 0x324   :  { %v10399_v46 = vpop.f32.mrb[11].mxu0  ;;  %v10439_v63 = vpop.f32.mrb[11].mxu1 }
 0x325   :  { %v15284_v31 = vadd.f32 %v10437_v58, %v10385_v24  ;;  %v10400_v39 = vadd.f32 %v10399_v46, %v10398_v52  ;;  %v10440_v10 = vadd.f32 %v10439_v63, %v10438_v11 }
 0x326   :  { %6766 = vmatmul.mubr.bf16.gmra.mrb[112].mxu0 %v14971_v57  ;;  %11063 = vmatmul.mubr.msk.bf16.gmra.mrb[112].mxu1 %vm685_vm0, %v11945_v27 }
 0x327   :  { %v15291_v4 = vadd.f32 %v10440_v10, %v10388_v44  ;;  %6773 = vmatprep.mubr.bf16.mxu0 %v14982_v34  ;;  %11066 = vmatprep.mubr.msk.bf16.mxu1 %vm685_vm0, %v11946_v29  ;;  %v11947_v34 = vld [vmem:[%s15741_s1 + $0x130] ss:$0 sps:$4 sm:$0x77]  }
 0x329   :  { %v10401_v24 = vpop.f32.mrb[12].mxu0  ;;  %v10441_v6 = vpop.f32.mrb[12].mxu1 }
 0x32a   :  { %v10402_v8 = vpop.f32.mrb[13].mxu0  ;;  %v10442_v57 = vpop.f32.mrb[13].mxu1 }
 0x32b   :  { %v10403_v26 = vadd.f32 %v10402_v8, %v10401_v24  ;;  %v10443_v43 = vadd.f32 %v10442_v57, %v10441_v6  ;;  %v10404_v55 = vpop.f32.mrb[14].mxu0  ;;  %v10444_v51 = vpop.f32.mrb[14].mxu1 }
 0x32c   :  { %v10405_v58 = vpop.f32.mrb[15].mxu0  ;;  %v10445_v52 = vpop.f32.mrb[15].mxu1 }
 0x32d   :  { %v15298_v44 = vadd.f32 %v10443_v43, %v10391_v14  ;;  %v10446_v11 = vadd.f32 %v10445_v52, %v10444_v51 }
 0x32e   :  { %6774 = vmatmul.mubr.bf16.gmra.mrb[116].mxu0 %v15019_v30  ;;  %11067 = vmatmul.mubr.msk.bf16.gmra.mrb[116].mxu1 %vm685_vm0, %v11947_v34 }
 0x32f   :  { %v15305_v46 = vadd.f32 %v10446_v11, %v10394_v41  ;;  %6781 = vmatprep.mubr.bf16.mxu0 %v15878_v2 }
 0x331   :  { %v10447_v63 = vpop.f32.mrb[16].mxu1  ;;  %v10475_v10 = vpop.f32.mrb[16].mxu0 }
 0x332   :  { %v10448_v27 = vpop.f32.mrb[17].mxu1  ;;  %v10476_v29 = vpop.f32.mrb[17].mxu0 }
 0x333   :  { %v10449_v24 = vadd.f32 %v10448_v27, %v10447_v63  ;;  %v10477_v14 = vadd.f32 %v10476_v29, %v10475_v10  ;;  %v10450_v6 = vpop.f32.mrb[18].mxu1  ;;  %v10478_v8 = vpop.f32.mrb[18].mxu0 }
 0x334   :  { %v10451_v57 = vpop.f32.mrb[19].mxu1  ;;  %v10479_v30 = vpop.f32.mrb[19].mxu0 }
 0x335   :  { %v15308_v43 = vadd.f32 %v10449_v24, %v10397_v48  ;;  %v10452_v55 = vadd.f32 %v10451_v57, %v10450_v6  ;;  %v10480_v51 = vadd.f32 %v10479_v30, %v10478_v8  ;;  %v5280_v58 = vadd.f32 %v10477_v14, %v15259_v49 }
 0x336   :  { %6782 = vmatmul.mubr.bf16.gmra.mrb[120].mxu0 %v12353_v17 }
 0x337   :  { %v15312_v41 = vadd.f32 %v10452_v55, %v10400_v39  ;;  %v5283_v2 = vadd.f32 %v10480_v51, %v15263_v0 }
 0x339   :  { %v10453_v52 = vpop.f32.mrb[20].mxu1  ;;  %v10481_v11 = vpop.f32.mrb[20].mxu0 }
 0x33a   :  { %v10454_v34 = vpop.f32.mrb[21].mxu1  ;;  %v10482_v63 = vpop.f32.mrb[21].mxu0 }
 0x33b   :  { %v10455_v10 = vadd.f32 %v10454_v34, %v10453_v52  ;;  %v10483_v27 = vadd.f32 %v10482_v63, %v10481_v11  ;;  %v10484_v29 = vpop.f32.mrb[22].mxu0  ;;  %v10456_v1 = vpop.f32.mrb[22].mxu1 }
 0x33c   :  { %v10485_v48 = vpop.f32.mrb[23].mxu0  ;;  %v10457_v24 = vpop.f32.mrb[23].mxu1 }
 0x33d   :  { %v15315_v6 = vadd.f32 %v10455_v10, %v10403_v26  ;;  %v10486_v8 = vadd.f32 %v10485_v48, %v10484_v29  ;;  %v5288_v49 = vadd.f32 %v10483_v27, %v15270_v20 }
 0x33f   :  { %v5291_v17 = vadd.f32 %v10486_v8, %v15277_v5 }
 0x341   :  { %v10487_v39 = vpop.f32.mrb[24].mxu0  ;;  %v11028_v14 = vpop.f32.mrb[24].mxu1 }
 0x342   :  { %v5368_v0 = vadd.f32 %v11028_v14, %v5288_v49  ;;  %v10488_v57 = vpop.f32.mrb[25].mxu0  ;;  %v5359_v30 = vpop.f32.mrb[25].mxu1 }
 0x343   :  { %v10489_v55 = vadd.f32 %v10488_v57, %v10487_v39  ;;  %v5360_v51 = vadd.f32 %v5359_v30, %v5280_v58  ;;  %v10490_v52 = vpop.f32.mrb[26].mxu0  ;;  %v11029_v11 = vpop.f32.mrb[26].mxu1 }
 0x344   :  { %v15322_v1 = vmax.f32 %v4675_v28, %v5368_v0  ;;  %v5371_v26 = vadd.f32 %v11029_v11, %v5291_v17  ;;  %v10491_v34 = vpop.f32.mrb[27].mxu0  ;;  %v5362_v63 = vpop.f32.mrb[27].mxu1 }
 0x345   :  { %v15327_v20 = vmax.f32 %v4673_v54, %v5360_v51  ;;  %v10492_v5 = vadd.f32 %v10491_v34, %v10490_v52  ;;  %v5363_v10 = vadd.f32 %v5362_v63, %v5283_v2  ;;  %v5296_v27 = vadd.f32 %v10489_v55, %v15284_v31 }
 0x346   :  { %v15333_v58 = vmax.f32 %v4676_v42, %v5371_v26 }
 0x347   :  { %v15338_v15 = vmax.f32 %v4674_v53, %v5363_v10  ;;  %v5299_v35 = vadd.f32 %v10492_v5, %v15291_v4 }
 0x349   :  { %v10493_v28 = vpop.f32.mrb[28].mxu0  ;;  %v11032_v9 = vpop.f32.mrb[28].mxu1 }
 0x34a   :  { %v10494_v56 = vpop.f32.mrb[29].mxu0  ;;  %v5375_v54 = vpop.f32.mrb[29].mxu1 }
 0x34b   :  { %v10495_v29 = vadd.f32 %v10494_v56, %v10493_v28  ;;  %v5376_v2 = vadd.f32 %v5375_v54, %v5296_v27  ;;  %v10496_v48 = vpop.f32.mrb[30].mxu0  ;;  %v11033_v31 = vpop.f32.mrb[30].mxu1 }
 0x34c   :  { %v10497_v24 = vpop.f32.mrb[31].mxu0  ;;  %v5378_v8 = vpop.f32.mrb[31].mxu1 }
 0x34d   :  { %v5304_v38 = vadd.f32 %v10495_v29, %v15298_v44  ;;  %v15345_v3 = vmax.f32 %v4677_v45, %v5376_v2  ;;  %v10498_v62 = vadd.f32 %v10497_v24, %v10496_v48  ;;  %v5379_v53 = vadd.f32 %v5378_v8, %v5299_v35 }
 0x34f   :  { %v5384_v36 = vadd.f32 %v11032_v9, %v5304_v38  ;;  %v5307_v42 = vadd.f32 %v10498_v62, %v15305_v46  ;;  %v15351_v4 = vmax.f32 %v4678_v22, %v5379_v53 }
 0x351   :  { %v15356_v49 = vmax.f32 %v4679_v33, %v5384_v36  ;;  %v5387_v44 = vadd.f32 %v11033_v31, %v5307_v42  ;;  %v10499_v17 = vpop.f32.mrb[32].mxu0  ;;  %v11036_v47 = vpop.f32.mrb[32].mxu1 }
 0x352   :  { %v10500_v19 = vpop.f32.mrb[33].mxu0  ;;  %v5391_v45 = vpop.f32.mrb[33].mxu1 }
 0x353   :  { %v15361_v39 = vmax.f32 %v4680_v59, %v5387_v44  ;;  %v10501_v46 = vadd.f32 %v10500_v19, %v10499_v17  ;;  %v10502_v14 = vpop.f32.mrb[34].mxu0  ;;  %v11037_v13 = vpop.f32.mrb[34].mxu1 }
 0x354   :  { %v10503_v32 = vpop.f32.mrb[35].mxu0  ;;  %v5394_v22 = vpop.f32.mrb[35].mxu1 }
 0x355   :  { %v10504_v0 = vadd.f32 %v10503_v32, %v10502_v14  ;;  %v5312_v16 = vadd.f32 %v10501_v46, %v15308_v43 }
 0x357   :  { %v5392_v23 = vadd.f32 %v5391_v45, %v5312_v16  ;;  %v5315_v33 = vadd.f32 %v10504_v0, %v15312_v41  ;;  %v15879_v41 = vmax.f32 %v14825_v7, %v15251_v21 }
 0x359   :  { %v15368_v57 = vmax.f32 %v4681_v61, %v5392_v23  ;;  %v5395_v30 = vadd.f32 %v5394_v22, %v5315_v33  ;;  %v10505_v18 = vpop.f32.mrb[36].mxu0 }
 0x35a   :  { %v10506_v60 = vpop.f32.mrb[37].mxu0 }
 0x35b   :  { %v15373_v59 = vmax.f32 %v4682_v25, %v5395_v30  ;;  %v10507_v55 = vadd.f32 %v10506_v60, %v10505_v18  ;;  %v10508_v51 = vpop.f32.mrb[38].mxu0 }
 0x35c   :  { %v10509_v52 = vpop.f32.mrb[39].mxu0 }
 0x35d   :  { %v5320_v43 = vadd.f32 %v10507_v55, %v15315_v6 }
 0x35f   :  { %v5400_v11 = vadd.f32 %v11036_v47, %v5320_v43 }
 0x361   :  { %v15379_v12 = vmax.f32 %v15879_v41, %v5400_v11  ;;  %v10535_v50 = vpop.f32.mrb[36].mxu1  ;;  %v10587_v61 = vpop.f32.mrb[40].mxu0 }
 0x362   :  { %v10536_v26 = vpop.f32.mrb[37].mxu1  ;;  %v10588_v34 = vpop.f32.mrb[41].mxu0 }
 0x363   :  { %v10537_v63 = vadd.f32 %v10536_v26, %v10535_v50  ;;  %v10589_v5 = vadd.f32 %v10588_v34, %v10587_v61  ;;  %v10538_v40 = vpop.f32.mrb[38].mxu1  ;;  %v10590_v37 = vpop.f32.mrb[42].mxu0 }
 0x364   :  { %v10539_v25 = vpop.f32.mrb[39].mxu1  ;;  %v10591_v10 = vpop.f32.mrb[43].mxu0 }
 0x365   :  { %v15381_v27 = vadd.f32 %v10589_v5, %v10537_v63  ;;  %v10540_v35 = vadd.f32 %v10539_v25, %v10538_v40  ;;  %v10592_v6 = vadd.f32 %v10591_v10, %v10590_v37 }
 0x367   :  { %v15383_v28 = vadd.f32 %v10592_v6, %v10540_v35 }
 0x369   :  { %v10541_v9 = vpop.f32.mrb[40].mxu1  ;;  %v10593_v7 = vpop.f32.mrb[44].mxu0 }
 0x36a   :  { %v10542_v21 = vpop.f32.mrb[41].mxu1  ;;  %v10594_v56 = vpop.f32.mrb[45].mxu0 }
 0x36b   :  { %v10543_v54 = vadd.f32 %v10542_v21, %v10541_v9  ;;  %v10595_v29 = vadd.f32 %v10594_v56, %v10593_v7  ;;  %v10544_v2 = vpop.f32.mrb[42].mxu1  ;;  %v10596_v48 = vpop.f32.mrb[46].mxu0 }
 0x36c   :  { %v10545_v31 = vpop.f32.mrb[43].mxu1  ;;  %v10597_v24 = vpop.f32.mrb[47].mxu0 }
 0x36d   :  { %v15385_v8 = vadd.f32 %v10595_v29, %v10543_v54  ;;  %v10546_v38 = vadd.f32 %v10545_v31, %v10544_v2  ;;  %v10598_v62 = vadd.f32 %v10597_v24, %v10596_v48 }
 0x36f   :  { %v15387_v53 = vadd.f32 %v10598_v62, %v10546_v38 }
 0x371   :  { %v10547_v36 = vpop.f32.mrb[44].mxu1  ;;  %v10599_v42 = vpop.f32.mrb[48].mxu0 }
 0x372   :  { %v10548_v44 = vpop.f32.mrb[45].mxu1  ;;  %v10600_v17 = vpop.f32.mrb[49].mxu0 }
 0x373   :  { %v10549_v47 = vadd.f32 %v10548_v44, %v10547_v36  ;;  %v10601_v19 = vadd.f32 %v10600_v17, %v10599_v42  ;;  %v10550_v45 = vpop.f32.mrb[46].mxu1  ;;  %v10602_v46 = vpop.f32.mrb[50].mxu0 }
 0x374   :  { %v10551_v14 = vpop.f32.mrb[47].mxu1  ;;  %v10603_v13 = vpop.f32.mrb[51].mxu0 }
 0x375   :  { %v15389_v32 = vadd.f32 %v10601_v19, %v10549_v47  ;;  %v10552_v22 = vadd.f32 %v10551_v14, %v10550_v45  ;;  %v10604_v0 = vadd.f32 %v10603_v13, %v10602_v46 }
 0x377   :  { %v15391_v16 = vadd.f32 %v10604_v0, %v10552_v22 }
 0x379   :  { %v10553_v23 = vpop.f32.mrb[48].mxu1  ;;  %v10605_v33 = vpop.f32.mrb[52].mxu0 }
 0x37a   :  { %v10554_v30 = vpop.f32.mrb[49].mxu1  ;;  %v10606_v18 = vpop.f32.mrb[53].mxu0 }
 0x37b   :  { %v10555_v60 = vadd.f32 %v10554_v30, %v10553_v23  ;;  %v10607_v55 = vadd.f32 %v10606_v18, %v10605_v33  ;;  %v10556_v51 = vpop.f32.mrb[50].mxu1  ;;  %v10608_v52 = vpop.f32.mrb[54].mxu0 }
 0x37c   :  { %v10557_v43 = vpop.f32.mrb[51].mxu1  ;;  %v10609_v11 = vpop.f32.mrb[55].mxu0 }
 0x37d   :  { %v15393_v41 = vadd.f32 %v10607_v55, %v10555_v60  ;;  %v10558_v50 = vadd.f32 %v10557_v43, %v10556_v51  ;;  %v10610_v61 = vadd.f32 %v10609_v11, %v10608_v52 }
 0x37f   :  { %v15395_v26 = vadd.f32 %v10610_v61, %v10558_v50 }
 0x381   :  { %v10559_v34 = vpop.f32.mrb[52].mxu1  ;;  %v10611_v63 = vpop.f32.mrb[56].mxu0 }
 0x382   :  { %v10560_v5 = vpop.f32.mrb[53].mxu1  ;;  %v10612_v40 = vpop.f32.mrb[57].mxu0 }
 0x383   :  { %v10561_v37 = vadd.f32 %v10560_v5, %v10559_v34  ;;  %v10613_v25 = vadd.f32 %v10612_v40, %v10611_v63  ;;  %v10562_v10 = vpop.f32.mrb[54].mxu1  ;;  %v10614_v35 = vpop.f32.mrb[58].mxu0 }
 0x384   :  { %v10563_v6 = vpop.f32.mrb[55].mxu1  ;;  %v10615_v9 = vpop.f32.mrb[59].mxu0 }
 0x385   :  { %v15397_v7 = vadd.f32 %v10613_v25, %v10561_v37  ;;  %v10564_v21 = vadd.f32 %v10563_v6, %v10562_v10  ;;  %v10616_v56 = vadd.f32 %v10615_v9, %v10614_v35 }
 0x387   :  { %v15399_v54 = vadd.f32 %v10616_v56, %v10564_v21 }
 0x389   :  { %v10565_v29 = vpop.f32.mrb[56].mxu1  ;;  %v10617_v2 = vpop.f32.mrb[60].mxu0 }
 0x38a   :  { %v10566_v48 = vpop.f32.mrb[57].mxu1  ;;  %v10618_v31 = vpop.f32.mrb[61].mxu0 }
 0x38b   :  { %v10567_v24 = vadd.f32 %v10566_v48, %v10565_v29  ;;  %v10619_v38 = vadd.f32 %v10618_v31, %v10617_v2  ;;  %v10620_v62 = vpop.f32.mrb[62].mxu0  ;;  %v10568_v36 = vpop.f32.mrb[58].mxu1 }
 0x38c   :  { %v10621_v42 = vpop.f32.mrb[63].mxu0  ;;  %v10569_v44 = vpop.f32.mrb[59].mxu1 }
 0x38d   :  { %v15401_v17 = vadd.f32 %v10619_v38, %v10567_v24 }
 0x391   :  { %v10639_v47 = vpop.f32.mrb[60].mxu1  ;;  %v11044_v19 = vpop.f32.mrb[64].mxu0 }
 0x392   :  { %v10640_v45 = vpop.f32.mrb[61].mxu1  ;;  %v6091_v46 = vpop.f32.mrb[65].mxu0 }
 0x393   :  { %v10641_v14 = vadd.f32 %v10640_v45, %v10639_v47  ;;  %v10642_v13 = vpop.f32.mrb[62].mxu1  ;;  %v11045_v22 = vpop.f32.mrb[66].mxu0 }
 0x394   :  { %v10643_v0 = vpop.f32.mrb[63].mxu1  ;;  %v6094_v23 = vpop.f32.mrb[67].mxu0 }
 0x395   :  { %v6012_v33 = vadd.f32 %v10641_v14, %v15381_v27  ;;  %v10644_v30 = vadd.f32 %v10643_v0, %v10642_v13 }
 0x397   :  { %v15404_v18 = vadd.f32 %v6091_v46, %v6012_v33  ;;  %v6015_v60 = vadd.f32 %v10644_v30, %v15383_v28  ;;  %v11786_v28 = vld [vmem:[%s15743_s3] sm:$0xff]  }
 0x398   :  { %11082 = vmatprep.mubr.msk.bf16.mxu1 %vm7079_vm1, %v11786_v28 }
 0x399   :  { %v6137_v55 = vmax.f32 %v15327_v20, %v15404_v18  ;;  %v15409_v51 = vadd.f32 %v6094_v23, %v6015_v60  ;;  %v10645_v52 = vpop.f32.mrb[64].mxu1  ;;  %v11048_v43 = vpop.f32.mrb[68].mxu0 }
 0x39a   :  { %v10646_v11 = vpop.f32.mrb[65].mxu1  ;;  %v6107_v50 = vpop.f32.mrb[69].mxu0 }
 0x39b   :  { %v6138_v61 = vmax.f32 %v15338_v15, %v15409_v51  ;;  %v10647_v34 = vadd.f32 %v10646_v11, %v10645_v52  ;;  %v10648_v63 = vpop.f32.mrb[66].mxu1  ;;  %v11049_v27 = vpop.f32.mrb[70].mxu0 }
 0x39c   :  { %v10649_v5 = vpop.f32.mrb[67].mxu1  ;;  %v6110_v40 = vpop.f32.mrb[71].mxu0 }
 0x39d   :  { %v6020_v37 = vadd.f32 %v10647_v34, %v15385_v8  ;;  %v10650_v25 = vadd.f32 %v10649_v5, %v10648_v63 }
 0x39f   :  { %v15418_v10 = vadd.f32 %v11044_v19, %v6020_v37  ;;  %v6023_v35 = vadd.f32 %v10650_v25, %v15387_v53 }
 0x3a1   :  { %v15421_v6 = vadd.f32 %v11045_v22, %v6023_v35  ;;  %v10651_v9 = vpop.f32.mrb[68].mxu1  ;;  %v11052_v21 = vpop.f32.mrb[72].mxu0  ;;  %v6139_v56 = vmax.f32 %v15322_v1, %v15418_v10 }
 0x3a2   :  { %v10652_v29 = vpop.f32.mrb[69].mxu1  ;;  %v6123_v2 = vpop.f32.mrb[73].mxu0 }
 0x3a3   :  { %v10653_v48 = vadd.f32 %v10652_v29, %v10651_v9  ;;  %v10654_v31 = vpop.f32.mrb[70].mxu1  ;;  %v11053_v24 = vpop.f32.mrb[74].mxu0  ;;  %v6140_v8 = vmax.f32 %v15333_v58, %v15421_v6 }
 0x3a4   :  { %v10655_v38 = vpop.f32.mrb[71].mxu1  ;;  %v6126_v62 = vpop.f32.mrb[75].mxu0 }
 0x3a5   :  { %v6028_v36 = vadd.f32 %v10653_v48, %v15389_v32  ;;  %v10656_v53 = vadd.f32 %v10655_v38, %v10654_v31 }
 0x3a7   :  { %v15428_v42 = vadd.f32 %v6107_v50, %v6028_v36  ;;  %v6031_v44 = vadd.f32 %v10656_v53, %v15391_v16 }
 0x3a9   :  { %v15431_v47 = vadd.f32 %v6110_v40, %v6031_v44  ;;  %v10657_v19 = vpop.f32.mrb[72].mxu1  ;;  %v6141_v45 = vmax.f32 %v15345_v3, %v15428_v42 }
 0x3aa   :  { %v10658_v46 = vpop.f32.mrb[73].mxu1 }
 0x3ab   :  { %v10659_v14 = vadd.f32 %v10658_v46, %v10657_v19  ;;  %v10660_v13 = vpop.f32.mrb[74].mxu1  ;;  %v6142_v22 = vmax.f32 %v15351_v4, %v15431_v47 }
 0x3ac   :  { %v10661_v0 = vpop.f32.mrb[75].mxu1 }
 0x3ad   :  { %v6036_v32 = vadd.f32 %v10659_v14, %v15393_v41  ;;  %v10662_v23 = vadd.f32 %v10661_v0, %v10660_v13 }
 0x3af   :  { %v15438_v33 = vadd.f32 %v11048_v43, %v6036_v32  ;;  %v6039_v16 = vadd.f32 %v10662_v23, %v15395_v26 }
 0x3b1   :  { %v15443_v60 = vadd.f32 %v11049_v27, %v6039_v16  ;;  %v10663_v52 = vpop.f32.mrb[76].mxu1  ;;  %v10699_v11 = vpop.f32.mrb[76].mxu0 }
 0x3b2   :  { %v10664_v50 = vpop.f32.mrb[77].mxu1  ;;  %v10700_v34 = vpop.f32.mrb[77].mxu0 }
 0x3b3   :  { %v10665_v5 = vadd.f32 %v10664_v50, %v10663_v52  ;;  %v10701_v40 = vadd.f32 %v10700_v34, %v10699_v11  ;;  %v10666_v41 = vpop.f32.mrb[78].mxu1  ;;  %v10702_v28 = vpop.f32.mrb[78].mxu0  ;;  %v15881_v4 = vmax.f32 %v15361_v39, %v15443_v60 }
 0x3b4   :  { %v10667_v43 = vpop.f32.mrb[79].mxu1  ;;  %v10703_v37 = vpop.f32.mrb[79].mxu0 }
 0x3b5   :  { %v6044_v26 = vadd.f32 %v10665_v5, %v15397_v7  ;;  %v10668_v25 = vadd.f32 %v10667_v43, %v10666_v41  ;;  %v10704_v35 = vadd.f32 %v10703_v37, %v10702_v28 }
 0x3b7   :  { %v15448_v9 = vadd.f32 %v6123_v2, %v6044_v26  ;;  %v6047_v27 = vadd.f32 %v10668_v25, %v15399_v54 }
 0x3b9   :  { %v15451_v29 = vadd.f32 %v6126_v62, %v6047_v27  ;;  %v10669_v48 = vpop.f32.mrb[80].mxu1  ;;  %v10705_v31 = vpop.f32.mrb[80].mxu0  ;;  %v15882_v60 = vmax.f32 %v15368_v57, %v15448_v9 }
 0x3ba   :  { %v10670_v38 = vpop.f32.mrb[81].mxu1  ;;  %v10706_v36 = vpop.f32.mrb[81].mxu0 }
 0x3bb   :  { %v10671_v53 = vadd.f32 %v10670_v38, %v10669_v48  ;;  %v10707_v44 = vadd.f32 %v10706_v36, %v10705_v31  ;;  %v10708_v19 = vpop.f32.mrb[82].mxu0  ;;  %v10672_v46 = vpop.f32.mrb[82].mxu1 }
 0x3bc   :  { %v10709_v2 = vpop.f32.mrb[83].mxu0  ;;  %v10673_v14 = vpop.f32.mrb[83].mxu1 }
 0x3bd   :  { %v6052_v54 = vadd.f32 %v10671_v53, %v15401_v17  ;;  %v10710_v62 = vadd.f32 %v10709_v2, %v10708_v19 }
 0x3bf   :  { %v15458_v13 = vadd.f32 %v11052_v21, %v6052_v54 }
 0x3c1   :  { %v10711_v32 = vpop.f32.mrb[84].mxu0  ;;  %v10751_v23 = vpop.f32.mrb[84].mxu1 }
 0x3c2   :  { %v10712_v16 = vpop.f32.mrb[85].mxu0  ;;  %v10752_v52 = vpop.f32.mrb[85].mxu1 }
 0x3c3   :  { %v10713_v11 = vadd.f32 %v10712_v16, %v10711_v32  ;;  %v10753_v50 = vadd.f32 %v10752_v52, %v10751_v23  ;;  %v10714_v34 = vpop.f32.mrb[86].mxu0  ;;  %v10754_v5 = vpop.f32.mrb[86].mxu1 }
 0x3c4   :  { %v10715_v41 = vpop.f32.mrb[87].mxu0  ;;  %v10755_v28 = vpop.f32.mrb[87].mxu1 }
 0x3c5   :  { %v6664_v43 = vadd.f32 %v10753_v50, %v10701_v40  ;;  %v10716_v37 = vadd.f32 %v10715_v41, %v10714_v34  ;;  %v10756_v26 = vadd.f32 %v10755_v28, %v10754_v5 }
 0x3c7   :  { %v6667_v17 = vadd.f32 %v10756_v26, %v10704_v35 }
 0x3c9   :  { %v10717_v25 = vpop.f32.mrb[88].mxu0  ;;  %v10757_v21 = vpop.f32.mrb[88].mxu1 }
 0x3ca   :  { %v10718_v27 = vpop.f32.mrb[89].mxu0  ;;  %v10758_v48 = vpop.f32.mrb[89].mxu1 }
 0x3cb   :  { %v10719_v31 = vadd.f32 %v10718_v27, %v10717_v25  ;;  %v10759_v38 = vadd.f32 %v10758_v48, %v10757_v21  ;;  %v10720_v36 = vpop.f32.mrb[90].mxu0  ;;  %v10760_v53 = vpop.f32.mrb[90].mxu1 }
 0x3cc   :  { %v10721_v19 = vpop.f32.mrb[91].mxu0  ;;  %v10761_v46 = vpop.f32.mrb[91].mxu1 }
 0x3cd   :  { %v6672_v2 = vadd.f32 %v10759_v38, %v10707_v44  ;;  %v10722_v14 = vadd.f32 %v10721_v19, %v10720_v36  ;;  %v10762_v54 = vadd.f32 %v10761_v46, %v10760_v53 }
 0x3cf   :  { %v6675_v32 = vadd.f32 %v10762_v54, %v10710_v62 }
 0x3d1   :  { %v10723_v23 = vpop.f32.mrb[92].mxu0  ;;  %v10763_v16 = vpop.f32.mrb[92].mxu1 }
 0x3d2   :  { %v10724_v40 = vpop.f32.mrb[93].mxu0  ;;  %v10764_v52 = vpop.f32.mrb[93].mxu1 }
 0x3d3   :  { %v10725_v50 = vadd.f32 %v10724_v40, %v10723_v23  ;;  %v10765_v35 = vadd.f32 %v10764_v52, %v10763_v16  ;;  %v10726_v34 = vpop.f32.mrb[94].mxu0  ;;  %v10766_v5 = vpop.f32.mrb[94].mxu1 }
 0x3d4   :  { %v10727_v41 = vpop.f32.mrb[95].mxu0  ;;  %v10767_v28 = vpop.f32.mrb[95].mxu1 }
 0x3d5   :  { %v15462_v26 = vadd.f32 %v10765_v35, %v10713_v11  ;;  %v10728_v25 = vadd.f32 %v10727_v41, %v10726_v34  ;;  %v10768_v21 = vadd.f32 %v10767_v28, %v10766_v5 }
 0x3d7   :  { %v15464_v27 = vadd.f32 %v10768_v21, %v10716_v37 }
 0x3d9   :  { %v10729_v44 = vpop.f32.mrb[96].mxu0  ;;  %v10769_v48 = vpop.f32.mrb[96].mxu1 }
 0x3da   :  { %v10730_v38 = vpop.f32.mrb[97].mxu0  ;;  %v10770_v62 = vpop.f32.mrb[97].mxu1 }
 0x3db   :  { %v10731_v36 = vadd.f32 %v10730_v38, %v10729_v44  ;;  %v10771_v53 = vadd.f32 %v10770_v62, %v10769_v48  ;;  %v10732_v19 = vpop.f32.mrb[98].mxu0  ;;  %v10772_v46 = vpop.f32.mrb[98].mxu1 }
 0x3dc   :  { %v10733_v54 = vpop.f32.mrb[99].mxu0  ;;  %v10773_v23 = vpop.f32.mrb[99].mxu1 }
 0x3dd   :  { %v15466_v16 = vadd.f32 %v10771_v53, %v10719_v31  ;;  %v10774_v40 = vadd.f32 %v10773_v23, %v10772_v46  ;;  %v6904_v46 = vpop.permute.xlu1 %6903 }
 0x3df   :  { %v15468_v52 = vadd.f32 %v10774_v40, %v10722_v14  ;;  %v6894_v14 = vpop.permute.xlu0 %6893 }
 0x3e1   :  { %v10775_v11 = vpop.f32.mrb[100].mxu1  ;;  %v10803_v35 = vpop.f32.mrb[100].mxu0 }
 0x3e2   :  { %v10776_v34 = vpop.f32.mrb[101].mxu1  ;;  %v10804_v37 = vpop.f32.mrb[101].mxu0 }
 0x3e3   :  { %v10777_v5 = vadd.f32 %v10776_v34, %v10775_v11  ;;  %v10805_v41 = vadd.f32 %v10804_v37, %v10803_v35  ;;  %v10778_v28 = vpop.f32.mrb[102].mxu1  ;;  %v10806_v21 = vpop.f32.mrb[102].mxu0 }
 0x3e4   :  { %v10779_v0 = vpop.f32.mrb[103].mxu1  ;;  %v10807_v44 = vpop.f32.mrb[103].mxu0 }
 0x3e5   :  { %v15470_v48 = vadd.f32 %v10777_v5, %v10725_v50  ;;  %v10780_v38 = vadd.f32 %v10779_v0, %v10778_v28  ;;  %v10808_v62 = vadd.f32 %v10807_v44, %v10806_v21  ;;  %v6744_v19 = vadd.f32 %v10805_v41, %v6664_v43  ;;  %v6909_v41 = vpop.permute.xlu1 %6908 }
 0x3e7   :  { %v15472_v31 = vadd.f32 %v10780_v38, %v10728_v25  ;;  %v6747_v53 = vadd.f32 %v10808_v62, %v6667_v17  ;;  %v6899_v25 = vpop.permute.xlu0 %6898 }
 0x3e9   :  { %v10781_v54 = vpop.f32.mrb[104].mxu1  ;;  %v10809_v23 = vpop.f32.mrb[104].mxu0 }
 0x3ea   :  { %v10782_v40 = vpop.f32.mrb[105].mxu1  ;;  %v10810_v7 = vpop.f32.mrb[105].mxu0 }
 0x3eb   :  { %v10783_v11 = vadd.f32 %v10782_v40, %v10781_v54  ;;  %v10811_v35 = vadd.f32 %v10810_v7, %v10809_v23  ;;  %v10812_v34 = vpop.f32.mrb[106].mxu0  ;;  %v10784_v37 = vpop.f32.mrb[106].mxu1 }
 0x3ec   :  { %v10813_v24 = vpop.f32.mrb[107].mxu0  ;;  %v10785_v63 = vpop.f32.mrb[107].mxu1 }
 0x3ed   :  { %v15474_v50 = vadd.f32 %v10783_v11, %v10731_v36  ;;  %v10814_v0 = vadd.f32 %v10813_v24, %v10812_v34  ;;  %v6752_v5 = vadd.f32 %v10811_v35, %v6672_v2  ;;  %v6919_v34 = vpop.permute.xlu1 %6918 }
 0x3ef   :  { %v6755_v43 = vadd.f32 %v10814_v0, %v6675_v32 }
 0x3f1   :  { %v10815_v17 = vpop.f32.mrb[108].mxu0  ;;  %v11060_v28 = vpop.f32.mrb[108].mxu1 }
 0x3f2   :  { %v6832_v21 = vadd.f32 %v11060_v28, %v6752_v5  ;;  %v10816_v44 = vpop.f32.mrb[109].mxu0  ;;  %v6823_v38 = vpop.f32.mrb[109].mxu1 }
 0x3f3   :  { %v10817_v62 = vadd.f32 %v10816_v44, %v10815_v17  ;;  %v6824_v30 = vadd.f32 %v6823_v38, %v6744_v19  ;;  %v10818_v54 = vpop.f32.mrb[110].mxu0  ;;  %v11061_v7 = vpop.f32.mrb[110].mxu1 }
 0x3f4   :  { %v6871_v63 = vmax.f32 %v6139_v56, %v6832_v21  ;;  %v6835_v36 = vadd.f32 %v11061_v7, %v6755_v43  ;;  %v10819_v23 = vpop.f32.mrb[111].mxu0  ;;  %v6826_v24 = vpop.f32.mrb[111].mxu1 }
 0x3f5   :  { %v6869_v2 = vmax.f32 %v6137_v55, %v6824_v30  ;;  %v10820_v32 = vadd.f32 %v10819_v23, %v10818_v54  ;;  %v6827_v40 = vadd.f32 %v6826_v24, %v6747_v53  ;;  %v6760_v11 = vadd.f32 %v10817_v62, %v15462_v26  ;;  %v6914_v56 = vpop.permute.xlu0 %6913  ;;  %v6929_v7 = vpop.permute.xlu1 %6928 }
 0x3f6   :  { %v6948_v35 = vadd.f32 %v6904_v46, %v6871_v63  ;;  %v6872_v19 = vmax.f32 %v6140_v8, %v6835_v36 }
 0x3f7   :  { %v6870_v1 = vmax.f32 %v6138_v61, %v6827_v40  ;;  %v6763_v10 = vadd.f32 %v10820_v32, %v15464_v27  ;;  %v6946_v37 = vadd.f32 %v6894_v14, %v6869_v2 }
 0x3f8   :  { %v6949_v20 = vadd.f32 %v6909_v41, %v6872_v19  ;;  %v6959_v53 = vmax.f32 %v6948_v35, 0.0 }
 0x3f9   :  { %v6947_v18 = vadd.f32 %v6899_v25, %v6870_v1  ;;  %v10821_v55 = vpop.f32.mrb[112].mxu0  ;;  %v11064_v30 = vpop.f32.mrb[112].mxu1  ;;  %v6957_v15 = vmax.f32 %v6946_v37, 0.0 }
 0x3fa   :  { %v6960_v26 = vmax.f32 %v6949_v20, 0.0  ;;  %v10822_v46 = vpop.f32.mrb[113].mxu0  ;;  %v6839_v0 = vpop.f32.mrb[113].mxu1 }
 0x3fb   :  { %v6958_v5 = vmax.f32 %v6947_v18, 0.0  ;;  %v10823_v58 = vadd.f32 %v10822_v46, %v10821_v55  ;;  %v6840_v6 = vadd.f32 %v6839_v0, %v6760_v11  ;;  %v10824_v8 = vpop.f32.mrb[114].mxu0  ;;  %v11065_v43 = vpop.f32.mrb[114].mxu1 }
 0x3fc   :  { %v10825_v51 = vpop.f32.mrb[115].mxu0  ;;  %v6842_v61 = vpop.f32.mrb[115].mxu1  ;;  %v6969_v27 = vpack.c.bf16 %v6960_v26, %v6959_v53 }
 0x3fd   :  { %v6768_v17 = vadd.f32 %v10823_v58, %v15466_v16  ;;  %v6873_v14 = vmax.f32 %v6141_v45, %v6840_v6  ;;  %v10826_v25 = vadd.f32 %v10825_v51, %v10824_v8  ;;  %v6843_v41 = vadd.f32 %v6842_v61, %v6763_v10  ;;  %v6924_v54 = vpop.permute.xlu0 %6923 }
 0x3fe   :  { %v6968_v28 = vpack.c.bf16 %v6958_v5, %v6957_v15  ;;  %v15880_v16 = vmax.f32 %v15356_v49, %v15438_v33  ;;  %v15884_v51 = vmax.f32 %v15379_v12, %v15458_v13  ;;  %v11787_v12 = vld [vmem:[%s15743_s3 + $0x8] sm:$0xff]   ;;  %v11788_v13 = vld [vmem:[%s15743_s3 + $0x10] sm:$0xff]  }
 0x3ff   :  { %v6848_v21 = vadd.f32 %v11064_v30, %v6768_v17  ;;  %v6950_v44 = vadd.f32 %v6914_v56, %v6873_v14  ;;  %v6771_v38 = vadd.f32 %v10826_v25, %v15468_v52  ;;  %v6874_v62 = vmax.f32 %v6142_v22, %v6843_v41 }
 0x400   :  { %11070 = vmatprep.subr.bf16.mxu1 %v6968_v28  ;;  %v11973_v17 = vmov 65535  }
 0x401   :  { %v6875_v63 = vmax.f32 %v15880_v16, %v6848_v21  ;;  %v6851_v3 = vadd.f32 %v11065_v43, %v6771_v38  ;;  %v6951_v42 = vadd.f32 %v6919_v34, %v6874_v62  ;;  %11071 = vmatpush3.bf16.msra.mxu1 %v6968_v28  ;;  %v10827_v45 = vpop.f32.mrb[116].mxu0  ;;  %v11068_v36 = vpop.f32.mrb[116].mxu1  ;;  %v6961_v23 = vmax.f32 %v6950_v44, 0.0  ;;  %v11789_v21 = vld [vmem:[%s15743_s3 + $0x18] sm:$0xff]   ;;  %v11790_v44 = vld [vmem:[%s15743_s3 + $0x20] sm:$0xff]  }
 0x402   :  { %11072 = vmatprep.subr.bf16.mxu1 %v6969_v27  ;;  %v10828_v24 = vpop.f32.mrb[117].mxu0  ;;  %v6855_v52 = vpop.f32.mrb[117].mxu1  ;;  %v7100_v14 = vsel %vm7098_vm2, 4294967295, %v11973_v17  ;;  %v11791_v38 = vld [vmem:[%s15743_s3 + $0x28] ss:$0 sps:$4 sm:$0x77]  }
 0x403   :  { %v6876_v47 = vmax.f32 %v15881_v4, %v6851_v3  ;;  %v6962_v22 = vmax.f32 %v6951_v42, 0.0  ;;  %v10829_v2 = vadd.f32 %v10828_v24, %v10827_v45  ;;  %v10830_v32 = vpop.f32.mrb[118].mxu0  ;;  %v11069_v40 = vpop.f32.mrb[118].mxu1  ;;  %v6952_v11 = vadd.f32 %v6924_v54, %v6875_v63  ;;  %s11975_s3 = smov 126   ;;  %v7202_v17 = vld [vmem:[%s15745_s5] sm:$0x7] }
 0x404   :  { %v10831_v49 = vpop.f32.mrb[119].mxu0  ;;  %v6858_v33 = vpop.f32.mrb[119].mxu1  ;;  %v15516_v41 = vsel %vm7099_vm3, %v7100_v14, 0  ;;  %v11974_v62 = vmov 0.0   ;;  %v7795_v14 = vld [vmem:[%s15748_s8] sm:$0x1f] }
 0x405   :  { %v10832_v35 = vadd.f32 %v10831_v49, %v10830_v32  ;;  %11073 = vmatpush3.bf16.msra.mxu1 %v6969_v27  ;;  %v6776_v19 = vadd.f32 %v10829_v2, %v15470_v48  ;;  %v6970_v1 = vpack.c.bf16 %v6962_v22, %v6961_v23  ;;  %v6953_v10 = vadd.f32 %v6929_v7, %v6876_v47  ;;  %v6934_v53 = vpop.permute.xlu0 %6933 }
 0x406   :  { %v6963_v37 = vmax.f32 %v6952_v11, 0.0  ;;  %v15883_v48 = vmax.f32 %v15373_v59, %v15451_v29  ;;  %11094 = vmatprep.subr.bf16.mxu0 %v11974_v62  ;;  %11106 = vmatprep.mubr.msk.bf16.mxu0 %vm11976_vm4, %v11974_v62 }
 0x407   :  { %v6856_v56 = vadd.f32 %v6855_v52, %v6776_v19  ;;  %11074 = vmatprep.subr.bf16.mxu1 %v6970_v1  ;;  %v6779_v34 = vadd.f32 %v10832_v35, %v15472_v31  ;;  %v6964_v39 = vmax.f32 %v6953_v10, 0.0  ;;  %v6939_v31 = vpop.permute.xlu1 %6938 }
 0x409   :  { %v6877_v20 = vmax.f32 %v15882_v60, %v6856_v56  ;;  %v6859_v18 = vadd.f32 %v6858_v33, %v6779_v34  ;;  %11075 = vmatpush3.bf16.msra.mxu1 %v6970_v1  ;;  %v10833_v55 = vpop.f32.mrb[120].mxu0  ;;  %v6971_v30 = vpack.c.bf16 %v6964_v39, %v6963_v37  ;;  %v6944_v59 = vpop.permute.xlu0 %6943 }
 0x40a   :  { %v10834_v26 = vpop.f32.mrb[121].mxu0 }
 0x40b   :  { %v6954_v46 = vadd.f32 %v6934_v53, %v6877_v20  ;;  %v6878_v0 = vmax.f32 %v15883_v48, %v6859_v18  ;;  %v10835_v5 = vadd.f32 %v10834_v26, %v10833_v55  ;;  %v10836_v58 = vpop.f32.mrb[122].mxu0  ;;  %11076 = vmatprep.subr.bf16.mxu1 %v6971_v30  ;;  %v6999_v54 = vpop.permute.xlu1 %6998 }
 0x40c   :  { %v10837_v6 = vpop.f32.mrb[123].mxu0 }
 0x40d   :  { %v6955_v8 = vadd.f32 %v6939_v31, %v6878_v0  ;;  %v6784_v57 = vadd.f32 %v10835_v5, %v15474_v50  ;;  %11077 = vmatpush3.bf16.msra.mxu1 %v6971_v30  ;;  %v6965_v9 = vmax.f32 %v6954_v46, 0.0  ;;  %v7004_v7 = vpop.permute.xlu0 %7003 }
 0x40f   :  { %v6966_v43 = vmax.f32 %v6955_v8, 0.0  ;;  %v6864_v15 = vadd.f32 %v11068_v36, %v6784_v57  ;;  %v7009_v16 = vpop.permute.xlu1 %7008 }
 0x411   :  { %v6879_v61 = vmax.f32 %v15884_v51, %v6864_v15  ;;  %v6972_v27 = vpack.c.bf16 %v6966_v43, %v6965_v9  ;;  %v7014_v63 = vpop.permute.xlu0 %7013 }
 0x413   :  { %11078 = vmatprep.subr.bf16.mxu1 %v6972_v27  ;;  %v6956_v29 = vadd.f32 %v6944_v59, %v6879_v61  ;;  %v7019_v3 = vpop.permute.xlu1 %7018 }
 0x414   :  { %11079 = vmatpush3.bf16.msra.mxu1 %v6972_v27 }
 0x415   :  { %v6967_v25 = vmax.f32 %v6956_v29, 0.0  ;;  %v7024_v52 = vpop.permute.xlu0 %7023 }
 0x417   :  { %v6973_v50 = vpack.c.bf16 %v6967_v25, %v6967_v25  ;;  %v7029_v22 = vpop.permute.xlu1 %7028  ;;  %v7782_v25 = vld [vmem:[%s15746_s6] sm:$0x1f] }
 0x419   :  { %v7103_v28 = vand.u32 %v15516_v41, %v6973_v50  ;;  %v7034_v1 = vpop.permute.xlu0 %7033  ;;  %v7885_v50 = vld [vmem:[#allocation2] sm:$0x1] }
 0x41b   :  { %11080 = vmatprep.subr.bf16.mxu1 %v7103_v28  ;;  %v7039_v34 = vpop.permute.xlu1 %7038 }
 0x41c   :  { %11081 = vmatpush3.bf16.msra.mxu1 %v7103_v28 }
 0x41d   :  { %11110 = vmatprep.subr.bf16.mxu1 %v11974_v62  ;;  %v7044_v57 = vpop.permute.xlu0 %7043 }
 0x41f   :  { %11083 = vmatmul.mubr.msk.bf16.vlgmr.msra.gmra.mrb[120].mxu1 %vm7079_vm1, %v11787_v12  ;;  %v7049_v48 = vpop.permute.xlu1 %7048 }
 0x420   :  { %11086 = vmatprep.mubr.msk.bf16.mxu1 %vm7079_vm1, %v11788_v13 }
 0x427   :  { %11087 = vmatmul.mubr.msk.bf16.gmra.mrb[124].mxu1 %vm7079_vm1, %v11789_v21 }
 0x428   :  { %11090 = vmatprep.mubr.msk.bf16.mxu1 %vm7079_vm1, %v11790_v44 }
 0x42f   :  { %11091 = vmatmul.mubr.msk.bf16.gmra.mrb[128].mxu1 %vm7079_vm1, %v11791_v38 }
 0x430   :  { %11122 = vmatprep.mubr.msk.bf16.mxu1 %vm11976_vm4, %v11974_v62 }
 0x4f2   :  { %v11084_v42 = vpop.f32.mrb[120].mxu1 }
 0x4f3   :  { %v7148_v45 = vadd.f32 %v11084_v42, %v7009_v16  ;;  %v7139_v36 = vpop.f32.mrb[121].mxu1 }
 0x4f4   :  { %v7140_v23 = vadd.f32 %v7139_v36, %v6999_v54  ;;  %v11085_v24 = vpop.f32.mrb[122].mxu1 }
 0x4f5   :  { %v7151_v4 = vadd.f32 %v11085_v24, %v7014_v63  ;;  %v7142_v47 = vpop.f32.mrb[123].mxu1  ;;  %v7187_v32 = vmax.f32 %v7148_v45, 0.0 }
 0x4f6   :  { %v7143_v2 = vadd.f32 %v7142_v47, %v7004_v7  ;;  %v7185_v11 = vmax.f32 %v7140_v23, 0.0 }
 0x4f7   :  { %v7188_v40 = vmax.f32 %v7151_v4, 0.0 }
 0x4f8   :  { %v7186_v49 = vmax.f32 %v7143_v2, 0.0 }
 0x4f9   :  { %v15541_v33 = vpack.c.bf16 %v7188_v40, %v7187_v32 }
 0x4fa   :  { %v15543_v35 = vpack.c.bf16 %v7186_v49, %v7185_v11  ;;  %v11088_v19 = vpop.f32.mrb[124].mxu1  ;;  %v9353_v49 = vld [vmem:[%s15745_s5 + $0x8] sm:$0x7] }
 0x4fb   :  { %v7164_v10 = vadd.f32 %v11088_v19, %v7029_v22  ;;  %7213 = vrot.lane.b32.xlu1 %v15541_v33, %s11975_s3  ;;  %v7155_v56 = vpop.f32.mrb[125].mxu1 }
 0x4fc   :  { %v7156_v37 = vadd.f32 %v7155_v56, %v7019_v3  ;;  %v11089_v39 = vpop.f32.mrb[126].mxu1  ;;  %7211 = vrot.lane.b32.xlu0 %v15543_v35, %s11975_s3  ;;  %11111 = vmatpush3.bf16.msra.mxu1 %v15543_v35  ;;  %v9350_v3 = vld [vmem:[%s15745_s5 + $0x4] sm:$0x7]  ;;  %v9355_v56 = vld [vmem:[%s15745_s5 + $0xc] sm:$0x7] }
 0x4fd   :  { %v7167_v60 = vadd.f32 %v11089_v39, %v7034_v1  ;;  %v7158_v20 = vpop.f32.mrb[127].mxu1  ;;  %11112 = vmatprep.subr.bf16.mxu1 %v11974_v62  ;;  %v7191_v55 = vmax.f32 %v7164_v10, 0.0 }
 0x4fe   :  { %v7159_v18 = vadd.f32 %v7158_v20, %v7024_v52  ;;  %v7189_v53 = vmax.f32 %v7156_v37, 0.0 }
 0x4ff   :  { %v7192_v30 = vmax.f32 %v7167_v60, 0.0 }
 0x500   :  { %v7190_v26 = vmax.f32 %v7159_v18, 0.0  ;;  %11113 = vmatpush3.bf16.msra.mxu1 %v15541_v33 }
 0x501   :  { %v15552_v46 = vpack.c.bf16 %v7192_v30, %v7191_v55  ;;  %11114 = vmatprep.subr.bf16.mxu1 %v11974_v62 }
 0x502   :  { %v15555_v0 = vpack.c.bf16 %v7190_v26, %v7189_v53  ;;  %v11092_v5 = vpop.f32.mrb[128].mxu1  ;;  %v9357_v26 = vld [vmem:[%s15745_s5 + $0x10] sm:$0x7] }
 0x503   :  { %v7180_v58 = vadd.f32 %v11092_v5, %v7049_v48  ;;  %7217 = vrot.lane.b32.xlu1 %v15552_v46, %s11975_s3  ;;  %v7171_v31 = vpop.f32.mrb[129].mxu1 }
 0x504   :  { %v7172_v6 = vadd.f32 %v7171_v31, %v7039_v34  ;;  %v11093_v8 = vpop.f32.mrb[130].mxu1  ;;  %7215 = vrot.lane.b32.xlu0 %v15555_v0, %s11975_s3  ;;  %11115 = vmatpush3.bf16.msra.mxu1 %v15555_v0  ;;  %v9359_v31 = vld [vmem:[%s15745_s5 + $0x14] sm:$0x7] }
 0x505   :  { %v7195_v9 = vmax.f32 %v7180_v58, 0.0  ;;  %v7174_v43 = vpop.f32.mrb[131].mxu1  ;;  %11116 = vmatprep.subr.bf16.mxu1 %v11974_v62 }
 0x506   :  { %v7175_v15 = vadd.f32 %v7174_v43, %v7044_v57  ;;  %v7193_v61 = vmax.f32 %v7172_v6, 0.0 }
 0x507   :  { %v7201_v51 = vpack.c.bf16 %v7195_v9, %v7195_v9 }
 0x508   :  { %v7194_v27 = vmax.f32 %v7175_v15, 0.0  ;;  %11117 = vmatpush3.bf16.msra.mxu1 %v15552_v46 }
 0x509   :  { %7221 = vrot.lane.b32.xlu1 %v7201_v51, %s11975_s3  ;;  %11118 = vmatprep.subr.bf16.mxu1 %v11974_v62  ;;  %v7278_v29 = vand.u32 %v7201_v51, %v15516_v41 }
 0x50a   :  { %v7200_v59 = vpack.c.bf16 %v7194_v27, %v7193_v61  ;;  %v9361_v27 = vld [vmem:[%s15745_s5 + $0x18] sm:$0x7] }
 0x50c   :  { %7219 = vrot.lane.b32.xlu0 %v7200_v59, %s11975_s3  ;;  %11119 = vmatpush3.bf16.msra.mxu1 %v7200_v59 }
 0x50d   :  { %7324 = vrot.lane.b32.xlu1 %v15541_v33, %s11977_s30  ;;  %11120 = vmatprep.subr.bf16.mxu1 %v11974_v62 }
 0x510   :  { %7322 = vrot.lane.b32.xlu0 %v15543_v35, %s11977_s30  ;;  %11121 = vmatpush3.bf16.msra.mxu1 %v7278_v29 }
 0x511   :  { %7328 = vrot.lane.b32.xlu1 %v15552_v46, %s11977_s30  ;;  %11142 = vmatprep.subr.bf16.mxu1 %v11974_v62 }
 0x513   :  { %11123 = vmatmul.mubr.msk.bf16.vlgmr.msra.gmra.mrb[132].mxu1 %vm7079_vm1, %v7202_v17 }
 0x514   :  { %7326 = vrot.lane.b32.xlu0 %v15555_v0, %s11977_s30  ;;  %11154 = vmatprep.mubr.msk.bf16.mxu1 %vm11976_vm4, %v11974_v62 }
 0x515   :  { %7332 = vrot.lane.b32.xlu1 %v7201_v51, %s11977_s30 }
 0x518   :  { %7330 = vrot.lane.b32.xlu0 %v7200_v59, %s11977_s30 }
 0x519   :  { %7454 = vrot.lane.b32.xlu1 %v15543_v35, %s11978_s14 }
 0x51c   :  { %7388 = vrot.lane.b32.xlu0 %v15543_v35, %s11979_s15 }
 0x51d   :  { %7456 = vrot.lane.b32.xlu1 %v15541_v33, %s11978_s14 }
 0x520   :  { %7390 = vrot.lane.b32.xlu0 %v15541_v33, %s11979_s15 }
 0x521   :  { %7458 = vrot.lane.b32.xlu1 %v15555_v0, %s11978_s14 }
 0x524   :  { %7392 = vrot.lane.b32.xlu0 %v15555_v0, %s11979_s15 }
 0x525   :  { %7460 = vrot.lane.b32.xlu1 %v15552_v46, %s11978_s14 }
 0x528   :  { %7394 = vrot.lane.b32.xlu0 %v15552_v46, %s11979_s15 }
 0x529   :  { %7398 = vrot.lane.b32.xlu1 %v7201_v51, %s11979_s15 }
 0x52c   :  { %7396 = vrot.lane.b32.xlu0 %v7200_v59, %s11979_s15 }
 0x52d   :  { %7464 = vrot.lane.b32.xlu1 %v7201_v51, %s11978_s14 }
 0x530   :  { %7462 = vrot.lane.b32.xlu0 %v7200_v59, %s11978_s14 }
 0x531   :  { %7586 = vrot.lane.b32.xlu1 %v15543_v35, %s11980_s16 }
 0x534   :  { %7520 = vrot.lane.b32.xlu0 %v15543_v35, %s11981_s17 }
 0x535   :  { %7588 = vrot.lane.b32.xlu1 %v15541_v33, %s11980_s16 }
 0x538   :  { %7522 = vrot.lane.b32.xlu0 %v15541_v33, %s11981_s17 }
 0x539   :  { %7590 = vrot.lane.b32.xlu1 %v15555_v0, %s11980_s16 }
 0x53c   :  { %7524 = vrot.lane.b32.xlu0 %v15555_v0, %s11981_s17 }
 0x53d   :  { %7592 = vrot.lane.b32.xlu1 %v15552_v46, %s11980_s16 }
 0x540   :  { %7526 = vrot.lane.b32.xlu0 %v15552_v46, %s11981_s17 }
 0x541   :  { %7530 = vrot.lane.b32.xlu1 %v7201_v51, %s11981_s17 }
 0x544   :  { %7528 = vrot.lane.b32.xlu0 %v7200_v59, %s11981_s17 }
 0x545   :  { %7596 = vrot.lane.b32.xlu1 %v7201_v51, %s11980_s16 }
 0x548   :  { %7594 = vrot.lane.b32.xlu0 %v7200_v59, %s11980_s16 }
 0x549   :  { %7718 = vrot.lane.b32.xlu1 %v15543_v35, %s11982_s18 }
 0x54c   :  { %7652 = vrot.lane.b32.xlu0 %v15543_v35, %s11983_s19 }
 0x54d   :  { %7720 = vrot.lane.b32.xlu1 %v15541_v33, %s11982_s18 }
 0x550   :  { %7654 = vrot.lane.b32.xlu0 %v15541_v33, %s11983_s19 }
 0x551   :  { %7722 = vrot.lane.b32.xlu1 %v15555_v0, %s11982_s18 }
 0x554   :  { %7656 = vrot.lane.b32.xlu0 %v15555_v0, %s11983_s19 }
 0x555   :  { %7724 = vrot.lane.b32.xlu1 %v15552_v46, %s11982_s18 }
 0x558   :  { %7658 = vrot.lane.b32.xlu0 %v15552_v46, %s11983_s19 }
 0x559   :  { %7662 = vrot.lane.b32.xlu1 %v7201_v51, %s11983_s19 }
 0x55c   :  { %7660 = vrot.lane.b32.xlu0 %v7200_v59, %s11983_s19 }
 0x55d   :  { %7728 = vrot.lane.b32.xlu1 %v7201_v51, %s11982_s18 }
 0x560   :  { %7726 = vrot.lane.b32.xlu0 %v7200_v59, %s11982_s18 }
 0x561   :  { %7798 = vperm.xlu1 %11278, %v7795_v14   ;;  %v9363_v14 = vld [vmem:[%s15745_s5 + $0x1c] sm:$0x7] }
 0x564   :  { %7785 = vperm.xlu0 %11277, %v7782_v25  }
 0x568   :  { %7888 = vperm.xlu0 %11277, %v7885_v50  }
 0x56d   :  { %v7214_v12 = vpop.permute.xlu1 %7213 }
 0x56e   :  { %v7212_v28 = vpop.permute.xlu0 %7211 }
 0x56f   :  { %11095 = vmatpush3.bf16.msra.mxu0 %v7212_v28 }
 0x570   :  { %11096 = vmatprep.subr.bf16.mxu0 %v11974_v62 }
 0x573   :  { %11097 = vmatpush3.bf16.msra.mxu0 %v7214_v12  ;;  %v9365_v12 = vld [vmem:[%s15745_s5 + $0x20] sm:$0x7] }
 0x574   :  { %11098 = vmatprep.subr.bf16.mxu0 %v11974_v62 }
 0x575   :  { %v7218_v21 = vpop.permute.xlu1 %7217 }
 0x576   :  { %v7216_v13 = vpop.permute.xlu0 %7215 }
 0x577   :  { %11099 = vmatpush3.bf16.msra.mxu0 %v7216_v13 }
 0x578   :  { %11100 = vmatprep.subr.bf16.mxu0 %v11974_v62 }
 0x57b   :  { %v7222_v44 = vpop.permute.xlu1 %7221  ;;  %11101 = vmatpush3.bf16.msra.mxu0 %v7218_v21 }
 0x57c   :  { %11102 = vmatprep.subr.bf16.mxu0 %v11974_v62  ;;  %v7232_v7 = vand.u32 %v7222_v44, %v15516_v41 }
 0x57e   :  { %v7220_v38 = vpop.permute.xlu0 %7219 }
 0x57f   :  { %v7325_v54 = vpop.permute.xlu1 %7324  ;;  %11103 = vmatpush3.bf16.msra.mxu0 %v7220_v38 }
 0x580   :  { %11104 = vmatprep.subr.bf16.mxu0 %v11974_v62 }
 0x582   :  { %v7323_v16 = vpop.permute.xlu0 %7322 }
 0x583   :  { %v7329_v63 = vpop.permute.xlu1 %7328  ;;  %11105 = vmatpush3.bf16.msra.mxu0 %v7232_v7 }
 0x584   :  { %11126 = vmatprep.subr.bf16.mxu0 %v11974_v62 }
 0x586   :  { %v7327_v42 = vpop.permute.xlu0 %7326  ;;  %11107 = vmatmul.mubr.msk.bf16.vlgmr.msra.gmra.mrb[124].mxu0 %vm7079_vm1, %v9350_v3 }
 0x587   :  { %v7333_v45 = vpop.permute.xlu1 %7332  ;;  %11127 = vmatpush3.bf16.msra.mxu0 %v7323_v16  ;;  %11138 = vmatprep.mubr.msk.bf16.mxu0 %vm11976_vm4, %v11974_v62 }
 0x588   :  { %11128 = vmatprep.subr.bf16.mxu0 %v11974_v62  ;;  %v7343_v32 = vand.u32 %v7333_v45, %v15516_v41 }
 0x58a   :  { %v7331_v36 = vpop.permute.xlu0 %7330 }
 0x58b   :  { %v7455_v23 = vpop.permute.xlu1 %7454  ;;  %11129 = vmatpush3.bf16.msra.mxu0 %v7325_v54 }
 0x58c   :  { %11130 = vmatprep.subr.bf16.mxu0 %v11974_v62 }
 0x58e   :  { %v7389_v24 = vpop.permute.xlu0 %7388 }
 0x58f   :  { %v7457_v52 = vpop.permute.xlu1 %7456  ;;  %11131 = vmatpush3.bf16.msra.mxu0 %v7327_v42  ;;  %11143 = vmatpush3.bf16.msra.mxu1 %v7389_v24 }
 0x590   :  { %11132 = vmatprep.subr.bf16.mxu0 %v11974_v62  ;;  %11144 = vmatprep.subr.bf16.mxu1 %v11974_v62 }
 0x592   :  { %v7391_v4 = vpop.permute.xlu0 %7390 }
 0x593   :  { %v7459_v47 = vpop.permute.xlu1 %7458  ;;  %11133 = vmatpush3.bf16.msra.mxu0 %v7329_v63  ;;  %11145 = vmatpush3.bf16.msra.mxu1 %v7391_v4 }
 0x594   :  { %11134 = vmatprep.subr.bf16.mxu0 %v11974_v62  ;;  %11146 = vmatprep.subr.bf16.mxu1 %v11974_v62 }
 0x596   :  { %v7393_v22 = vpop.permute.xlu0 %7392 }
 0x597   :  { %v7461_v2 = vpop.permute.xlu1 %7460  ;;  %11135 = vmatpush3.bf16.msra.mxu0 %v7331_v36  ;;  %11147 = vmatpush3.bf16.msra.mxu1 %v7393_v22 }
 0x598   :  { %11136 = vmatprep.subr.bf16.mxu0 %v11974_v62  ;;  %11148 = vmatprep.subr.bf16.mxu1 %v11974_v62 }
 0x59a   :  { %v7395_v40 = vpop.permute.xlu0 %7394 }
 0x59b   :  { %v7399_v11 = vpop.permute.xlu1 %7398  ;;  %11137 = vmatpush3.bf16.msra.mxu0 %v7343_v32  ;;  %11149 = vmatpush3.bf16.msra.mxu1 %v7395_v40 }
 0x59c   :  { %11158 = vmatprep.subr.bf16.mxu0 %v11974_v62  ;;  %11150 = vmatprep.subr.bf16.mxu1 %v11974_v62  ;;  %v7409_v19 = vand.u32 %v7399_v11, %v15516_v41 }
 0x59e   :  { %11139 = vmatmul.mubr.msk.bf16.vlgmr.msra.gmra.mrb[128].mxu0 %vm7079_vm1, %v9353_v49  ;;  %v7397_v33 = vpop.permute.xlu0 %7396 }
 0x59f   :  { %v7465_v35 = vpop.permute.xlu1 %7464  ;;  %11151 = vmatpush3.bf16.msra.mxu1 %v7397_v33  ;;  %11159 = vmatpush3.bf16.msra.mxu0 %v7455_v23 }
 0x5a0   :  { %11160 = vmatprep.subr.bf16.mxu0 %v11974_v62  ;;  %11152 = vmatprep.subr.bf16.mxu1 %v11974_v62  ;;  %v7475_v55 = vand.u32 %v7465_v35, %v15516_v41 }
 0x5a1   :  { %11170 = vmatprep.mubr.msk.bf16.mxu0 %vm11976_vm4, %v11974_v62 }
 0x5a2   :  { %v7463_v1 = vpop.permute.xlu0 %7462 }
 0x5a3   :  { %v7587_v10 = vpop.permute.xlu1 %7586  ;;  %11153 = vmatpush3.bf16.msra.mxu1 %v7409_v19  ;;  %11161 = vmatpush3.bf16.msra.mxu0 %v7457_v52 }
 0x5a4   :  { %11162 = vmatprep.subr.bf16.mxu0 %v11974_v62  ;;  %11174 = vmatprep.subr.bf16.mxu1 %v11974_v62 }
 0x5a6   :  { %v7521_v34 = vpop.permute.xlu0 %7520  ;;  %11155 = vmatmul.mubr.msk.bf16.vlgmr.msra.gmra.mrb[136].mxu1 %vm7079_vm1, %v9355_v56 }
 0x5a7   :  { %v7589_v37 = vpop.permute.xlu1 %7588  ;;  %11163 = vmatpush3.bf16.msra.mxu0 %v7459_v47  ;;  %11175 = vmatpush3.bf16.msra.mxu1 %v7521_v34 }
 0x5a8   :  { %11164 = vmatprep.subr.bf16.mxu0 %v11974_v62  ;;  %11176 = vmatprep.subr.bf16.mxu1 %v11974_v62 }
 0x5a9   :  { %11186 = vmatprep.mubr.msk.bf16.mxu1 %vm11976_vm4, %v11974_v62 }
 0x5aa   :  { %v7523_v39 = vpop.permute.xlu0 %7522 }
 0x5ab   :  { %v7591_v60 = vpop.permute.xlu1 %7590  ;;  %11165 = vmatpush3.bf16.msra.mxu0 %v7461_v2  ;;  %11177 = vmatpush3.bf16.msra.mxu1 %v7523_v39 }
 0x5ac   :  { %11166 = vmatprep.subr.bf16.mxu0 %v11974_v62  ;;  %11178 = vmatprep.subr.bf16.mxu1 %v11974_v62 }
 0x5ae   :  { %v7525_v20 = vpop.permute.xlu0 %7524 }
 0x5af   :  { %v7593_v18 = vpop.permute.xlu1 %7592  ;;  %11167 = vmatpush3.bf16.msra.mxu0 %v7463_v1  ;;  %11179 = vmatpush3.bf16.msra.mxu1 %v7525_v20 }
 0x5b0   :  { %11168 = vmatprep.subr.bf16.mxu0 %v11974_v62  ;;  %11180 = vmatprep.subr.bf16.mxu1 %v11974_v62 }
 0x5b2   :  { %v7527_v30 = vpop.permute.xlu0 %7526 }
 0x5b3   :  { %v7531_v53 = vpop.permute.xlu1 %7530  ;;  %11169 = vmatpush3.bf16.msra.mxu0 %v7475_v55  ;;  %11181 = vmatpush3.bf16.msra.mxu1 %v7527_v30 }
 0x5b4   :  { %11190 = vmatprep.subr.bf16.mxu0 %v11974_v62  ;;  %11182 = vmatprep.subr.bf16.mxu1 %v11974_v62  ;;  %v7541_v0 = vand.u32 %v7531_v53, %v15516_v41 }
 0x5b6   :  { %11171 = vmatmul.mubr.msk.bf16.vlgmr.msra.gmra.mrb[132].mxu0 %vm7079_vm1, %v9357_v26  ;;  %v7529_v46 = vpop.permute.xlu0 %7528 }
 0x5b7   :  { %v7597_v48 = vpop.permute.xlu1 %7596  ;;  %11183 = vmatpush3.bf16.msra.mxu1 %v7529_v46  ;;  %11191 = vmatpush3.bf16.msra.mxu0 %v7587_v10 }
 0x5b8   :  { %11192 = vmatprep.subr.bf16.mxu0 %v11974_v62  ;;  %11184 = vmatprep.subr.bf16.mxu1 %v11974_v62  ;;  %v7607_v51 = vand.u32 %v7597_v48, %v15516_v41 }
 0x5b9   :  { %11202 = vmatprep.mubr.msk.bf16.mxu0 %vm11976_vm4, %v11974_v62 }
 0x5ba   :  { %v7595_v5 = vpop.permute.xlu0 %7594 }
 0x5bb   :  { %v7719_v58 = vpop.permute.xlu1 %7718  ;;  %11185 = vmatpush3.bf16.msra.mxu1 %v7541_v0  ;;  %11193 = vmatpush3.bf16.msra.mxu0 %v7589_v37 }
 0x5bc   :  { %11194 = vmatprep.subr.bf16.mxu0 %v11974_v62  ;;  %11206 = vmatprep.subr.bf16.mxu1 %v11974_v62 }
 0x5be   :  { %v7653_v6 = vpop.permute.xlu0 %7652  ;;  %11187 = vmatmul.mubr.msk.bf16.vlgmr.msra.gmra.mrb[140].mxu1 %vm7079_vm1, %v9359_v31 }
 0x5bf   :  { %v7721_v8 = vpop.permute.xlu1 %7720  ;;  %11195 = vmatpush3.bf16.msra.mxu0 %v7591_v60  ;;  %11207 = vmatpush3.bf16.msra.mxu1 %v7653_v6 }
 0x5c0   :  { %11196 = vmatprep.subr.bf16.mxu0 %v11974_v62  ;;  %11208 = vmatprep.subr.bf16.mxu1 %v11974_v62 }
 0x5c1   :  { %11218 = vmatprep.mubr.msk.bf16.mxu1 %vm11976_vm4, %v11974_v62 }
 0x5c2   :  { %v7655_v57 = vpop.permute.xlu0 %7654 }
 0x5c3   :  { %v7723_v9 = vpop.permute.xlu1 %7722  ;;  %11197 = vmatpush3.bf16.msra.mxu0 %v7593_v18  ;;  %11209 = vmatpush3.bf16.msra.mxu1 %v7655_v57 }
 0x5c4   :  { %11198 = vmatprep.subr.bf16.mxu0 %v11974_v62  ;;  %11210 = vmatprep.subr.bf16.mxu1 %v11974_v62 }
 0x5c6   :  { %v7657_v43 = vpop.permute.xlu0 %7656 }
 0x5c7   :  { %11199 = vmatpush3.bf16.msra.mxu0 %v7595_v5  ;;  %11211 = vmatpush3.bf16.msra.mxu1 %v7657_v43  ;;  %v7725_v15 = vpop.permute.xlu1 %7724  ;;  %v7794_v43 = vld [vmem:[%s15747_s7] sm:$0x1f] }
 0x5c8   :  { %11200 = vmatprep.subr.bf16.mxu0 %v11974_v62  ;;  %11212 = vmatprep.subr.bf16.mxu1 %v11974_v62 }
 0x5ca   :  { %v7659_v61 = vpop.permute.xlu0 %7658 }
 0x5cb   :  { %11201 = vmatpush3.bf16.msra.mxu0 %v7607_v51  ;;  %11213 = vmatpush3.bf16.msra.mxu1 %v7659_v61  ;;  %v7663_v59 = vpop.permute.xlu1 %7662 }
 0x5cc   :  { %11222 = vmatprep.subr.bf16.mxu0 %v11974_v62  ;;  %11214 = vmatprep.subr.bf16.mxu1 %v11974_v62  ;;  %v7673_v17 = vand.u32 %v7663_v59, %v15516_v41 }
 0x5ce   :  { %11203 = vmatmul.mubr.msk.bf16.vlgmr.msra.gmra.mrb[136].mxu0 %vm7079_vm1, %v9361_v27  ;;  %v7661_v29 = vpop.permute.xlu0 %7660 }
 0x5cf   :  { %11215 = vmatpush3.bf16.msra.mxu1 %v7661_v29  ;;  %11223 = vmatpush3.bf16.msra.mxu0 %v7719_v58  ;;  %v7729_v25 = vpop.permute.xlu1 %7728 }
 0x5d0   :  { %11224 = vmatprep.subr.bf16.mxu0 %v11974_v62  ;;  %11216 = vmatprep.subr.bf16.mxu1 %v11974_v62  ;;  %v7739_v28 = vand.u32 %v7729_v25, %v15516_v41 }
 0x5d1   :  { %11234 = vmatprep.mubr.msk.bf16.mxu0 %vm11976_vm4, %v11974_v62 }
 0x5d2   :  { %v7727_v50 = vpop.permute.xlu0 %7726 }
 0x5d3   :  { %11217 = vmatpush3.bf16.msra.mxu1 %v7673_v17  ;;  %11225 = vmatpush3.bf16.msra.mxu0 %v7721_v8 }
 0x5d4   :  { %11226 = vmatprep.subr.bf16.mxu0 %v11974_v62  ;;  %11238 = vmatprep.subr.mxu1 %v11974_v62 }
 0x5d6   :  { %11219 = vmatmul.mubr.msk.bf16.vlgmr.msra.gmra.mrb[144].mxu1 %vm7079_vm1, %v9363_v14 }
 0x5d7   :  { %11227 = vmatpush3.bf16.msra.mxu0 %v7723_v9  ;;  %11240 = vmatprep.mubr.msk.f32.mxu1 %vm11976_vm4, %v11974_v62 }
 0x5d8   :  { %11228 = vmatprep.subr.bf16.mxu0 %v11974_v62 }
 0x5db   :  { %11229 = vmatpush3.bf16.msra.mxu0 %v7725_v15 }
 0x5dc   :  { %11230 = vmatprep.subr.bf16.mxu0 %v11974_v62 }
 0x5df   :  { %11231 = vmatpush3.bf16.msra.mxu0 %v7727_v50  ;;  %v7884_v50 = vld [vmem:[%s15749_s9] sm:$0x1]  ;;  %s11984_s9 = smov [#allocation3]  }
 0x5e0   :  { %11232 = vmatprep.subr.bf16.mxu0 %v11974_v62  ;;  %v7799_v51 = vpop.permute.xlu1 %7798  ;;  %s7984_s15 = sshll.u32 %s11984_s9, 4  ;;  %s7985_s15 = int_to_ptr.vmem [resolvable:$true] %s7984_s15 }
 0x5e1   :  { %s11948_s16 = scalar_lea.vmem %s7985_s15, 16  ;;  %s11952_s17 = scalar_lea.vmem %s7985_s15, 32 }
 0x5e2   :  { %p11949_p0 = scmp.ne.s32.totalorder %s7985_s15, %s11948_s16  ;;  %p11953_p1 = scmp.lt.s32.totalorder %s7985_s15, %s7985_s15 }
 0x5e3   :  { %11233 = vmatpush3.bf16.msra.mxu0 %v7739_v28  ;;  %v7786_v0 = vpop.permute.xlu0 %7785  ;;  %p11954_p2 = scmp.lt.s32.totalorder %s11952_s17, %s11948_s16 }
 0x5e5   :  { %p11955_p3 = por %p11954_p2, %p11953_p1 }
 0x5e6   :  { %11235 = vmatmul.mubr.msk.bf16.vlgmr.msra.gmra.mrb[140].mxu0 %vm7079_vm1, %v9365_v12  ;;  %v7314_v13 = vpop.f32.mrb[132].mxu1 }
 0x5e7   :  { %v11124_v21 = vpop.f32.mrb[133].mxu1  ;;  %p11956_p4 = pnand %p11955_p3, %p11949_p0 }
 0x5e8   :  { %v7317_v44 = vpop.f32.mrb[134].mxu1  ;;  %v7889_v21 = vpop.permute.xlu0 %7888 }
 0x5e9   :  { %v11125_v38 = vpop.f32.mrb[135].mxu1 }
 0x659   :  { %v7268_v54 = vpop.f32.mrb[124].mxu0 }
 0x65a   :  { %v11108_v7 = vpop.f32.mrb[125].mxu0  ;;  %v7315_v16 = vadd.f32 %v7314_v13, %v7268_v54 }
 0x65b   :  { %v7271_v63 = vpop.f32.mrb[126].mxu0 }
 0x65c   :  { %v11109_v3 = vpop.f32.mrb[127].mxu0 }
 0x671   :  { %v7379_v42 = vpop.f32.mrb[128].mxu0 }
 0x672   :  { %v7385_v45 = vadd.f32 %v7379_v42, %v7315_v16  ;;  %v11140_v36 = vpop.f32.mrb[129].mxu0 }
 0x673   :  { %v7382_v41 = vpop.f32.mrb[130].mxu0 }
 0x674   :  { %v11141_v23 = vpop.f32.mrb[131].mxu0 }
 0x679   :  { %v7445_v24 = vpop.f32.mrb[136].mxu1 }
 0x67a   :  { %v7451_v52 = vadd.f32 %v7445_v24, %v7385_v45  ;;  %v11156_v4 = vpop.f32.mrb[137].mxu1 }
 0x67b   :  { %v7448_v47 = vpop.f32.mrb[138].mxu1 }
 0x67c   :  { %v11157_v22 = vpop.f32.mrb[139].mxu1 }
 0x689   :  { %v7511_v2 = vpop.f32.mrb[132].mxu0 }
 0x68a   :  { %v7517_v32 = vadd.f32 %v7511_v2, %v7451_v52  ;;  %v11172_v40 = vpop.f32.mrb[133].mxu0 }
 0x68b   :  { %v7514_v11 = vpop.f32.mrb[134].mxu0 }
 0x68c   :  { %v11173_v49 = vpop.f32.mrb[135].mxu0 }
 0x691   :  { %v7577_v33 = vpop.f32.mrb[140].mxu1 }
 0x692   :  { %v7583_v35 = vadd.f32 %v7577_v33, %v7517_v32  ;;  %v11188_v19 = vpop.f32.mrb[141].mxu1 }
 0x693   :  { %v7580_v1 = vpop.f32.mrb[142].mxu1 }
 0x694   :  { %v11189_v10 = vpop.f32.mrb[143].mxu1 }
 0x6a1   :  { %v7643_v56 = vpop.f32.mrb[136].mxu0 }
 0x6a2   :  { %v7649_v34 = vadd.f32 %v7643_v56, %v7583_v35  ;;  %v11204_v37 = vpop.f32.mrb[137].mxu0 }
 0x6a3   :  { %v7646_v39 = vpop.f32.mrb[138].mxu0 }
 0x6a4   :  { %v11205_v60 = vpop.f32.mrb[139].mxu0 }
 0x6a9   :  { %v7709_v20 = vpop.f32.mrb[144].mxu1 }
 0x6aa   :  { %v7715_v18 = vadd.f32 %v7709_v20, %v7649_v34  ;;  %v11220_v55 = vpop.f32.mrb[145].mxu1 }
 0x6ab   :  { %v7712_v30 = vpop.f32.mrb[146].mxu1 }
 0x6ac   :  { %v11221_v53 = vpop.f32.mrb[147].mxu1 }
 0x6b9   :  { %v7775_v26 = vpop.f32.mrb[140].mxu0 }
 0x6ba   :  { %v7781_v46 = vadd.f32 %v7775_v26, %v7715_v18  ;;  %v11236_v48 = vpop.f32.mrb[141].mxu0 }
 0x6bb   :  { %v7778_v5 = vpop.f32.mrb[142].mxu0 }
 0x6bc   :  { %v7788_v58 = vadd.f32 %v7786_v0, %v7781_v46  ;;  %v11237_v31 = vpop.f32.mrb[143].mxu0 }
 0x6be   :  { %v7789_v6 = vsub.f32 0.0, %v7788_v58 }
 0x6c0   :  { %v7790_v8 = vmul.f32 1.442695, %v7789_v6 }
 0x6c2   :  { %11792 = vpow2.f32 %v7790_v8 }
 0x6cc   :  { %v11793_v57 = vpop.eup %11792 }
 0x6cd   :  { %v7792_v9 = vadd.f32 1.0, %v11793_v57 }
 0x6cf   :  { %11794 = vrcp.f32 %v7792_v9 }
 0x6d9   :  { %v11795_v15 = vpop.eup %11794 }
 0x6da   :  { %11239 = vmatpush3.msk.msra.mxu1 %vm7805_vm5, %v11795_v15 }
 0x6db   :  { %11241 = vmatmul.mubr.msk.f32.vlgmr.msra.gmra.mrb[148].mxu1 %vm7801_vm6, %v7794_v43  ;;  %11243 = vmatprep.subr.mxu1 %v11974_v62 }
 0x6dc   :  { %11245 = vmatprep.mubr.msk.f32.mxu1 %vm11976_vm4, %v11974_v62  ;;  %v7891_v62 = vlaneseq }
 0x6de   :  { %v7892_v12 = vshrl.u32 %v7891_v62, 7 }
 0x6e0   :  { %v7893_v13 = vsub.s32 0, %v7892_v12 }
 0x6e2   :  { %v7894_v44 = vrot.slane %v7889_v21, %v7893_v13 }
 0x7ae   :  { %v7875_v61 = vpop.f32.mrb[148].mxu1 }
 0x7af   :  { %v7876_v27 = vadd.f32 %v7875_v61, %v7799_v51  ;;  %v11242_v59 = vpop.f32.mrb[149].mxu1 }
 0x7b1   :  { %v7879_v29 = vsub.f32 0.0, %v7876_v27 }
 0x7b3   :  { %v7880_v17 = vmul.f32 1.442695, %v7879_v29 }
 0x7b5   :  { %11796 = vpow2.f32 %v7880_v17 }
 0x7bf   :  { %v11797_v14 = vpop.eup %11796 }
 0x7c0   :  { %v7882_v25 = vadd.f32 1.0, %v11797_v14 }
 0x7c2   :  { %11798 = vrcp.f32 %v7882_v25 }
 0x7cc   :  { %v11799_v28 = vpop.eup %11798 }
 0x7cd   :  { %11244 = vmatpush3.msk.msra.mxu1 %vm7805_vm5, %v11799_v28 }
 0x7ce   :  { %11246 = vmatmul.mubr.msk.f32.vlgmr.msra.gmra.mrb[150].mxu1 %vm7801_vm6, %v7884_v50 }
 0x8a1   :  { %v7967_v38 = vpop.f32.mrb[150].mxu1 }
 0x8a2   :  { %v7968_v54 = vadd.f32 %v7967_v38, %v7894_v44  ;;  %v11247_v7 = vpop.f32.mrb[151].mxu1 }
 0x8a4   :  { %v7971_v16 = vsub.f32 0.0, %v7968_v54 }
 0x8a6   :  { %v7972_v63 = vmul.f32 1.442695, %v7971_v16 }
 0x8a8   :  { %11800 = vpow2.f32 %v7972_v63 }
 0x8b2   :  { %v11801_v3 = vpop.eup %11800 }
 0x8b3   :  { %v7974_v42 = vadd.f32 1.0, %v11801_v3 }
 0x8b5   :  { %11802 = vrcp.f32 %v7974_v42 }
 0x8bf   :  { %v11803_v45 = vpop.eup %11802 }
 0x8c0   :  { %7977 = vst.msk [vmem:[#allocation3] sm:$0x1] %vm7976_vm7, %v11803_v45 }
 0x8c1   :  { %11959 = shalt.err (!%p11956_p4)
}
 0x8c2   :  { %s11960_s20 = scalar_lea.hbm %s15751_s11, 16 }
 0x8c3   :  { %p11961_p5 = scmp.ne.s32.totalorder %s15751_s11, %s11960_s20  ;;  %p11964_p6 = scmp.lt.u32.totalorder %s11960_s20, %s15751_s11 }
 0x8c5   :  { %p11966_p7 = pnand %p11964_p6, %p11961_p5 }
 0x8c7   :  { %11969 = shalt.err (!%p11966_p7)
}
 0x8c8   :  { %7987 = dma.vmem_to_hbm [thread:$0]  %s7985_s15, 16, %s15751_s11, [#allocation4]  }
 0x8c9   :  { %11970 = dma.done.wait [#allocation4], 16  }
 0x8ca   :  { %11971 = vsyncadd [#allocation4], 4294967280 }
 0x8cb   :  { %7991 = vsyncpa [#allocation4], 1 }

</bundles_post_ra>
